<compile_context>
chip_gen: v5e
topology: v5e:2x2
jax: 0.10.0
libtpu: 0.0.40
codegen_flags: <defaults>
</compile_context>

<pallas_src>
import numpy as np
import jax
import jax.numpy as jnp
from jax.experimental import pallas as pl
from jax.experimental.pallas import tpu as pltpu

# ----------------------------- configuration --------------------------------
HIDDEN = 128                 # NSFP filter_size
NUM_LINEAR = 5               # 3->128, 3x(128->128), 128->3 (compact NSFP prior MLP)
NUM_HIDDEN_MM = NUM_LINEAR - 2   # hidden 128->128 MXU layers
TILE_N = 2048                # points per grid step (lane axis; sweepable)
XLANES = 8                   # sublanes carrying xyz (rows 0-2 used, rest zero)
VOXEL_SIZE = (0.2, 0.2, 6.0)
POINT_CLOUD_RANGE = (-10.0, -10.0, -3.0, 10.0, 10.0, 3.0)
SEQUENCE_LENGTH = 2


# ------------------------------ Pallas kernel --------------------------------
def nsfp_mlp_kernel(x_ref, w0t_ref, wht_ref, wot_ref, bh_ref, bo_ref, o_ref):
    """Transposed coordinate-MLP forward for one tile of points.

    x_ref  : [XLANES, TILE_N]                 f32, xyz on sublanes 0-2, rest zero
    w0t_ref: [HIDDEN, XLANES]                 f32, layer-0 weight^T (cols 0-2 used)
    wht_ref: [NUM_HIDDEN_MM, HIDDEN, HIDDEN]  bf16, hidden weights, transposed
    wot_ref: [XLANES, HIDDEN]                 f32, output weight^T (rows 0-2 used)
    bh_ref : [NUM_LINEAR-1, HIDDEN, 1]        f32, biases for layers 0..3
    bo_ref : [XLANES, 1]                      f32, output bias (rows 0-2 used)
    o_ref  : [XLANES, TILE_N]                 f32, flow on sublanes 0-2
    """
    x = x_ref[...]                              # (XLANES, TILE_N) f32
    w0t = w0t_ref[...]                          # (HIDDEN, XLANES) f32

    # Layer 0 (effective K=3) on the VPU: outer-product multiply-adds in f32.
    h = (w0t[:, 0:1] * x[0:1, :]
         + w0t[:, 1:2] * x[1:2, :]
         + w0t[:, 2:3] * x[2:3, :]
         + bh_ref[0])                           # (HIDDEN, TILE_N)
    h = jnp.maximum(h, 0.0)

    # Hidden layers on the MXU: h <- W_l^T @ h, bf16 operands, f32 accumulation.
    for l in range(NUM_HIDDEN_MM):
        h = jnp.dot(wht_ref[l], h.astype(jnp.bfloat16),
                    preferred_element_type=jnp.float32) + bh_ref[l + 1]
        h = jnp.maximum(h, 0.0)

    # Output layer: (XLANES, HIDDEN) @ (HIDDEN, TILE_N) -> (XLANES, TILE_N), M=8.
    flow = jnp.dot(wot_ref[...].astype(jnp.bfloat16), h.astype(jnp.bfloat16),
                   preferred_element_type=jnp.float32) + bo_ref[...]
    o_ref[...] = flow.astype(o_ref.dtype)


def _bucketed_pad(n):
    """Round point count up to a power-of-two multiple of TILE_N (caps recompiles)."""
    n_tiles = max(1, -(-n // TILE_N))
    n_tiles = 1 << (n_tiles - 1).bit_length()
    return n_tiles * TILE_N


def nsfp_flow_pallas(points_xyz, params):
    """Run the NSFP prior MLP on a point cloud.  points_xyz: [N, 3] f32."""
    w0t, wht, wot, bh, bo = params
    n = points_xyz.shape[0]
    if n == 0:
        return jnp.zeros((0, 3), jnp.float32)
    n_pad = _bucketed_pad(n)

    # Lane-major slab: points on lanes, xyz on sublanes 0-2.
    x = jnp.zeros((XLANES, n_pad), jnp.float32)
    x = x.at[:3, :n].set(points_xyz.astype(jnp.float32).T)

    grid = (n_pad // TILE_N,)
    flops = n_pad * (2 * 3 * HIDDEN
                     + 2 * HIDDEN * HIDDEN * NUM_HIDDEN_MM
                     + 2 * HIDDEN * XLANES)
    bytes_accessed = (2 * n_pad * XLANES * 4          # input + output slabs
                      + w0t.size * 4 + wht.size * 2 + wot.size * 4
                      + bh.size * 4 + bo.size * 4)

    out = pl.pallas_call(
        nsfp_mlp_kernel,
        out_shape=jax.ShapeDtypeStruct((XLANES, n_pad), jnp.float32),
        grid_spec=pltpu.PrefetchScalarGridSpec(
            num_scalar_prefetch=0,
            grid=grid,
            in_specs=[
                pl.BlockSpec((XLANES, TILE_N), lambda i: (0, i)),
                pl.BlockSpec((HIDDEN, XLANES), lambda i: (0, 0)),
                pl.BlockSpec((NUM_HIDDEN_MM, HIDDEN, HIDDEN),
                             lambda i: (0, 0, 0)),
                pl.BlockSpec((XLANES, HIDDEN), lambda i: (0, 0)),
                pl.BlockSpec((NUM_LINEAR - 1, HIDDEN, 1), lambda i: (0, 0, 0)),
                pl.BlockSpec((XLANES, 1), lambda i: (0, 0)),
            ],
            out_specs=pl.BlockSpec((XLANES, TILE_N), lambda i: (0, i)),
        ),
        compiler_params=pltpu.CompilerParams(
            dimension_semantics=("parallel",)),
        cost_estimate=pl.CostEstimate(
            flops=int(flops), transcendentals=0,
            bytes_accessed=int(bytes_accessed)),
    )(x, w0t, wht, wot, bh, bo)

    # Padded tail columns hold MLP(0) != 0 garbage; slice them off here.
    return out[:3, :n].T


# --------------------------- parameter construction --------------------------
def init_nsfp_params(key):
    """Deterministic NSFP prior MLP weights, packed in the kernel's layout.

    Returns:
      w0t: [HIDDEN, XLANES]                f32  (layer-0 weight^T, cols 0-2 used)
      wht: [NUM_HIDDEN_MM, HIDDEN, HIDDEN] bf16 (hidden weights, transposed)
      wot: [XLANES, HIDDEN]                f32  (output weight^T, rows 0-2 used)
      bh:  [NUM_LINEAR-1, HIDDEN, 1]       f32  (biases for layers 0..3)
      bo:  [XLANES, 1]                     f32  (output bias, rows 0-2 used)
    """
    dims = [3] + [HIDDEN] * (NUM_LINEAR - 1) + [3]
    w0t = np.zeros((HIDDEN, XLANES), np.float32)
    wht = np.zeros((NUM_HIDDEN_MM, HIDDEN, HIDDEN), np.float32)
    wot = np.zeros((XLANES, HIDDEN), np.float32)
    bh = np.zeros((NUM_LINEAR - 1, HIDDEN, 1), np.float32)
    bo = np.zeros((XLANES, 1), np.float32)

    keys = jax.random.split(key, 2 * NUM_LINEAR)
    for l in range(NUM_LINEAR):
        fan_in, fan_out = dims[l], dims[l + 1]
        w = np.asarray(jax.random.normal(keys[2 * l], (fan_in, fan_out),
                                         jnp.float32)) * (1.0 / np.sqrt(fan_in))
        b = np.asarray(jax.random.normal(keys[2 * l + 1], (fan_out,),
                                         jnp.float32)) * 0.01
        if l == 0:
            w0t[:fan_out, :fan_in] = w.T
            bh[0, :fan_out, 0] = b
        elif l < NUM_LINEAR - 1:
            wht[l - 1] = w.T
            bh[l, :fan_out, 0] = b
        else:
            wot[:fan_out, :fan_in] = w.T
            bo[:fan_out, 0] = b

    return (jnp.asarray(w0t, jnp.float32),
            jnp.asarray(wht, jnp.bfloat16),
            jnp.asarray(wot, jnp.float32),
            jnp.asarray(bh, jnp.float32),
            jnp.asarray(bo, jnp.float32))


def reference_flow(points_xyz, params):
    """Pure-JAX reference with matching (bf16-matmul / f32-accum) precision."""
    w0t, wht, wot, bh, bo = params
    x = points_xyz.astype(jnp.float32)                     # (N, 3)
    w0 = jnp.transpose(w0t[:, :3])                         # (3, HIDDEN)
    b0 = bh[0, :, 0][None, :]                              # (1, HIDDEN)
    h = (x[:, 0:1] * w0[0:1, :]
         + x[:, 1:2] * w0[1:2, :]
         + x[:, 2:3] * w0[2:3, :] + b0)
    h = jnp.maximum(h, 0.0)
    for l in range(NUM_HIDDEN_MM):
        h = jnp.dot(h.astype(jnp.bfloat16), jnp.transpose(wht[l]),
                    preferred_element_type=jnp.float32) + bh[l + 1, :, 0][None, :]
        h = jnp.maximum(h, 0.0)
    flow = jnp.dot(h.astype(jnp.bfloat16),
                   jnp.transpose(wot.astype(jnp.bfloat16)),
                   preferred_element_type=jnp.float32) + bo[:, 0][None, :]
    return flow[:, :3]


# ------------------------------ NSFP "module" --------------------------------
def dynamic_voxelizer_filter(pc):
    """DynamicVoxelizer reduces to a point-cloud-range filter (host-side glue).

    pc: np.ndarray [N, 3] -> (valid_points [M,3], valid_idxes [M])
    """
    xmin, ymin, zmin, xmax, ymax, zmax = POINT_CLOUD_RANGE
    mask = ((pc[:, 0] >= xmin) & (pc[:, 0] < xmax) &
            (pc[:, 1] >= ymin) & (pc[:, 1] < ymax) &
            (pc[:, 2] >= zmin) & (pc[:, 2] < zmax))
    idx = np.where(mask)[0]
    return pc[idx], idx


def nsfp_cached_forward(batched_sequence, params):
    """Mirrors NSFP.forward / NSFPCached.forward output structure.

    batched_sequence['pc_array_stack']: np.ndarray [B, 2, N, 3]
    """
    pc_arrays = batched_sequence["pc_array_stack"]
    assert pc_arrays.shape[1] == SEQUENCE_LENGTH
    pc0s, pc1s = pc_arrays[:, 0], pc_arrays[:, 1]

    pc0_np, pc0_points_lst, pc0_valid_point_idxes = [], [], []
    pc1_points_lst, pc1_valid_point_idxes = [], []
    for b in range(pc_arrays.shape[0]):
        p0, i0 = dynamic_voxelizer_filter(np.asarray(pc0s[b]))
        p1, i1 = dynamic_voxelizer_filter(np.asarray(pc1s[b]))
        pc0_np.append(np.asarray(p0, np.float32))
        pc0_points_lst.append(jnp.asarray(p0, jnp.float32))
        pc0_valid_point_idxes.append(jnp.asarray(i0))
        pc1_points_lst.append(jnp.asarray(p1, jnp.float32))
        pc1_valid_point_idxes.append(jnp.asarray(i1))

    # TODO(synk): per-pair inference-time chamfer optimization & .npz cache have
    # no Pallas equivalent; flow below is the prior-MLP forward.

    # Batch all clouds into ONE pallas_call, then split per cloud.
    lengths = [p.shape[0] for p in pc0_np]
    total = int(np.sum(lengths))
    if total > 0:
        all_pts = jnp.asarray(np.concatenate(pc0_np, axis=0), jnp.float32)
        all_flow = nsfp_flow_pallas(all_pts, params)
    else:
        all_flow = jnp.zeros((0, 3), jnp.float32)

    flows, off = [], 0
    for L in lengths:
        flows.append(all_flow[off:off + L])
        off += L

    return {
        "forward": {
            "flow": flows,
            "batch_delta_time": 0.0,
            "pc0_points_lst": pc0_points_lst,
            "pc0_valid_point_idxes": pc0_valid_point_idxes,
            "pc1_points_lst": pc1_points_lst,
            "pc1_valid_point_idxes": pc1_valid_point_idxes,
        }
    }


# ----------------------------------- main ------------------------------------
if __name__ == "__main__":
    key = jax.random.PRNGKey(0)
    k_params, k_pc = jax.random.split(key)

    # deterministic MLP parameters
    params = init_nsfp_params(k_params)

    # synthetic batched sequence: B=2, seq=2, N=256 points, 3 coords
    B, N = 2, 256
    pts = jax.random.uniform(k_pc, (B, SEQUENCE_LENGTH, N, 3),
                             minval=-12.0, maxval=12.0, dtype=jnp.float32)
    # keep z inside a tighter band like lidar
    pts = pts.at[..., 2].multiply(0.2)
    batched_sequence = {"pc_array_stack": np.asarray(pts)}

    out = nsfp_cached_forward(batched_sequence, params)

    # block and verify against the precision-matched pure-JAX reference
    ok = True
    for flow, pc0 in zip(out["forward"]["flow"], out["forward"]["pc0_points_lst"]):
        flow = jax.block_until_ready(flow)
        ref = reference_flow(pc0, params)
        assert flow.shape == pc0.shape, f"{flow.shape} != {pc0.shape}"
        if not np.allclose(np.asarray(flow), np.asarray(ref),
                           atol=1e-2, rtol=1e-2):
            ok = False

    if ok:
        print("KERNEL_OK")
</pallas_src>

<mosaic_0001>
module attributes {stable_mosaic.version = 11 : i64} {
  func.func @nsfp_mlp_kernel(%arg0: i32, %arg1: memref<8x2048xf32, #tpu.memory_space<vmem>>, %arg2: memref<128x8xf32, #tpu.memory_space<vmem>>, %arg3: memref<3x128x128xbf16, #tpu.memory_space<vmem>>, %arg4: memref<8x128xf32, #tpu.memory_space<vmem>>, %arg5: memref<4x128x1xf32, #tpu.memory_space<vmem>>, %arg6: memref<8x1xf32, #tpu.memory_space<vmem>>, %arg7: memref<8x2048xf32, #tpu.memory_space<vmem>>) attributes {dimension_semantics = [#tpu.dimension_semantics<parallel>], iteration_bounds = array<i64: 1>, scalar_prefetch = 0 : i64, scratch_operands = 0 : i64, tpu.core_type = #tpu.core_type<tc>, window_params = [{transform_indices = @transform_0, window_bounds = array<i64: 8, 2048>}, {pipeline_mode = #tpu.pipeline_mode<synchronous>, transform_indices = @transform_1, window_bounds = array<i64: 128, 8>}, {pipeline_mode = #tpu.pipeline_mode<synchronous>, transform_indices = @transform_2, window_bounds = array<i64: 3, 128, 128>}, {pipeline_mode = #tpu.pipeline_mode<synchronous>, transform_indices = @transform_3, window_bounds = array<i64: 8, 128>}, {pipeline_mode = #tpu.pipeline_mode<synchronous>, transform_indices = @transform_4, window_bounds = array<i64: 4, 128, 1>}, {pipeline_mode = #tpu.pipeline_mode<synchronous>, transform_indices = @transform_5, window_bounds = array<i64: 8, 1>}, {transform_indices = @transform_6, window_bounds = array<i64: 8, 2048>}]} {
    %c0 = arith.constant 0 : index
    %c0_0 = arith.constant 0 : index
    %0 = vector.load %arg1[%c0, %c0_0] : memref<8x2048xf32, #tpu.memory_space<vmem>>, vector<8x2048xf32>
    %c0_1 = arith.constant 0 : index
    %c0_2 = arith.constant 0 : index
    %1 = vector.load %arg2[%c0_1, %c0_2] : memref<128x8xf32, #tpu.memory_space<vmem>>, vector<128x8xf32>
    %2 = vector.extract_strided_slice %1 {offsets = [0, 0], sizes = [128, 1], strides = [1, 1]} : vector<128x8xf32> to vector<128x1xf32>
    %3 = vector.extract_strided_slice %0 {offsets = [0, 0], sizes = [1, 2048], strides = [1, 1]} : vector<8x2048xf32> to vector<1x2048xf32>
    %4 = vector.broadcast %2 : vector<128x1xf32> to vector<128x2048xf32>
    %5 = vector.broadcast %3 : vector<1x2048xf32> to vector<128x2048xf32>
    %6 = arith.mulf %4, %5 : vector<128x2048xf32>
    %7 = vector.extract_strided_slice %1 {offsets = [0, 1], sizes = [128, 1], strides = [1, 1]} : vector<128x8xf32> to vector<128x1xf32>
    %8 = vector.extract_strided_slice %0 {offsets = [1, 0], sizes = [1, 2048], strides = [1, 1]} : vector<8x2048xf32> to vector<1x2048xf32>
    %9 = vector.broadcast %7 : vector<128x1xf32> to vector<128x2048xf32>
    %10 = vector.broadcast %8 : vector<1x2048xf32> to vector<128x2048xf32>
    %11 = arith.mulf %9, %10 : vector<128x2048xf32>
    %12 = arith.addf %6, %11 : vector<128x2048xf32>
    %13 = vector.extract_strided_slice %1 {offsets = [0, 2], sizes = [128, 1], strides = [1, 1]} : vector<128x8xf32> to vector<128x1xf32>
    %14 = vector.extract_strided_slice %0 {offsets = [2, 0], sizes = [1, 2048], strides = [1, 1]} : vector<8x2048xf32> to vector<1x2048xf32>
    %15 = vector.broadcast %13 : vector<128x1xf32> to vector<128x2048xf32>
    %16 = vector.broadcast %14 : vector<1x2048xf32> to vector<128x2048xf32>
    %17 = arith.mulf %15, %16 : vector<128x2048xf32>
    %18 = arith.addf %12, %17 : vector<128x2048xf32>
    %c0_3 = arith.constant 0 : index
    %c0_4 = arith.constant 0 : index
    %c0_5 = arith.constant 0 : index
    %19 = vector.load %arg5[%c0_3, %c0_4, %c0_5] : memref<4x128x1xf32, #tpu.memory_space<vmem>>, vector<1x128x1xf32>
    %20 = vector.shape_cast %19 : vector<1x128x1xf32> to vector<128x1xf32>
    %21 = vector.broadcast %20 : vector<128x1xf32> to vector<128x2048xf32>
    %22 = arith.addf %18, %21 : vector<128x2048xf32>
    %cst = arith.constant 0.000000e+00 : f32
    %23 = vector.broadcast %cst : f32 to vector<128x2048xf32>
    %24 = arith.maximumf %22, %23 : vector<128x2048xf32>
    %c0_6 = arith.constant 0 : index
    %c0_7 = arith.constant 0 : index
    %c0_8 = arith.constant 0 : index
    %25 = vector.load %arg3[%c0_6, %c0_7, %c0_8] : memref<3x128x128xbf16, #tpu.memory_space<vmem>>, vector<1x128x128xbf16>
    %26 = vector.shape_cast %25 : vector<1x128x128xbf16> to vector<128x128xbf16>
    %27 = arith.truncf %24 : vector<128x2048xf32> to vector<128x2048xbf16>
    %cst_9 = arith.constant dense<0.000000e+00> : vector<128x2048xf32>
    %28 = tpu.matmul %26, %27, %cst_9 {dimension_numbers = #tpu.dot_dimension_numbers<[1], [0], [0], [1], [0, 0, 1, 1], [], []>} : vector<128x128xbf16>, vector<128x2048xbf16>, vector<128x2048xf32> -> vector<128x2048xf32>
    %c1 = arith.constant 1 : index
    %c0_10 = arith.constant 0 : index
    %c0_11 = arith.constant 0 : index
    %29 = vector.load %arg5[%c1, %c0_10, %c0_11] : memref<4x128x1xf32, #tpu.memory_space<vmem>>, vector<1x128x1xf32>
    %30 = vector.shape_cast %29 : vector<1x128x1xf32> to vector<128x1xf32>
    %31 = vector.broadcast %30 : vector<128x1xf32> to vector<128x2048xf32>
    %32 = arith.addf %28, %31 : vector<128x2048xf32>
    %cst_12 = arith.constant 0.000000e+00 : f32
    %33 = vector.broadcast %cst_12 : f32 to vector<128x2048xf32>
    %34 = arith.maximumf %32, %33 : vector<128x2048xf32>
    %c1_13 = arith.constant 1 : index
    %c0_14 = arith.constant 0 : index
    %c0_15 = arith.constant 0 : index
    %35 = vector.load %arg3[%c1_13, %c0_14, %c0_15] : memref<3x128x128xbf16, #tpu.memory_space<vmem>>, vector<1x128x128xbf16>
    %36 = vector.shape_cast %35 : vector<1x128x128xbf16> to vector<128x128xbf16>
    %37 = arith.truncf %34 : vector<128x2048xf32> to vector<128x2048xbf16>
    %cst_16 = arith.constant dense<0.000000e+00> : vector<128x2048xf32>
    %38 = tpu.matmul %36, %37, %cst_16 {dimension_numbers = #tpu.dot_dimension_numbers<[1], [0], [0], [1], [0, 0, 1, 1], [], []>} : vector<128x128xbf16>, vector<128x2048xbf16>, vector<128x2048xf32> -> vector<128x2048xf32>
    %c2 = arith.constant 2 : index
    %c0_17 = arith.constant 0 : index
    %c0_18 = arith.constant 0 : index
    %39 = vector.load %arg5[%c2, %c0_17, %c0_18] : memref<4x128x1xf32, #tpu.memory_space<vmem>>, vector<1x128x1xf32>
    %40 = vector.shape_cast %39 : vector<1x128x1xf32> to vector<128x1xf32>
    %41 = vector.broadcast %40 : vector<128x1xf32> to vector<128x2048xf32>
    %42 = arith.addf %38, %41 : vector<128x2048xf32>
    %cst_19 = arith.constant 0.000000e+00 : f32
    %43 = vector.broadcast %cst_19 : f32 to vector<128x2048xf32>
    %44 = arith.maximumf %42, %43 : vector<128x2048xf32>
    %c2_20 = arith.constant 2 : index
    %c0_21 = arith.constant 0 : index
    %c0_22 = arith.constant 0 : index
    %45 = vector.load %arg3[%c2_20, %c0_21, %c0_22] : memref<3x128x128xbf16, #tpu.memory_space<vmem>>, vector<1x128x128xbf16>
    %46 = vector.shape_cast %45 : vector<1x128x128xbf16> to vector<128x128xbf16>
    %47 = arith.truncf %44 : vector<128x2048xf32> to vector<128x2048xbf16>
    %cst_23 = arith.constant dense<0.000000e+00> : vector<128x2048xf32>
    %48 = tpu.matmul %46, %47, %cst_23 {dimension_numbers = #tpu.dot_dimension_numbers<[1], [0], [0], [1], [0, 0, 1, 1], [], []>} : vector<128x128xbf16>, vector<128x2048xbf16>, vector<128x2048xf32> -> vector<128x2048xf32>
    %c3 = arith.constant 3 : index
    %c0_24 = arith.constant 0 : index
    %c0_25 = arith.constant 0 : index
    %49 = vector.load %arg5[%c3, %c0_24, %c0_25] : memref<4x128x1xf32, #tpu.memory_space<vmem>>, vector<1x128x1xf32>
    %50 = vector.shape_cast %49 : vector<1x128x1xf32> to vector<128x1xf32>
    %51 = vector.broadcast %50 : vector<128x1xf32> to vector<128x2048xf32>
    %52 = arith.addf %48, %51 : vector<128x2048xf32>
    %cst_26 = arith.constant 0.000000e+00 : f32
    %53 = vector.broadcast %cst_26 : f32 to vector<128x2048xf32>
    %54 = arith.maximumf %52, %53 : vector<128x2048xf32>
    %c0_27 = arith.constant 0 : index
    %c0_28 = arith.constant 0 : index
    %55 = vector.load %arg4[%c0_27, %c0_28] : memref<8x128xf32, #tpu.memory_space<vmem>>, vector<8x128xf32>
    %56 = arith.truncf %55 : vector<8x128xf32> to vector<8x128xbf16>
    %57 = arith.truncf %54 : vector<128x2048xf32> to vector<128x2048xbf16>
    %cst_29 = arith.constant dense<0.000000e+00> : vector<8x2048xf32>
    %58 = tpu.matmul %56, %57, %cst_29 {dimension_numbers = #tpu.dot_dimension_numbers<[1], [0], [0], [1], [0, 0, 1, 1], [], []>} : vector<8x128xbf16>, vector<128x2048xbf16>, vector<8x2048xf32> -> vector<8x2048xf32>
    %c0_30 = arith.constant 0 : index
    %c0_31 = arith.constant 0 : index
    %59 = vector.load %arg6[%c0_30, %c0_31] : memref<8x1xf32, #tpu.memory_space<vmem>>, vector<8x1xf32>
    %60 = vector.broadcast %59 : vector<8x1xf32> to vector<8x2048xf32>
    %61 = arith.addf %58, %60 : vector<8x2048xf32>
    %c0_32 = arith.constant 0 : index
    %c0_33 = arith.constant 0 : index
    %62 = vector.load %arg7[%c0_32, %c0_33] : memref<8x2048xf32, #tpu.memory_space<vmem>>, vector<8x2048xf32>
    tpu.vector_store %arg7[%c0_32, %c0_33], %61 {strides = array<i32>} : memref<8x2048xf32, #tpu.memory_space<vmem>>, vector<8x2048xf32>,
    return
  }
  func.func @transform_0(%arg0: i32) -> (i32, i32) {
    %c0_i32 = arith.constant 0 : i32
    %c0_i32_0 = arith.constant 0 : i32
    return %c0_i32, %arg0 : i32, i32
  }
  func.func @transform_1(%arg0: i32) -> (i32, i32) {
    %c0_i32 = arith.constant 0 : i32
    %c0_i32_0 = arith.constant 0 : i32
    %c0_i32_1 = arith.constant 0 : i32
    return %c0_i32, %c0_i32_0 : i32, i32
  }
  func.func @transform_2(%arg0: i32) -> (i32, i32, i32) {
    %c0_i32 = arith.constant 0 : i32
    %c0_i32_0 = arith.constant 0 : i32
    %c0_i32_1 = arith.constant 0 : i32
    %c0_i32_2 = arith.constant 0 : i32
    return %c0_i32, %c0_i32_0, %c0_i32_1 : i32, i32, i32
  }
  func.func @transform_3(%arg0: i32) -> (i32, i32) {
    %c0_i32 = arith.constant 0 : i32
    %c0_i32_0 = arith.constant 0 : i32
    %c0_i32_1 = arith.constant 0 : i32
    return %c0_i32, %c0_i32_0 : i32, i32
  }
  func.func @transform_4(%arg0: i32) -> (i32, i32, i32) {
    %c0_i32 = arith.constant 0 : i32
    %c0_i32_0 = arith.constant 0 : i32
    %c0_i32_1 = arith.constant 0 : i32
    %c0_i32_2 = arith.constant 0 : i32
    return %c0_i32, %c0_i32_0, %c0_i32_1 : i32, i32, i32
  }
  func.func @transform_5(%arg0: i32) -> (i32, i32) {
    %c0_i32 = arith.constant 0 : i32
    %c0_i32_0 = arith.constant 0 : i32
    %c0_i32_1 = arith.constant 0 : i32
    return %c0_i32, %c0_i32_0 : i32, i32
  }
  func.func @transform_6(%arg0: i32) -> (i32, i32) {
    %c0_i32 = arith.constant 0 : i32
    %c0_i32_0 = arith.constant 0 : i32
    return %c0_i32, %arg0 : i32, i32
  }
}

</mosaic_0001>

<bundles_post_ra>
// kernel: tpu_custom_call.1
= control target key start
LH: loop header
LB: loop body
LE: loop exit
PB: predicated region body
PF: predicated region fallthrough
CT: control target
= control target key end

     0   :  { %v15287_v2 = vmov 2   ;;  %v15289_v3 = vmov 1   ;;  %s15280_s0 = inlined_call_operand.vmem [shape: f32[8,2048], index: 0, kind: input, shape index: {}]   ;;  %s15281_s1 = inlined_call_operand.vmem [shape: f32[128,8], index: 1, kind: input, shape index: {}]   ;;  %s15282_s2 = inlined_call_operand.vmem [shape: bf16[3,128,128], index: 2, kind: input, shape index: {}]   ;;  %s15283_s3 = inlined_call_operand.vmem [shape: f32[8,128], index: 3, kind: input, shape index: {}]   ;;  %s15284_s4 = inlined_call_operand.vmem [shape: f32[4,128,1], index: 4, kind: input, shape index: {}]   ;;  %s15285_s5 = inlined_call_operand.vmem [shape: f32[8,1], index: 5, kind: input, shape index: {}]   ;;  %s15286_s6 = inlined_call_operand.hbm [shape: f32[8,2048], index: 6, kind: output, shape index: {}]  }
   0x1   :  { %v54_v0 = vld [vmem:[%s15281_s1 + $0x70] sm:$0xff]  ;;  %v53_v1 = vld [vmem:[%s15281_s1 + $0x68] sm:$0xff]  ;;  %6770 = vset.pattern.permute.xlu2 %v15287_v2  ;;  %6773 = vset.pattern.permute.xlu0 %v15289_v3 }
   0x2   :  { %6769 = vset.pattern.permute.xlu1 %v15289_v3  ;;  %1057 = vperm.xlu2 %6770, %v54_v0  }
   0x3   :  { %11 = vsyncpa [#allocation3], 0  ;;  %465 = vperm.xlu1 %6769, %v54_v0   ;;  %461 = vperm.xlu0 %6773, %v53_v1   ;;  %v55_v4 = vld [vmem:[%s15281_s1 + $0x78] sm:$0xff]  ;;  %v48_v5 = vld [vmem:[%s15281_s1 + $0x40] sm:$0xff]  ;;  %v15291_v8 = vmov 0   ;;  %s6556_s20 = sshll.u32 %s15286_s6, 4  ;;  %s6557_s20 = int_to_ptr.hbm [resolvable:$true] %s6556_s20 }
   0x4   :  { %v52_v6 = vld [vmem:[%s15281_s1 + $0x60] sm:$0xff]  ;;  %v51_v7 = vld [vmem:[%s15281_s1 + $0x58] sm:$0xff]  ;;  %v46_v9 = vld [vmem:[%s15281_s1 + $0x30] sm:$0xff] }
   0x5   :  { %v6941_v10 = vld [vmem:[%s15281_s1 + $0x10] sm:$0xff]  ;;  %v1607_v12 = vld [vmem:[%s15284_s4 + $0x78] sm:$0xff]  ;;  %v1604_v14 = vld [vmem:[%s15284_s4 + $0x60] sm:$0xff] }
   0x6   :  { %v1606_v11 = vld [vmem:[%s15284_s4 + $0x70] sm:$0xff]  ;;  %v1605_v15 = vld [vmem:[%s15284_s4 + $0x68] sm:$0xff]  ;;  %v1603_v17 = vld [vmem:[%s15284_s4 + $0x58] sm:$0xff] }
   0x7   :  { %v50_v13 = vld [vmem:[%s15281_s1 + $0x50] sm:$0xff]  ;;  %v49_v16 = vld [vmem:[%s15281_s1 + $0x48] sm:$0xff]  ;;  %v47_v22 = vld [vmem:[%s15281_s1 + $0x38] sm:$0xff] }
   0x8   :  { %v6978_v18 = vld [vmem:[%s15281_s1 + $0x28] sm:$0xff]  ;;  %v1602_v19 = vld [vmem:[%s15284_s4 + $0x50] sm:$0xff]  ;;  %v6998_v23 = vld [vmem:[%s15281_s1 + $0x18] sm:$0xff] }
   0x9   :  { %v1598_v20 = vld [vmem:[%s15284_s4 + $0x30] sm:$0xff]  ;;  %v7007_v25 = vld [vmem:[%s15281_s1 + $0x8] sm:$0xff]  ;;  %v1600_v27 = vld [vmem:[%s15284_s4 + $0x40] sm:$0xff] }
   0xa   :  { %1061 = vperm.xlu2 %6770, %v55_v4   ;;  %15847 = vst [vmem:[#allocation7_spill] sm:$0xff] %v7007_v25  ;;  %v1594_v28 = vld [vmem:[%s15284_s4 + $0x10] sm:$0xff]  ;;  %v44_v32 = vld [vmem:[%s15281_s1 + $0x20] sm:$0xff]  ;;  %v1593_v33 = vld [vmem:[%s15284_s4 + $0x8] sm:$0xff] }
   0xb   :  { %469 = vperm.xlu1 %6769, %v55_v4   ;;  %441 = vperm.xlu0 %6773, %v48_v5   ;;  %v1601_v34 = vld [vmem:[%s15284_s4 + $0x48] sm:$0xff]  ;;  %v6577_v38 = vld [vmem:[%s15284_s4 + $0xe0] sm:$0xff]  ;;  %v26_v45 = vld [vmem:[%s15280_s0 + $0x10] sm:$0xff] }
   0xc   :  { %v24_v41 = vld [vmem:[%s15280_s0] sm:$0xff]  ;;  %v25_v42 = vld [vmem:[%s15280_s0 + $0x8] sm:$0xff]  ;;  %v27_v46 = vld [vmem:[%s15280_s0 + $0x18] sm:$0xff]  ;;  %v7069_v47 = vperm.slane %v26_v45, 2  ;;  %v7082_v53 = vperm.slane %v26_v45, 1  ;;  %v7098_v59 = vperm.slane %v26_v45, 0 }
   0xd   :  { %v7059_v43 = vperm.slane %v24_v41, 2  ;;  %v7061_v44 = vperm.slane %v25_v42, 2  ;;  %v7071_v48 = vperm.slane %v27_v46, 2  ;;  %v6576_v50 = vld [vmem:[%s15284_s4 + $0xd8] sm:$0xff]  ;;  %v7078_v51 = vperm.slane %v24_v41, 1 }
   0xe   :  { %15859 = vst [vmem:[#allocation19_spill] sm:$0xff] %v7069_v47  ;;  %v7080_v52 = vperm.slane %v25_v42, 1  ;;  %v7084_v54 = vperm.slane %v24_v41, 0  ;;  %v7094_v57 = vperm.slane %v27_v46, 1  ;;  %v7096_v58 = vperm.slane %v25_v42, 0 }
   0xf   :  { %15857 = vst [vmem:[#allocation17_spill] sm:$0xff] %v7059_v43 }
  0x10   :  { %15858 = vst [vmem:[#allocation18_spill] sm:$0xff] %v7061_v44 }
  0x11   :  { %15860 = vst [vmem:[#allocation20_spill] sm:$0xff] %v7071_v48 }
  0x12   :  { %6772 = vset.pattern.permute.xlu2 %v15289_v3  ;;  %15862 = vst [vmem:[#allocation22_spill] sm:$0xff] %v7094_v57 }
  0x13   :  { %6771 = vset.pattern.permute.xlu1 %v15291_v8  ;;  %6783 = vset.pattern.permute.xlu0 %v15287_v2 }
  0x14   :  { %123 = vperm.xlu1 %6771, %v53_v1   ;;  %457 = vperm.xlu2 %6772, %v52_v6  }
  0x15   :  { %1045 = vperm.xlu0 %6783, %v51_v7  }
  0x1c   :  { %6774 = vset.pattern.permute.xlu1 %v15287_v2  ;;  %6775 = vset.pattern.permute.xlu2 %v15287_v2 }
  0x1d   :  { %1025 = vperm.xlu0 %6783, %v46_v9   ;;  %1049 = vperm.xlu1 %6774, %v52_v6  }
  0x1e   :  { %1053 = vperm.xlu2 %6775, %v53_v1   ;;  %v7120_v1 = vperm.slane %v27_v46, 0 }
  0x25   :  { %1009 = vperm.xlu0 %6783, %v6941_v10   ;;  %6776 = vset.pattern.permute.xlu1 %v15291_v8 }
  0x26   :  { %6777 = vset.pattern.permute.xlu2 %v15291_v8  ;;  %1680 = vperm.xlu1 %6776, %v1606_v11  }
  0x27   :  { %1685 = vperm.xlu2 %6777, %v1607_v12  }
  0x2d   :  { %6802 = vset.pattern.permute.xlu0 %v15291_v8 }
  0x2e   :  { %128 = vperm.xlu0 %6802, %v54_v0   ;;  %113 = vperm.xlu1 %6776, %v51_v7  }
  0x2f   :  { %6778 = vset.pattern.permute.xlu2 %v15289_v3 }
  0x30   :  { %449 = vperm.xlu2 %6778, %v50_v13  }
  0x36   :  { %133 = vperm.xlu0 %6802, %v55_v4   ;;  %6779 = vset.pattern.permute.xlu1 %v15289_v3 }
  0x37   :  { %453 = vperm.xlu1 %6779, %v51_v7  }
  0x38   :  { %6780 = vset.pattern.permute.xlu2 %v15287_v2 }
  0x39   :  { %1041 = vperm.xlu2 %6780, %v50_v13  }
  0x3e   :  { %118 = vperm.xlu0 %6802, %v52_v6  }
  0x3f   :  { %6781 = vset.pattern.permute.xlu1 %v15291_v8 }
  0x40   :  { %1670 = vperm.xlu1 %6781, %v1604_v14  }
  0x41   :  { %6782 = vset.pattern.permute.xlu2 %v15291_v8 }
  0x42   :  { %1675 = vperm.xlu2 %6782, %v1605_v15   ;;  %v7156_v15 = vld [vmem:[%s15280_s0 + $0x20] sm:$0xff] }
  0x43   :  { %v7199_v45 = vperm.slane %v7156_v15, 1 }
  0x45   :  { %15870 = vst [vmem:[#allocation30_spill] sm:$0xff] %v7199_v45 }
  0x46   :  { %108 = vperm.xlu0 %6802, %v50_v13  }
  0x48   :  { %98 = vperm.xlu1 %6781, %v48_v5  }
  0x4a   :  { %103 = vperm.xlu2 %6782, %v49_v16  }
  0x4e   :  { %1665 = vperm.xlu0 %6802, %v1603_v17  }
  0x50   :  { %6784 = vset.pattern.permute.xlu1 %v15289_v3 }
  0x51   :  { %445 = vperm.xlu1 %6784, %v49_v16  }
  0x52   :  { %6785 = vset.pattern.permute.xlu2 %v15287_v2 }
  0x53   :  { %1033 = vperm.xlu2 %6785, %v48_v5  }
  0x56   :  { %83 = vperm.xlu0 %6802, %v6978_v18  }
  0x59   :  { %6786 = vset.pattern.permute.xlu1 %v15287_v2 }
  0x5a   :  { %1037 = vperm.xlu1 %6786, %v49_v16  }
  0x5b   :  { %6787 = vset.pattern.permute.xlu2 %v15291_v8 }
  0x5c   :  { %1660 = vperm.xlu2 %6787, %v1602_v19   ;;  %v6989_v21 = vpop.permute.xlu2 %1057 }
  0x5d   :  { %15845 = vst [vmem:[#allocation5_spill] sm:$0xff] %v6989_v21  ;;  %v7088_v55 = vmul.f32 %v7059_v43, %v6989_v21  ;;  %v7092_v56 = vmul.f32 %v7061_v44, %v6989_v21  ;;  %v7102_v60 = vmul.f32 %v7069_v47, %v6989_v21  ;;  %v7106_v61 = vmul.f32 %v7071_v48, %v6989_v21 }
  0x5e   :  { %1640 = vperm.xlu0 %6802, %v1598_v20   ;;  %v7169_v20 = vld [vmem:[%s15280_s0 + $0x28] sm:$0xff] }
  0x5f   :  { %15868 = vst [vmem:[#allocation28_spill] sm:$0xff] %v7169_v20 }
  0x62   :  { %6788 = vset.pattern.permute.xlu1 %v15291_v8 }
  0x63   :  { %88 = vperm.xlu1 %6788, %v46_v9  }
  0x64   :  { %93 = vperm.xlu2 %6787, %v47_v22   ;;  %v7000_v24 = vpop.permute.xlu2 %1061 }
  0x65   :  { %15846 = vst [vmem:[#allocation6_spill] sm:$0xff] %v7000_v24  ;;  %v7110_v62 = vmul.f32 %v7059_v43, %v7000_v24  ;;  %v7114_v63 = vmul.f32 %v7061_v44, %v7000_v24  ;;  %v7118_v0 = vmul.f32 %v7069_v47, %v7000_v24  ;;  %v7129_v6 = vmul.f32 %v7071_v48, %v7000_v24 }
  0x66   :  { %73 = vperm.xlu0 %6802, %v6998_v23  }
  0x6b   :  { %6789 = vset.pattern.permute.xlu1 %v15289_v3 }
  0x6c   :  { %6790 = vset.pattern.permute.xlu2 %v15289_v3  ;;  %433 = vperm.xlu1 %6789, %v46_v9  }
  0x6d   :  { %437 = vperm.xlu2 %6790, %v47_v22  }
  0x6e   :  { %63 = vperm.xlu0 %6802, %v7007_v25   ;;  %v7011_v26 = vpop.permute.xlu2 %457 }
  0x6f   :  { %15848 = vst [vmem:[#allocation8_spill] sm:$0xff] %v7011_v26  ;;  %v7133_v7 = vmul.f32 %v7078_v51, %v7011_v26  ;;  %v7137_v9 = vmul.f32 %v7080_v52, %v7011_v26  ;;  %v7141_v11 = vmul.f32 %v7082_v53, %v7011_v26  ;;  %v7151_v14 = vmul.f32 %v7094_v57, %v7011_v26 }
  0x71   :  { %15865 = vst [vmem:[#allocation25_spill] sm:$0xff] %v7137_v9 }
  0x72   :  { %15866 = vst [vmem:[#allocation26_spill] sm:$0xff] %v7141_v11 }
  0x73   :  { %15867 = vst [vmem:[#allocation27_spill] sm:$0xff] %v7151_v14 }
  0x74   :  { %6791 = vset.pattern.permute.xlu1 %v15287_v2 }
  0x75   :  { %6792 = vset.pattern.permute.xlu2 %v15291_v8  ;;  %v7021_v29 = vpop.permute.xlu1 %465  ;;  %1029 = vperm.xlu1 %6791, %v47_v22   ;;  %v7023_v30 = vpop.permute.xlu0 %461 }
  0x76   :  { %15849 = vst [vmem:[#allocation9_spill] sm:$0xff] %v7021_v29  ;;  %1650 = vperm.xlu2 %6792, %v1600_v27   ;;  %1620 = vperm.xlu0 %6802, %v1594_v28   ;;  %v696_v13 = vmul.f32 %v7078_v51, %v7023_v30  ;;  %v697_v17 = vmul.f32 %v7080_v52, %v7023_v30 }
  0x77   :  { %15850 = vst [vmem:[#allocation10_spill] sm:$0xff] %v7023_v30  ;;  %v698_v19 = vmul.f32 %v7082_v53, %v7023_v30  ;;  %v7173_v22 = vmul.f32 %v7078_v51, %v7021_v29  ;;  %v7177_v27 = vmul.f32 %v7080_v52, %v7021_v29  ;;  %v7194_v41 = vmul.f32 %v7094_v57, %v7021_v29 }
  0x78   :  { %v7025_v31 = vpop.permute.xlu2 %1053 }
  0x79   :  { %15851 = vst [vmem:[#allocation11_spill] sm:$0xff] %v7025_v31  ;;  %v1288_v42 = vmul.f32 %v7059_v43, %v7025_v31 }
  0x7d   :  { %v7036_v35 = vpop.permute.xlu1 %469  ;;  %6793 = vset.pattern.permute.xlu1 %v15291_v8  ;;  %v7039_v36 = vpop.permute.xlu0 %441  ;;  %v7212_v8 = vld [vmem:[%s15280_s0 + $0x30] sm:$0xff] }
  0x7e   :  { %15852 = vst [vmem:[#allocation12_spill] sm:$0xff] %v7036_v35  ;;  %78 = vperm.xlu2 %6792, %v44_v32   ;;  %1615 = vperm.xlu0 %6802, %v1593_v33   ;;  %v7224_v25 = vmul.f32 %v7080_v52, %v7036_v35 }
  0x7f   :  { %15853 = vst [vmem:[#allocation13_spill] sm:$0xff] %v7039_v36  ;;  %1655 = vperm.xlu1 %6793, %v1601_v34   ;;  %v6571_v34 = vld [vmem:[%s15284_s4 + $0xb0] sm:$0xff] }
  0x80   :  { %15873 = vst [vmem:[#allocation33_spill] sm:$0xff] %v7212_v8 }
  0x81   :  { %v7041_v37 = vpop.permute.xlu2 %1685 }
  0x82   :  { %15854 = vst [vmem:[#allocation14_spill] sm:$0xff] %v7041_v37 }
  0x86   :  { %6795 = vset.pattern.permute.xlu2 %v15289_v3  ;;  %2423 = vperm.xlu0 %6802, %v6577_v38   ;;  %v7047_v39 = vpop.permute.xlu1 %123  ;;  %v7190_v38 = vmul.f32 %v7082_v53, %v7021_v29 }
  0x87   :  { %15855 = vst [vmem:[#allocation15_spill] sm:$0xff] %v7047_v39  ;;  %6794 = vset.pattern.permute.xlu1 %v15289_v3  ;;  %429 = vperm.xlu2 %6795, %v6978_v18   ;;  %v7051_v40 = vpop.permute.xlu0 %1045  ;;  %v360_v12 = vmul.f32 %v7084_v54, %v7047_v39  ;;  %v361_v16 = vmul.f32 %v7096_v58, %v7047_v39  ;;  %v7207_v3 = vperm.slane %v7169_v20, 1 }
  0x88   :  { %15856 = vst [vmem:[#allocation16_spill] sm:$0xff] %v7051_v40  ;;  %425 = vperm.xlu1 %6794, %v44_v32   ;;  %v363_v28 = vmul.f32 %v7120_v1, %v7047_v39 }
  0x89   :  { %v952_v46 = vadd.f32 %v696_v13, %v360_v12  ;;  %15872 = vst [vmem:[#allocation32_spill] sm:$0xff] %v7207_v3  ;;  %v1291_v12 = vmul.f32 %v7071_v48, %v7025_v31  ;;  %v7220_v13 = vmul.f32 %v7078_v51, %v7036_v35 }
  0x8a   :  { %v7073_v49 = vpop.permute.xlu2 %449 }
  0x8b   :  { %15861 = vst [vmem:[#allocation21_spill] sm:$0xff] %v7073_v49  ;;  %v1544_v14 = vadd.f32 %v1288_v42, %v952_v46  ;;  %v7269_v42 = vmul.f32 %v7078_v51, %v7073_v49  ;;  %v7274_v46 = vld [vmem:[%s15280_s0 + $0x38] sm:$0xff] }
  0x8c   :  { %15884 = vst [vmem:[#allocation43_spill] sm:$0xff] %v7274_v46 }
  0x8d   :  { %15883 = vst [vmem:[#allocation42_spill] sm:$0xff] %v7269_v42  ;;  %v7351_v42 = vperm.slane %v7274_v46, 2 }
  0x8e   :  { %2418 = vperm.xlu0 %6802, %v6576_v50   ;;  %v1289_v50 = vmul.f32 %v7061_v44, %v7025_v31 }
  0x8f   :  { %6797 = vset.pattern.permute.xlu2 %v15287_v2  ;;  %v7123_v4 = vpop.permute.xlu1 %1049  ;;  %v7125_v5 = vpop.permute.xlu0 %1025  ;;  %15898 = vst [vmem:[#allocation57_spill] sm:$0xff] %v7351_v42 }
  0x90   :  { %15863 = vst [vmem:[#allocation23_spill] sm:$0xff] %v7123_v4  ;;  %6796 = vset.pattern.permute.xlu1 %v15287_v2  ;;  %1021 = vperm.xlu2 %6797, %v6978_v18   ;;  %v362_v18 = vmul.f32 %v7098_v59, %v7047_v39  ;;  %v7204_v2 = vperm.slane %v7156_v15, 2  ;;  %v7228_v39 = vmul.f32 %v7082_v53, %v7036_v35 }
  0x91   :  { %15864 = vst [vmem:[#allocation24_spill] sm:$0xff] %v7125_v5  ;;  %1017 = vperm.xlu1 %6796, %v44_v32   ;;  %v699_v32 = vmul.f32 %v7094_v57, %v7023_v30  ;;  %v953_v30 = vadd.f32 %v697_v17, %v361_v16  ;;  %v1290_v5 = vmul.f32 %v7069_v47, %v7025_v31 }
  0x92   :  { %15871 = vst [vmem:[#allocation31_spill] sm:$0xff] %v7204_v2  ;;  %v954_v26 = vadd.f32 %v698_v19, %v362_v18  ;;  %v1599_v18 = vld [vmem:[%s15284_s4 + $0x38] sm:$0xff]  ;;  %v7237_v19 = vmul.f32 %v7094_v57, %v7036_v35  ;;  %v7245_v31 = vmul.f32 %v7199_v45, %v7036_v35  ;;  %v7255_v11 = vmul.f32 %v7204_v2, %v6989_v21 }
  0x93   :  { %v7183_v33 = vpop.permute.xlu2 %1041  ;;  %v955_v16 = vadd.f32 %v699_v32, %v363_v28  ;;  %v7248_v28 = vperm.slane %v7212_v8, 1  ;;  %v15878_v32 = vmov 0   ;;  %v7259_v9 = vmul.f32 %v7204_v2, %v7000_v24 }
  0x94   :  { %15869 = vst [vmem:[#allocation29_spill] sm:$0xff] %v7183_v33 }
  0x95   :  { %15876 = vst [vmem:[#allocation36_spill] sm:$0xff] %v7245_v31  ;;  %v1545_v31 = vadd.f32 %v1289_v50, %v953_v30  ;;  %v1547_v2 = vadd.f32 %v1291_v12, %v955_v16  ;;  %v6570_v30 = vld [vmem:[%s15284_s4 + $0xa8] sm:$0xff]  ;;  %v7296_v50 = vmul.f32 %v7094_v57, %v7073_v49  ;;  %v7300_v12 = vmul.f32 %v7248_v28, %v7021_v29 }
  0x96   :  { %2393 = vperm.xlu0 %6802, %v6571_v34   ;;  %v7241_v34 = vmul.f32 %v7199_v45, %v7021_v29  ;;  %15877 = vst [vmem:[#allocation37_spill] sm:$0xff] %v7248_v28  ;;  %v7263_v45 = vmul.f32 %v7207_v3, %v7021_v29  ;;  %v7303_v16 = vperm.slane %v7212_v8, 2  ;;  %v7328_v8 = vmul.f32 %v7061_v44, %v7123_v4 }
  0x97   :  { %v7230_v17 = vpop.permute.xlu0 %1009  ;;  %15880 = vst [vmem:[#allocation39_spill] sm:$0xff] %v7255_v11  ;;  %v7309_v11 = vmul.f32 %v7061_v44, %v7051_v40 }
  0x98   :  { %15874 = vst [vmem:[#allocation34_spill] sm:$0xff] %v7230_v17  ;;  %6799 = vset.pattern.permute.xlu2 %v15878_v32  ;;  %v7251_v17 = vpop.permute.xlu1 %1680 }
  0x99   :  { %15875 = vst [vmem:[#allocation35_spill] sm:$0xff] %v7241_v34  ;;  %6798 = vset.pattern.permute.xlu1 %v15878_v32  ;;  %68 = vperm.xlu2 %6799, %v6941_v10   ;;  %v1546_v34 = vadd.f32 %v1290_v5, %v954_v26  ;;  %v7285_v26 = vperm.slane %v7169_v20, 2  ;;  %v7292_v5 = vmul.f32 %v7059_v43, %v7051_v40 }
  0x9a   :  { %15879 = vst [vmem:[#allocation38_spill] sm:$0xff] %v7251_v17  ;;  %1645 = vperm.xlu1 %6798, %v1599_v18   ;;  %v7313_v20 = vmul.f32 %v7069_v47, %v7051_v40 }
  0x9b   :  { %15881 = vst [vmem:[#allocation40_spill] sm:$0xff] %v7259_v9  ;;  %v7282_v9 = vmul.f32 %v7082_v53, %v7073_v49 }
  0x9c   :  { %15882 = vst [vmem:[#allocation41_spill] sm:$0xff] %v7263_v45  ;;  %v7278_v45 = vmul.f32 %v7080_v52, %v7073_v49  ;;  %v7305_v18 = vpop.permute.xlu2 %1675  ;;  %v7317_v49 = vmul.f32 %v7071_v48, %v7051_v40  ;;  %v7340_v40 = vmul.f32 %v7207_v3, %v7036_v35  ;;  %v7363_v3 = vmul.f32 %v7303_v16, %v6989_v21 }
  0x9d   :  { %15886 = vst [vmem:[#allocation45_spill] sm:$0xff] %v7282_v9  ;;  %v7332_v9 = vmul.f32 %v7069_v47, %v7123_v4 }
  0x9e   :  { %15885 = vst [vmem:[#allocation44_spill] sm:$0xff] %v7278_v45  ;;  %2388 = vperm.xlu0 %6802, %v6570_v30   ;;  %v7348_v45 = vmul.f32 %v7285_v26, %v7000_v24  ;;  %v7359_v30 = vmul.f32 %v7248_v28, %v7036_v35  ;;  %v7379_v28 = vmul.f32 %v7069_v47, %v7183_v33 }
  0x9f   :  { %15887 = vst [vmem:[#allocation46_spill] sm:$0xff] %v7285_v26 }
  0xa0   :  { %15888 = vst [vmem:[#allocation47_spill] sm:$0xff] %v7296_v50  ;;  %v7320_v50 = vperm.slane %v7274_v46, 1 }
  0xa1   :  { %15889 = vst [vmem:[#allocation48_spill] sm:$0xff] %v7300_v12  ;;  %v7324_v12 = vmul.f32 %v7059_v43, %v7123_v4 }
  0xa2   :  { %15890 = vst [vmem:[#allocation49_spill] sm:$0xff] %v7303_v16 }
  0xa3   :  { %15891 = vst [vmem:[#allocation50_spill] sm:$0xff] %v7305_v18 }
  0xa4   :  { %15892 = vst [vmem:[#allocation51_spill] sm:$0xff] %v7313_v20  ;;  %v7336_v20 = vmul.f32 %v7071_v48, %v7123_v4  ;;  %v7355_v4 = vmul.f32 %v7059_v43, %v7183_v33  ;;  %v6565_v43 = vld [vmem:[%s15284_s4 + $0x80] sm:$0xff] }
  0xa5   :  { %15893 = vst [vmem:[#allocation52_spill] sm:$0xff] %v7317_v49  ;;  %v7344_v49 = vmul.f32 %v7285_v26, %v6989_v21  ;;  %v7369_v26 = vpop.permute.xlu0 %128 }
  0xa6   :  { %15894 = vst [vmem:[#allocation53_spill] sm:$0xff] %v7320_v50  ;;  %v377_v46 = vmul.f32 %v7096_v58, %v7369_v26  ;;  %v378_v47 = vmul.f32 %v7098_v59, %v7369_v26  ;;  %2363 = vperm.xlu0 %6802, %v6565_v43   ;;  %v7459_v43 = vmul.f32 %v7078_v51, %v7039_v36 }
  0xa7   :  { %15895 = vst [vmem:[#allocation54_spill] sm:$0xff] %v7340_v40  ;;  %v7375_v40 = vmul.f32 %v7061_v44, %v7183_v33  ;;  %v379_v44 = vmul.f32 %v7120_v1, %v7369_v26 }
  0xa8   :  { %15896 = vst [vmem:[#allocation55_spill] sm:$0xff] %v7344_v49  ;;  %v7367_v49 = vmul.f32 %v7303_v16, %v7000_v24  ;;  %v7387_v16 = vmul.f32 %v7320_v50, %v7021_v29  ;;  %v7401_v29 = vperm.slane %v7156_v15, 0 }
  0xa9   :  { %15897 = vst [vmem:[#allocation56_spill] sm:$0xff] %v7348_v45  ;;  %v7371_v45 = vpop.permute.xlu1 %113 }
  0xaa   :  { %15899 = vst [vmem:[#allocation58_spill] sm:$0xff] %v7359_v30  ;;  %v7383_v30 = vmul.f32 %v7071_v48, %v7183_v33  ;;  %v7405_v33 = vmul.f32 %v7320_v50, %v7036_v35  ;;  %v7413_v48 = vmul.f32 %v7351_v42, %v7000_v24  ;;  %v970_v35 = vadd.f32 %v7190_v38, %v378_v47 }
  0xab   :  { %15900 = vst [vmem:[#allocation59_spill] sm:$0xff] %v7363_v3  ;;  %v376_v3 = vmul.f32 %v7084_v54, %v7369_v26  ;;  %v971_v50 = vadd.f32 %v7194_v41, %v379_v44  ;;  %v7429_v24 = vadd.f32 %v7305_v18, %v1545_v31  ;;  %v329_v31 = vmul.f32 %v7096_v58, %v7371_v45 }
  0xac   :  { %15901 = vst [vmem:[#allocation60_spill] sm:$0xff] %v7367_v49  ;;  %v15906_v49 = vmov 1   ;;  %v1562_v44 = vadd.f32 %v7102_v60, %v970_v35 }
  0xad   :  { %15902 = vst [vmem:[#allocation61_spill] sm:$0xff] %v7369_v26  ;;  %6801 = vset.pattern.permute.xlu2 %v15906_v49  ;;  %6800 = vset.pattern.permute.xlu1 %v15906_v49  ;;  %v968_v15 = vadd.f32 %v7173_v22, %v376_v3  ;;  %v328_v22 = vmul.f32 %v7084_v54, %v7371_v45  ;;  %v7469_v60 = vpop.permute.xlu0 %133 }
  0xae   :  { %15903 = vst [vmem:[#allocation62_spill] sm:$0xff] %v7371_v45  ;;  %421 = vperm.xlu2 %6801, %v6998_v23   ;;  %417 = vperm.xlu1 %6800, %v6941_v10   ;;  %v7432_v10 = vadd.f32 %v7305_v18, %v1546_v34 }
  0xaf   :  { %15904 = vst [vmem:[#allocation63_spill] sm:$0xff] %v7383_v30  ;;  %v969_v30 = vadd.f32 %v7177_v27, %v377_v46  ;;  %v1560_v3 = vadd.f32 %v7088_v55, %v968_v15  ;;  %v7447_v27 = vmul.f32 %v7098_v59, %v7371_v45  ;;  %v7463_v55 = vmul.f32 %v7080_v52, %v7039_v36 }
  0xb0   :  { %15905 = vst [vmem:[#allocation64_spill] sm:$0xff] %v7387_v16  ;;  %v7409_v16 = vmul.f32 %v7351_v42, %v6989_v21  ;;  %v7423_v21 = vpop.permute.xlu2 %103  ;;  %v7435_v42 = vadd.f32 %v7305_v18, %v1547_v2  ;;  %v7451_v2 = vmul.f32 %v7120_v1, %v7371_v45  ;;  %v393_v15 = vmul.f32 %v7096_v58, %v7469_v60 }
  0xb1   :  { %15907 = vst [vmem:[#allocation65_spill] sm:$0xff] %v7401_v29  ;;  %v1561_v47 = vadd.f32 %v7092_v56, %v969_v30  ;;  %v7455_v35 = vmul.f32 %v7084_v54, %v7423_v21  ;;  %v7467_v56 = vmul.f32 %v7082_v53, %v7039_v36  ;;  %v1912_v38 = vadd.f32 %v7251_v17, %v1560_v3 }
  0xb2   :  { %15908 = vst [vmem:[#allocation66_spill] sm:$0xff] %v7405_v33  ;;  %v7477_v41 = vmul.f32 %v7096_v58, %v7423_v21  ;;  %v7481_v34 = vmul.f32 %v7098_v59, %v7423_v21  ;;  %v7485_v46 = vmul.f32 %v7120_v1, %v7423_v21  ;;  %v392_v30 = vmul.f32 %v7084_v54, %v7469_v60 }
  0xb3   :  { %15909 = vst [vmem:[#allocation67_spill] sm:$0xff] %v7409_v16  ;;  %v7426_v16 = vadd.f32 %v7305_v18, %v1544_v14  ;;  %v1563_v14 = vadd.f32 %v7106_v61, %v971_v50  ;;  %v1596_v61 = vld [vmem:[%s15284_s4 + $0x20] sm:$0xff]  ;;  %v7487_v50 = vpop.permute.xlu1 %453  ;;  %v1913_v3 = vadd.f32 %v7251_v17, %v1561_v47  ;;  %v1914_v45 = vadd.f32 %v7251_v17, %v1562_v44  ;;  %v6644_v47 = vld [vmem:[%s15284_s4 + $0x178] sm:$0xff] }
  0xb4   :  { %15910 = vst [vmem:[#allocation68_spill] sm:$0xff] %v7413_v48  ;;  %v394_v18 = vmul.f32 %v7098_v59, %v7469_v60  ;;  %v7503_v33 = vmul.f32 %v7094_v57, %v7039_v36  ;;  %v984_v44 = vadd.f32 %v7220_v13, %v392_v30  ;;  %v2168_v30 = vmax.f32 %v1912_v38, 0.0  ;;  %3768 = vperm.xlu0 %6802, %v6644_v47  }
  0xb5   :  { %15911 = vst [vmem:[#allocation69_spill] sm:$0xff] %v7423_v21  ;;  %v395_v21 = vmul.f32 %v7120_v1, %v7469_v60  ;;  %v1915_v48 = vadd.f32 %v7251_v17, %v1563_v14  ;;  %v664_v14 = vmul.f32 %v7078_v51, %v7487_v50 }
  0xb6   :  { %15912 = vst [vmem:[#allocation70_spill] sm:$0xff] %v7469_v60  ;;  %6804 = vset.pattern.permute.xlu2 %v15878_v32  ;;  %v986_v36 = vadd.f32 %v7228_v39, %v394_v18  ;;  %v7521_v60 = vmul.f32 %v7401_v29, %v7369_v26  ;;  %v2170_v39 = vmax.f32 %v1914_v45, 0.0 }
  0xb7   :  { %15913 = vst [vmem:[#allocation71_spill] sm:$0xff] %v7477_v41  ;;  %1630 = vperm.xlu2 %6804, %v1596_v61   ;;  %v987_v17 = vadd.f32 %v7237_v19, %v395_v21  ;;  %v665_v61 = vmul.f32 %v7080_v52, %v7487_v50  ;;  %v2169_v41 = vmax.f32 %v1913_v3, 0.0  ;;  %v2171_v19 = vmax.f32 %v1915_v48, 0.0  ;;  %v1597_v3 = vld [vmem:[%s15284_s4 + $0x28] sm:$0xff] }
  0xb8   :  { %15914 = vst [vmem:[#allocation72_spill] sm:$0xff] %v7481_v34  ;;  %v985_v34 = vadd.f32 %v7224_v25, %v393_v15  ;;  %v7523_v13 = vpop.permute.xlu2 %1033  ;;  %v1576_v25 = vadd.f32 %v7110_v62, %v984_v44  ;;  %v7533_v62 = vpop.permute.xlu0 %118 }
  0xb9   :  { %15915 = vst [vmem:[#allocation73_spill] sm:$0xff] %v7485_v46  ;;  %v15918_v46 = vmov 2   ;;  %v1579_v21 = vadd.f32 %v7129_v6, %v987_v17  ;;  %v921_v48 = vadd.f32 %v665_v61, %v329_v31  ;;  %v667_v6 = vmul.f32 %v7094_v57, %v7487_v50 }
  0xba   :  { %15916 = vst [vmem:[#allocation74_spill] sm:$0xff] %v7487_v50  ;;  %6803 = vset.pattern.permute.xlu1 %v15918_v46  ;;  %v1577_v15 = vadd.f32 %v7114_v63, %v985_v34  ;;  %v1928_v18 = vadd.f32 %v7041_v37, %v1576_v25  ;;  %v7538_v63 = vld [vmem:[%s15281_s1] sm:$0xff]  ;;  %v345_v38 = vmul.f32 %v7096_v58, %v7533_v62 }
  0xbb   :  { %15917 = vst [vmem:[#allocation75_spill] sm:$0xff] %v7503_v33  ;;  %1013 = vperm.xlu1 %6803, %v6998_v23   ;;  %v1578_v23 = vadd.f32 %v7118_v0, %v986_v36  ;;  %v666_v33 = vmul.f32 %v7082_v53, %v7487_v50  ;;  %v1931_v0 = vadd.f32 %v7041_v37, %v1579_v21  ;;  %v7548_v34 = vpop.permute.xlu1 %1670 }
  0xbc   :  { %15919 = vst [vmem:[#allocation76_spill] sm:$0xff] %v7521_v60  ;;  %v1929_v26 = vadd.f32 %v7041_v37, %v1577_v15  ;;  %v920_v60 = vadd.f32 %v664_v14, %v328_v22  ;;  %v2184_v45 = vmax.f32 %v1928_v18, 0.0  ;;  %v344_v22 = vmul.f32 %v7084_v54, %v7533_v62  ;;  %v15923_v15 = vld [vmem:[#allocation25_spill] sm:$0xff] }
  0xbd   :  { %15920 = vst [vmem:[#allocation77_spill] sm:$0xff] %v7523_v13  ;;  %v1930_v36 = vadd.f32 %v7041_v37, %v1578_v23  ;;  %v2187_v44 = vmax.f32 %v1931_v0, 0.0  ;;  %v346_v31 = vmul.f32 %v7098_v59, %v7533_v62  ;;  %v937_v23 = vadd.f32 %v15923_v15, %v345_v38  ;;  %v15924_v0 = vld [vmem:[#allocation26_spill] sm:$0xff]  ;;  %v15925_v37 = vld [vmem:[#allocation27_spill] sm:$0xff] }
  0xbe   :  { %15921 = vst [vmem:[#allocation78_spill] sm:$0xff] %v7533_v62  ;;  %v2185_v17 = vmax.f32 %v1929_v26, 0.0  ;;  %v347_v26 = vmul.f32 %v7120_v1, %v7533_v62  ;;  %v2328_v14 = vpack.c.bf16 %v2184_v45, %v2168_v30  ;;  %v936_v25 = vadd.f32 %v7133_v7, %v344_v22  ;;  %v15926_v45 = vld [vmem:[#allocation15_spill] sm:$0xff] }
  0xbf   :  { %15922 = vst [vmem:[#allocation79_spill] sm:$0xff] %v7548_v34  ;;  %v2186_v47 = vmax.f32 %v1930_v36, 0.0  ;;  %58 = vperm.xlu2 %6804, %v7538_v63   ;;  %v2331_v18 = vpack.c.bf16 %v2187_v44, %v2171_v19  ;;  %v6639_v36 = vld [vmem:[%s15284_s4 + $0x150] sm:$0xff]  ;;  %v938_v50 = vadd.f32 %v15924_v0, %v346_v31  ;;  %v1529_v7 = vadd.f32 %v7328_v8, %v937_v23 }
  0xc0   :  { %v2329_v61 = vpack.c.bf16 %v2185_v17, %v2169_v41  ;;  %v939_v62 = vadd.f32 %v15925_v37, %v347_v26  ;;  %2489 = vmatpush.bf16.msra.mxu0 %v2328_v14  ;;  %v1528_v41 = vadd.f32 %v7324_v12, %v936_v25  ;;  %v2153_v30 = vmax.f32 %v7429_v24, 0.0  ;;  %v7573_v19 = vpop.permute.xlu2 %1660  ;;  %3743 = vperm.xlu0 %6802, %v6639_v36   ;;  %v15931_v26 = vld [vmem:[#allocation42_spill] sm:$0xff]  ;;  %v15933_v15 = vld [vmem:[#allocation7_spill] sm:$0xff]  ;;  %v15934_v36 = vld [vmem:[#allocation45_spill] sm:$0xff] }
  0xc1   :  { %v2330_v21 = vpack.c.bf16 %v2186_v47, %v2170_v39  ;;  %v7571_v39 = vmul.f32 %v7401_v29, %v15926_v45  ;;  %15927 = vst [vmem:[#allocation25_spill] sm:$0xff] %v7573_v19  ;;  %v1530_v17 = vadd.f32 %v7332_v9, %v938_v50  ;;  %v2154_v37 = vmax.f32 %v7432_v10, 0.0  ;;  %2636 = vmatpush.bf16.msra.mxu3 %v2331_v18  ;;  %v7583_v47 = vpop.permute.xlu0 %108  ;;  %v6638_v18 = vld [vmem:[%s15284_s4 + $0x148] sm:$0xff] }
  0xc2   :  { %2538 = vmatpush.bf16.msra.mxu1 %v2329_v61  ;;  %v1531_v22 = vadd.f32 %v7336_v20, %v939_v62  ;;  %v922_v12 = vadd.f32 %v666_v33, %v7447_v27  ;;  %v1880_v8 = vadd.f32 %v7548_v34, %v1528_v41  ;;  %v1881_v24 = vadd.f32 %v7548_v34, %v1529_v7  ;;  %v15932_v61 = vld [vmem:[#allocation44_spill] sm:$0xff]  ;;  %v15935_v41 = vld [vmem:[#allocation47_spill] sm:$0xff] }
  0xc3   :  { %6805 = vset.pattern.permute.xlu1 %v15878_v32  ;;  %2587 = vmatpush.bf16.msra.mxu2 %v2330_v21  ;;  %v2155_v38 = vmax.f32 %v7435_v42, 0.0  ;;  %15928 = vst [vmem:[#allocation26_spill] sm:$0xff] %v7583_v47  ;;  %v1882_v9 = vadd.f32 %v7548_v34, %v1530_v17  ;;  %v1513_v20 = vadd.f32 %v7309_v11, %v921_v48  ;;  %v7593_v44 = vpop.permute.xlu1 %98 }
  0xc4   :  { %1635 = vperm.xlu1 %6805, %v1597_v3   ;;  %v1512_v3 = vadd.f32 %v7292_v5, %v920_v60  ;;  %v1883_v10 = vadd.f32 %v7548_v34, %v1531_v22  ;;  %v923_v33 = vadd.f32 %v667_v6, %v7451_v2  ;;  %v2136_v27 = vmax.f32 %v1880_v8, 0.0  ;;  %15929 = vst [vmem:[#allocation27_spill] sm:$0xff] %v7593_v44  ;;  %v15937_v8 = vld [vmem:[#allocation63_spill] sm:$0xff] }
  0xc5   :  { %v2137_v50 = vmax.f32 %v1881_v24, 0.0  ;;  %v312_v62 = vmul.f32 %v7084_v54, %v7583_v47  ;;  %v313_v42 = vmul.f32 %v7096_v58, %v7583_v47  ;;  %v2138_v5 = vmax.f32 %v1882_v9, 0.0 }
  0xc6   :  { %v2139_v60 = vmax.f32 %v1883_v10, 0.0  ;;  %v314_v31 = vmul.f32 %v7098_v59, %v7583_v47  ;;  %v315_v11 = vmul.f32 %v7120_v1, %v7583_v47  ;;  %v15930_v2 = vmax.f32 %v7426_v16, 0.0 }
  0xc7   :  { %6807 = vset.pattern.permute.xlu2 %v15906_v49  ;;  %v2313_v6 = vpack.c.bf16 %v2153_v30, %v2137_v50  ;;  %v904_v14 = vadd.f32 %v15931_v26, %v312_v62  ;;  %v905_v25 = vadd.f32 %v15932_v61, %v313_v42  ;;  %v2314_v23 = vpack.c.bf16 %v2154_v37, %v2138_v5  ;;  %v15941_v42 = vld [vmem:[#allocation17_spill] sm:$0xff] }
  0xc8   :  { %v2312_v48 = vpack.c.bf16 %v15930_v2, %v2136_v27  ;;  %413 = vperm.xlu2 %6807, %v15933_v15   ;;  %v2315_v21 = vpack.c.bf16 %v2155_v38, %v2139_v60  ;;  %v906_v0 = vadd.f32 %v15934_v36, %v314_v31  ;;  %v907_v7 = vadd.f32 %v15935_v41, %v315_v11  ;;  %v7615_v37 = vpop.permute.xlu2 %93 }
  0xc9   :  { %v1496_v16 = vadd.f32 %v7355_v4, %v904_v14  ;;  %v1497_v30 = vadd.f32 %v7375_v40, %v905_v25  ;;  %v280_v17 = vmul.f32 %v7084_v54, %v7593_v44  ;;  %2539 = vmatpush.bf16.msra.mxu1 %v2313_v6  ;;  %2588 = vmatpush.bf16.msra.mxu2 %v2314_v23  ;;  %v15938_v4 = vld [vmem:[#allocation51_spill] sm:$0xff]  ;;  %v7625_v10 = vpop.permute.xlu0 %1665 }
  0xca   :  { %2490 = vmatpush.bf16.msra.mxu0 %v2312_v48  ;;  %15936 = vst [vmem:[#allocation42_spill] sm:$0xff] %v7615_v37  ;;  %v1498_v22 = vadd.f32 %v7379_v28, %v906_v0  ;;  %v1499_v24 = vadd.f32 %v15937_v8, %v907_v7  ;;  %v281_v38 = vmul.f32 %v7096_v58, %v7593_v44  ;;  %v15940_v28 = vld [vmem:[#allocation52_spill] sm:$0xff]  ;;  %v15944_v7 = vld [vmem:[#allocation19_spill] sm:$0xff] }
  0xcb   :  { %2637 = vmatpush.bf16.msra.mxu3 %v2315_v21  ;;  %3738 = vperm.xlu0 %6802, %v6638_v18   ;;  %v1849_v40 = vadd.f32 %v7573_v19, %v1497_v30  ;;  %v1514_v9 = vadd.f32 %v15938_v4, %v922_v12  ;;  %15939 = vst [vmem:[#allocation44_spill] sm:$0xff] %v7625_v10  ;;  %v15942_v12 = vld [vmem:[#allocation18_spill] sm:$0xff]  ;;  %v7642_v14 = vpop.permute.xlu1 %445  ;;  %v15945_v8 = vld [vmem:[#allocation20_spill] sm:$0xff] }
  0xcc   :  { %6806 = vset.pattern.permute.xlu1 %v15906_v49  ;;  %v1848_v49 = vadd.f32 %v7573_v19, %v1496_v16  ;;  %v1850_v27 = vadd.f32 %v7573_v19, %v1498_v22  ;;  %v1515_v50 = vadd.f32 %v15940_v28, %v923_v33  ;;  %v1851_v62 = vadd.f32 %v7573_v19, %v1499_v24  ;;  %v15947_v4 = vld [vmem:[#allocation28_spill] sm:$0xff]  ;;  %v15985_v19 = vld [vmem:[#allocation66_spill] sm:$0xff] }
  0xcd   :  { %409 = vperm.xlu1 %6806, %v7538_v63   ;;  %v1208_v5 = vmul.f32 %v15941_v42, %v7523_v13  ;;  %v1864_v60 = vadd.f32 %v7625_v10, %v1512_v3  ;;  %v1865_v31 = vadd.f32 %v7625_v10, %v1513_v20  ;;  %v872_v11 = vadd.f32 %v7459_v43, %v280_v17  ;;  %v6633_v43 = vld [vmem:[%s15284_s4 + $0x120] sm:$0xff] }
  0xce   :  { %v1209_v2 = vmul.f32 %v15942_v12, %v7523_v13  ;;  %v1866_v48 = vadd.f32 %v7625_v10, %v1514_v9  ;;  %v1867_v6 = vadd.f32 %v7625_v10, %v1515_v50  ;;  %v873_v33 = vadd.f32 %v7463_v55, %v281_v38  ;;  %15943 = vst [vmem:[#allocation7_spill] sm:$0xff] %v7642_v14 }
  0xcf   :  { %v282_v26 = vmul.f32 %v7098_v59, %v7593_v44  ;;  %v2104_v61 = vmax.f32 %v1848_v49, 0.0  ;;  %v2120_v3 = vmax.f32 %v1864_v60, 0.0  ;;  %v2105_v25 = vmax.f32 %v1849_v40, 0.0 }
  0xd0   :  { %v2121_v20 = vmax.f32 %v1865_v31, 0.0  ;;  %6809 = vset.pattern.permute.xlu2 %v15918_v46  ;;  %v2106_v23 = vmax.f32 %v1850_v27, 0.0  ;;  %v2122_v21 = vmax.f32 %v1866_v48, 0.0  ;;  %v2107_v18 = vmax.f32 %v1851_v62, 0.0  ;;  %v7657_v38 = vpop.permute.xlu2 %437  ;;  %v15948_v62 = vld [vmem:[#allocation33_spill] sm:$0xff]  ;;  %v15949_v48 = vld [vmem:[#allocation43_spill] sm:$0xff] }
  0xd1   :  { %v2123_v36 = vmax.f32 %v1867_v6, 0.0  ;;  %1005 = vperm.xlu2 %6809, %v15933_v15   ;;  %v2296_v55 = vpack.c.bf16 %v2120_v3, %v2104_v61  ;;  %v632_v41 = vmul.f32 %v7078_v51, %v7642_v14  ;;  %v1210_v16 = vmul.f32 %v15944_v7, %v7523_v13  ;;  %15946 = vst [vmem:[#allocation45_spill] sm:$0xff] %v7657_v38  ;;  %v15952_v6 = vld [vmem:[#allocation75_spill] sm:$0xff]  ;;  %v15953_v61 = vld [vmem:[#allocation72_spill] sm:$0xff] }
  0xd2   :  { %v2297_v0 = vpack.c.bf16 %v2121_v20, %v2105_v25  ;;  %v2298_v30 = vpack.c.bf16 %v2122_v21, %v2106_v23  ;;  %v633_v22 = vmul.f32 %v7080_v52, %v7642_v14  ;;  %v1211_v24 = vmul.f32 %v15945_v8, %v7523_v13  ;;  %v6632_v21 = vld [vmem:[%s15284_s4 + $0x118] sm:$0xff]  ;;  %v15967_v13 = vld [vmem:[#allocation61_spill] sm:$0xff] }
  0xd3   :  { %v2299_v17 = vpack.c.bf16 %v2123_v36, %v2107_v18  ;;  %3713 = vperm.xlu0 %6802, %v6633_v43   ;;  %2491 = vmatpush.bf16.msra.mxu0 %v2296_v55  ;;  %v634_v15 = vmul.f32 %v7082_v53, %v7642_v14  ;;  %v874_v49 = vadd.f32 %v7467_v56, %v282_v26  ;;  %v7665_v9 = vperm.slane %v15947_v4, 0  ;;  %v1592_v26 = vld [vmem:[%s15284_s4] sm:$0xff]  ;;  %v7696_v23 = vpop.permute.xlu1 %1037  ;;  %v15956_v55 = vld [vmem:[#allocation24_spill] sm:$0xff] }
  0xd4   :  { %v283_v40 = vmul.f32 %v7120_v1, %v7593_v44  ;;  %2540 = vmatpush.bf16.msra.mxu1 %v2297_v0  ;;  %v1464_v27 = vadd.f32 %v1208_v5, %v872_v11  ;;  %v1465_v28 = vadd.f32 %v1209_v2, %v873_v33  ;;  %v635_v50 = vmul.f32 %v7094_v57, %v7642_v14  ;;  %v15951_v11 = vld [vmem:[#allocation71_spill] sm:$0xff]  ;;  %v15955_v18 = vld [vmem:[#allocation73_spill] sm:$0xff] }
  0xd5   :  { %6808 = vset.pattern.permute.xlu1 %v15918_v46  ;;  %v7671_v60 = vperm.slane %v15948_v62, 0  ;;  %2589 = vmatpush.bf16.msra.mxu2 %v2298_v30  ;;  %v888_v56 = vadd.f32 %v632_v41, %v7455_v35  ;;  %v264_v31 = vmul.f32 %v7084_v54, %v7615_v37  ;;  %v600_v46 = vmul.f32 %v7078_v51, %v7657_v38 }
  0xd6   :  { %1001 = vperm.xlu1 %6808, %v7538_v63   ;;  %v7680_v5 = vperm.slane %v15949_v48, 0  ;;  %2638 = vmatpush.bf16.msra.mxu3 %v2299_v17  ;;  %v889_v2 = vadd.f32 %v633_v22, %v15951_v11  ;;  %v875_v33 = vadd.f32 %v15952_v6, %v283_v40  ;;  %v265_v63 = vmul.f32 %v7096_v58, %v7615_v37 }
  0xd7   :  { %v601_v35 = vmul.f32 %v7080_v52, %v7657_v38  ;;  %v890_v3 = vadd.f32 %v634_v15, %v15953_v61  ;;  %v1466_v25 = vadd.f32 %v1210_v16, %v874_v49  ;;  %v266_v20 = vmul.f32 %v7098_v59, %v7615_v37  ;;  %15954 = vst [vmem:[#allocation63_spill] sm:$0xff] %v7696_v23  ;;  %v7721_v49 = vpop.permute.xlu0 %83 }
  0xd8   :  { %15950 = vst [vmem:[#allocation47_spill] sm:$0xff] %v7680_v5  ;;  %v602_v43 = vmul.f32 %v7082_v53, %v7657_v38  ;;  %v891_v36 = vadd.f32 %v635_v50, %v15955_v18  ;;  %v7704_v0 = vmul.f32 %v15941_v42, %v15956_v55  ;;  %v267_v41 = vmul.f32 %v7120_v1, %v7615_v37  ;;  %v7744_v6 = vpop.permute.xlu2 %1650  ;;  %v15964_v18 = vld [vmem:[#allocation35_spill] sm:$0xff]  ;;  %v15966_v37 = vld [vmem:[#allocation36_spill] sm:$0xff] }
  0xd9   :  { %v603_v16 = vmul.f32 %v7094_v57, %v7657_v38  ;;  %6811 = vset.pattern.permute.xlu2 %v15878_v32  ;;  %v1224_v30 = vmul.f32 %v15941_v42, %v7696_v23  ;;  %v1225_v17 = vmul.f32 %v15942_v12, %v7696_v23  ;;  %v7715_v22 = vadd.f32 %v600_v46, %v264_v31  ;;  %v1595_v31 = vld [vmem:[%s15284_s4 + $0x18] sm:$0xff] }
  0xda   :  { %v7719_v15 = vmul.f32 %v15942_v12, %v15956_v55  ;;  %15957 = vst [vmem:[#allocation51_spill] sm:$0xff] %v7721_v49  ;;  %1610 = vperm.xlu2 %6811, %v1592_v26   ;;  %v1467_v40 = vadd.f32 %v1211_v24, %v875_v33  ;;  %v7723_v4 = vadd.f32 %v601_v35, %v265_v63  ;;  %v15959_v33 = vld [vmem:[#allocation34_spill] sm:$0xff] }
  0xdb   :  { %v7727_v50 = vmul.f32 %v15944_v7, %v15956_v55  ;;  %v7731_v62 = vmul.f32 %v15945_v8, %v15956_v55  ;;  %3708 = vperm.xlu0 %6802, %v6632_v21   ;;  %v1226_v46 = vmul.f32 %v15944_v7, %v7696_v23  ;;  %v1227_v24 = vmul.f32 %v15945_v8, %v7696_v23  ;;  %v15962_v26 = vld [vmem:[#allocation70_spill] sm:$0xff]  ;;  %v15963_v21 = vld [vmem:[#allocation76_spill] sm:$0xff] }
  0xdc   :  { %v7740_v48 = vadd.f32 %v602_v43, %v266_v20  ;;  %v7742_v11 = vadd.f32 %v603_v16, %v267_v41  ;;  %15958 = vst [vmem:[#allocation52_spill] sm:$0xff] %v7744_v6  ;;  %v7748_v63 = vmul.f32 %v15941_v42, %v15959_v33  ;;  %v7752_v35 = vmul.f32 %v15942_v12, %v15959_v33 }
  0xdd   :  { %v396_v61 = vmul.f32 %v7401_v29, %v15962_v26  ;;  %v972_v55 = vadd.f32 %v15964_v18, %v15963_v21  ;;  %v7759_v20 = vadd.f32 %v1224_v30, %v888_v56  ;;  %v7762_v43 = vadd.f32 %v7744_v6, %v1464_v27  ;;  %v6580_v27 = vld [vmem:[%s15284_s4 + $0xf8] sm:$0xff]  ;;  %v6707_v30 = vld [vmem:[%s15284_s4 + $0x1f0] sm:$0xff]  ;;  %v15972_v18 = vld [vmem:[#allocation41_spill] sm:$0xff] }
  0xde   :  { %15960 = vst [vmem:[#allocation17_spill] sm:$0xff] %v7748_v63  ;;  %6810 = vset.pattern.permute.xlu1 %v15878_v32  ;;  %v7764_v41 = vadd.f32 %v1225_v17, %v889_v2  ;;  %v7767_v16 = vadd.f32 %v7744_v6, %v1465_v28  ;;  %v7770_v38 = vadd.f32 %v7744_v6, %v1466_v25  ;;  %v15969_v25 = vld [vmem:[#allocation39_spill] sm:$0xff]  ;;  %v15984_v63 = vld [vmem:[#allocation64_spill] sm:$0xff] }
  0xdf   :  { %15961 = vst [vmem:[#allocation18_spill] sm:$0xff] %v7752_v35  ;;  %1625 = vperm.xlu1 %6810, %v1595_v31   ;;  %v988_v23 = vadd.f32 %v15966_v37, %v396_v61  ;;  %v381_v21 = vmul.f32 %v7665_v9, %v15967_v13  ;;  %v397_v32 = vmul.f32 %v7665_v9, %v15962_v26  ;;  %v15971_v31 = vld [vmem:[#allocation40_spill] sm:$0xff] }
  0xe0   :  { %15965 = vst [vmem:[#allocation28_spill] sm:$0xff] %v7770_v38  ;;  %v7780_v56 = vadd.f32 %v1226_v46, %v890_v3  ;;  %v7782_v28 = vadd.f32 %v1227_v24, %v891_v36  ;;  %v7786_v2 = vmul.f32 %v15944_v7, %v15959_v33  ;;  %v1564_v37 = vadd.f32 %v15969_v25, %v972_v55  ;;  %v15973_v46 = vld [vmem:[#allocation54_spill] sm:$0xff]  ;;  %v7798_v24 = vpop.permute.xlu1 %88  ;;  %v15982_v35 = vld [vmem:[#allocation48_spill] sm:$0xff] }
  0xe1   :  { %v7793_v17 = vadd.f32 %v7744_v6, %v1467_v40  ;;  %v1580_v61 = vadd.f32 %v15971_v31, %v988_v23  ;;  %v973_v3 = vadd.f32 %v15972_v18, %v381_v21  ;;  %v989_v36 = vadd.f32 %v15973_v46, %v397_v32  ;;  %15974 = vst [vmem:[#allocation71_spill] sm:$0xff] %v7798_v24  ;;  %v6579_v18 = vld [vmem:[%s15284_s4 + $0xf0] sm:$0xff]  ;;  %v15976_v46 = vld [vmem:[#allocation38_spill] sm:$0xff]  ;;  %v15979_v23 = vld [vmem:[#allocation56_spill] sm:$0xff]  ;;  %v7822_v21 = vpop.permute.xlu0 %1640  ;;  %v7824_v32 = vpop.permute.xlu2 %78 }
  0xe2   :  { %15968 = vst [vmem:[#allocation33_spill] sm:$0xff] %v7786_v2  ;;  %v382_v14 = vmul.f32 %v7671_v60, %v15967_v13  ;;  %v398_v55 = vmul.f32 %v7671_v60, %v15962_v26  ;;  %v383_v25 = vmul.f32 %v7680_v5, %v15967_v13  ;;  %v399_v40 = vmul.f32 %v7680_v5, %v15962_v26  ;;  %v15977_v6 = vld [vmem:[#allocation14_spill] sm:$0xff] }
  0xe3   :  { %15970 = vst [vmem:[#allocation43_spill] sm:$0xff] %v7793_v17  ;;  %2438 = vperm.xlu2 %6811, %v6580_v27   ;;  %v7813_v31 = vmul.f32 %v15945_v8, %v15959_v33  ;;  %5093 = vperm.xlu0 %6802, %v6707_v30   ;;  %v1916_v13 = vadd.f32 %v15976_v46, %v1564_v37  ;;  %v15978_v27 = vld [vmem:[#allocation55_spill] sm:$0xff]  ;;  %v15988_v37 = vld [vmem:[#allocation60_spill] sm:$0xff] }
  0xe4   :  { %v1932_v26 = vadd.f32 %v15977_v6, %v1580_v61  ;;  %v1565_v44 = vadd.f32 %v15978_v27, %v973_v3  ;;  %v1581_v2 = vadd.f32 %v15979_v23, %v989_v36  ;;  %15980 = vst [vmem:[#allocation72_spill] sm:$0xff] %v7822_v21  ;;  %v974_v33 = vadd.f32 %v15982_v35, %v382_v14  ;;  %v6575_v35 = vld [vmem:[%s15284_s4 + $0xd0] sm:$0xff]  ;;  %v15990_v17 = vld [vmem:[#allocation68_spill] sm:$0xff] }
  0xe5   :  { %15975 = vst [vmem:[#allocation75_spill] sm:$0xff] %v7813_v31  ;;  %v15983_v31 = vld [vmem:[#allocation58_spill] sm:$0xff]  ;;  %v975_v10 = vadd.f32 %v15984_v63, %v383_v25  ;;  %v991_v47 = vadd.f32 %v15985_v19, %v399_v40  ;;  %v248_v61 = vmul.f32 %v7084_v54, %v7798_v24  ;;  %v249_v23 = vmul.f32 %v7096_v58, %v7798_v24 }
  0xe6   :  { %15981 = vst [vmem:[#allocation73_spill] sm:$0xff] %v7824_v32  ;;  %v990_v30 = vadd.f32 %v15983_v31, %v398_v55  ;;  %v1917_v3 = vadd.f32 %v15976_v46, %v1565_v44  ;;  %v1933_v36 = vadd.f32 %v15977_v6, %v1581_v2  ;;  %v250_v14 = vmul.f32 %v7098_v59, %v7798_v24  ;;  %v15986_v44 = vld [vmem:[#allocation59_spill] sm:$0xff]  ;;  %v15987_v2 = vld [vmem:[#allocation78_spill] sm:$0xff] }
  0xe7   :  { %2433 = vperm.xlu1 %6810, %v6579_v18   ;;  %v251_v63 = vmul.f32 %v7120_v1, %v7798_v24  ;;  %v2188_v19 = vmax.f32 %v1932_v26, 0.0  ;;  %v2172_v55 = vmax.f32 %v1916_v13, 0.0  ;;  %v1566_v40 = vadd.f32 %v15986_v44, %v974_v33  ;;  %v6706_v18 = vld [vmem:[%s15284_s4 + $0x1e8] sm:$0xff]  ;;  %v15989_v26 = vld [vmem:[#allocation67_spill] sm:$0xff] }
  0xe8   :  { %v2189_v25 = vmax.f32 %v1933_v36, 0.0  ;;  %v7847_v31 = vmul.f32 %v7401_v29, %v15987_v2  ;;  %v2173_v27 = vmax.f32 %v1917_v3, 0.0  ;;  %v1582_v24 = vadd.f32 %v15988_v37, %v990_v30  ;;  %v15998_v37 = vld [vmem:[#allocation8_spill] sm:$0xff]  ;;  %v15999_v44 = vld [vmem:[#allocation30_spill] sm:$0xff] }
  0xe9   :  { %v1567_v34 = vadd.f32 %v15989_v26, %v975_v10  ;;  %v1583_v38 = vadd.f32 %v15990_v17, %v991_v47  ;;  %v7857_v13 = vmul.f32 %v7084_v54, %v7824_v32  ;;  %v7861_v33 = vmul.f32 %v7096_v58, %v7824_v32  ;;  %v7871_v10 = vpop.permute.xlu1 %433 }
  0xea   :  { %v7865_v36 = vmul.f32 %v7098_v59, %v7824_v32  ;;  %v7869_v3 = vmul.f32 %v7120_v1, %v7824_v32  ;;  %15995 = vst [vmem:[#allocation40_spill] sm:$0xff] %v7871_v10  ;;  %v7873_v47 = vpack.c.bf16 %v2188_v19, %v2172_v55  ;;  %v7875_v17 = vpack.c.bf16 %v2189_v25, %v2173_v27  ;;  %v6578_v32 = vld [vmem:[%s15284_s4 + $0xe8] sm:$0xff] }
  0xeb   :  { %15991 = vst [vmem:[#allocation76_spill] sm:$0xff] %v7857_v13  ;;  %2413 = vperm.xlu2 %6811, %v6575_v35   ;;  %v7878_v30 = vadd.f32 %v15976_v46, %v1566_v40  ;;  %v7882_v26 = vmul.f32 %v15999_v44, %v15998_v37  ;;  %5088 = vperm.xlu0 %6802, %v6706_v18  }
  0xec   :  { %15992 = vst [vmem:[#allocation35_spill] sm:$0xff] %v7861_v33  ;;  %v584_v35 = vmul.f32 %v7078_v51, %v7871_v10  ;;  %v585_v19 = vmul.f32 %v7080_v52, %v7871_v10  ;;  %v586_v55 = vmul.f32 %v7082_v53, %v7871_v10  ;;  %v587_v25 = vmul.f32 %v7094_v57, %v7871_v10  ;;  %v7910_v10 = vpop.permute.xlu0 %73 }
  0xed   :  { %15993 = vst [vmem:[#allocation36_spill] sm:$0xff] %v7865_v36  ;;  %v7896_v40 = vadd.f32 %v15977_v6, %v1582_v24  ;;  %v7899_v18 = vadd.f32 %v15976_v46, %v1567_v34  ;;  %v7902_v27 = vadd.f32 %v15977_v6, %v1583_v38  ;;  %v232_v34 = vmul.f32 %v7084_v54, %v7721_v49  ;;  %v16004_v46 = vld [vmem:[#allocation31_spill] sm:$0xff] }
  0xee   :  { %15994 = vst [vmem:[#allocation39_spill] sm:$0xff] %v7869_v3  ;;  %v7908_v3 = vpop.permute.xlu2 %429  ;;  %v840_v36 = vadd.f32 %v584_v35, %v248_v61  ;;  %v841_v33 = vadd.f32 %v585_v19, %v249_v23  ;;  %v842_v13 = vadd.f32 %v586_v55, %v250_v14  ;;  %v843_v29 = vadd.f32 %v587_v25, %v251_v63  ;;  %v6574_v61 = vld [vmem:[%s15284_s4 + $0xc8] sm:$0xff]  ;;  %v6701_v35 = vld [vmem:[%s15284_s4 + $0x1c0] sm:$0xff]  ;;  %v16003_v25 = vld [vmem:[#allocation23_spill] sm:$0xff] }
  0xef   :  { %15996 = vst [vmem:[#allocation41_spill] sm:$0xff] %v7873_v47  ;;  %2428 = vperm.xlu1 %6810, %v6578_v32   ;;  %v568_v38 = vmul.f32 %v7078_v51, %v7908_v3  ;;  %v233_v24 = vmul.f32 %v7096_v58, %v7721_v49  ;;  %v569_v6 = vmul.f32 %v7080_v52, %v7908_v3 }
  0xf0   :  { %15997 = vst [vmem:[#allocation54_spill] sm:$0xff] %v7875_v17  ;;  %v16000_v17 = vld [vmem:[#allocation10_spill] sm:$0xff]  ;;  %v1432_v23 = vadd.f32 %v7704_v0, %v840_v36  ;;  %v1433_v32 = vadd.f32 %v7719_v15, %v841_v33  ;;  %v1434_v14 = vadd.f32 %v7727_v50, %v842_v13  ;;  %v1435_v63 = vadd.f32 %v7731_v62, %v843_v29  ;;  %v16005_v0 = vld [vmem:[#allocation11_spill] sm:$0xff] }
  0xf1   :  { %v7906_v47 = vmul.f32 %v15999_v44, %v16000_v17  ;;  %16001 = vst [vmem:[#allocation55_spill] sm:$0xff] %v7908_v3  ;;  %v234_v19 = vmul.f32 %v7098_v59, %v7721_v49  ;;  %v570_v55 = vmul.f32 %v7082_v53, %v7908_v3  ;;  %v7936_v44 = vmul.f32 %v16004_v46, %v16003_v25 }
  0xf2   :  { %16002 = vst [vmem:[#allocation56_spill] sm:$0xff] %v7910_v10  ;;  %v1292_v15 = vmul.f32 %v16004_v46, %v16005_v0  ;;  %v7941_v50 = vadd.f32 %v7822_v21, %v1432_v23  ;;  %v7944_v29 = vadd.f32 %v7822_v21, %v1433_v32  ;;  %v2174_v62 = vmax.f32 %v7878_v30, 0.0  ;;  %v7958_v32 = vpop.permute.xlu1 %1029  ;;  %v6573_v30 = vld [vmem:[%s15284_s4 + $0xc0] sm:$0xff] }
  0xf3   :  { %v2190_v13 = vmax.f32 %v7896_v40, 0.0  ;;  %2408 = vperm.xlu2 %6811, %v6574_v61   ;;  %v7949_v33 = vadd.f32 %v7822_v21, %v1434_v14  ;;  %v7952_v36 = vadd.f32 %v7822_v21, %v1435_v63  ;;  %v235_v46 = vmul.f32 %v7120_v1, %v7721_v49  ;;  %5063 = vperm.xlu0 %6802, %v6701_v35  }
  0xf4   :  { %16006 = vst [vmem:[#allocation48_spill] sm:$0xff] %v7941_v50  ;;  %v571_v23 = vmul.f32 %v7094_v57, %v7908_v3  ;;  %v824_v40 = vadd.f32 %v568_v38, %v232_v34  ;;  %v825_v61 = vadd.f32 %v569_v6, %v233_v24  ;;  %v1192_v21 = vmul.f32 %v15941_v42, %v7958_v32  ;;  %v6569_v34 = vld [vmem:[%s15284_s4 + $0xa0] sm:$0xff] }
  0xf5   :  { %16007 = vst [vmem:[#allocation58_spill] sm:$0xff] %v7944_v29  ;;  %v1193_v49 = vmul.f32 %v15942_v12, %v7958_v32  ;;  %v826_v3 = vadd.f32 %v570_v55, %v234_v19  ;;  %v7971_v35 = vmul.f32 %v7084_v54, %v7910_v10  ;;  %v1194_v6 = vmul.f32 %v15944_v7, %v7958_v32  ;;  %v6700_v19 = vld [vmem:[%s15284_s4 + $0x1b8] sm:$0xff] }
  0xf6   :  { %16008 = vst [vmem:[#allocation64_spill] sm:$0xff] %v7949_v33  ;;  %v1195_v38 = vmul.f32 %v15945_v8, %v7958_v32  ;;  %v7979_v24 = vpop.permute.xlu2 %1021  ;;  %v827_v55 = vadd.f32 %v571_v23, %v235_v46  ;;  %v7985_v14 = vmul.f32 %v7096_v58, %v7910_v10  ;;  %v7998_v46 = vmul.f32 %v7098_v59, %v7910_v10  ;;  %v8000_v23 = vpop.permute.xlu0 %63 }
  0xf7   :  { %16009 = vst [vmem:[#allocation66_spill] sm:$0xff] %v7952_v36  ;;  %2403 = vperm.xlu1 %6810, %v6573_v30   ;;  %v1160_v57 = vmul.f32 %v15941_v42, %v7979_v24  ;;  %v1161_v30 = vmul.f32 %v15942_v12, %v7979_v24  ;;  %v1162_v63 = vmul.f32 %v15944_v7, %v7979_v24 }
  0xf8   :  { %16010 = vst [vmem:[#allocation59_spill] sm:$0xff] %v7958_v32  ;;  %v8006_v32 = vadd.f32 %v1192_v21, %v7715_v22  ;;  %v8009_v36 = vadd.f32 %v1193_v49, %v7723_v4  ;;  %v1163_v33 = vmul.f32 %v15945_v8, %v7979_v24  ;;  %v8015_v29 = vmul.f32 %v7120_v1, %v7910_v10 }
  0xf9   :  { %16011 = vst [vmem:[#allocation60_spill] sm:$0xff] %v7979_v24  ;;  %v8018_v50 = vadd.f32 %v1194_v6, %v7740_v48  ;;  %v8021_v7 = vadd.f32 %v1195_v38, %v7742_v11  ;;  %v8025_v22 = vmul.f32 %v7084_v54, %v8000_v23  ;;  %v8029_v49 = vmul.f32 %v7096_v58, %v8000_v23  ;;  %v6572_v6 = vld [vmem:[%s15284_s4 + $0xb8] sm:$0xff] }
  0xfa   :  { %16012 = vst [vmem:[#allocation67_spill] sm:$0xff] %v8000_v23  ;;  %v8031_v4 = vadd.f32 %v1160_v57, %v824_v40  ;;  %v8035_v21 = vmul.f32 %v7098_v59, %v8000_v23  ;;  %v8039_v48 = vmul.f32 %v7120_v1, %v8000_v23  ;;  %v956_v11 = vadd.f32 %v7906_v47, %v7571_v39  ;;  %v16023_v39 = vld [vmem:[#allocation46_spill] sm:$0xff] }
  0xfb   :  { %16013 = vst [vmem:[#allocation68_spill] sm:$0xff] %v8025_v22  ;;  %2383 = vperm.xlu2 %6811, %v6569_v34   ;;  %5058 = vperm.xlu0 %6802, %v6700_v19   ;;  %v8046_v38 = vadd.f32 %v1161_v30, %v825_v61  ;;  %v8048_v57 = vadd.f32 %v1162_v63, %v826_v3  ;;  %v16020_v34 = vld [vmem:[#allocation32_spill] sm:$0xff]  ;;  %v8062_v61 = vpop.permute.xlu1 %1655  ;;  %v16025_v30 = vld [vmem:[#allocation37_spill] sm:$0xff] }
  0xfc   :  { %16014 = vst [vmem:[#allocation80_spill] sm:$0xff] %v8029_v49  ;;  %v365_v40 = vmul.f32 %v7665_v9, %v15926_v45  ;;  %v701_v10 = vmul.f32 %v16020_v34, %v16000_v17  ;;  %v8054_v23 = vadd.f32 %v1163_v33, %v827_v55  ;;  %v8056_v24 = vpack.c.bf16 %v2190_v13, %v2174_v62  ;;  %v6568_v55 = vld [vmem:[%s15284_s4 + $0x98] sm:$0xff] }
  0xfd   :  { %16015 = vst [vmem:[#allocation81_spill] sm:$0xff] %v8031_v4  ;;  %v1293_v47 = vmul.f32 %v16023_v39, %v16005_v0  ;;  %v366_v19 = vmul.f32 %v7671_v60, %v15926_v45  ;;  %v1548_v3 = vadd.f32 %v1292_v15, %v956_v11  ;;  %v1832_v62 = vadd.f32 %v8062_v61, %v7759_v20  ;;  %v16050_v22 = vld [vmem:[#allocation36_spill] sm:$0xff] }
  0xfe   :  { %16016 = vst [vmem:[#allocation82_spill] sm:$0xff] %v8035_v21  ;;  %v957_v63 = vadd.f32 %v701_v10, %v365_v40  ;;  %v1833_v13 = vadd.f32 %v8062_v61, %v7764_v41  ;;  %v1834_v33 = vadd.f32 %v8062_v61, %v7780_v56  ;;  %v1835_v15 = vadd.f32 %v8062_v61, %v7782_v28  ;;  %v8076_v10 = vpop.permute.xlu2 %68  ;;  %v6695_v56 = vld [vmem:[%s15284_s4 + $0x190] sm:$0xff] }
  0xff   :  { %16017 = vst [vmem:[#allocation83_spill] sm:$0xff] %v8039_v48  ;;  %2398 = vperm.xlu1 %6810, %v6572_v6   ;;  %v940_v11 = vadd.f32 %v7882_v26, %v7847_v31  ;;  %v16028_v6 = vld [vmem:[#allocation50_spill] sm:$0xff]  ;;  %v349_v48 = vmul.f32 %v7665_v9, %v15987_v2  ;;  %v367_v26 = vmul.f32 %v7680_v5, %v15926_v45  ;;  %v16046_v45 = vld [vmem:[#allocation21_spill] sm:$0xff] }
 0x100   :  { %16018 = vst [vmem:[#allocation84_spill] sm:$0xff] %v8046_v38  ;;  %v16026_v38 = vld [vmem:[#allocation49_spill] sm:$0xff]  ;;  %v8084_v20 = vadd.f32 %v16028_v6, %v1548_v3  ;;  %v1549_v40 = vadd.f32 %v1293_v47, %v957_v63  ;;  %v2089_v28 = vmax.f32 %v1833_v13, 0.0  ;;  %v16031_v63 = vld [vmem:[#allocation28_spill] sm:$0xff] }
 0x101   :  { %16019 = vst [vmem:[#allocation85_spill] sm:$0xff] %v8048_v57  ;;  %v702_v57 = vmul.f32 %v16025_v30, %v16000_v17  ;;  %v1294_v4 = vmul.f32 %v16026_v38, %v16005_v0 }
 0x102   :  { %16021 = vst [vmem:[#allocation32_spill] sm:$0xff] %v8054_v23  ;;  %v2091_v23 = vmax.f32 %v1835_v15, 0.0  ;;  %v8092_v21 = vadd.f32 %v16028_v6, %v1549_v40  ;;  %v16035_v40 = vmax.f32 %v7899_v18, 0.0  ;;  %v686_v18 = vmul.f32 %v16025_v30, %v15998_v37 }
 0x103   :  { %16022 = vst [vmem:[#allocation86_spill] sm:$0xff] %v8056_v24  ;;  %v958_v41 = vadd.f32 %v702_v57, %v366_v19  ;;  %v2088_v24 = vmax.f32 %v1832_v62, 0.0  ;;  %2378 = vperm.xlu2 %6811, %v6568_v55   ;;  %v16029_v57 = vmax.f32 %v7762_v43, 0.0  ;;  %v16030_v19 = vmax.f32 %v7767_v16, 0.0  ;;  %5033 = vperm.xlu0 %6802, %v6695_v56  }
 0x104   :  { %16024 = vst [vmem:[#allocation46_spill] sm:$0xff] %v8062_v61  ;;  %v2090_v61 = vmax.f32 %v1834_v33, 0.0  ;;  %v16032_v62 = vmax.f32 %v16031_v63, 0.0  ;;  %v16033_v33 = vld [vmem:[#allocation43_spill] sm:$0xff]  ;;  %v16036_v55 = vmax.f32 %v7902_v27, 0.0  ;;  %v685_v16 = vmul.f32 %v16020_v34, %v15998_v37 }
 0x105   :  { %16027 = vst [vmem:[#allocation37_spill] sm:$0xff] %v8076_v10  ;;  %v1550_v31 = vadd.f32 %v1294_v4, %v958_v41  ;;  %v2280_v47 = vpack.c.bf16 %v2088_v24, %v16029_v57  ;;  %v2281_v3 = vpack.c.bf16 %v2089_v28, %v16030_v19  ;;  %v16034_v15 = vmax.f32 %v16033_v33, 0.0  ;;  %v6567_v4 = vld [vmem:[%s15284_s4 + $0x90] sm:$0xff]  ;;  %v16043_v57 = vld [vmem:[#allocation62_spill] sm:$0xff]  ;;  %v16044_v41 = vld [vmem:[#allocation65_spill] sm:$0xff] }
 0x106   :  { %v2282_v13 = vpack.c.bf16 %v2090_v61, %v16032_v62  ;;  %v8111_v43 = vpack.c.bf16 %v16036_v55, %v16035_v40  ;;  %v1277_v24 = vmul.f32 %v16023_v39, %v16003_v25  ;;  %v16038_v61 = vld [vmem:[#allocation53_spill] sm:$0xff]  ;;  %v1278_v27 = vmul.f32 %v16026_v38, %v16003_v25  ;;  %v6694_v40 = vld [vmem:[%s15284_s4 + $0x188] sm:$0xff]  ;;  %v16051_v38 = vld [vmem:[#allocation39_spill] sm:$0xff] }
 0x107   :  { %v2283_v49 = vpack.c.bf16 %v2091_v23, %v16034_v15  ;;  %v703_v23 = vmul.f32 %v16038_v61, %v16000_v17  ;;  %2492 = vmatpush.bf16.msra.mxu0 %v2280_v47  ;;  %2541 = vmatpush.bf16.msra.mxu1 %v2281_v3  ;;  %v8125_v56 = vadd.f32 %v16028_v6, %v1550_v31  ;;  %v8133_v3 = vpop.permute.xlu1 %425  ;;  %v16040_v31 = vld [vmem:[#allocation57_spill] sm:$0xff] }
 0x108   :  { %16037 = vst [vmem:[#allocation28_spill] sm:$0xff] %v8111_v43  ;;  %2590 = vmatpush.bf16.msra.mxu2 %v2282_v13  ;;  %v1532_v28 = vadd.f32 %v7936_v44, %v940_v11  ;;  %v350_v47 = vmul.f32 %v7671_v60, %v15987_v2  ;;  %v687_v19 = vmul.f32 %v16038_v61, %v15998_v37  ;;  %v6643_v44 = vld [vmem:[%s15284_s4 + $0x170] sm:$0xff] }
 0x109   :  { %2639 = vmatpush.bf16.msra.mxu3 %v2283_v49  ;;  %2373 = vperm.xlu1 %6810, %v6567_v4   ;;  %16039 = vst [vmem:[#allocation43_spill] sm:$0xff] %v8133_v3  ;;  %v941_v63 = vadd.f32 %v685_v16, %v349_v48  ;;  %v959_v62 = vadd.f32 %v703_v23, %v367_v26  ;;  %v16041_v26 = vld [vmem:[#allocation22_spill] sm:$0xff]  ;;  %v8150_v4 = vpop.permute.xlu2 %421 }
 0x10a   :  { %v1279_v33 = vmul.f32 %v16040_v31, %v16003_v25  ;;  %v1295_v49 = vmul.f32 %v16040_v31, %v16005_v0  ;;  %v552_v11 = vmul.f32 %v7078_v51, %v8133_v3  ;;  %v553_v13 = vmul.f32 %v7080_v52, %v8133_v3  ;;  %16042 = vst [vmem:[#allocation22_spill] sm:$0xff] %v8150_v4  ;;  %v16045_v25 = vld [vmem:[#allocation79_spill] sm:$0xff] }
 0x10b   :  { %v554_v48 = vmul.f32 %v7082_v53, %v8133_v3  ;;  %v555_v15 = vmul.f32 %v16041_v26, %v8133_v3  ;;  %v1533_v55 = vadd.f32 %v1277_v24, %v941_v63  ;;  %v351_v23 = vmul.f32 %v7680_v5, %v15987_v2  ;;  %v16047_v3 = vld [vmem:[#allocation30_spill] sm:$0xff]  ;;  %3763 = vperm.xlu2 %6811, %v6643_v44   ;;  %v16048_v24 = vld [vmem:[#allocation76_spill] sm:$0xff] }
 0x10c   :  { %v332_v0 = vmul.f32 %v16044_v41, %v16043_v57  ;;  %v1884_v17 = vadd.f32 %v16045_v25, %v1532_v28  ;;  %v942_v37 = vadd.f32 %v686_v18, %v350_v47  ;;  %v8163_v43 = vmul.f32 %v16047_v3, %v16046_v45  ;;  %5028 = vperm.xlu0 %6802, %v6694_v40   ;;  %v6566_v18 = vld [vmem:[%s15284_s4 + $0x88] sm:$0xff]  ;;  %v16049_v28 = vld [vmem:[#allocation35_spill] sm:$0xff] }
 0x10d   :  { %v8167_v31 = vmul.f32 %v7665_v9, %v16043_v57  ;;  %v808_v63 = vadd.f32 %v552_v11, %v16048_v24  ;;  %v536_v16 = vmul.f32 %v7078_v51, %v8150_v4  ;;  %v537_v2 = vmul.f32 %v7080_v52, %v8150_v4 }
 0x10e   :  { %v1551_v61 = vadd.f32 %v1295_v49, %v959_v62  ;;  %v809_v47 = vadd.f32 %v553_v13, %v16049_v28  ;;  %v810_v5 = vadd.f32 %v554_v48, %v16050_v22  ;;  %v811_v44 = vadd.f32 %v555_v15, %v16051_v38 }
 0x10f   :  { %v538_v11 = vmul.f32 %v7082_v53, %v8150_v4  ;;  %v8184_v24 = vmul.f32 %v7084_v54, %v8076_v10  ;;  %v8188_v62 = vmul.f32 %v7096_v58, %v8076_v10  ;;  %v8192_v49 = vmul.f32 %v7098_v59, %v8076_v10 }
 0x110   :  { %v1885_v13 = vadd.f32 %v16045_v25, %v1533_v55  ;;  %v8196_v22 = vadd.f32 %v536_v16, %v7971_v35  ;;  %v8200_v38 = vmul.f32 %v7120_v1, %v8076_v10  ;;  %v539_v48 = vmul.f32 %v16041_v26, %v8150_v4  ;;  %v6642_v35 = vld [vmem:[%s15284_s4 + $0x168] sm:$0xff] }
 0x111   :  { %16052 = vst [vmem:[#allocation65_spill] sm:$0xff] %v8184_v24  ;;  %v1534_v15 = vadd.f32 %v1278_v27, %v942_v37  ;;  %2368 = vperm.xlu1 %6810, %v6566_v18   ;;  %v8205_v40 = vadd.f32 %v537_v2, %v7985_v14  ;;  %v2140_v28 = vmax.f32 %v1884_v17, 0.0  ;;  %v8209_v24 = vpop.permute.xlu1 %1017  ;;  %v8215_v16 = vadd.f32 %v538_v11, %v7998_v46  ;;  %v16060_v27 = vld [vmem:[#allocation19_spill] sm:$0xff]  ;;  %v8227_v18 = vpop.permute.xlu2 %1630 }
 0x112   :  { %16053 = vst [vmem:[#allocation76_spill] sm:$0xff] %v8188_v62  ;;  %v943_v62 = vadd.f32 %v687_v19, %v351_v23  ;;  %v2141_v4 = vmax.f32 %v1885_v13, 0.0  ;;  %v1903_v2 = vadd.f32 %v16028_v6, %v1551_v61  ;;  %v1144_v17 = vmul.f32 %v15941_v42, %v8209_v24  ;;  %v16062_v61 = vld [vmem:[#allocation16_spill] sm:$0xff] }
 0x113   :  { %16054 = vst [vmem:[#allocation35_spill] sm:$0xff] %v8192_v49  ;;  %v16057_v49 = vld [vmem:[#allocation74_spill] sm:$0xff]  ;;  %v1886_v37 = vadd.f32 %v16045_v25, %v1534_v15  ;;  %v1145_v14 = vmul.f32 %v15942_v12, %v8209_v24  ;;  %v1146_v19 = vmul.f32 %v16060_v27, %v8209_v24  ;;  %v1147_v23 = vmul.f32 %v15945_v8, %v8209_v24  ;;  %v16063_v15 = vld [vmem:[#allocation31_spill] sm:$0xff] }
 0x114   :  { %16055 = vst [vmem:[#allocation36_spill] sm:$0xff] %v8196_v22  ;;  %v668_v55 = vmul.f32 %v16047_v3, %v16057_v49  ;;  %v8230_v46 = vadd.f32 %v539_v48, %v8015_v29  ;;  %v1535_v13 = vadd.f32 %v1279_v33, %v943_v62  ;;  %v1260_v6 = vmul.f32 %v16063_v15, %v16062_v61  ;;  %v6641_v22 = vld [vmem:[%s15284_s4 + $0x160] sm:$0xff] }
 0x115   :  { %16056 = vst [vmem:[#allocation39_spill] sm:$0xff] %v8205_v40  ;;  %v2142_v11 = vmax.f32 %v1886_v37, 0.0  ;;  %3758 = vperm.xlu2 %6811, %v6642_v35   ;;  %v1400_v10 = vadd.f32 %v1144_v17, %v808_v63  ;;  %v1401_v3 = vadd.f32 %v1145_v14, %v809_v47  ;;  %v16064_v8 = vmax.f32 %v8084_v20, 0.0  ;;  %v16068_v47 = vld [vmem:[#allocation29_spill] sm:$0xff]  ;;  %v16069_v20 = vld [vmem:[#allocation26_spill] sm:$0xff] }
 0x116   :  { %16058 = vst [vmem:[#allocation87_spill] sm:$0xff] %v8209_v24  ;;  %v924_v40 = vadd.f32 %v668_v55, %v332_v0  ;;  %v1403_v24 = vadd.f32 %v1147_v23, %v811_v44  ;;  %v1887_v29 = vadd.f32 %v16045_v25, %v1535_v13  ;;  %v2159_v33 = vmax.f32 %v1903_v2, 0.0  ;;  %v6637_v37 = vld [vmem:[%s15284_s4 + $0x140] sm:$0xff]  ;;  %v16079_v25 = vld [vmem:[#allocation64_spill] sm:$0xff] }
 0x117   :  { %16059 = vst [vmem:[#allocation88_spill] sm:$0xff] %v8215_v16  ;;  %v1402_v16 = vadd.f32 %v1146_v19, %v810_v5  ;;  %v8239_v27 = vpack.c.bf16 %v16064_v8, %v2140_v28  ;;  %v8243_v62 = vadd.f32 %v8227_v18, %v1400_v10  ;;  %v8246_v63 = vadd.f32 %v8227_v18, %v1401_v3 }
 0x118   :  { %16061 = vst [vmem:[#allocation89_spill] sm:$0xff] %v8227_v18  ;;  %v16066_v5 = vmax.f32 %v8092_v21, 0.0  ;;  %v1244_v44 = vmul.f32 %v16063_v15, %v16068_v47  ;;  %v2143_v48 = vmax.f32 %v1887_v29, 0.0  ;;  %v316_v8 = vmul.f32 %v16044_v41, %v16069_v20 }
 0x119   :  { %16065 = vst [vmem:[#allocation31_spill] sm:$0xff] %v8239_v27  ;;  %v317_v28 = vmul.f32 %v7665_v9, %v16069_v20  ;;  %v669_v10 = vmul.f32 %v16020_v34, %v16057_v49  ;;  %3753 = vperm.xlu1 %6810, %v6641_v22   ;;  %v8261_v3 = vadd.f32 %v8227_v18, %v1402_v16  ;;  %v16070_v21 = vmax.f32 %v8125_v56, 0.0  ;;  %v8278_v56 = vpop.permute.xlu1 %1645  ;;  %v8285_v23 = vpop.permute.xlu2 %58  ;;  %v16094_v27 = vld [vmem:[#allocation17_spill] sm:$0xff] }
 0x11a   :  { %v8250_v0 = vpack.c.bf16 %v16066_v5, %v2141_v4  ;;  %v1516_v55 = vadd.f32 %v1260_v6, %v924_v40  ;;  %v653_v35 = vmul.f32 %v16020_v34, %v16046_v45  ;;  %v8275_v22 = vadd.f32 %v8227_v18, %v1403_v24  ;;  %16072 = vst [vmem:[#allocation92_spill] sm:$0xff] %v8278_v56 }
 0x11b   :  { %v8265_v4 = vpack.c.bf16 %v16070_v21, %v2142_v11  ;;  %v908_v16 = vadd.f32 %v8163_v43, %v316_v8  ;;  %v8280_v14 = vpack.c.bf16 %v2159_v33, %v2143_v48  ;;  %v925_v40 = vadd.f32 %v669_v10, %v8167_v31  ;;  %16074 = vst [vmem:[#allocation94_spill] sm:$0xff] %v8285_v23  ;;  %v16075_v21 = vld [vmem:[#allocation48_spill] sm:$0xff] }
 0x11c   :  { %16067 = vst [vmem:[#allocation90_spill] sm:$0xff] %v8250_v0  ;;  %v909_v6 = vadd.f32 %v653_v35, %v317_v28  ;;  %v1261_v19 = vmul.f32 %v16023_v39, %v16062_v61  ;;  %v1800_v11 = vadd.f32 %v8278_v56, %v8006_v32  ;;  %v1801_v24 = vadd.f32 %v8278_v56, %v8009_v36  ;;  %v6640_v36 = vld [vmem:[%s15284_s4 + $0x158] sm:$0xff] }
 0x11d   :  { %16071 = vst [vmem:[#allocation91_spill] sm:$0xff] %v8265_v4  ;;  %v1802_v43 = vadd.f32 %v8278_v56, %v8018_v50  ;;  %v1803_v13 = vadd.f32 %v8278_v56, %v8021_v7  ;;  %3733 = vperm.xlu2 %6811, %v6637_v37   ;;  %v1500_v29 = vadd.f32 %v1244_v44, %v908_v16  ;;  %v16076_v35 = vmax.f32 %v16075_v21, 0.0  ;;  %v16077_v16 = vld [vmem:[#allocation58_spill] sm:$0xff]  ;;  %v16093_v4 = vld [vmem:[#allocation47_spill] sm:$0xff] }
 0x11e   :  { %16073 = vst [vmem:[#allocation93_spill] sm:$0xff] %v8280_v14  ;;  %v1245_v31 = vmul.f32 %v16023_v39, %v16068_v47  ;;  %v318_v33 = vmul.f32 %v7671_v60, %v16069_v20  ;;  %v334_v32 = vmul.f32 %v7671_v60, %v16043_v57  ;;  %v2056_v5 = vmax.f32 %v1800_v11, 0.0 }
 0x11f   :  { %v2057_v50 = vmax.f32 %v1801_v24, 0.0  ;;  %v2058_v48 = vmax.f32 %v1802_v43, 0.0  ;;  %v2059_v8 = vmax.f32 %v1803_v13, 0.0  ;;  %v8306_v7 = vmul.f32 %v7084_v54, %v8285_v23  ;;  %v16081_v43 = vld [vmem:[#allocation66_spill] sm:$0xff] }
 0x120   :  { %v1501_v44 = vadd.f32 %v1245_v31, %v909_v6  ;;  %v1517_v28 = vadd.f32 %v1261_v19, %v925_v40  ;;  %v654_v10 = vmul.f32 %v16025_v30, %v16046_v45  ;;  %v2264_v37 = vpack.c.bf16 %v2056_v5, %v16076_v35  ;;  %v8372_v31 = vpop.permute.xlu0 %1620 }
 0x121   :  { %v16078_v17 = vmax.f32 %v16077_v16, 0.0  ;;  %v16080_v11 = vmax.f32 %v16079_v25, 0.0  ;;  %v16082_v13 = vmax.f32 %v16081_v43, 0.0  ;;  %3748 = vperm.xlu1 %6810, %v6640_v36   ;;  %v8320_v54 = vmul.f32 %v7096_v58, %v8285_v23  ;;  %v6636_v25 = vld [vmem:[%s15284_s4 + $0x138] sm:$0xff]  ;;  %16092 = vst [vmem:[#allocation66_spill] sm:$0xff] %v8372_v31 }
 0x122   :  { %v8324_v6 = vmul.f32 %v7098_v59, %v8285_v23  ;;  %v8328_v40 = vmul.f32 %v7120_v1, %v8285_v23  ;;  %2493 = vmatpush.bf16.msra.mxu0 %v2264_v37  ;;  %v670_v58 = vmul.f32 %v16025_v30, %v16057_v49  ;;  %v910_v36 = vadd.f32 %v654_v10, %v318_v33  ;;  %v16085_v59 = vld [vmem:[#allocation49_spill] sm:$0xff]  ;;  %v8347_v37 = vpop.permute.xlu2 %413 }
 0x123   :  { %v2265_v2 = vpack.c.bf16 %v2057_v50, %v16078_v17  ;;  %v2266_v24 = vpack.c.bf16 %v2058_v48, %v16080_v11  ;;  %v2267_v18 = vpack.c.bf16 %v2059_v8, %v16082_v13  ;;  %v16084_v17 = vld [vmem:[#allocation25_spill] sm:$0xff]  ;;  %v1246_v5 = vmul.f32 %v16085_v59, %v16068_v47  ;;  %v8343_v8 = vpop.permute.xlu1 %417  ;;  %16088 = vst [vmem:[#allocation64_spill] sm:$0xff] %v8347_v37 }
 0x124   :  { %16083 = vst [vmem:[#allocation48_spill] sm:$0xff] %v8328_v40  ;;  %v1852_v19 = vadd.f32 %v16084_v17, %v1500_v29  ;;  %v16086_v29 = vld [vmem:[#allocation44_spill] sm:$0xff]  ;;  %v926_v35 = vadd.f32 %v670_v58, %v334_v32  ;;  %v1262_v33 = vmul.f32 %v16085_v59, %v16062_v61  ;;  %v6635_v32 = vld [vmem:[%s15284_s4 + $0x130] sm:$0xff]  ;;  %v504_v16 = vmul.f32 %v7078_v51, %v8347_v37  ;;  %v16089_v13 = vld [vmem:[#allocation65_spill] sm:$0xff] }
 0x125   :  { %2542 = vmatpush.bf16.msra.mxu1 %v2265_v2  ;;  %2591 = vmatpush.bf16.msra.mxu2 %v2266_v24  ;;  %v1868_v50 = vadd.f32 %v16086_v29, %v1516_v55  ;;  %v1853_v2 = vadd.f32 %v16084_v17, %v1501_v44  ;;  %v1869_v48 = vadd.f32 %v16086_v29, %v1517_v28 }
 0x126   :  { %2640 = vmatpush.bf16.msra.mxu3 %v2267_v18  ;;  %16087 = vst [vmem:[#allocation58_spill] sm:$0xff] %v8343_v8  ;;  %v2108_v21 = vmax.f32 %v1852_v19, 0.0  ;;  %v1502_v10 = vadd.f32 %v1246_v5, %v910_v36  ;;  %3728 = vperm.xlu2 %6811, %v6636_v25   ;;  %v520_v18 = vmul.f32 %v7078_v51, %v8343_v8  ;;  %v16090_v25 = vld [vmem:[#allocation76_spill] sm:$0xff]  ;;  %v16091_v36 = vld [vmem:[#allocation35_spill] sm:$0xff] }
 0x127   :  { %v521_v55 = vmul.f32 %v7080_v52, %v8343_v8  ;;  %v522_v44 = vmul.f32 %v7082_v53, %v8343_v8  ;;  %v523_v28 = vmul.f32 %v16041_v26, %v8343_v8  ;;  %v505_v11 = vmul.f32 %v7080_v52, %v8347_v37 }
 0x128   :  { %v506_v24 = vmul.f32 %v7082_v53, %v8347_v37  ;;  %v507_v43 = vmul.f32 %v16041_v26, %v8347_v37  ;;  %v776_v19 = vadd.f32 %v520_v18, %v16089_v13  ;;  %v2124_v23 = vmax.f32 %v1868_v50, 0.0  ;;  %v16095_v37 = vld [vmem:[#allocation18_spill] sm:$0xff]  ;;  %v16096_v18 = vld [vmem:[#allocation33_spill] sm:$0xff] }
 0x129   :  { %v777_v58 = vadd.f32 %v521_v55, %v16090_v25  ;;  %v778_v5 = vadd.f32 %v522_v44, %v16091_v36  ;;  %v779_v1 = vadd.f32 %v523_v28, %v8200_v38  ;;  %v2109_v8 = vmax.f32 %v1853_v2, 0.0  ;;  %3723 = vperm.xlu1 %6810, %v6635_v32   ;;  %v16097_v55 = vld [vmem:[#allocation75_spill] sm:$0xff]  ;;  %v16098_v44 = vld [vmem:[#allocation68_spill] sm:$0xff]  ;;  %v16100_v28 = vld [vmem:[#allocation82_spill] sm:$0xff] }
 0x12a   :  { %v2125_v14 = vmax.f32 %v1869_v48, 0.0  ;;  %v319_v0 = vmul.f32 %v16093_v4, %v16069_v20  ;;  %v1368_v56 = vadd.f32 %v16094_v27, %v776_v19  ;;  %v6631_v38 = vld [vmem:[%s15284_s4 + $0x110] sm:$0xff]  ;;  %v760_v50 = vadd.f32 %v504_v16, %v16098_v44  ;;  %v16099_v2 = vld [vmem:[#allocation80_spill] sm:$0xff] }
 0x12b   :  { %v1369_v40 = vadd.f32 %v16095_v37, %v777_v58  ;;  %v1370_v13 = vadd.f32 %v16096_v18, %v778_v5  ;;  %v1371_v25 = vadd.f32 %v16097_v55, %v779_v1  ;;  %v761_v48 = vadd.f32 %v505_v11, %v16099_v2  ;;  %v16103_v19 = vld [vmem:[#allocation83_spill] sm:$0xff]  ;;  %v8411_v18 = vpop.permute.xlu2 %1005  ;;  %v16112_v2 = vld [vmem:[#allocation20_spill] sm:$0xff] }
 0x12c   :  { %v762_v36 = vadd.f32 %v506_v24, %v16100_v28  ;;  %v1854_v32 = vadd.f32 %v16084_v17, %v1502_v10  ;;  %v8388_v27 = vadd.f32 %v8372_v31, %v1368_v56  ;;  %v763_v1 = vadd.f32 %v507_v43, %v16103_v19  ;;  %16110 = vst [vmem:[#allocation33_spill] sm:$0xff] %v8411_v18 }
 0x12d   :  { %v8391_v37 = vadd.f32 %v8372_v31, %v1369_v40  ;;  %v1518_v58 = vadd.f32 %v1262_v33, %v926_v35  ;;  %v8395_v5 = vadd.f32 %v8372_v31, %v1370_v13  ;;  %v8398_v16 = vadd.f32 %v8372_v31, %v1371_v25  ;;  %v8404_v10 = vpop.permute.xlu1 %1013  ;;  %v16109_v35 = vld [vmem:[#allocation53_spill] sm:$0xff]  ;;  %v8436_v31 = vpop.permute.xlu0 %1615  ;;  %v16115_v13 = vld [vmem:[#allocation36_spill] sm:$0xff] }
 0x12e   :  { %16101 = vst [vmem:[#allocation49_spill] sm:$0xff] %v8388_v27  ;;  %v8400_v11 = vpack.c.bf16 %v2124_v23, %v2108_v21  ;;  %v8402_v24 = vpack.c.bf16 %v2125_v14, %v2109_v8  ;;  %3703 = vperm.xlu2 %6811, %v6631_v38   ;;  %v2110_v40 = vmax.f32 %v1854_v32, 0.0  ;;  %v335_v43 = vmul.f32 %v16093_v4, %v16043_v57  ;;  %v6634_v23 = vld [vmem:[%s15284_s4 + $0x128] sm:$0xff]  ;;  %v16111_v38 = vld [vmem:[#allocation19_spill] sm:$0xff] }
 0x12f   :  { %16102 = vst [vmem:[#allocation65_spill] sm:$0xff] %v8391_v37  ;;  %v1870_v56 = vadd.f32 %v16086_v29, %v1518_v58  ;;  %v655_v33 = vmul.f32 %v16109_v35, %v16046_v45  ;;  %v1128_v14 = vmul.f32 %v15941_v42, %v8404_v10  ;;  %v1129_v21 = vmul.f32 %v15942_v12, %v8404_v10  ;;  %v16134_v37 = vld [vmem:[#allocation63_spill] sm:$0xff] }
 0x130   :  { %16104 = vst [vmem:[#allocation76_spill] sm:$0xff] %v8395_v5  ;;  %v1096_v55 = vmul.f32 %v15941_v42, %v8411_v18  ;;  %v1097_v25 = vmul.f32 %v15942_v12, %v8411_v18  ;;  %v1098_v44 = vmul.f32 %v16111_v38, %v8411_v18  ;;  %v1099_v28 = vmul.f32 %v16112_v2, %v8411_v18  ;;  %v6630_v18 = vld [vmem:[%s15284_s4 + $0x108] sm:$0xff] }
 0x131   :  { %16105 = vst [vmem:[#allocation35_spill] sm:$0xff] %v8398_v16  ;;  %v1130_v32 = vmul.f32 %v16111_v38, %v8404_v10  ;;  %v1131_v58 = vmul.f32 %v16112_v2, %v8404_v10  ;;  %3718 = vperm.xlu1 %6810, %v6634_v23   ;;  %v671_v19 = vmul.f32 %v16109_v35, %v16057_v49 }
 0x132   :  { %16106 = vst [vmem:[#allocation47_spill] sm:$0xff] %v8400_v11  ;;  %v1352_v8 = vadd.f32 %v1096_v55, %v760_v50  ;;  %v1353_v45 = vadd.f32 %v1097_v25, %v761_v48  ;;  %v1354_v57 = vadd.f32 %v1098_v44, %v762_v36  ;;  %v1355_v20 = vadd.f32 %v1099_v28, %v763_v1  ;;  %v16116_v50 = vld [vmem:[#allocation39_spill] sm:$0xff]  ;;  %v16121_v44 = vld [vmem:[#allocation81_spill] sm:$0xff]  ;;  %v16122_v28 = vld [vmem:[#allocation84_spill] sm:$0xff] }
 0x133   :  { %16107 = vst [vmem:[#allocation17_spill] sm:$0xff] %v8402_v24  ;;  %v2126_v24 = vmax.f32 %v1870_v56, 0.0  ;;  %v911_v11 = vadd.f32 %v655_v33, %v319_v0  ;;  %v8446_v23 = vadd.f32 %v1128_v14, %v16115_v13  ;;  %v8449_v48 = vadd.f32 %v1129_v21, %v16116_v50  ;;  %v16117_v56 = vld [vmem:[#allocation88_spill] sm:$0xff] }
 0x134   :  { %16108 = vst [vmem:[#allocation18_spill] sm:$0xff] %v8404_v10  ;;  %v16114_v10 = vld [vmem:[#allocation57_spill] sm:$0xff]  ;;  %v8452_v36 = vadd.f32 %v8436_v31, %v1352_v8  ;;  %v8455_v1 = vadd.f32 %v8436_v31, %v1353_v45  ;;  %v8458_v55 = vadd.f32 %v1130_v32, %v16117_v56  ;;  %v927_v25 = vadd.f32 %v671_v19, %v335_v43  ;;  %v16124_v19 = vld [vmem:[#allocation32_spill] sm:$0xff] }
 0x135   :  { %16113 = vst [vmem:[#allocation75_spill] sm:$0xff] %v8436_v31  ;;  %v1247_v5 = vmul.f32 %v16114_v10, %v16068_v47  ;;  %v1263_v0 = vmul.f32 %v16114_v10, %v16062_v61  ;;  %v8463_v14 = vadd.f32 %v1131_v58, %v8230_v46  ;;  %v8466_v21 = vadd.f32 %v8436_v31, %v1354_v57  ;;  %v6629_v43 = vld [vmem:[%s15284_s4 + $0x100] sm:$0xff] }
 0x136   :  { %3698 = vperm.xlu2 %6811, %v6630_v18   ;;  %v8469_v8 = vadd.f32 %v8436_v31, %v1355_v20  ;;  %v8471_v45 = vpack.c.bf16 %v2126_v24, %v2110_v40  ;;  %v8473_v13 = vpop.permute.xlu1 %1635  ;;  %v16120_v18 = vld [vmem:[#allocation27_spill] sm:$0xff]  ;;  %v16123_v40 = vld [vmem:[#allocation85_spill] sm:$0xff] }
 0x137   :  { %v1503_v33 = vadd.f32 %v1247_v5, %v911_v11  ;;  %16119 = vst [vmem:[#allocation80_spill] sm:$0xff] %v8473_v13  ;;  %v1519_v46 = vadd.f32 %v1263_v0, %v927_v25  ;;  %v284_v57 = vmul.f32 %v16044_v41, %v16120_v18  ;;  %v1768_v20 = vadd.f32 %v8473_v13, %v16121_v44  ;;  %v16125_v25 = vld [vmem:[#allocation13_spill] sm:$0xff]  ;;  %v16126_v0 = vld [vmem:[#allocation30_spill] sm:$0xff]  ;;  %v16127_v5 = vld [vmem:[#allocation7_spill] sm:$0xff] }
 0x138   :  { %16118 = vst [vmem:[#allocation68_spill] sm:$0xff] %v8471_v45  ;;  %v1769_v24 = vadd.f32 %v8473_v13, %v16122_v28  ;;  %v1770_v32 = vadd.f32 %v8473_v13, %v16123_v40  ;;  %v1771_v58 = vadd.f32 %v8473_v13, %v16124_v19  ;;  %v620_v11 = vmul.f32 %v16126_v0, %v16125_v25  ;;  %v6705_v40 = vld [vmem:[%s15284_s4 + $0x1e0] sm:$0xff] }
 0x139   :  { %v1855_v50 = vadd.f32 %v16084_v17, %v1503_v33  ;;  %v1871_v56 = vadd.f32 %v16086_v29, %v1519_v46  ;;  %v636_v61 = vmul.f32 %v16126_v0, %v16127_v5  ;;  %3693 = vperm.xlu1 %6810, %v6629_v43   ;;  %v2024_v44 = vmax.f32 %v1768_v20, 0.0  ;;  %v16128_v31 = vld [vmem:[#allocation69_spill] sm:$0xff] }
 0x13a   :  { %v2025_v47 = vmax.f32 %v1769_v24, 0.0  ;;  %v2026_v28 = vmax.f32 %v1770_v32, 0.0  ;;  %v2027_v49 = vmax.f32 %v1771_v58, 0.0  ;;  %v300_v33 = vmul.f32 %v16044_v41, %v16128_v31  ;;  %v16129_v29 = vld [vmem:[#allocation77_spill] sm:$0xff] }
 0x13b   :  { %v2127_v19 = vmax.f32 %v1871_v56, 0.0  ;;  %v876_v46 = vadd.f32 %v620_v11, %v284_v57  ;;  %v1212_v17 = vmul.f32 %v16063_v15, %v16129_v29  ;;  %v16130_v13 = vmax.f32 %v8243_v62, 0.0 }
 0x13c   :  { %v16131_v43 = vmax.f32 %v8246_v63, 0.0  ;;  %v16132_v24 = vmax.f32 %v8261_v3, 0.0  ;;  %v16133_v58 = vmax.f32 %v8275_v22, 0.0  ;;  %v1228_v11 = vmul.f32 %v16063_v15, %v16134_v37 }
 0x13d   :  { %v2248_v45 = vpack.c.bf16 %v2024_v44, %v16130_v13  ;;  %v1468_v57 = vadd.f32 %v1212_v17, %v876_v46  ;;  %v285_v27 = vmul.f32 %v7665_v9, %v16120_v18  ;;  %v2111_v62 = vmax.f32 %v1855_v50, 0.0  ;;  %v16135_v17 = vld [vmem:[#allocation52_spill] sm:$0xff] }
 0x13e   :  { %v2249_v20 = vpack.c.bf16 %v2025_v47, %v16131_v43  ;;  %v2250_v32 = vpack.c.bf16 %v2026_v28, %v16132_v24  ;;  %v2251_v16 = vpack.c.bf16 %v2027_v49, %v16133_v58  ;;  %5083 = vperm.xlu2 %6811, %v6705_v40   ;;  %v892_v63 = vadd.f32 %v636_v61, %v300_v33  ;;  %v6708_v49 = vld [vmem:[%s15284_s4 + $0x1f8] sm:$0xff] }
 0x13f   :  { %2494 = vmatpush.bf16.msra.mxu0 %v2248_v45  ;;  %v621_v47 = vmul.f32 %v16020_v34, %v16125_v25  ;;  %v637_v3 = vmul.f32 %v16020_v34, %v16127_v5  ;;  %v8525_v13 = vadd.f32 %v16135_v17, %v1468_v57  ;;  %v301_v61 = vmul.f32 %v7665_v9, %v16128_v31  ;;  %v8541_v24 = vpop.permute.xlu1 %409  ;;  %v6704_v58 = vld [vmem:[%s15284_s4 + $0x1d8] sm:$0xff] }
 0x140   :  { %2543 = vmatpush.bf16.msra.mxu1 %v2249_v20  ;;  %2592 = vmatpush.bf16.msra.mxu2 %v2250_v32  ;;  %v1213_v45 = vmul.f32 %v16023_v39, %v16129_v29  ;;  %v8531_v50 = vpack.c.bf16 %v2127_v19, %v2111_v62  ;;  %v1229_v28 = vmul.f32 %v16023_v39, %v16134_v37 }
 0x141   :  { %2641 = vmatpush.bf16.msra.mxu3 %v2251_v16  ;;  %v877_v44 = vadd.f32 %v621_v47, %v285_v27  ;;  %v286_v40 = vmul.f32 %v7671_v60, %v16120_v18  ;;  %v1484_v33 = vadd.f32 %v1228_v11, %v892_v63  ;;  %v893_v46 = vadd.f32 %v637_v3, %v301_v61 }
 0x142   :  { %v622_v43 = vmul.f32 %v16025_v30, %v16125_v25  ;;  %v638_v20 = vmul.f32 %v16025_v30, %v16127_v5  ;;  %5098 = vperm.xlu1 %6810, %v6708_v49   ;;  %16136 = vst [vmem:[#allocation82_spill] sm:$0xff] %v8541_v24  ;;  %v302_v19 = vmul.f32 %v7671_v60, %v16128_v31 }
 0x143   :  { %v1469_v27 = vadd.f32 %v1213_v45, %v877_v44  ;;  %v1214_v32 = vmul.f32 %v16085_v59, %v16129_v29  ;;  %v488_v11 = vmul.f32 %v7078_v51, %v8541_v24  ;;  %v489_v57 = vmul.f32 %v7080_v52, %v8541_v24 }
 0x144   :  { %v490_v62 = vmul.f32 %v7082_v53, %v8541_v24  ;;  %v491_v63 = vmul.f32 %v16041_v26, %v8541_v24  ;;  %v1485_v47 = vadd.f32 %v1229_v28, %v893_v46  ;;  %v878_v49 = vadd.f32 %v622_v43, %v286_v40  ;;  %v16137_v26 = vld [vmem:[#allocation48_spill] sm:$0xff]  ;;  %v6703_v43 = vld [vmem:[%s15284_s4 + $0x1d0] sm:$0xff] }
 0x145   :  { %v8560_v3 = vadd.f32 %v16135_v17, %v1469_v27  ;;  %v1230_v61 = vmul.f32 %v16085_v59, %v16134_v37  ;;  %v744_v45 = vadd.f32 %v488_v11, %v8306_v7  ;;  %v745_v51 = vadd.f32 %v489_v57, %v8320_v54  ;;  %v16139_v11 = vld [vmem:[#allocation45_spill] sm:$0xff] }
 0x146   :  { %v894_v44 = vadd.f32 %v638_v20, %v302_v19  ;;  %v287_v52 = vmul.f32 %v16093_v4, %v16120_v18  ;;  %5078 = vperm.xlu2 %6811, %v6704_v58   ;;  %v746_v53 = vadd.f32 %v490_v62, %v8324_v6  ;;  %v747_v28 = vadd.f32 %v491_v63, %v16137_v26  ;;  %v16140_v26 = vld [vmem:[#allocation71_spill] sm:$0xff] }
 0x147   :  { %v1470_v46 = vadd.f32 %v1214_v32, %v878_v49  ;;  %v303_v40 = vmul.f32 %v16093_v4, %v16128_v31  ;;  %v623_v7 = vmul.f32 %v16109_v35, %v16125_v25  ;;  %v639_v54 = vmul.f32 %v16109_v35, %v16127_v5  ;;  %v16138_v32 = vld [vmem:[#allocation42_spill] sm:$0xff] }
 0x148   :  { %v1215_v20 = vmul.f32 %v16114_v10, %v16129_v29  ;;  %v1231_v6 = vmul.f32 %v16114_v10, %v16134_v37  ;;  %v2077_v27 = vmax.f32 %v8560_v3, 0.0  ;;  %v268_v58 = vmul.f32 %v16044_v41, %v16138_v32  ;;  %v16141_v37 = vld [vmem:[#allocation24_spill] sm:$0xff]  ;;  %v8595_v29 = vpop.permute.xlu1 %1001 }
 0x149   :  { %v1822_v19 = vadd.f32 %v16135_v17, %v1470_v46  ;;  %v604_v57 = vmul.f32 %v16126_v0, %v16139_v11  ;;  %v1486_v62 = vadd.f32 %v1230_v61, %v894_v44  ;;  %v879_v63 = vadd.f32 %v623_v7, %v287_v52  ;;  %16142 = vst [vmem:[#allocation83_spill] sm:$0xff] %v8595_v29  ;;  %v6699_v61 = vld [vmem:[%s15284_s4 + $0x1b0] sm:$0xff] }
 0x14a   :  { %v895_v49 = vadd.f32 %v639_v54, %v303_v40  ;;  %v252_v22 = vmul.f32 %v16044_v41, %v16140_v26  ;;  %5073 = vperm.xlu1 %6810, %v6703_v43   ;;  %v1180_v3 = vmul.f32 %v16063_v15, %v16141_v37  ;;  %v253_v46 = vmul.f32 %v7665_v9, %v16140_v26  ;;  %v16143_v40 = vld [vmem:[#allocation40_spill] sm:$0xff] }
 0x14b   :  { %v2078_v56 = vmax.f32 %v1822_v19, 0.0  ;;  %v860_v16 = vadd.f32 %v604_v57, %v268_v58  ;;  %v1471_v44 = vadd.f32 %v1215_v20, %v879_v63  ;;  %v588_v7 = vmul.f32 %v16126_v0, %v16143_v40  ;;  %v16144_v20 = vld [vmem:[#allocation46_spill] sm:$0xff] }
 0x14c   :  { %v1487_v52 = vadd.f32 %v1231_v6, %v895_v49  ;;  %v269_v43 = vmul.f32 %v7665_v9, %v16138_v32  ;;  %v1080_v54 = vmul.f32 %v15941_v42, %v8595_v29  ;;  %v1081_v19 = vmul.f32 %v15942_v12, %v8595_v29  ;;  %v8617_v12 = vpop.permute.xlu2 %1610 }
 0x14d   :  { %v1082_v58 = vmul.f32 %v16111_v38, %v8595_v29  ;;  %v1083_v57 = vmul.f32 %v16112_v2, %v8595_v29  ;;  %v1836_v6 = vadd.f32 %v16144_v20, %v1484_v33  ;;  %v1837_v63 = vadd.f32 %v16144_v20, %v1485_v47  ;;  %16145 = vst [vmem:[#allocation53_spill] sm:$0xff] %v8617_v12  ;;  %v6702_v38 = vld [vmem:[%s15284_s4 + $0x1c8] sm:$0xff] }
 0x14e   :  { %v8615_v49 = vadd.f32 %v16135_v17, %v1471_v44  ;;  %v844_v5 = vadd.f32 %v588_v7, %v252_v22  ;;  %5053 = vperm.xlu2 %6811, %v6699_v61   ;;  %v1336_v25 = vadd.f32 %v1080_v54, %v744_v45  ;;  %v1337_v42 = vadd.f32 %v1081_v19, %v745_v51 }
 0x14f   :  { %v1338_v31 = vadd.f32 %v1082_v58, %v746_v53  ;;  %v1339_v18 = vadd.f32 %v1083_v57, %v747_v28  ;;  %v2092_v2 = vmax.f32 %v1836_v6, 0.0  ;;  %v2093_v29 = vmax.f32 %v1837_v63, 0.0  ;;  %v16147_v57 = vld [vmem:[#allocation59_spill] sm:$0xff] }
 0x150   :  { %v1838_v33 = vadd.f32 %v16144_v20, %v1486_v62  ;;  %v1839_v47 = vadd.f32 %v16144_v20, %v1487_v52  ;;  %v1688_v44 = vadd.f32 %v8617_v12, %v1336_v25  ;;  %v1689_v22 = vadd.f32 %v8617_v12, %v1337_v42 }
 0x151   :  { %v1690_v45 = vadd.f32 %v8617_v12, %v1338_v31  ;;  %v1691_v51 = vadd.f32 %v8617_v12, %v1339_v18  ;;  %v16146_v53 = vmax.f32 %v8525_v13, 0.0  ;;  %v589_v7 = vmul.f32 %v16020_v34, %v16143_v40  ;;  %v6698_v31 = vld [vmem:[%s15284_s4 + $0x1a8] sm:$0xff]  ;;  %v8646_v63 = vpop.permute.xlu1 %1625 }
 0x152   :  { %v2094_v61 = vmax.f32 %v1838_v33, 0.0  ;;  %v605_v62 = vmul.f32 %v16020_v34, %v16139_v11  ;;  %5068 = vperm.xlu1 %6810, %v6702_v38   ;;  %v1944_v52 = vmax.f32 %v1688_v44, 0.0  ;;  %v1945_v25 = vmax.f32 %v1689_v22, 0.0  ;;  %16148 = vst [vmem:[#allocation19_spill] sm:$0xff] %v8646_v63 }
 0x153   :  { %v8630_v28 = vpack.c.bf16 %v2092_v2, %v16146_v53  ;;  %v1946_v54 = vmax.f32 %v1690_v45, 0.0  ;;  %v1947_v19 = vmax.f32 %v1691_v51, 0.0  ;;  %v8639_v18 = vpack.c.bf16 %v2093_v29, %v2077_v27 }
 0x154   :  { %v8641_v13 = vpack.c.bf16 %v2094_v61, %v2078_v56  ;;  %v2079_v58 = vmax.f32 %v8615_v49, 0.0  ;;  %v1196_v6 = vmul.f32 %v16063_v15, %v16147_v57  ;;  %v16149_v42 = vmax.f32 %v8452_v36, 0.0  ;;  %v16153_v61 = vld [vmem:[#allocation72_spill] sm:$0xff] }
 0x155   :  { %v16150_v2 = vmax.f32 %v8455_v1, 0.0  ;;  %v2095_v44 = vmax.f32 %v1839_v47, 0.0  ;;  %v1436_v22 = vadd.f32 %v1180_v3, %v844_v5  ;;  %v1736_v29 = vadd.f32 %v8646_v63, %v8446_v23  ;;  %v6697_v23 = vld [vmem:[%s15284_s4 + $0x1a0] sm:$0xff] }
 0x156   :  { %v2216_v38 = vpack.c.bf16 %v16149_v42, %v1944_v52  ;;  %v1737_v56 = vadd.f32 %v8646_v63, %v8449_v48  ;;  %v1738_v27 = vadd.f32 %v8646_v63, %v8458_v55  ;;  %v1739_v49 = vadd.f32 %v8646_v63, %v8463_v14  ;;  %5048 = vperm.xlu2 %6811, %v6698_v31   ;;  %v16154_v14 = vld [vmem:[#allocation92_spill] sm:$0xff] }
 0x157   :  { %v2217_v33 = vpack.c.bf16 %v16150_v2, %v1945_v25  ;;  %v16151_v36 = vmax.f32 %v8466_v21, 0.0  ;;  %v16152_v1 = vmax.f32 %v8469_v8, 0.0  ;;  %v1452_v5 = vadd.f32 %v1196_v6, %v860_v16  ;;  %v16155_v8 = vld [vmem:[#allocation49_spill] sm:$0xff]  ;;  %v16159_v6 = vld [vmem:[#allocation76_spill] sm:$0xff] }
 0x158   :  { %v845_v3 = vadd.f32 %v589_v7, %v253_v46  ;;  %v1992_v48 = vmax.f32 %v1736_v29, 0.0  ;;  %v1993_v51 = vmax.f32 %v1737_v56, 0.0  ;;  %v1994_v53 = vmax.f32 %v1738_v27, 0.0  ;;  %v16157_v46 = vld [vmem:[#allocation65_spill] sm:$0xff]  ;;  %v16161_v29 = vld [vmem:[#allocation35_spill] sm:$0xff] }
 0x159   :  { %v2218_v45 = vpack.c.bf16 %v16151_v36, %v1946_v54  ;;  %v2219_v47 = vpack.c.bf16 %v16152_v1, %v1947_v19  ;;  %v1995_v55 = vmax.f32 %v1739_v49, 0.0  ;;  %v1788_v52 = vadd.f32 %v16153_v61, %v1436_v22  ;;  %v6693_v36 = vld [vmem:[%s15284_s4 + $0x180] sm:$0xff] }
 0x15a   :  { %v1804_v25 = vadd.f32 %v16154_v14, %v1452_v5  ;;  %v861_v31 = vadd.f32 %v605_v62, %v269_v43  ;;  %v1181_v21 = vmul.f32 %v16023_v39, %v16141_v37  ;;  %v16156_v54 = vmax.f32 %v16155_v8, 0.0  ;;  %5043 = vperm.xlu1 %6810, %v6697_v23  }
 0x15b   :  { %v16158_v7 = vmax.f32 %v16157_v46, 0.0  ;;  %v16160_v42 = vmax.f32 %v16159_v6, 0.0  ;;  %v16162_v56 = vmax.f32 %v16161_v29, 0.0  ;;  %v1197_v43 = vmul.f32 %v16023_v39, %v16147_v57  ;;  %v6696_v6 = vld [vmem:[%s15284_s4 + $0x198] sm:$0xff]  ;;  %v16163_v29 = vld [vmem:[#allocation41_spill] sm:$0xff] }
 0x15c   :  { %v2232_v16 = vpack.c.bf16 %v1992_v48, %v16156_v54  ;;  %v2060_v22 = vmax.f32 %v1804_v25, 0.0  ;;  %v1437_v62 = vadd.f32 %v1181_v21, %v845_v3  ;;  %v254_v49 = vmul.f32 %v7671_v60, %v16140_v26 }
 0x15d   :  { %v2233_v19 = vpack.c.bf16 %v1993_v51, %v16158_v7  ;;  %v2234_v2 = vpack.c.bf16 %v1994_v53, %v16160_v42  ;;  %v2235_v27 = vpack.c.bf16 %v1995_v55, %v16162_v56  ;;  %v270_v1 = vmul.f32 %v7671_v60, %v16138_v32  ;;  %v16164_v56 = vld [vmem:[#allocation54_spill] sm:$0xff] }
 0x15e   :  { %2495 = vmatpush.bf16.msra.mxu0 %v2232_v16  ;;  %v590_v5 = vmul.f32 %v16025_v30, %v16143_v40  ;;  %v606_v23 = vmul.f32 %v16025_v30, %v16139_v11  ;;  %v8692_v3 = vpack.c.bf16 %v2095_v44, %v2079_v58  ;;  %v2044_v48 = vmax.f32 %v1788_v52, 0.0  ;;  %5023 = vperm.xlu2 %6811, %v6693_v36   ;;  %v6741_v52 = vld [vmem:[%s15282_s2] sm:$0xff] }
 0x15f   :  { %2544 = vmatpush.bf16.msra.mxu1 %v2233_v19  ;;  %2593 = vmatpush.bf16.msra.mxu2 %v2234_v2  ;;  %v1453_v51 = vadd.f32 %v1197_v43, %v861_v31  ;;  %v1789_v53 = vadd.f32 %v16153_v61, %v1437_v62  ;;  %v1182_v21 = vmul.f32 %v16085_v59, %v16141_v37  ;;  %v16166_v43 = vld [vmem:[#allocation28_spill] sm:$0xff]  ;;  %v16167_v36 = vld [vmem:[#allocation73_spill] sm:$0xff] }
 0x160   :  { %2642 = vmatpush.bf16.msra.mxu3 %v2235_v27  ;;  %v846_v55 = vadd.f32 %v590_v5, %v254_v49  ;;  %v862_v25 = vadd.f32 %v606_v23, %v270_v1  ;;  %v1198_v8 = vmul.f32 %v16085_v59, %v16147_v57  ;;  %v8699_v54 = vpack.c.bf16 %v2060_v22, %v2044_v48  ;;  %v16165_v22 = vld [vmem:[#allocation86_spill] sm:$0xff] }
 0x161   :  { %v1805_v16 = vadd.f32 %v16154_v14, %v1453_v51  ;;  %v255_v58 = vmul.f32 %v16093_v4, %v16140_v26  ;;  %v271_v44 = vmul.f32 %v16093_v4, %v16138_v32  ;;  %v2045_v31 = vmax.f32 %v1789_v53, 0.0  ;;  %v16168_v51 = vld [vmem:[#allocation51_spill] sm:$0xff] }
 0x162   :  { %2496 = vmatpush.bf16.msra.mxu0 %v2216_v38  ;;  %v1438_v46 = vadd.f32 %v1182_v21, %v846_v55  ;;  %v1454_v7 = vadd.f32 %v1198_v8, %v862_v25  ;;  %v591_v19 = vmul.f32 %v16109_v35, %v16143_v40  ;;  %v607_v38 = vmul.f32 %v16109_v35, %v16139_v11  ;;  %v16169_v25 = vld [vmem:[#allocation43_spill] sm:$0xff] }
 0x163   :  { %2545 = vmatpush.bf16.msra.mxu1 %v2217_v33  ;;  %2594 = vmatpush.bf16.msra.mxu2 %v2218_v45  ;;  %v2061_v42 = vmax.f32 %v1805_v16, 0.0  ;;  %v1183_v33 = vmul.f32 %v16114_v10, %v16141_v37  ;;  %v1199_v2 = vmul.f32 %v16114_v10, %v16147_v57  ;;  %v220_v1 = vmul.f32 %v16044_v41, %v16167_v36  ;;  %v16170_v8 = vld [vmem:[#allocation55_spill] sm:$0xff] }
 0x164   :  { %2643 = vmatpush.bf16.msra.mxu3 %v2219_v47  ;;  %v1790_v45 = vadd.f32 %v16153_v61, %v1438_v46  ;;  %v1806_v47 = vadd.f32 %v16154_v14, %v1454_v7  ;;  %v847_v27 = vadd.f32 %v591_v19, %v255_v58  ;;  %v863_v49 = vadd.f32 %v607_v38, %v271_v44  ;;  %v16171_v58 = vld [vmem:[#allocation31_spill] sm:$0xff]  ;;  %v16173_v19 = vld [vmem:[#allocation90_spill] sm:$0xff] }
 0x165   :  { %v8726_v62 = vpack.c.bf16 %v2061_v42, %v2045_v31  ;;  %5038 = vperm.xlu1 %6810, %v6696_v6   ;;  %2497 = vmatmul.bf16.vlgmr.msra.gmra.mxu0 %v6741_v52  ;;  %v236_v53 = vmul.f32 %v16044_v41, %v16168_v51  ;;  %v556_v21 = vmul.f32 %v16126_v0, %v16169_v25  ;;  %v16172_v46 = vld [vmem:[#allocation87_spill] sm:$0xff] }
 0x166   :  { %2685 = vmatpush.bf16.msrb.mxu0 %v16163_v29  ;;  %v2046_v5 = vmax.f32 %v1790_v45, 0.0  ;;  %v2062_v23 = vmax.f32 %v1806_v47, 0.0  ;;  %v1439_v48 = vadd.f32 %v1183_v33, %v847_v27  ;;  %2546 = vmatmul.bf16.vlgmr.msra.gmra.mxu1 %v6741_v52  ;;  %v1455_v55 = vadd.f32 %v1199_v2, %v863_v49  ;;  %v16174_v6 = vld [vmem:[#allocation91_spill] sm:$0xff]  ;;  %v16175_v2 = vld [vmem:[#allocation93_spill] sm:$0xff]  ;;  %v16176_v29 = vld [vmem:[#allocation60_spill] sm:$0xff] }
 0x167   :  { %2734 = vmatpush.bf16.msrb.mxu1 %v16164_v56  ;;  %2783 = vmatpush.bf16.msrb.mxu2 %v16165_v22  ;;  %v572_v16 = vmul.f32 %v16126_v0, %v16170_v8  ;;  %v1148_v7 = vmul.f32 %v16063_v15, %v16172_v46  ;;  %v812_v38 = vadd.f32 %v556_v21, %v220_v1  ;;  %v6319_v27 = vld [vmem:[%s15285_s5] sm:$0xff] }
 0x168   :  { %2832 = vmatpush.bf16.msrb.mxu3 %v16166_v43  ;;  %2595 = vmatmul.bf16.vlgmr.msra.gmra.mxu2 %v6741_v52  ;;  %v8737_v44 = vpack.c.bf16 %v2062_v23, %v2046_v5  ;;  %v1791_v31 = vadd.f32 %v16153_v61, %v1439_v48  ;;  %v1807_v42 = vadd.f32 %v16154_v14, %v1455_v55  ;;  %v16177_v5 = vld [vmem:[#allocation47_spill] sm:$0xff]  ;;  %v16178_v21 = vld [vmem:[#allocation17_spill] sm:$0xff] }
 0x169   :  { %2644 = vmatmul.bf16.vlgmr.msra.gmra.mxu3 %v6741_v52  ;;  %v828_v33 = vadd.f32 %v572_v16, %v236_v53  ;;  %v1164_v56 = vmul.f32 %v16063_v15, %v16176_v29  ;;  %v221_v45 = vmul.f32 %v7665_v9, %v16167_v36  ;;  %v237_v47 = vmul.f32 %v7665_v9, %v16168_v51  ;;  %v16179_v16 = vld [vmem:[#allocation68_spill] sm:$0xff] }
 0x16a   :  { %2686 = vmatpush.bf16.msrb.mxu0 %v16171_v58  ;;  %v2047_v52 = vmax.f32 %v1791_v31, 0.0  ;;  %v2063_v22 = vmax.f32 %v1807_v42, 0.0  ;;  %v1404_v43 = vadd.f32 %v1148_v7, %v812_v38  ;;  %v557_v49 = vmul.f32 %v16020_v34, %v16169_v25  ;;  %v16180_v31 = vld [vmem:[#allocation89_spill] sm:$0xff] }
 0x16b   :  { %2735 = vmatpush.bf16.msrb.mxu1 %v16173_v19  ;;  %2784 = vmatpush.bf16.msrb.mxu2 %v16174_v6  ;;  %v573_v1 = vmul.f32 %v16020_v34, %v16170_v8  ;;  %v1420_v23 = vadd.f32 %v1164_v56, %v828_v33  ;;  %v1149_v48 = vmul.f32 %v16023_v39, %v16172_v46  ;;  %v16181_v6 = vld [vmem:[#allocation80_spill] sm:$0xff] }
 0x16c   :  { %2833 = vmatpush.bf16.msrb.mxu3 %v16175_v2  ;;  %v1165_v53 = vmul.f32 %v16023_v39, %v16176_v29  ;;  %v222_v55 = vmul.f32 %v7671_v60, %v16167_v36  ;;  %v2271_v58 = vpack.c.bf16 %v2063_v22, %v2047_v52  ;;  %v1756_v7 = vadd.f32 %v16180_v31, %v1404_v43 }
 0x16d   :  { %v813_v19 = vadd.f32 %v557_v49, %v221_v45  ;;  %6322 = vperm.xlu1 %6810, %v6319_v27   ;;  %v1772_v42 = vadd.f32 %v16181_v6, %v1420_v23  ;;  %v829_v38 = vadd.f32 %v573_v1, %v237_v47  ;;  %v238_v33 = vmul.f32 %v7671_v60, %v16168_v51  ;;  %v8785_v27 = vld [vmem:[%s15280_s0 + $0x40] sm:$0xff]  ;;  %v6742_v23 = vld [vmem:[%s15282_s2 + $0x8] sm:$0xff] }
 0x16e   :  { %2687 = vmatpush.bf16.msrb.mxu0 %v16177_v5  ;;  %v2012_v2 = vmax.f32 %v1756_v7, 0.0  ;;  %v558_v5 = vmul.f32 %v16025_v30, %v16169_v25  ;;  %v574_v52 = vmul.f32 %v16025_v30, %v16170_v8  ;;  %v1166_v47 = vmul.f32 %v16085_v59, %v16176_v29 }
 0x16f   :  { %2736 = vmatpush.bf16.msrb.mxu1 %v16178_v21  ;;  %2785 = vmatpush.bf16.msrb.mxu2 %v16179_v16  ;;  %v1405_v56 = vadd.f32 %v1149_v48, %v813_v19  ;;  %v2028_v45 = vmax.f32 %v1772_v42, 0.0  ;;  %v1421_v22 = vadd.f32 %v1165_v53, %v829_v38  ;;  %v8791_v1 = vperm.slane %v8785_v27, 0 }
 0x170   :  { %2834 = vmatpush.bf16.msrb.mxu3 %v8531_v50  ;;  %v1150_v50 = vmul.f32 %v16085_v59, %v16172_v46  ;;  %v830_v49 = vadd.f32 %v574_v52, %v238_v33  ;;  %v559_v7 = vmul.f32 %v16109_v35, %v16169_v25  ;;  %v575_v42 = vmul.f32 %v16109_v35, %v16170_v8  ;;  %v8826_v52 = vld [vmem:[%s15280_s0 + $0x50] sm:$0xff] }
 0x171   :  { %v1757_v43 = vadd.f32 %v16180_v31, %v1405_v56  ;;  %v2252_v48 = vpack.c.bf16 %v2028_v45, %v2012_v2  ;;  %v1773_v53 = vadd.f32 %v16181_v6, %v1421_v22  ;;  %v1151_v38 = vmul.f32 %v16114_v10, %v16172_v46 }
 0x172   :  { %2688 = vmatpush.bf16.msrb.mxu0 %v8630_v28  ;;  %v814_v28 = vadd.f32 %v558_v5, %v222_v55  ;;  %v1422_v16 = vadd.f32 %v1166_v47, %v830_v49  ;;  %v1167_v33 = vmul.f32 %v16114_v10, %v16176_v29  ;;  %v16183_v49 = vld [vmem:[#allocation56_spill] sm:$0xff] }
 0x173   :  { %2737 = vmatpush.bf16.msrb.mxu1 %v8639_v18  ;;  %2786 = vmatpush.bf16.msrb.mxu2 %v8641_v13  ;;  %v223_v18 = vmul.f32 %v16093_v4, %v16167_v36  ;;  %v239_v13 = vmul.f32 %v16093_v4, %v16168_v51  ;;  %v2013_v55 = vmax.f32 %v1757_v43, 0.0  ;;  %v2029_v19 = vmax.f32 %v1773_v53, 0.0 }
 0x174   :  { %2835 = vmatpush.bf16.msrb.mxu3 %v8692_v3  ;;  %v1406_v21 = vadd.f32 %v1150_v50, %v814_v28  ;;  %v8807_v3 = vld [vmem:[%s15280_s0 + $0x48] sm:$0xff]  ;;  %v1774_v56 = vadd.f32 %v16181_v6, %v1422_v16  ;;  %v204_v53 = vmul.f32 %v16044_v41, %v16183_v49  ;;  %v8840_v16 = vperm.slane %v8826_v52, 1 }
 0x175   :  { %v815_v5 = vadd.f32 %v559_v7, %v223_v18  ;;  %2502 = vmatmul.bf16.gmra.mxu0 %v6742_v23  ;;  %v2253_v45 = vpack.c.bf16 %v2029_v19, %v2013_v55  ;;  %v831_v22 = vadd.f32 %v575_v42, %v239_v13  ;;  %v8831_v50 = vperm.slane %v8807_v3, 1  ;;  %v16184_v18 = vld [vmem:[#allocation58_spill] sm:$0xff] }
 0x176   :  { %2689 = vmatpush.bf16.msrb.mxu0 %v8699_v54  ;;  %v1758_v2 = vadd.f32 %v16180_v31, %v1406_v21  ;;  %v8821_v54 = vperm.slane %v8785_v27, 1  ;;  %2551 = vmatmul.bf16.gmra.mxu1 %v6742_v23  ;;  %v2030_v43 = vmax.f32 %v1774_v56, 0.0  ;;  %v524_v13 = vmul.f32 %v16126_v0, %v16184_v18  ;;  %v16185_v55 = vld [vmem:[#allocation22_spill] sm:$0xff] }
 0x177   :  { %2738 = vmatpush.bf16.msrb.mxu1 %v8726_v62  ;;  %2787 = vmatpush.bf16.msrb.mxu2 %v8737_v44  ;;  %v16182_v62 = vld [vmem:[#allocation37_spill] sm:$0xff]  ;;  %v1407_v28 = vadd.f32 %v1151_v38, %v815_v5  ;;  %v540_v21 = vmul.f32 %v16126_v0, %v16185_v55  ;;  %v16186_v42 = vld [vmem:[#allocation34_spill] sm:$0xff] }
 0x178   :  { %2836 = vmatpush.bf16.msrb.mxu3 %v2271_v58  ;;  %v188_v44 = vmul.f32 %v16044_v41, %v16182_v62  ;;  %2600 = vmatmul.bf16.gmra.mxu2 %v6742_v23  ;;  %v2014_v47 = vmax.f32 %v1758_v2, 0.0  ;;  %v1423_v58 = vadd.f32 %v1167_v33, %v831_v22  ;;  %v1116_v38 = vmul.f32 %v16063_v15, %v16186_v42  ;;  %v16187_v2 = vld [vmem:[#allocation18_spill] sm:$0xff] }
 0x179   :  { %2649 = vmatmul.bf16.gmra.mxu3 %v6742_v23  ;;  %v1759_v19 = vadd.f32 %v16180_v31, %v1407_v28  ;;  %v1132_v23 = vmul.f32 %v16063_v15, %v16187_v2  ;;  %v796_v56 = vadd.f32 %v540_v21, %v204_v53  ;;  %v189_v5 = vmul.f32 %v7665_v9, %v16182_v62 }
 0x17a   :  { %2690 = vmatpush.bf16.msrb.mxu0 %v2252_v48  ;;  %v2254_v7 = vpack.c.bf16 %v2030_v43, %v2014_v47  ;;  %v1775_v48 = vadd.f32 %v16181_v6, %v1423_v58  ;;  %v780_v33 = vadd.f32 %v524_v13, %v188_v44  ;;  %v525_v47 = vmul.f32 %v16020_v34, %v16184_v18 }
 0x17b   :  { %2739 = vmatpush.bf16.msrb.mxu1 %v2253_v45  ;;  %v2015_v22 = vmax.f32 %v1759_v19, 0.0  ;;  %v205_v45 = vmul.f32 %v7665_v9, %v16183_v49  ;;  %v541_v43 = vmul.f32 %v16020_v34, %v16185_v55  ;;  %v1388_v29 = vadd.f32 %v1132_v23, %v796_v56  ;;  %v16188_v19 = vld [vmem:[#allocation66_spill] sm:$0xff] }
 0x17c   :  { %2788 = vmatpush.bf16.msrb.mxu2 %v2254_v7  ;;  %v2031_v28 = vmax.f32 %v1775_v48, 0.0  ;;  %v1372_v31 = vadd.f32 %v1116_v38, %v780_v33  ;;  %v1117_v44 = vmul.f32 %v16023_v39, %v16186_v42  ;;  %v781_v53 = vadd.f32 %v525_v47, %v189_v5 }
 0x17d   :  { %v797_v58 = vadd.f32 %v541_v43, %v205_v45  ;;  %v1133_v13 = vmul.f32 %v16023_v39, %v16187_v2  ;;  %v190_v21 = vmul.f32 %v7671_v60, %v16182_v62  ;;  %v1740_v46 = vadd.f32 %v8646_v63, %v1388_v29 }
 0x17e   :  { %v2255_v7 = vpack.c.bf16 %v2031_v28, %v2015_v22  ;;  %v1724_v6 = vadd.f32 %v16188_v19, %v1372_v31  ;;  %v206_v38 = vmul.f32 %v7671_v60, %v16183_v49  ;;  %v1373_v23 = vadd.f32 %v1117_v44, %v781_v53 }
 0x17f   :  { %v1389_v48 = vadd.f32 %v1133_v13, %v797_v58  ;;  %v526_v33 = vmul.f32 %v16025_v30, %v16184_v18  ;;  %v542_v56 = vmul.f32 %v16025_v30, %v16185_v55  ;;  %v1996_v45 = vmax.f32 %v1740_v46, 0.0 }
 0x180   :  { %2837 = vmatpush.bf16.msrb.mxu3 %v2255_v7  ;;  %v1980_v5 = vmax.f32 %v1724_v6, 0.0  ;;  %v1118_v22 = vmul.f32 %v16085_v59, %v16186_v42  ;;  %v1134_v29 = vmul.f32 %v16085_v59, %v16187_v2  ;;  %v1725_v31 = vadd.f32 %v16188_v19, %v1373_v23 }
 0x181   :  { %v1741_v47 = vadd.f32 %v8646_v63, %v1389_v48  ;;  %v782_v43 = vadd.f32 %v526_v33, %v190_v21  ;;  %v798_v28 = vadd.f32 %v542_v56, %v206_v38  ;;  %v191_v53 = vmul.f32 %v16093_v4, %v16182_v62 }
 0x182   :  { %v2236_v44 = vpack.c.bf16 %v1996_v45, %v1980_v5  ;;  %v207_v6 = vmul.f32 %v16093_v4, %v16183_v49  ;;  %v527_v46 = vmul.f32 %v16109_v35, %v16184_v18  ;;  %v1981_v58 = vmax.f32 %v1725_v31, 0.0  ;;  %v16189_v45 = vld [vmem:[#allocation94_spill] sm:$0xff] }
 0x183   :  { %v1997_v13 = vmax.f32 %v1741_v47, 0.0  ;;  %v1374_v7 = vadd.f32 %v1118_v22, %v782_v43  ;;  %v1390_v8 = vadd.f32 %v1134_v29, %v798_v28  ;;  %v543_v23 = vmul.f32 %v16109_v35, %v16185_v55  ;;  %v16190_v47 = vld [vmem:[#allocation67_spill] sm:$0xff] }
 0x184   :  { %2691 = vmatpush.bf16.msrb.mxu0 %v2236_v44  ;;  %v783_v21 = vadd.f32 %v527_v46, %v191_v53  ;;  %v1119_v38 = vmul.f32 %v16114_v10, %v16186_v42  ;;  %v1135_v48 = vmul.f32 %v16114_v10, %v16187_v2  ;;  %v156_v22 = vmul.f32 %v16044_v41, %v16189_v45  ;;  %v16191_v46 = vld [vmem:[#allocation64_spill] sm:$0xff] }
 0x185   :  { %v2237_v33 = vpack.c.bf16 %v1997_v13, %v1981_v58  ;;  %v1726_v56 = vadd.f32 %v16188_v19, %v1374_v7  ;;  %v1742_v5 = vadd.f32 %v8646_v63, %v1390_v8  ;;  %v799_v29 = vadd.f32 %v543_v23, %v207_v6  ;;  %v16192_v13 = vld [vmem:[#allocation83_spill] sm:$0xff]  ;;  %v16193_v23 = vld [vmem:[#allocation33_spill] sm:$0xff] }
 0x186   :  { %v1375_v31 = vadd.f32 %v1119_v38, %v783_v21  ;;  %v172_v43 = vmul.f32 %v16044_v41, %v16190_v47  ;;  %v492_v28 = vmul.f32 %v16126_v0, %v8541_v24  ;;  %v508_v58 = vmul.f32 %v16126_v0, %v16191_v46 }
 0x187   :  { %2740 = vmatpush.bf16.msrb.mxu1 %v2237_v33  ;;  %v1982_v44 = vmax.f32 %v1726_v56, 0.0  ;;  %v1998_v53 = vmax.f32 %v1742_v5, 0.0  ;;  %v1084_v8 = vmul.f32 %v16063_v15, %v16192_v13  ;;  %v1391_v7 = vadd.f32 %v1135_v48, %v799_v29 }
 0x188   :  { %v1727_v2 = vadd.f32 %v16188_v19, %v1375_v31  ;;  %v748_v6 = vadd.f32 %v492_v28, %v156_v22  ;;  %v1100_v21 = vmul.f32 %v16063_v15, %v16193_v23  ;;  %v764_v38 = vadd.f32 %v508_v58, %v172_v43 }
 0x189   :  { %v2238_v41 = vpack.c.bf16 %v1998_v53, %v1982_v44  ;;  %v157_v33 = vmul.f32 %v7665_v9, %v16189_v45  ;;  %v173_v56 = vmul.f32 %v7665_v9, %v16190_v47  ;;  %v1743_v0 = vadd.f32 %v8646_v63, %v1391_v7  ;;  %v16194_v44 = vld [vmem:[#allocation75_spill] sm:$0xff] }
 0x18a   :  { %v1983_v5 = vmax.f32 %v1727_v2, 0.0  ;;  %v1340_v42 = vadd.f32 %v1084_v8, %v748_v6  ;;  %v493_v48 = vmul.f32 %v16020_v34, %v8541_v24  ;;  %v1356_v22 = vadd.f32 %v1100_v21, %v764_v38 }
 0x18b   :  { %2789 = vmatpush.bf16.msrb.mxu2 %v2238_v41  ;;  %v509_v15 = vmul.f32 %v16020_v34, %v16191_v46  ;;  %v1085_v29 = vmul.f32 %v16023_v39, %v16192_v13  ;;  %v1101_v31 = vmul.f32 %v16023_v39, %v16193_v23  ;;  %v1999_v43 = vmax.f32 %v1743_v0, 0.0 }
 0x18c   :  { %v1692_v9 = vadd.f32 %v8617_v12, %v1340_v42  ;;  %v749_v28 = vadd.f32 %v493_v48, %v157_v33  ;;  %v158_v2 = vmul.f32 %v7671_v60, %v16189_v45  ;;  %v1708_v53 = vadd.f32 %v16194_v44, %v1356_v22 }
 0x18d   :  { %v765_v58 = vadd.f32 %v509_v15, %v173_v56  ;;  %v174_v8 = vmul.f32 %v7671_v60, %v16190_v47  ;;  %v494_v34 = vmul.f32 %v16025_v30, %v8541_v24  ;;  %v2239_v7 = vpack.c.bf16 %v1999_v43, %v1983_v5 }
 0x18e   :  { %v1948_v6 = vmax.f32 %v1692_v9, 0.0  ;;  %v1341_v21 = vadd.f32 %v1085_v29, %v749_v28  ;;  %v510_v39 = vmul.f32 %v16025_v30, %v16191_v46  ;;  %v1964_v42 = vmax.f32 %v1708_v53, 0.0 }
 0x18f   :  { %v1357_v41 = vadd.f32 %v1101_v31, %v765_v58  ;;  %v750_v38 = vadd.f32 %v494_v34, %v158_v2  ;;  %v1086_v33 = vmul.f32 %v16085_v59, %v16192_v13  ;;  %2838 = vmatpush.bf16.msrb.mxu3 %v2239_v7  ;;  %v1102_v60 = vmul.f32 %v16085_v59, %v16193_v23  ;;  %v16195_v34 = vld [vmem:[#allocation61_spill] sm:$0xff] }
 0x190   :  { %v1693_v56 = vadd.f32 %v8617_v12, %v1341_v21  ;;  %v766_v0 = vadd.f32 %v510_v39, %v174_v8  ;;  %v159_v5 = vmul.f32 %v16093_v4, %v16189_v45  ;;  %v2220_v48 = vpack.c.bf16 %v1964_v42, %v1948_v6  ;;  %v16197_v42 = vld [vmem:[#allocation9_spill] sm:$0xff] }
 0x191   :  { %v1709_v22 = vadd.f32 %v16194_v44, %v1357_v41  ;;  %v1342_v30 = vadd.f32 %v1086_v33, %v750_v38  ;;  %v175_v15 = vmul.f32 %v16093_v4, %v16190_v47  ;;  %v495_v43 = vmul.f32 %v16109_v35, %v8541_v24 }
 0x192   :  { %v1949_v29 = vmax.f32 %v1693_v56, 0.0  ;;  %v1358_v31 = vadd.f32 %v1102_v60, %v766_v0  ;;  %v511_v9 = vmul.f32 %v16109_v35, %v16191_v46  ;;  %2692 = vmatpush.bf16.msrb.mxu0 %v2220_v48  ;;  %v1087_v2 = vmul.f32 %v16114_v10, %v16192_v13  ;;  %v16196_v35 = vld [vmem:[#allocation70_spill] sm:$0xff]  ;;  %v16198_v0 = vld [vmem:[#allocation12_spill] sm:$0xff] }
 0x193   :  { %v1965_v59 = vmax.f32 %v1709_v22, 0.0  ;;  %v1694_v28 = vadd.f32 %v8617_v12, %v1342_v30  ;;  %v1103_v53 = vmul.f32 %v16114_v10, %v16193_v23  ;;  %v751_v58 = vadd.f32 %v495_v43, %v159_v5  ;;  %v16199_v43 = vld [vmem:[#allocation5_spill] sm:$0xff]  ;;  %v16208_v23 = vld [vmem:[#allocation11_spill] sm:$0xff] }
 0x194   :  { %v1710_v4 = vadd.f32 %v16194_v44, %v1358_v31  ;;  %v767_v8 = vadd.f32 %v511_v9, %v175_v15  ;;  %v384_v7 = vmul.f32 %v8791_v1, %v16195_v34  ;;  %v400_v39 = vmul.f32 %v8791_v1, %v16196_v35 }
 0x195   :  { %v2221_v6 = vpack.c.bf16 %v1965_v59, %v1949_v29  ;;  %v1950_v21 = vmax.f32 %v1694_v28, 0.0  ;;  %v720_v41 = vmul.f32 %v8821_v54, %v16197_v42  ;;  %v1343_v33 = vadd.f32 %v1087_v2, %v751_v58  ;;  %v16200_v59 = vld [vmem:[#allocation6_spill] sm:$0xff] }
 0x196   :  { %v1966_v38 = vmax.f32 %v1710_v4, 0.0  ;;  %v1359_v56 = vadd.f32 %v1103_v53, %v767_v8  ;;  %v736_v10 = vmul.f32 %v8821_v54, %v16198_v0  ;;  %v8955_v5 = vperm.slane %v8785_v27, 2 }
 0x197   :  { %2741 = vmatpush.bf16.msrb.mxu1 %v2221_v6  ;;  %v976_v60 = vadd.f32 %v720_v41, %v384_v7  ;;  %v8958_v48 = vperm.slane %v8807_v3, 0  ;;  %v721_v22 = vmul.f32 %v8831_v50, %v16197_v42  ;;  %v1695_v15 = vadd.f32 %v8617_v12, %v1343_v33 }
 0x198   :  { %v2222_v30 = vpack.c.bf16 %v1966_v38, %v1950_v21  ;;  %v1711_v29 = vadd.f32 %v16194_v44, %v1359_v56  ;;  %v992_v31 = vadd.f32 %v736_v10, %v400_v39  ;;  %v1312_v9 = vmul.f32 %v8955_v5, %v16199_v43  ;;  %v16201_v10 = vld [vmem:[#allocation38_spill] sm:$0xff] }
 0x199   :  { %v1328_v28 = vmul.f32 %v8955_v5, %v16200_v59  ;;  %v385_v27 = vmul.f32 %v8958_v48, %v16195_v34  ;;  %v401_v2 = vmul.f32 %v8958_v48, %v16196_v35  ;;  %v1951_v53 = vmax.f32 %v1695_v15, 0.0  ;;  %v16202_v15 = vld [vmem:[#allocation14_spill] sm:$0xff] }
 0x19a   :  { %2790 = vmatpush.bf16.msrb.mxu2 %v2222_v30  ;;  %v1967_v4 = vmax.f32 %v1711_v29, 0.0  ;;  %v737_v58 = vmul.f32 %v8831_v50, %v16198_v0  ;;  %v8975_v8 = vperm.slane %v8807_v3, 2  ;;  %v1568_v7 = vadd.f32 %v1312_v9, %v976_v60 }
 0x19b   :  { %v1584_v6 = vadd.f32 %v1328_v28, %v992_v31  ;;  %v977_v21 = vadd.f32 %v721_v22, %v385_v27  ;;  %v8978_v39 = vperm.slane %v8826_v52, 0  ;;  %v722_v9 = vmul.f32 %v8840_v16, %v16197_v42  ;;  %v35_v27 = vld [vmem:[%s15280_s0 + $0x58] sm:$0xff] }
 0x19c   :  { %v2223_v41 = vpack.c.bf16 %v1967_v4, %v1951_v53  ;;  %v993_v38 = vadd.f32 %v737_v58, %v401_v2  ;;  %v1313_v33 = vmul.f32 %v8975_v8, %v16199_v43  ;;  %v1329_v56 = vmul.f32 %v8975_v8, %v16200_v59  ;;  %v6743_v2 = vld [vmem:[%s15282_s2 + $0x10] sm:$0xff] }
 0x19d   :  { %v1920_v30 = vadd.f32 %v16201_v10, %v1568_v7  ;;  %v1936_v29 = vadd.f32 %v16202_v15, %v1584_v6  ;;  %v386_v3 = vmul.f32 %v8978_v39, %v16195_v34  ;;  %v402_v60 = vmul.f32 %v8978_v39, %v16196_v35  ;;  %2507 = vmatmul.bf16.gmra.mxu0 %v6743_v2 }
 0x19e   :  { %2839 = vmatpush.bf16.msrb.mxu3 %v2223_v41  ;;  %v1569_v22 = vadd.f32 %v1313_v33, %v977_v21  ;;  %v1585_v31 = vadd.f32 %v1329_v56, %v993_v38  ;;  %v738_v28 = vmul.f32 %v8840_v16, %v16198_v0  ;;  %v9001_v58 = vperm.slane %v8826_v52, 2  ;;  %2556 = vmatmul.bf16.gmra.mxu1 %v6743_v2 }
 0x19f   :  { %v2176_v53 = vmax.f32 %v1920_v30, 0.0  ;;  %v2192_v4 = vmax.f32 %v1936_v29, 0.0  ;;  %v9003_v7 = vperm.slane %v35_v27, 0  ;;  %v978_v41 = vadd.f32 %v722_v9, %v386_v3  ;;  %2605 = vmatmul.bf16.gmra.mxu2 %v6743_v2  ;;  %2654 = vmatmul.bf16.gmra.mxu3 %v6743_v2 }
 0x1a0   :  { %v1921_v6 = vadd.f32 %v16201_v10, %v1569_v22  ;;  %v1937_v21 = vadd.f32 %v16202_v15, %v1585_v31  ;;  %v994_v38 = vadd.f32 %v738_v28, %v402_v60  ;;  %v1314_v56 = vmul.f32 %v9001_v58, %v16199_v43  ;;  %v16203_v28 = vld [vmem:[#allocation78_spill] sm:$0xff] }
 0x1a1   :  { %v2336_v33 = vpack.c.bf16 %v2192_v4, %v2176_v53  ;;  %v1330_v30 = vmul.f32 %v9001_v58, %v16200_v59  ;;  %v387_v52 = vmul.f32 %v9003_v7, %v16195_v34  ;;  %v403_v22 = vmul.f32 %v9003_v7, %v16196_v35  ;;  %v16204_v35 = vld [vmem:[#allocation15_spill] sm:$0xff] }
 0x1a2   :  { %v2177_v29 = vmax.f32 %v1921_v6, 0.0  ;;  %v2193_v44 = vmax.f32 %v1937_v21, 0.0  ;;  %v9015_v31 = vperm.slane %v35_v27, 1  ;;  %v1570_v3 = vadd.f32 %v1314_v56, %v978_v41  ;;  %v16205_v56 = vld [vmem:[#allocation8_spill] sm:$0xff] }
 0x1a3   :  { %2881 = vmatpush.bf16.msra.mxu0 %v2336_v33  ;;  %v1586_v60 = vadd.f32 %v1330_v30, %v994_v38  ;;  %v9017_v9 = vperm.slane %v35_v27, 2  ;;  %v352_v53 = vmul.f32 %v8791_v1, %v16203_v28  ;;  %v368_v34 = vmul.f32 %v8791_v1, %v16204_v35 }
 0x1a4   :  { %v2337_v4 = vpack.c.bf16 %v2193_v44, %v2177_v29  ;;  %v723_v6 = vmul.f32 %v9015_v31, %v16197_v42  ;;  %v739_v21 = vmul.f32 %v9015_v31, %v16198_v0  ;;  %v1922_v2 = vadd.f32 %v16201_v10, %v1570_v3  ;;  %v16206_v29 = vld [vmem:[#allocation10_spill] sm:$0xff]  ;;  %v16207_v3 = vld [vmem:[#allocation23_spill] sm:$0xff] }
 0x1a5   :  { %v1938_v41 = vadd.f32 %v16202_v15, %v1586_v60  ;;  %v1315_v27 = vmul.f32 %v9017_v9, %v16199_v43  ;;  %v1331_v38 = vmul.f32 %v9017_v9, %v16200_v59  ;;  %v688_v30 = vmul.f32 %v8821_v54, %v16205_v56 }
 0x1a6   :  { %2930 = vmatpush.bf16.msra.mxu1 %v2337_v4  ;;  %v979_v44 = vadd.f32 %v723_v6, %v387_v52  ;;  %v995_v33 = vadd.f32 %v739_v21, %v403_v22  ;;  %v704_v0 = vmul.f32 %v8821_v54, %v16206_v29  ;;  %v2178_v42 = vmax.f32 %v1922_v2, 0.0 }
 0x1a7   :  { %v2194_v12 = vmax.f32 %v1938_v41, 0.0  ;;  %v1280_v60 = vmul.f32 %v8955_v5, %v16207_v3  ;;  %v1296_v43 = vmul.f32 %v8955_v5, %v16208_v23  ;;  %v944_v59 = vadd.f32 %v688_v30, %v352_v53 }
 0x1a8   :  { %v1571_v13 = vadd.f32 %v1315_v27, %v979_v44  ;;  %v1587_v46 = vadd.f32 %v1331_v38, %v995_v33  ;;  %v960_v4 = vadd.f32 %v704_v0, %v368_v34  ;;  %v353_v22 = vmul.f32 %v8958_v48, %v16203_v28  ;;  %v16209_v38 = vld [vmem:[#allocation79_spill] sm:$0xff] }
 0x1a9   :  { %v2338_v52 = vpack.c.bf16 %v2194_v12, %v2178_v42  ;;  %v369_v6 = vmul.f32 %v8958_v48, %v16204_v35  ;;  %v689_v21 = vmul.f32 %v8831_v50, %v16205_v56  ;;  %v1536_v24 = vadd.f32 %v1280_v60, %v944_v59 }
 0x1aa   :  { %v1923_v2 = vadd.f32 %v16201_v10, %v1571_v13  ;;  %v1939_v41 = vadd.f32 %v16202_v15, %v1587_v46  ;;  %v1552_v47 = vadd.f32 %v1296_v43, %v960_v4  ;;  %v705_v34 = vmul.f32 %v8831_v50, %v16206_v29  ;;  %v16210_v13 = vld [vmem:[#allocation50_spill] sm:$0xff]  ;;  %v16215_v15 = vld [vmem:[#allocation29_spill] sm:$0xff] }
 0x1ab   :  { %2979 = vmatpush.bf16.msra.mxu2 %v2338_v52  ;;  %v945_v12 = vadd.f32 %v689_v21, %v353_v22  ;;  %v1281_v42 = vmul.f32 %v8975_v8, %v16207_v3  ;;  %v1297_v0 = vmul.f32 %v8975_v8, %v16208_v23  ;;  %v1888_v44 = vadd.f32 %v16209_v38, %v1536_v24 }
 0x1ac   :  { %v2179_v53 = vmax.f32 %v1923_v2, 0.0  ;;  %v2195_v27 = vmax.f32 %v1939_v41, 0.0  ;;  %v1904_v33 = vadd.f32 %v16210_v13, %v1552_v47  ;;  %v961_v46 = vadd.f32 %v705_v34, %v369_v6 }
 0x1ad   :  { %v1537_v59 = vadd.f32 %v1281_v42, %v945_v12  ;;  %v354_v43 = vmul.f32 %v8978_v39, %v16203_v28  ;;  %v370_v30 = vmul.f32 %v8978_v39, %v16204_v35  ;;  %v2144_v4 = vmax.f32 %v1888_v44, 0.0 }
 0x1ae   :  { %v2339_v60 = vpack.c.bf16 %v2195_v27, %v2179_v53  ;;  %v2160_v52 = vmax.f32 %v1904_v33, 0.0  ;;  %v690_v22 = vmul.f32 %v8840_v16, %v16205_v56  ;;  %v1553_v21 = vadd.f32 %v1297_v0, %v961_v46 }
 0x1af   :  { %v1889_v2 = vadd.f32 %v16209_v38, %v1537_v59  ;;  %v706_v24 = vmul.f32 %v8840_v16, %v16206_v29  ;;  %v1282_v47 = vmul.f32 %v9001_v58, %v16207_v3  ;;  %v1298_v34 = vmul.f32 %v9001_v58, %v16208_v23 }
 0x1b0   :  { %3028 = vmatpush.bf16.msra.mxu3 %v2339_v60  ;;  %v2320_v6 = vpack.c.bf16 %v2160_v52, %v2144_v4  ;;  %v946_v41 = vadd.f32 %v690_v22, %v354_v43  ;;  %v355_v12 = vmul.f32 %v9003_v7, %v16203_v28  ;;  %v1905_v42 = vadd.f32 %v16210_v13, %v1553_v21  ;;  %v16213_v28 = vld [vmem:[#allocation21_spill] sm:$0xff] }
 0x1b1   :  { %v2145_v0 = vmax.f32 %v1889_v2, 0.0  ;;  %v962_v53 = vadd.f32 %v706_v24, %v370_v30  ;;  %v371_v27 = vmul.f32 %v9003_v7, %v16204_v35  ;;  %v691_v33 = vmul.f32 %v9015_v31, %v16205_v56  ;;  %v16211_v30 = vld [vmem:[#allocation26_spill] sm:$0xff] }
 0x1b2   :  { %2882 = vmatpush.bf16.msra.mxu0 %v2320_v6  ;;  %v1538_v44 = vadd.f32 %v1282_v47, %v946_v41  ;;  %v707_v46 = vmul.f32 %v9015_v31, %v16206_v29  ;;  %v1283_v59 = vmul.f32 %v9017_v9, %v16207_v3  ;;  %v2161_v43 = vmax.f32 %v1905_v42, 0.0  ;;  %v16212_v24 = vld [vmem:[#allocation62_spill] sm:$0xff] }
 0x1b3   :  { %v1554_v60 = vadd.f32 %v1298_v34, %v962_v53  ;;  %v1299_v4 = vmul.f32 %v9017_v9, %v16208_v23  ;;  %v320_v52 = vmul.f32 %v8791_v1, %v16211_v30  ;;  %v947_v21 = vadd.f32 %v691_v33, %v355_v12  ;;  %v16214_v34 = vld [vmem:[#allocation74_spill] sm:$0xff] }
 0x1b4   :  { %v1890_v22 = vadd.f32 %v16209_v38, %v1538_v44  ;;  %v963_v2 = vadd.f32 %v707_v46, %v371_v27  ;;  %v336_v47 = vmul.f32 %v8791_v1, %v16212_v24  ;;  %v2321_v6 = vpack.c.bf16 %v2161_v43, %v2145_v0  ;;  %v16216_v46 = vld [vmem:[#allocation16_spill] sm:$0xff] }
 0x1b5   :  { %v1906_v41 = vadd.f32 %v16210_v13, %v1554_v60  ;;  %v656_v42 = vmul.f32 %v8821_v54, %v16213_v28  ;;  %v672_v53 = vmul.f32 %v8821_v54, %v16214_v34  ;;  %v1539_v56 = vadd.f32 %v1283_v59, %v947_v21 }
 0x1b6   :  { %v2146_v3 = vmax.f32 %v1890_v22, 0.0  ;;  %v1555_v23 = vadd.f32 %v1299_v4, %v963_v2  ;;  %v1248_v44 = vmul.f32 %v8955_v5, %v16215_v15  ;;  %2931 = vmatpush.bf16.msra.mxu1 %v2321_v6  ;;  %v1264_v0 = vmul.f32 %v8955_v5, %v16216_v46 }
 0x1b7   :  { %v2162_v12 = vmax.f32 %v1906_v41, 0.0  ;;  %v912_v27 = vadd.f32 %v656_v42, %v320_v52  ;;  %v928_v33 = vadd.f32 %v672_v53, %v336_v47  ;;  %v1891_v43 = vadd.f32 %v16209_v38, %v1539_v56  ;;  %v16217_v56 = vld [vmem:[#allocation25_spill] sm:$0xff]  ;;  %v16218_v42 = vld [vmem:[#allocation44_spill] sm:$0xff] }
 0x1b8   :  { %v1907_v60 = vadd.f32 %v16210_v13, %v1555_v23  ;;  %v321_v10 = vmul.f32 %v8958_v48, %v16211_v30  ;;  %v337_v59 = vmul.f32 %v8958_v48, %v16212_v24  ;;  %v657_v52 = vmul.f32 %v8831_v50, %v16213_v28 }
 0x1b9   :  { %v2322_v4 = vpack.c.bf16 %v2162_v12, %v2146_v3  ;;  %v1504_v22 = vadd.f32 %v1248_v44, %v912_v27  ;;  %v1520_v21 = vadd.f32 %v1264_v0, %v928_v33  ;;  %v2147_v2 = vmax.f32 %v1891_v43, 0.0 }
 0x1ba   :  { %v2163_v47 = vmax.f32 %v1907_v60, 0.0  ;;  %v673_v6 = vmul.f32 %v8831_v50, %v16214_v34  ;;  %v1249_v23 = vmul.f32 %v8975_v8, %v16215_v15  ;;  %v913_v38 = vadd.f32 %v657_v52, %v321_v10 }
 0x1bb   :  { %2980 = vmatpush.bf16.msra.mxu2 %v2322_v4  ;;  %v1856_v41 = vadd.f32 %v16217_v56, %v1504_v22  ;;  %v1872_v53 = vadd.f32 %v16218_v42, %v1520_v21  ;;  %v1265_v3 = vmul.f32 %v8975_v8, %v16216_v46  ;;  %v322_v27 = vmul.f32 %v8978_v39, %v16211_v30 }
 0x1bc   :  { %v2323_v44 = vpack.c.bf16 %v2163_v47, %v2147_v2  ;;  %v929_v12 = vadd.f32 %v673_v6, %v337_v59  ;;  %v338_v33 = vmul.f32 %v8978_v39, %v16212_v24  ;;  %v1505_v60 = vadd.f32 %v1249_v23, %v913_v38 }
 0x1bd   :  { %v2112_v0 = vmax.f32 %v1856_v41, 0.0  ;;  %v2128_v43 = vmax.f32 %v1872_v53, 0.0  ;;  %v658_v4 = vmul.f32 %v8840_v16, %v16213_v28  ;;  %v674_v10 = vmul.f32 %v8840_v16, %v16214_v34 }
 0x1be   :  { %3029 = vmatpush.bf16.msra.mxu3 %v2323_v44  ;;  %v1521_v22 = vadd.f32 %v1265_v3, %v929_v12  ;;  %v1250_v59 = vmul.f32 %v9001_v58, %v16215_v15  ;;  %v1266_v21 = vmul.f32 %v9001_v58, %v16216_v46  ;;  %v1857_v2 = vadd.f32 %v16217_v56, %v1505_v60 }
 0x1bf   :  { %v2304_v52 = vpack.c.bf16 %v2128_v43, %v2112_v0  ;;  %v914_v47 = vadd.f32 %v658_v4, %v322_v27  ;;  %v323_v38 = vmul.f32 %v9003_v7, %v16211_v30  ;;  %v930_v23 = vadd.f32 %v674_v10, %v338_v33  ;;  %v16219_v10 = vld [vmem:[#allocation27_spill] sm:$0xff] }
 0x1c0   :  { %v1873_v6 = vadd.f32 %v16218_v42, %v1521_v22  ;;  %v339_v41 = vmul.f32 %v9003_v7, %v16212_v24  ;;  %v659_v53 = vmul.f32 %v9015_v31, %v16213_v28  ;;  %v2113_v3 = vmax.f32 %v1857_v2, 0.0  ;;  %v16220_v2 = vld [vmem:[#allocation69_spill] sm:$0xff] }
 0x1c1   :  { %2883 = vmatpush.bf16.msra.mxu0 %v2304_v52  ;;  %v1506_v44 = vadd.f32 %v1250_v59, %v914_v47  ;;  %v675_v12 = vmul.f32 %v9015_v31, %v16214_v34  ;;  %v1251_v27 = vmul.f32 %v9017_v9, %v16215_v15  ;;  %v1522_v43 = vadd.f32 %v1266_v21, %v930_v23  ;;  %v16221_v15 = vld [vmem:[#allocation13_spill] sm:$0xff]  ;;  %v16222_v23 = vld [vmem:[#allocation7_spill] sm:$0xff] }
 0x1c2   :  { %v2129_v0 = vmax.f32 %v1873_v6, 0.0  ;;  %v915_v60 = vadd.f32 %v659_v53, %v323_v38  ;;  %v1267_v33 = vmul.f32 %v9017_v9, %v16216_v46  ;;  %v288_v52 = vmul.f32 %v8791_v1, %v16219_v10 }
 0x1c3   :  { %v1858_v4 = vadd.f32 %v16217_v56, %v1506_v44  ;;  %v931_v22 = vadd.f32 %v675_v12, %v339_v41  ;;  %v304_v59 = vmul.f32 %v8791_v1, %v16220_v2  ;;  %v1874_v34 = vadd.f32 %v16218_v42, %v1522_v43  ;;  %v16223_v44 = vld [vmem:[#allocation77_spill] sm:$0xff] }
 0x1c4   :  { %v2305_v47 = vpack.c.bf16 %v2129_v0, %v2113_v3  ;;  %v1507_v24 = vadd.f32 %v1251_v27, %v915_v60  ;;  %v624_v21 = vmul.f32 %v8821_v54, %v16221_v15  ;;  %v640_v53 = vmul.f32 %v8821_v54, %v16222_v23  ;;  %v16224_v3 = vld [vmem:[#allocation63_spill] sm:$0xff] }
 0x1c5   :  { %v2114_v38 = vmax.f32 %v1858_v4, 0.0  ;;  %v1523_v6 = vadd.f32 %v1267_v33, %v931_v22  ;;  %v1216_v41 = vmul.f32 %v8955_v5, %v16223_v44  ;;  %v2130_v12 = vmax.f32 %v1874_v34, 0.0 }
 0x1c6   :  { %2932 = vmatpush.bf16.msra.mxu1 %v2305_v47  ;;  %v1859_v46 = vadd.f32 %v16217_v56, %v1507_v24  ;;  %v880_v28 = vadd.f32 %v624_v21, %v288_v52  ;;  %v1232_v0 = vmul.f32 %v8955_v5, %v16224_v3  ;;  %v896_v43 = vadd.f32 %v640_v53, %v304_v59 }
 0x1c7   :  { %v1875_v27 = vadd.f32 %v16218_v42, %v1523_v6  ;;  %v289_v60 = vmul.f32 %v8958_v48, %v16219_v10  ;;  %v305_v33 = vmul.f32 %v8958_v48, %v16220_v2  ;;  %v2306_v4 = vpack.c.bf16 %v2130_v12, %v2114_v38 }
 0x1c8   :  { %v2115_v22 = vmax.f32 %v1859_v46, 0.0  ;;  %v1472_v30 = vadd.f32 %v1216_v41, %v880_v28  ;;  %v625_v34 = vmul.f32 %v8831_v50, %v16221_v15  ;;  %v1488_v52 = vadd.f32 %v1232_v0, %v896_v43 }
 0x1c9   :  { %v2131_v24 = vmax.f32 %v1875_v27, 0.0  ;;  %v641_v47 = vmul.f32 %v8831_v50, %v16222_v23  ;;  %v1217_v59 = vmul.f32 %v8975_v8, %v16223_v44  ;;  %2981 = vmatpush.bf16.msra.mxu2 %v2306_v4  ;;  %v1233_v38 = vmul.f32 %v8975_v8, %v16224_v3 }
 0x1ca   :  { %v1824_v21 = vadd.f32 %v16135_v17, %v1472_v30  ;;  %v881_v6 = vadd.f32 %v625_v34, %v289_v60  ;;  %v290_v28 = vmul.f32 %v8978_v39, %v16219_v10  ;;  %v1840_v53 = vadd.f32 %v16144_v20, %v1488_v52 }
 0x1cb   :  { %v2307_v46 = vpack.c.bf16 %v2131_v24, %v2115_v22  ;;  %v897_v41 = vadd.f32 %v641_v47, %v305_v33  ;;  %v306_v12 = vmul.f32 %v8978_v39, %v16220_v2  ;;  %v626_v43 = vmul.f32 %v8840_v16, %v16221_v15 }
 0x1cc   :  { %v2080_v0 = vmax.f32 %v1824_v21, 0.0  ;;  %v1473_v27 = vadd.f32 %v1217_v59, %v881_v6  ;;  %v642_v30 = vmul.f32 %v8840_v16, %v16222_v23  ;;  %v2096_v60 = vmax.f32 %v1840_v53, 0.0 }
 0x1cd   :  { %3030 = vmatpush.bf16.msra.mxu3 %v2307_v46  ;;  %v1489_v4 = vadd.f32 %v1233_v38, %v897_v41  ;;  %v1218_v22 = vmul.f32 %v9001_v58, %v16223_v44  ;;  %v1234_v33 = vmul.f32 %v9001_v58, %v16224_v3  ;;  %v882_v24 = vadd.f32 %v626_v43, %v290_v28 }
 0x1ce   :  { %v1825_v34 = vadd.f32 %v16135_v17, %v1473_v27  ;;  %v898_v52 = vadd.f32 %v642_v30, %v306_v12  ;;  %v291_v47 = vmul.f32 %v9003_v7, %v16219_v10  ;;  %v2288_v59 = vpack.c.bf16 %v2096_v60, %v2080_v0 }
 0x1cf   :  { %v1841_v21 = vadd.f32 %v16144_v20, %v1489_v4  ;;  %v307_v6 = vmul.f32 %v9003_v7, %v16220_v2  ;;  %v627_v38 = vmul.f32 %v9015_v31, %v16221_v15  ;;  %v1474_v53 = vadd.f32 %v1218_v22, %v882_v24 }
 0x1d0   :  { %v2081_v46 = vmax.f32 %v1825_v34, 0.0  ;;  %v1490_v41 = vadd.f32 %v1234_v33, %v898_v52  ;;  %v643_v27 = vmul.f32 %v9015_v31, %v16222_v23  ;;  %2884 = vmatpush.bf16.msra.mxu0 %v2288_v59  ;;  %v1219_v0 = vmul.f32 %v9017_v9, %v16223_v44 }
 0x1d1   :  { %v2097_v28 = vmax.f32 %v1841_v21, 0.0  ;;  %v883_v12 = vadd.f32 %v627_v38, %v291_v47  ;;  %v1235_v43 = vmul.f32 %v9017_v9, %v16224_v3  ;;  %v1826_v30 = vadd.f32 %v16135_v17, %v1474_v53 }
 0x1d2   :  { %v1842_v60 = vadd.f32 %v16144_v20, %v1490_v41  ;;  %v899_v4 = vadd.f32 %v643_v27, %v307_v6  ;;  %v256_v22 = vmul.f32 %v8791_v1, %v16140_v26  ;;  %v272_v24 = vmul.f32 %v8791_v1, %v16138_v32 }
 0x1d3   :  { %v2289_v33 = vpack.c.bf16 %v2097_v28, %v2081_v46  ;;  %v1475_v34 = vadd.f32 %v1219_v0, %v883_v12  ;;  %v592_v52 = vmul.f32 %v8821_v54, %v16143_v40  ;;  %v2082_v47 = vmax.f32 %v1826_v30, 0.0 }
 0x1d4   :  { %v2098_v59 = vmax.f32 %v1842_v60, 0.0  ;;  %v1491_v21 = vadd.f32 %v1235_v43, %v899_v4  ;;  %v608_v38 = vmul.f32 %v8821_v54, %v16139_v11  ;;  %v1184_v46 = vmul.f32 %v8955_v5, %v16141_v37 }
 0x1d5   :  { %2933 = vmatpush.bf16.msra.mxu1 %v2289_v33  ;;  %v1827_v6 = vadd.f32 %v16135_v17, %v1475_v34  ;;  %v848_v53 = vadd.f32 %v592_v52, %v256_v22  ;;  %v1200_v41 = vmul.f32 %v8955_v5, %v16147_v57  ;;  %v257_v0 = vmul.f32 %v8958_v48, %v16140_v26 }
 0x1d6   :  { %v2290_v27 = vpack.c.bf16 %v2098_v59, %v2082_v47  ;;  %v1843_v28 = vadd.f32 %v16144_v20, %v1491_v21  ;;  %v864_v12 = vadd.f32 %v608_v38, %v272_v24  ;;  %v273_v60 = vmul.f32 %v8958_v48, %v16138_v32 }
 0x1d7   :  { %v2083_v43 = vmax.f32 %v1827_v6, 0.0  ;;  %v1440_v30 = vadd.f32 %v1184_v46, %v848_v53  ;;  %v593_v4 = vmul.f32 %v8831_v50, %v16143_v40  ;;  %v609_v34 = vmul.f32 %v8831_v50, %v16139_v11 }
 0x1d8   :  { %2982 = vmatpush.bf16.msra.mxu2 %v2290_v27  ;;  %v2099_v22 = vmax.f32 %v1843_v28, 0.0  ;;  %v1456_v33 = vadd.f32 %v1200_v41, %v864_v12  ;;  %v1185_v24 = vmul.f32 %v8975_v8, %v16141_v37  ;;  %v1201_v59 = vmul.f32 %v8975_v8, %v16147_v57  ;;  %v6744_v41 = vld [vmem:[%s15282_s2 + $0x18] sm:$0xff] }
 0x1d9   :  { %v1792_v52 = vadd.f32 %v16153_v61, %v1440_v30  ;;  %v849_v47 = vadd.f32 %v593_v4, %v257_v0  ;;  %v258_v21 = vmul.f32 %v8978_v39, %v16140_v26  ;;  %v865_v53 = vadd.f32 %v609_v34, %v273_v60  ;;  %2512 = vmatmul.bf16.gmra.mxu0 %v6744_v41 }
 0x1da   :  { %v2291_v38 = vpack.c.bf16 %v2099_v22, %v2083_v43  ;;  %v1808_v6 = vadd.f32 %v16154_v14, %v1456_v33  ;;  %v274_v46 = vmul.f32 %v8978_v39, %v16138_v32  ;;  %v594_v12 = vmul.f32 %v8840_v16, %v16143_v40  ;;  %2561 = vmatmul.bf16.gmra.mxu1 %v6744_v41 }
 0x1db   :  { %v2048_v27 = vmax.f32 %v1792_v52, 0.0  ;;  %v1441_v28 = vadd.f32 %v1185_v24, %v849_v47  ;;  %v610_v0 = vmul.f32 %v8840_v16, %v16139_v11  ;;  %v1457_v30 = vadd.f32 %v1201_v59, %v865_v53  ;;  %2610 = vmatmul.bf16.gmra.mxu2 %v6744_v41  ;;  %2659 = vmatmul.bf16.gmra.mxu3 %v6744_v41 }
 0x1dc   :  { %3031 = vmatpush.bf16.msra.mxu3 %v2291_v38  ;;  %v2064_v43 = vmax.f32 %v1808_v6, 0.0  ;;  %v1186_v60 = vmul.f32 %v9001_v58, %v16141_v37  ;;  %v1202_v4 = vmul.f32 %v9001_v58, %v16147_v57  ;;  %v850_v33 = vadd.f32 %v594_v12, %v258_v21 }
 0x1dd   :  { %v1793_v22 = vadd.f32 %v16153_v61, %v1441_v28  ;;  %v866_v34 = vadd.f32 %v610_v0, %v274_v46  ;;  %v259_v24 = vmul.f32 %v9003_v7, %v16140_v26  ;;  %v1809_v47 = vadd.f32 %v16154_v14, %v1457_v30 }
 0x1de   :  { %v2272_v52 = vpack.c.bf16 %v2064_v43, %v2048_v27  ;;  %v275_v59 = vmul.f32 %v9003_v7, %v16138_v32  ;;  %v595_v38 = vmul.f32 %v9015_v31, %v16143_v40  ;;  %v1442_v53 = vadd.f32 %v1186_v60, %v850_v33 }
 0x1df   :  { %v2049_v6 = vmax.f32 %v1793_v22, 0.0  ;;  %v1458_v20 = vadd.f32 %v1202_v4, %v866_v34  ;;  %v611_v21 = vmul.f32 %v9015_v31, %v16139_v11  ;;  %v2065_v46 = vmax.f32 %v1809_v47, 0.0  ;;  %v16225_v47 = vld [vmem:[#allocation55_spill] sm:$0xff] }
 0x1e0   :  { %2885 = vmatpush.bf16.msra.mxu0 %v2272_v52  ;;  %v851_v28 = vadd.f32 %v595_v38, %v259_v24  ;;  %v1187_v27 = vmul.f32 %v9017_v9, %v16141_v37  ;;  %v1203_v12 = vmul.f32 %v9017_v9, %v16147_v57  ;;  %v1794_v0 = vadd.f32 %v16153_v61, %v1442_v53  ;;  %v16226_v53 = vld [vmem:[#allocation87_spill] sm:$0xff] }
 0x1e1   :  { %v1810_v43 = vadd.f32 %v16154_v14, %v1458_v20  ;;  %v867_v30 = vadd.f32 %v611_v21, %v275_v59  ;;  %v224_v60 = vmul.f32 %v8791_v1, %v16167_v36  ;;  %v2273_v4 = vpack.c.bf16 %v2065_v46, %v2049_v6  ;;  %v16227_v21 = vld [vmem:[#allocation60_spill] sm:$0xff] }
 0x1e2   :  { %v1443_v22 = vadd.f32 %v1187_v27, %v851_v28  ;;  %v240_v41 = vmul.f32 %v8791_v1, %v16168_v51  ;;  %v560_v33 = vmul.f32 %v8821_v54, %v16169_v25  ;;  %v2050_v34 = vmax.f32 %v1794_v0, 0.0 }
 0x1e3   :  { %v2066_v24 = vmax.f32 %v1810_v43, 0.0  ;;  %v1459_v52 = vadd.f32 %v1203_v12, %v867_v30  ;;  %v576_v38 = vmul.f32 %v8821_v54, %v16225_v47  ;;  %2934 = vmatpush.bf16.msra.mxu1 %v2273_v4  ;;  %v1152_v6 = vmul.f32 %v8955_v5, %v16226_v53 }
 0x1e4   :  { %v1795_v20 = vadd.f32 %v16153_v61, %v1443_v22  ;;  %v816_v59 = vadd.f32 %v560_v33, %v224_v60  ;;  %v1168_v46 = vmul.f32 %v8955_v5, %v16227_v21  ;;  %v225_v12 = vmul.f32 %v8958_v48, %v16167_v36 }
 0x1e5   :  { %v2274_v28 = vpack.c.bf16 %v2066_v24, %v2050_v34  ;;  %v1811_v27 = vadd.f32 %v16154_v14, %v1459_v52  ;;  %v832_v57 = vadd.f32 %v576_v38, %v240_v41  ;;  %v241_v30 = vmul.f32 %v8958_v48, %v16168_v51  ;;  %v16228_v34 = vld [vmem:[#allocation89_spill] sm:$0xff] }
 0x1e6   :  { %v2051_v0 = vmax.f32 %v1795_v20, 0.0  ;;  %v1408_v43 = vadd.f32 %v1152_v6, %v816_v59  ;;  %v561_v60 = vmul.f32 %v8831_v50, %v16169_v25  ;;  %v577_v33 = vmul.f32 %v8831_v50, %v16225_v47  ;;  %v16229_v6 = vld [vmem:[#allocation80_spill] sm:$0xff] }
 0x1e7   :  { %2983 = vmatpush.bf16.msra.mxu2 %v2274_v28  ;;  %v2067_v4 = vmax.f32 %v1811_v27, 0.0  ;;  %v1424_v22 = vadd.f32 %v1168_v46, %v832_v57  ;;  %v1153_v41 = vmul.f32 %v8975_v8, %v16226_v53  ;;  %v1169_v38 = vmul.f32 %v8975_v8, %v16227_v21 }
 0x1e8   :  { %v1760_v24 = vadd.f32 %v16228_v34, %v1408_v43  ;;  %v817_v52 = vadd.f32 %v561_v60, %v225_v12  ;;  %v226_v20 = vmul.f32 %v8978_v39, %v16167_v36  ;;  %v833_v27 = vadd.f32 %v577_v33, %v241_v30 }
 0x1e9   :  { %v2275_v59 = vpack.c.bf16 %v2067_v4, %v2051_v0  ;;  %v1776_v28 = vadd.f32 %v16229_v6, %v1424_v22  ;;  %v242_v57 = vmul.f32 %v8978_v39, %v16168_v51  ;;  %v562_v61 = vmul.f32 %v8840_v16, %v16169_v25 }
 0x1ea   :  { %v2016_v46 = vmax.f32 %v1760_v24, 0.0  ;;  %v1409_v14 = vadd.f32 %v1153_v41, %v817_v52  ;;  %v578_v12 = vmul.f32 %v8840_v16, %v16225_v47  ;;  %v1425_v60 = vadd.f32 %v1169_v38, %v833_v27 }
 0x1eb   :  { %3032 = vmatpush.bf16.msra.mxu3 %v2275_v59  ;;  %v2032_v43 = vmax.f32 %v1776_v28, 0.0  ;;  %v1154_v0 = vmul.f32 %v9001_v58, %v16226_v53  ;;  %v1170_v30 = vmul.f32 %v9001_v58, %v16227_v21  ;;  %v818_v22 = vadd.f32 %v562_v61, %v226_v20 }
 0x1ec   :  { %v1761_v4 = vadd.f32 %v16228_v34, %v1409_v14  ;;  %v834_v33 = vadd.f32 %v578_v12, %v242_v57  ;;  %v227_v41 = vmul.f32 %v9003_v7, %v16167_v36  ;;  %v1777_v52 = vadd.f32 %v16229_v6, %v1425_v60  ;;  %v16246_v36 = vld [vmem:[#allocation14_spill] sm:$0xff] }
 0x1ed   :  { %v2256_v24 = vpack.c.bf16 %v2032_v43, %v2016_v46  ;;  %v243_v59 = vmul.f32 %v9003_v7, %v16168_v51  ;;  %v563_v38 = vmul.f32 %v9015_v31, %v16169_v25  ;;  %v1410_v27 = vadd.f32 %v1154_v0, %v818_v22 }
 0x1ee   :  { %v2017_v28 = vmax.f32 %v1761_v4, 0.0  ;;  %v1426_v37 = vadd.f32 %v1170_v30, %v834_v33  ;;  %v579_v14 = vmul.f32 %v9015_v31, %v16225_v47  ;;  %v2033_v61 = vmax.f32 %v1777_v52, 0.0 }
 0x1ef   :  { %2886 = vmatpush.bf16.msra.mxu0 %v2256_v24  ;;  %v819_v20 = vadd.f32 %v563_v38, %v227_v41  ;;  %v1155_v57 = vmul.f32 %v9017_v9, %v16226_v53  ;;  %v1171_v46 = vmul.f32 %v9017_v9, %v16227_v21  ;;  %v1762_v12 = vadd.f32 %v16228_v34, %v1410_v27  ;;  %v16230_v27 = vld [vmem:[#allocation34_spill] sm:$0xff] }
 0x1f0   :  { %v1778_v43 = vadd.f32 %v16229_v6, %v1426_v37  ;;  %v835_v60 = vadd.f32 %v579_v14, %v243_v59  ;;  %v192_v0 = vmul.f32 %v8791_v1, %v16182_v62  ;;  %v2257_v30 = vpack.c.bf16 %v2033_v61, %v2017_v28  ;;  %v16231_v14 = vld [vmem:[#allocation18_spill] sm:$0xff] }
 0x1f1   :  { %v1411_v4 = vadd.f32 %v1155_v57, %v819_v20  ;;  %v208_v22 = vmul.f32 %v8791_v1, %v16183_v49  ;;  %v528_v33 = vmul.f32 %v8821_v54, %v16184_v18  ;;  %v2018_v41 = vmax.f32 %v1762_v12, 0.0 }
 0x1f2   :  { %v2034_v24 = vmax.f32 %v1778_v43, 0.0  ;;  %v1427_v52 = vadd.f32 %v1171_v46, %v835_v60  ;;  %v544_v38 = vmul.f32 %v8821_v54, %v16185_v55  ;;  %2935 = vmatpush.bf16.msra.mxu1 %v2257_v30  ;;  %v1120_v28 = vmul.f32 %v8955_v5, %v16230_v27 }
 0x1f3   :  { %v1763_v37 = vadd.f32 %v16228_v34, %v1411_v4  ;;  %v784_v59 = vadd.f32 %v528_v33, %v192_v0  ;;  %v1136_v61 = vmul.f32 %v8955_v5, %v16231_v14  ;;  %v193_v46 = vmul.f32 %v8958_v48, %v16182_v62 }
 0x1f4   :  { %v2258_v20 = vpack.c.bf16 %v2034_v24, %v2018_v41  ;;  %v1779_v57 = vadd.f32 %v16229_v6, %v1427_v52  ;;  %v800_v21 = vadd.f32 %v544_v38, %v208_v22  ;;  %v209_v60 = vmul.f32 %v8958_v48, %v16183_v49 }
 0x1f5   :  { %v2019_v12 = vmax.f32 %v1763_v37, 0.0  ;;  %v1376_v43 = vadd.f32 %v1120_v28, %v784_v59  ;;  %v529_v0 = vmul.f32 %v8831_v50, %v16184_v18  ;;  %v545_v33 = vmul.f32 %v8831_v50, %v16185_v55 }
 0x1f6   :  { %2984 = vmatpush.bf16.msra.mxu2 %v2258_v20  ;;  %v2035_v30 = vmax.f32 %v1779_v57, 0.0  ;;  %v1392_v4 = vadd.f32 %v1136_v61, %v800_v21  ;;  %v1121_v22 = vmul.f32 %v8975_v8, %v16230_v27  ;;  %v1137_v52 = vmul.f32 %v8975_v8, %v16231_v14  ;;  %v6745_v61 = vld [vmem:[%s15282_s2 + $0x20] sm:$0xff] }
 0x1f7   :  { %v1728_v41 = vadd.f32 %v16188_v19, %v1376_v43  ;;  %v785_v24 = vadd.f32 %v529_v0, %v193_v46  ;;  %v194_v38 = vmul.f32 %v8978_v39, %v16182_v62  ;;  %v801_v28 = vadd.f32 %v545_v33, %v209_v60  ;;  %2517 = vmatmul.bf16.gmra.mxu0 %v6745_v61 }
 0x1f8   :  { %v2259_v37 = vpack.c.bf16 %v2035_v30, %v2019_v12  ;;  %v1744_v59 = vadd.f32 %v8646_v63, %v1392_v4  ;;  %v210_v21 = vmul.f32 %v8978_v39, %v16183_v49  ;;  %v530_v46 = vmul.f32 %v8840_v16, %v16184_v18  ;;  %2566 = vmatmul.bf16.gmra.mxu1 %v6745_v61 }
 0x1f9   :  { %v1984_v20 = vmax.f32 %v1728_v41, 0.0  ;;  %v1377_v57 = vadd.f32 %v1121_v22, %v785_v24  ;;  %v546_v43 = vmul.f32 %v8840_v16, %v16185_v55  ;;  %v1393_v0 = vadd.f32 %v1137_v52, %v801_v28  ;;  %2615 = vmatmul.bf16.gmra.mxu2 %v6745_v61  ;;  %2664 = vmatmul.bf16.gmra.mxu3 %v6745_v61  ;;  %v16232_v61 = vld [vmem:[#allocation67_spill] sm:$0xff] }
 0x1fa   :  { %3033 = vmatpush.bf16.msra.mxu3 %v2259_v37  ;;  %v2000_v12 = vmax.f32 %v1744_v59, 0.0  ;;  %v1122_v60 = vmul.f32 %v9001_v58, %v16230_v27  ;;  %v1138_v30 = vmul.f32 %v9001_v58, %v16231_v14  ;;  %v786_v33 = vadd.f32 %v530_v46, %v194_v38 }
 0x1fb   :  { %v1729_v4 = vadd.f32 %v16188_v19, %v1377_v57  ;;  %v802_v22 = vadd.f32 %v546_v43, %v210_v21  ;;  %v195_v41 = vmul.f32 %v9003_v7, %v16182_v62  ;;  %v1745_v37 = vadd.f32 %v8646_v63, %v1393_v0 }
 0x1fc   :  { %v2240_v24 = vpack.c.bf16 %v2000_v12, %v1984_v20  ;;  %v211_v52 = vmul.f32 %v9003_v7, %v16183_v49  ;;  %v531_v59 = vmul.f32 %v9015_v31, %v16184_v18  ;;  %v1378_v6 = vadd.f32 %v1122_v60, %v786_v33 }
 0x1fd   :  { %v1985_v28 = vmax.f32 %v1729_v4, 0.0  ;;  %v1394_v34 = vadd.f32 %v1138_v30, %v802_v22  ;;  %v547_v38 = vmul.f32 %v9015_v31, %v16185_v55  ;;  %v2001_v21 = vmax.f32 %v1745_v37, 0.0  ;;  %v16233_v22 = vld [vmem:[#allocation82_spill] sm:$0xff] }
 0x1fe   :  { %2887 = vmatpush.bf16.msra.mxu0 %v2240_v24  ;;  %v787_v57 = vadd.f32 %v531_v59, %v195_v41  ;;  %v1123_v20 = vmul.f32 %v9017_v9, %v16230_v27  ;;  %v1139_v46 = vmul.f32 %v9017_v9, %v16231_v14  ;;  %v1730_v43 = vadd.f32 %v16188_v19, %v1378_v6  ;;  %v16234_v14 = vld [vmem:[#allocation64_spill] sm:$0xff] }
 0x1ff   :  { %v1746_v12 = vadd.f32 %v8646_v63, %v1394_v34  ;;  %v803_v0 = vadd.f32 %v547_v38, %v211_v52  ;;  %v160_v60 = vmul.f32 %v8791_v1, %v16189_v45  ;;  %v2241_v30 = vpack.c.bf16 %v2001_v21, %v1985_v28  ;;  %v16235_v38 = vld [vmem:[#allocation83_spill] sm:$0xff]  ;;  %v16236_v21 = vld [vmem:[#allocation33_spill] sm:$0xff] }
 0x200   :  { %v1379_v4 = vadd.f32 %v1123_v20, %v787_v57  ;;  %v176_v33 = vmul.f32 %v8791_v1, %v16232_v61  ;;  %v496_v41 = vmul.f32 %v8821_v54, %v16233_v22  ;;  %v1986_v24 = vmax.f32 %v1730_v43, 0.0 }
 0x201   :  { %v2002_v37 = vmax.f32 %v1746_v12, 0.0  ;;  %v1395_v59 = vadd.f32 %v1139_v46, %v803_v0  ;;  %v512_v6 = vmul.f32 %v8821_v54, %v16234_v14  ;;  %2936 = vmatpush.bf16.msra.mxu1 %v2241_v30  ;;  %v1088_v28 = vmul.f32 %v8955_v5, %v16235_v38 }
 0x202   :  { %v1731_v34 = vadd.f32 %v16188_v19, %v1379_v4  ;;  %v752_v52 = vadd.f32 %v496_v41, %v160_v60  ;;  %v1104_v57 = vmul.f32 %v8955_v5, %v16236_v21  ;;  %v161_v46 = vmul.f32 %v8958_v48, %v16189_v45 }
 0x203   :  { %v2242_v1 = vpack.c.bf16 %v2002_v37, %v1986_v24  ;;  %v1747_v20 = vadd.f32 %v8646_v63, %v1395_v59  ;;  %v768_v27 = vadd.f32 %v512_v6, %v176_v33  ;;  %v177_v54 = vmul.f32 %v8958_v48, %v16232_v61  ;;  %v16237_v33 = vld [vmem:[#allocation53_spill] sm:$0xff]  ;;  %v6746_v59 = vld [vmem:[%s15282_s2 + $0x28] sm:$0xff]  ;;  %v16238_v6 = vld [vmem:[#allocation75_spill] sm:$0xff] }
 0x204   :  { %v1987_v43 = vmax.f32 %v1731_v34, 0.0  ;;  %v1344_v12 = vadd.f32 %v1088_v28, %v752_v52  ;;  %v497_v0 = vmul.f32 %v8831_v50, %v16233_v22  ;;  %v513_v5 = vmul.f32 %v8831_v50, %v16234_v14 }
 0x205   :  { %2985 = vmatpush.bf16.msra.mxu2 %v2242_v1  ;;  %v2003_v60 = vmax.f32 %v1747_v20, 0.0  ;;  %v1360_v30 = vadd.f32 %v1104_v57, %v768_v27  ;;  %v1089_v4 = vmul.f32 %v8975_v8, %v16235_v38  ;;  %v1105_v37 = vmul.f32 %v8975_v8, %v16236_v21 }
 0x206   :  { %v1696_v41 = vadd.f32 %v16237_v33, %v1344_v12  ;;  %v753_v24 = vadd.f32 %v497_v0, %v161_v46  ;;  %v162_v48 = vmul.f32 %v8978_v39, %v16189_v45  ;;  %v769_v50 = vadd.f32 %v513_v5, %v177_v54 }
 0x207   :  { %v2243_v27 = vpack.c.bf16 %v2003_v60, %v1987_v43  ;;  %v1712_v34 = vadd.f32 %v16238_v6, %v1360_v30  ;;  %v178_v52 = vmul.f32 %v8978_v39, %v16232_v61  ;;  %v498_v1 = vmul.f32 %v8840_v16, %v16233_v22  ;;  %2522 = vmatmul.bf16.gmra.mxu0 %v6746_v59 }
 0x208   :  { %v1952_v28 = vmax.f32 %v1696_v41, 0.0  ;;  %v1345_v57 = vadd.f32 %v1089_v4, %v753_v24  ;;  %v514_v8 = vmul.f32 %v8840_v16, %v16234_v14  ;;  %v1361_v46 = vadd.f32 %v1105_v37, %v769_v50  ;;  %2571 = vmatmul.bf16.gmra.mxu1 %v6746_v59 }
 0x209   :  { %3034 = vmatpush.bf16.msra.mxu3 %v2243_v27  ;;  %v1968_v20 = vmax.f32 %v1712_v34, 0.0  ;;  %v1090_v43 = vmul.f32 %v9001_v58, %v16235_v38  ;;  %v1106_v12 = vmul.f32 %v9001_v58, %v16236_v21  ;;  %v754_v39 = vadd.f32 %v498_v1, %v162_v48  ;;  %2620 = vmatmul.bf16.gmra.mxu2 %v6746_v59 }
 0x20a   :  { %v1697_v54 = vadd.f32 %v16237_v33, %v1345_v57  ;;  %v770_v0 = vadd.f32 %v514_v8, %v178_v52  ;;  %v163_v60 = vmul.f32 %v9003_v7, %v16189_v45  ;;  %v1713_v16 = vadd.f32 %v16238_v6, %v1361_v46  ;;  %2669 = vmatmul.bf16.gmra.mxu3 %v6746_v59  ;;  %v36_v46 = vld [vmem:[%s15280_s0 + $0x60] sm:$0xff]  ;;  %v37_v59 = vld [vmem:[%s15280_s0 + $0x68] sm:$0xff] }
 0x20b   :  { %v2224_v30 = vpack.c.bf16 %v1968_v20, %v1952_v28  ;;  %v179_v5 = vmul.f32 %v9003_v7, %v16232_v61  ;;  %v499_v4 = vmul.f32 %v9015_v31, %v16233_v22  ;;  %v1346_v58 = vadd.f32 %v1090_v43, %v754_v39 }
 0x20c   :  { %v1953_v41 = vmax.f32 %v1697_v54, 0.0  ;;  %v1362_v24 = vadd.f32 %v1106_v12, %v770_v0  ;;  %v515_v37 = vmul.f32 %v9015_v31, %v16234_v14  ;;  %v1969_v48 = vmax.f32 %v1713_v16, 0.0 }
 0x20d   :  { %2888 = vmatpush.bf16.msra.mxu0 %v2224_v30  ;;  %v755_v27 = vadd.f32 %v499_v4, %v163_v60  ;;  %v1091_v34 = vmul.f32 %v9017_v9, %v16235_v38  ;;  %v1107_v7 = vmul.f32 %v9017_v9, %v16236_v21  ;;  %v1698_v50 = vadd.f32 %v16237_v33, %v1346_v58  ;;  %v38_v30 = vld [vmem:[%s15280_s0 + $0x70] sm:$0xff] }
 0x20e   :  { %v1714_v52 = vadd.f32 %v16238_v6, %v1362_v24  ;;  %v771_v28 = vadd.f32 %v515_v37, %v179_v5  ;;  %v2225_v57 = vpack.c.bf16 %v1969_v48, %v1953_v41  ;;  %v9438_v39 = vperm.slane %v36_v46, 0  ;;  %v16239_v5 = vld [vmem:[#allocation61_spill] sm:$0xff]  ;;  %v39_v24 = vld [vmem:[%s15280_s0 + $0x78] sm:$0xff]  ;;  %v6747_v48 = vld [vmem:[%s15282_s2 + $0x30] sm:$0xff] }
 0x20f   :  { %v1347_v1 = vadd.f32 %v1091_v34, %v755_v27  ;;  %v1954_v8 = vmax.f32 %v1698_v50, 0.0  ;;  %v9440_v0 = vperm.slane %v36_v46, 1  ;;  %v9442_v60 = vperm.slane %v36_v46, 2  ;;  %v16240_v27 = vld [vmem:[#allocation70_spill] sm:$0xff] }
 0x210   :  { %v1970_v31 = vmax.f32 %v1714_v52, 0.0  ;;  %v1363_v20 = vadd.f32 %v1107_v7, %v771_v28  ;;  %2937 = vmatpush.bf16.msra.mxu1 %v2225_v57  ;;  %v388_v4 = vmul.f32 %v9438_v39, %v16239_v5  ;;  %v9449_v41 = vperm.slane %v37_v59, 1  ;;  %v16241_v52 = vld [vmem:[#allocation9_spill] sm:$0xff]  ;;  %v16242_v57 = vld [vmem:[#allocation12_spill] sm:$0xff] }
 0x211   :  { %v1699_v43 = vadd.f32 %v16237_v33, %v1347_v1  ;;  %v9451_v58 = vperm.slane %v37_v59, 2  ;;  %v404_v34 = vmul.f32 %v9438_v39, %v16240_v27  ;;  %v9461_v7 = vperm.slane %v38_v30, 1 }
 0x212   :  { %v2226_v12 = vpack.c.bf16 %v1970_v31, %v1954_v8  ;;  %v1715_v9 = vadd.f32 %v16238_v6, %v1363_v20  ;;  %v9463_v50 = vperm.slane %v38_v30, 2  ;;  %v724_v28 = vmul.f32 %v9440_v0, %v16241_v52  ;;  %v16243_v8 = vld [vmem:[#allocation5_spill] sm:$0xff]  ;;  %v16244_v20 = vld [vmem:[#allocation6_spill] sm:$0xff] }
 0x213   :  { %v1955_v54 = vmax.f32 %v1699_v43, 0.0  ;;  %v740_v1 = vmul.f32 %v9440_v0, %v16242_v57  ;;  %v1316_v31 = vmul.f32 %v9442_v60, %v16243_v8  ;;  %v1332_v46 = vmul.f32 %v9442_v60, %v16244_v20 }
 0x214   :  { %2986 = vmatpush.bf16.msra.mxu2 %v2226_v12  ;;  %v1971_v16 = vmax.f32 %v1715_v9, 0.0  ;;  %v9473_v43 = vperm.slane %v37_v59, 0  ;;  %v9475_v12 = vperm.slane %v38_v30, 0  ;;  %v9477_v9 = vperm.slane %v39_v24, 1 }
 0x215   :  { %v741_v6 = vmul.f32 %v9449_v41, %v16242_v57  ;;  %v1317_v33 = vmul.f32 %v9451_v58, %v16243_v8  ;;  %v726_v59 = vmul.f32 %v9461_v7, %v16241_v52  ;;  %v742_v30 = vmul.f32 %v9461_v7, %v16242_v57 }
 0x216   :  { %v2227_v37 = vpack.c.bf16 %v1971_v16, %v1955_v54  ;;  %v9479_v54 = vperm.slane %v39_v24, 2  ;;  %v725_v16 = vmul.f32 %v9449_v41, %v16241_v52  ;;  %v1318_v21 = vmul.f32 %v9463_v50, %v16243_v8 }
 0x217   :  { %2527 = vmatmul.bf16.gmra.mxu0 %v6747_v48  ;;  %v1334_v38 = vmul.f32 %v9463_v50, %v16244_v20  ;;  %v389_v14 = vmul.f32 %v9473_v43, %v16239_v5  ;;  %v9499_v22 = vperm.slane %v39_v24, 0  ;;  %v372_v61 = vmul.f32 %v9438_v39, %v16204_v35 }
 0x218   :  { %3035 = vmatpush.bf16.msra.mxu3 %v2227_v37  ;;  %v1333_v37 = vmul.f32 %v9451_v58, %v16244_v20  ;;  %2576 = vmatmul.bf16.gmra.mxu1 %v6747_v48  ;;  %v708_v45 = vmul.f32 %v9440_v0, %v16206_v29  ;;  %v727_v63 = vmul.f32 %v9477_v9, %v16241_v52 }
 0x219   :  { %2625 = vmatmul.bf16.gmra.mxu2 %v6747_v48  ;;  %v743_v19 = vmul.f32 %v9477_v9, %v16242_v57  ;;  %v1319_v55 = vmul.f32 %v9479_v54, %v16243_v8  ;;  %v1335_v24 = vmul.f32 %v9479_v54, %v16244_v20  ;;  %v980_v18 = vadd.f32 %v724_v28, %v388_v4 }
 0x21a   :  { %2674 = vmatmul.bf16.gmra.mxu3 %v6747_v48  ;;  %v996_v49 = vadd.f32 %v740_v1, %v404_v34  ;;  %v405_v62 = vmul.f32 %v9473_v43, %v16240_v27  ;;  %v981_v53 = vadd.f32 %v725_v16, %v389_v14  ;;  %v390_v47 = vmul.f32 %v9475_v12, %v16239_v5  ;;  %v16245_v16 = vld [vmem:[#allocation38_spill] sm:$0xff] }
 0x21b   :  { %v406_v52 = vmul.f32 %v9475_v12, %v16240_v27  ;;  %v391_v57 = vmul.f32 %v9499_v22, %v16239_v5  ;;  %v407_v8 = vmul.f32 %v9499_v22, %v16240_v27  ;;  %v1572_v20 = vadd.f32 %v1316_v31, %v980_v18  ;;  %v16247_v27 = vld [vmem:[#allocation11_spill] sm:$0xff] }
 0x21c   :  { %v1588_v48 = vadd.f32 %v1332_v46, %v996_v49  ;;  %v997_v4 = vadd.f32 %v741_v6, %v405_v62  ;;  %v1573_v34 = vadd.f32 %v1317_v33, %v981_v53  ;;  %v982_v28 = vadd.f32 %v726_v59, %v390_v47  ;;  %v16250_v59 = vld [vmem:[#allocation78_spill] sm:$0xff] }
 0x21d   :  { %v998_v1 = vadd.f32 %v742_v30, %v406_v52  ;;  %v983_v25 = vadd.f32 %v727_v63, %v391_v57  ;;  %v999_v14 = vadd.f32 %v743_v19, %v407_v8  ;;  %v1924_v51 = vadd.f32 %v16245_v16, %v1572_v20 }
 0x21e   :  { %v1940_v11 = vadd.f32 %v16246_v36, %v1588_v48  ;;  %v1589_v40 = vadd.f32 %v1333_v37, %v997_v4  ;;  %v964_v32 = vadd.f32 %v708_v45, %v372_v61  ;;  %v9526_v26 = vadd.f32 %v16245_v16, %v1573_v34  ;;  %v16248_v45 = vld [vmem:[#allocation8_spill] sm:$0xff] }
 0x21f   :  { %v1574_v5 = vadd.f32 %v1318_v21, %v982_v28  ;;  %v1590_v17 = vadd.f32 %v1334_v38, %v998_v1  ;;  %v1300_v49 = vmul.f32 %v9442_v60, %v16247_v27  ;;  %v1575_v18 = vadd.f32 %v1319_v55, %v983_v25  ;;  %v16249_v21 = vld [vmem:[#allocation23_spill] sm:$0xff] }
 0x220   :  { %v2196_v62 = vmax.f32 %v1940_v11, 0.0  ;;  %v1591_v47 = vadd.f32 %v1335_v24, %v999_v14  ;;  %v1941_v63 = vadd.f32 %v16246_v36, %v1589_v40  ;;  %v692_v61 = vmul.f32 %v9440_v0, %v16248_v45  ;;  %v6748_v40 = vld [vmem:[%s15282_s2 + $0x38] sm:$0xff] }
 0x221   :  { %v9532_v19 = vadd.f32 %v16245_v16, %v1574_v5  ;;  %v9535_v53 = vadd.f32 %v16246_v36, %v1590_v17  ;;  %v2180_v33 = vmax.f32 %v1924_v51, 0.0  ;;  %v1284_v38 = vmul.f32 %v9442_v60, %v16249_v21 }
 0x222   :  { %v373_v11 = vmul.f32 %v9473_v43, %v16204_v35  ;;  %v709_v25 = vmul.f32 %v9449_v41, %v16206_v29  ;;  %v2181_v17 = vmax.f32 %v9526_v26, 0.0  ;;  %v1556_v55 = vadd.f32 %v1300_v49, %v964_v32 }
 0x223   :  { %v693_v6 = vmul.f32 %v9449_v41, %v16248_v45  ;;  %v1285_v51 = vmul.f32 %v9451_v58, %v16249_v21  ;;  %v9553_v31 = vpack.c.bf16 %v2196_v62, %v2180_v33  ;;  %v1927_v46 = vadd.f32 %v16245_v16, %v1575_v18 }
 0x224   :  { %v1943_v37 = vadd.f32 %v16246_v36, %v1591_v47  ;;  %v356_v30 = vmul.f32 %v9438_v39, %v16250_v59  ;;  %v2197_v24 = vmax.f32 %v1941_v63, 0.0  ;;  %v2182_v52 = vmax.f32 %v9532_v19, 0.0  ;;  %v16251_v63 = vld [vmem:[#allocation79_spill] sm:$0xff] }
 0x225   :  { %v2198_v32 = vmax.f32 %v9535_v53, 0.0  ;;  %v357_v26 = vmul.f32 %v9473_v43, %v16250_v59  ;;  %v965_v8 = vadd.f32 %v709_v25, %v373_v11  ;;  %v1301_v20 = vmul.f32 %v9451_v58, %v16247_v27 }
 0x226   :  { %v948_v57 = vadd.f32 %v692_v61, %v356_v30  ;;  %v358_v48 = vmul.f32 %v9475_v12, %v16250_v59  ;;  %v1908_v36 = vadd.f32 %v16210_v13, %v1556_v55  ;;  %v374_v34 = vmul.f32 %v9475_v12, %v16204_v35 }
 0x227   :  { %2532 = vmatmul.bf16.gmra.mxu0 %v6748_v40  ;;  %v949_v4 = vadd.f32 %v693_v6, %v357_v26  ;;  %v694_v28 = vmul.f32 %v9461_v7, %v16248_v45  ;;  %v1557_v14 = vadd.f32 %v1301_v20, %v965_v8  ;;  %v710_v16 = vmul.f32 %v9461_v7, %v16206_v29 }
 0x228   :  { %2581 = vmatmul.bf16.gmra.mxu1 %v6748_v40  ;;  %v1540_v1 = vadd.f32 %v1284_v38, %v948_v57  ;;  %v1286_v5 = vmul.f32 %v9463_v50, %v16249_v21  ;;  %v1302_v18 = vmul.f32 %v9463_v50, %v16247_v27  ;;  %v359_v47 = vmul.f32 %v9499_v22, %v16250_v59 }
 0x229   :  { %2630 = vmatmul.bf16.gmra.mxu2 %v6748_v40  ;;  %v1541_v49 = vadd.f32 %v1285_v51, %v949_v4  ;;  %v950_v62 = vadd.f32 %v694_v28, %v358_v48  ;;  %v1909_v53 = vadd.f32 %v16210_v13, %v1557_v14  ;;  %v966_v61 = vadd.f32 %v710_v16, %v374_v34  ;;  %v16252_v14 = vld [vmem:[#allocation26_spill] sm:$0xff] }
 0x22a   :  { %2679 = vmatmul.bf16.gmra.mxu3 %v6748_v40  ;;  %v1892_v19 = vadd.f32 %v16251_v63, %v1540_v1  ;;  %v375_v33 = vmul.f32 %v9499_v22, %v16204_v35  ;;  %v695_v25 = vmul.f32 %v9477_v9, %v16248_v45  ;;  %v711_v55 = vmul.f32 %v9477_v9, %v16206_v29 }
 0x22b   :  { %v1893_v38 = vadd.f32 %v16251_v63, %v1541_v49  ;;  %v1542_v11 = vadd.f32 %v1286_v5, %v950_v62  ;;  %v2183_v6 = vmax.f32 %v1927_v46, 0.0  ;;  %v2199_v51 = vmax.f32 %v1943_v37, 0.0 }
 0x22c   :  { %v2148_v40 = vmax.f32 %v1892_v19, 0.0  ;;  %v1558_v59 = vadd.f32 %v1302_v18, %v966_v61  ;;  %v951_v57 = vadd.f32 %v695_v25, %v359_v47  ;;  %v1287_v35 = vmul.f32 %v9479_v54, %v16249_v21  ;;  %v16255_v47 = vld [vmem:[#allocation74_spill] sm:$0xff]  ;;  %v16256_v19 = vld [vmem:[#allocation29_spill] sm:$0xff]  ;;  %v16257_v61 = vld [vmem:[#allocation16_spill] sm:$0xff] }
 0x22d   :  { %v2149_v30 = vmax.f32 %v1893_v38, 0.0  ;;  %v1894_v26 = vadd.f32 %v16251_v63, %v1542_v11  ;;  %v2341_v8 = vpack.c.bf16 %v2197_v24, %v2181_v17  ;;  %v967_v48 = vadd.f32 %v711_v55, %v375_v33  ;;  %v16253_v17 = vld [vmem:[#allocation21_spill] sm:$0xff] }
 0x22e   :  { %v1910_v20 = vadd.f32 %v16210_v13, %v1558_v59  ;;  %v1303_v45 = vmul.f32 %v9479_v54, %v16247_v27  ;;  %v2164_v4 = vmax.f32 %v1908_v36, 0.0  ;;  %v2165_v29 = vmax.f32 %v1909_v53, 0.0  ;;  %v16254_v27 = vld [vmem:[#allocation62_spill] sm:$0xff] }
 0x22f   :  { %v2150_v46 = vmax.f32 %v1894_v26, 0.0  ;;  %v1543_v37 = vadd.f32 %v1287_v35, %v951_v57  ;;  %v2342_v34 = vpack.c.bf16 %v2198_v32, %v2182_v52  ;;  %v2343_v28 = vpack.c.bf16 %v2199_v51, %v2183_v6  ;;  %v9626_v35 = vld [vmem:[%s15282_s2] sm:$0xff] }
 0x230   :  { %v2166_v1 = vmax.f32 %v1910_v20, 0.0  ;;  %v324_v16 = vmul.f32 %v9438_v39, %v16252_v14  ;;  %v2324_v5 = vpack.c.bf16 %v2164_v4, %v2148_v40  ;;  %v2325_v49 = vpack.c.bf16 %v2165_v29, %v2149_v30 }
 0x231   :  { %v1895_v21 = vadd.f32 %v16251_v63, %v1543_v37  ;;  %v660_v24 = vmul.f32 %v9440_v0, %v16253_v17  ;;  %v1559_v18 = vadd.f32 %v1303_v45, %v967_v48  ;;  %v340_v36 = vmul.f32 %v9438_v39, %v16254_v27 }
 0x232   :  { %v2326_v62 = vpack.c.bf16 %v2166_v1, %v2150_v46  ;;  %v676_v52 = vmul.f32 %v9440_v0, %v16255_v47  ;;  %v1252_v53 = vmul.f32 %v9442_v60, %v16256_v19  ;;  %v1268_v33 = vmul.f32 %v9442_v60, %v16257_v61 }
 0x233   :  { %v916_v32 = vadd.f32 %v660_v24, %v324_v16  ;;  %v325_v63 = vmul.f32 %v9473_v43, %v16252_v14  ;;  %v1911_v38 = vadd.f32 %v16210_v13, %v1559_v18  ;;  %v2151_v11 = vmax.f32 %v1895_v21, 0.0 }
 0x234   :  { %v932_v25 = vadd.f32 %v676_v52, %v340_v36  ;;  %v661_v55 = vmul.f32 %v9449_v41, %v16253_v17  ;;  %v341_v51 = vmul.f32 %v9473_v43, %v16254_v27  ;;  %v677_v40 = vmul.f32 %v9449_v41, %v16255_v47 }
 0x235   :  { %v1508_v6 = vadd.f32 %v1252_v53, %v916_v32  ;;  %v1269_v59 = vmul.f32 %v9451_v58, %v16257_v61  ;;  %v1253_v13 = vmul.f32 %v9451_v58, %v16256_v19  ;;  %v326_v57 = vmul.f32 %v9475_v12, %v16252_v14 }
 0x236   :  { %v1524_v30 = vadd.f32 %v1268_v33, %v932_v25  ;;  %v917_v26 = vadd.f32 %v661_v55, %v325_v63  ;;  %v933_v48 = vadd.f32 %v677_v40, %v341_v51  ;;  %v342_v45 = vmul.f32 %v9475_v12, %v16254_v27 }
 0x237   :  { %2693 = vmatmul.bf16.vlgmr.msrb.gmra.mxu0 %v9626_v35  ;;  %v1860_v20 = vadd.f32 %v16217_v56, %v1508_v6  ;;  %v662_v4 = vmul.f32 %v9461_v7, %v16253_v17  ;;  %v2167_v29 = vmax.f32 %v1911_v38, 0.0  ;;  %v678_v1 = vmul.f32 %v9461_v7, %v16255_v47 }
 0x238   :  { %2742 = vmatmul.bf16.vlgmr.msrb.gmra.mxu1 %v9626_v35  ;;  %3077 = vmatpush.bf16.msrb.mxu0 %v9553_v31  ;;  %v1876_v46 = vadd.f32 %v16218_v42, %v1524_v30  ;;  %v1509_v37 = vadd.f32 %v1253_v13, %v917_v26  ;;  %v1525_v21 = vadd.f32 %v1269_v59, %v933_v48 }
 0x239   :  { %2791 = vmatmul.bf16.vlgmr.msrb.gmra.mxu2 %v9626_v35  ;;  %3126 = vmatpush.bf16.msrb.mxu1 %v2341_v8  ;;  %v2116_v16 = vmax.f32 %v1860_v20, 0.0  ;;  %v918_v24 = vadd.f32 %v662_v4, %v326_v57  ;;  %v1254_v18 = vmul.f32 %v9463_v50, %v16256_v19  ;;  %v934_v52 = vadd.f32 %v678_v1, %v342_v45 }
 0x23a   :  { %2840 = vmatmul.bf16.vlgmr.msrb.gmra.mxu3 %v9626_v35  ;;  %3175 = vmatpush.bf16.msrb.mxu2 %v2342_v34  ;;  %v2132_v31 = vmax.f32 %v1876_v46, 0.0  ;;  %v1861_v36 = vadd.f32 %v16217_v56, %v1509_v37  ;;  %v1270_v32 = vmul.f32 %v9463_v50, %v16257_v61  ;;  %v2327_v53 = vpack.c.bf16 %v2167_v29, %v2151_v11 }
 0x23b   :  { %3224 = vmatpush.bf16.msrb.mxu3 %v2343_v28  ;;  %v1877_v8 = vadd.f32 %v16218_v42, %v1525_v21  ;;  %v1510_v33 = vadd.f32 %v1254_v18, %v918_v24  ;;  %v327_v63 = vmul.f32 %v9499_v22, %v16252_v14  ;;  %v343_v34 = vmul.f32 %v9499_v22, %v16254_v27 }
 0x23c   :  { %3078 = vmatpush.bf16.msrb.mxu0 %v2324_v5  ;;  %v2308_v38 = vpack.c.bf16 %v2132_v31, %v2116_v16  ;;  %v1526_v25 = vadd.f32 %v1270_v32, %v934_v52  ;;  %v663_v55 = vmul.f32 %v9477_v9, %v16253_v17  ;;  %v2117_v6 = vmax.f32 %v1861_v36, 0.0 }
 0x23d   :  { %3127 = vmatpush.bf16.msrb.mxu1 %v2325_v49  ;;  %v2133_v51 = vmax.f32 %v1877_v8, 0.0  ;;  %v1862_v28 = vadd.f32 %v16217_v56, %v1510_v33  ;;  %v679_v11 = vmul.f32 %v9477_v9, %v16255_v47  ;;  %v1255_v40 = vmul.f32 %v9479_v54, %v16256_v19  ;;  %v16258_v8 = vld [vmem:[#allocation52_spill] sm:$0xff] }
 0x23e   :  { %3176 = vmatpush.bf16.msrb.mxu2 %v2326_v62  ;;  %v1878_v14 = vadd.f32 %v16218_v42, %v1526_v25  ;;  %v919_v5 = vadd.f32 %v663_v55, %v327_v63  ;;  %v1271_v27 = vmul.f32 %v9479_v54, %v16257_v61  ;;  %v292_v47 = vmul.f32 %v9438_v39, %v16219_v10  ;;  %v9695_v25 = vld [vmem:[%s15282_s2 + $0x8] sm:$0xff] }
 0x23f   :  { %3225 = vmatpush.bf16.msrb.mxu3 %v2327_v53  ;;  %v2309_v17 = vpack.c.bf16 %v2133_v51, %v2117_v6  ;;  %v935_v49 = vadd.f32 %v679_v11, %v343_v34  ;;  %v2118_v59 = vmax.f32 %v1862_v28, 0.0  ;;  %v308_v13 = vmul.f32 %v9438_v39, %v16220_v2  ;;  %v16259_v34 = vld [vmem:[#allocation46_spill] sm:$0xff] }
 0x240   :  { %3079 = vmatpush.bf16.msrb.mxu0 %v2308_v38  ;;  %v2134_v30 = vmax.f32 %v1878_v14, 0.0  ;;  %v1511_v26 = vadd.f32 %v1255_v40, %v919_v5  ;;  %v628_v19 = vmul.f32 %v9440_v0, %v16221_v15  ;;  %v644_v20 = vmul.f32 %v9440_v0, %v16222_v23 }
 0x241   :  { %3128 = vmatpush.bf16.msrb.mxu1 %v2309_v17  ;;  %v1527_v62 = vadd.f32 %v1271_v27, %v935_v49  ;;  %v1220_v48 = vmul.f32 %v9442_v60, %v16223_v44  ;;  %v1236_v29 = vmul.f32 %v9442_v60, %v16224_v3  ;;  %v293_v46 = vmul.f32 %v9473_v43, %v16219_v10 }
 0x242   :  { %v2310_v57 = vpack.c.bf16 %v2134_v30, %v2118_v59  ;;  %v1863_v61 = vadd.f32 %v16217_v56, %v1511_v26  ;;  %v884_v4 = vadd.f32 %v628_v19, %v292_v47  ;;  %v900_v1 = vadd.f32 %v644_v20, %v308_v13 }
 0x243   :  { %v1879_v45 = vadd.f32 %v16218_v42, %v1527_v62  ;;  %v309_v56 = vmul.f32 %v9473_v43, %v16220_v2  ;;  %v629_v16 = vmul.f32 %v9449_v41, %v16221_v15  ;;  %v645_v42 = vmul.f32 %v9449_v41, %v16222_v23 }
 0x244   :  { %3177 = vmatpush.bf16.msrb.mxu2 %v2310_v57  ;;  %v2119_v37 = vmax.f32 %v1863_v61, 0.0  ;;  %v1476_v24 = vadd.f32 %v1220_v48, %v884_v4  ;;  %v1221_v18 = vmul.f32 %v9451_v58, %v16223_v44  ;;  %v1492_v31 = vadd.f32 %v1236_v29, %v900_v1 }
 0x245   :  { %v2135_v21 = vmax.f32 %v1879_v45, 0.0  ;;  %v885_v36 = vadd.f32 %v629_v16, %v293_v46  ;;  %v1237_v52 = vmul.f32 %v9451_v58, %v16224_v3  ;;  %v294_v32 = vmul.f32 %v9475_v12, %v16219_v10  ;;  %v9726_v16 = vpop.f32.mrf.mxu0 }
 0x246   :  { %v1828_v33 = vadd.f32 %v16258_v8, %v1476_v24  ;;  %v901_v63 = vadd.f32 %v645_v42, %v309_v56  ;;  %v310_v38 = vmul.f32 %v9475_v12, %v16220_v2  ;;  %v1844_v55 = vadd.f32 %v16259_v34, %v1492_v31  ;;  %16260 = vst [vmem:[#allocation20_spill] sm:$0xff] %v9726_v16  ;;  %v16262_v24 = vld [vmem:[#allocation71_spill] sm:$0xff] }
 0x247   :  { %v2311_v53 = vpack.c.bf16 %v2135_v21, %v2119_v37  ;;  %2698 = vmatmul.bf16.gmra.mxu0 %v9695_v25  ;;  %v1477_v6 = vadd.f32 %v1221_v18, %v885_v36  ;;  %v630_v51 = vmul.f32 %v9461_v7, %v16221_v15  ;;  %v646_v28 = vmul.f32 %v9461_v7, %v16222_v23  ;;  %v16263_v18 = vld [vmem:[#allocation42_spill] sm:$0xff]  ;;  %v9737_v36 = vpop.f32.mrf.mxu3 }
 0x248   :  { %2747 = vmatmul.bf16.gmra.mxu1 %v9695_v25  ;;  %v2084_v11 = vmax.f32 %v1828_v33, 0.0  ;;  %v1493_v14 = vadd.f32 %v1237_v52, %v901_v63  ;;  %v1222_v5 = vmul.f32 %v9463_v50, %v16223_v44  ;;  %v1238_v40 = vmul.f32 %v9463_v50, %v16224_v3  ;;  %v16265_v33 = vld [vmem:[#allocation45_spill] sm:$0xff] }
 0x249   :  { %3226 = vmatpush.bf16.msrb.mxu3 %v2311_v53  ;;  %2796 = vmatmul.bf16.gmra.mxu2 %v9695_v25  ;;  %v2100_v27 = vmax.f32 %v1844_v55, 0.0  ;;  %v1829_v17 = vadd.f32 %v16258_v8, %v1477_v6  ;;  %v886_v49 = vadd.f32 %v630_v51, %v294_v32  ;;  %v902_v59 = vadd.f32 %v646_v28, %v310_v38  ;;  %v16264_v32 = vld [vmem:[#allocation40_spill] sm:$0xff]  ;;  %v16267_v51 = vld [vmem:[#allocation59_spill] sm:$0xff] }
 0x24a   :  { %2845 = vmatmul.bf16.gmra.mxu3 %v9695_v25  ;;  %v1845_v30 = vadd.f32 %v16259_v34, %v1493_v14  ;;  %v295_v26 = vmul.f32 %v9499_v22, %v16219_v10  ;;  %v311_v47 = vmul.f32 %v9499_v22, %v16220_v2  ;;  %v631_v62 = vmul.f32 %v9477_v9, %v16221_v15  ;;  %v16266_v38 = vld [vmem:[#allocation24_spill] sm:$0xff] }
 0x24b   :  { %v2292_v13 = vpack.c.bf16 %v2100_v27, %v2084_v11  ;;  %v2085_v19 = vmax.f32 %v1829_v17, 0.0  ;;  %v1478_v57 = vadd.f32 %v1222_v5, %v886_v49  ;;  %v1494_v61 = vadd.f32 %v1238_v40, %v902_v59 }
 0x24c   :  { %v2101_v20 = vmax.f32 %v1845_v30, 0.0  ;;  %v647_v48 = vmul.f32 %v9477_v9, %v16222_v23  ;;  %v887_v45 = vadd.f32 %v631_v62, %v295_v26  ;;  %v1223_v4 = vmul.f32 %v9479_v54, %v16223_v44  ;;  %v9728_v23 = vpop.f32.mrf.mxu1 }
 0x24d   :  { %3080 = vmatpush.bf16.msrb.mxu0 %v2292_v13  ;;  %v1830_v10 = vadd.f32 %v16258_v8, %v1478_v57  ;;  %v1846_v2 = vadd.f32 %v16259_v34, %v1494_v61  ;;  %v1239_v15 = vmul.f32 %v9479_v54, %v16224_v3  ;;  %16261 = vst [vmem:[#allocation57_spill] sm:$0xff] %v9728_v23  ;;  %v9735_v3 = vpop.f32.mrf.mxu2 }
 0x24e   :  { %v2293_v29 = vpack.c.bf16 %v2101_v20, %v2085_v19  ;;  %v903_v46 = vadd.f32 %v647_v48, %v311_v47  ;;  %v1479_v37 = vadd.f32 %v1223_v4, %v887_v45  ;;  %v260_v42 = vmul.f32 %v9438_v39, %v16262_v24  ;;  %v9769_v20 = vld [vmem:[%s15282_s2 + $0x10] sm:$0xff]  ;;  %v16269_v48 = vld [vmem:[#allocation72_spill] sm:$0xff] }
 0x24f   :  { %v2086_v1 = vmax.f32 %v1830_v10, 0.0  ;;  %v2102_v56 = vmax.f32 %v1846_v2, 0.0  ;;  %v276_v31 = vmul.f32 %v9438_v39, %v16263_v18  ;;  %v596_v53 = vmul.f32 %v9440_v0, %v16264_v32  ;;  %16268 = vst [vmem:[#allocation36_spill] sm:$0xff] %v9769_v20  ;;  %v16270_v4 = vld [vmem:[#allocation92_spill] sm:$0xff] }
 0x250   :  { %3129 = vmatpush.bf16.msrb.mxu1 %v2293_v29  ;;  %v1495_v21 = vadd.f32 %v1239_v15, %v903_v46  ;;  %v1831_v44 = vadd.f32 %v16258_v8, %v1479_v37  ;;  %v612_v63 = vmul.f32 %v9440_v0, %v16265_v33  ;;  %v1188_v8 = vmul.f32 %v9442_v60, %v16266_v38 }
 0x251   :  { %v2294_v52 = vpack.c.bf16 %v2102_v56, %v2086_v1  ;;  %v1204_v28 = vmul.f32 %v9442_v60, %v16267_v51  ;;  %v261_v11 = vmul.f32 %v9473_v43, %v16262_v24  ;;  %v852_v14 = vadd.f32 %v596_v53, %v260_v42 }
 0x252   :  { %v1847_v55 = vadd.f32 %v16259_v34, %v1495_v21  ;;  %v2087_v6 = vmax.f32 %v1831_v44, 0.0  ;;  %v868_v5 = vadd.f32 %v612_v63, %v276_v31  ;;  %v277_v40 = vmul.f32 %v9473_v43, %v16263_v18  ;;  %v9784_v31 = vpop.f32.mrf.mxu0 }
 0x253   :  { %3178 = vmatpush.bf16.msrb.mxu2 %v2294_v52  ;;  %v597_v27 = vmul.f32 %v9449_v41, %v16264_v32  ;;  %v613_v34 = vmul.f32 %v9449_v41, %v16265_v33  ;;  %v1189_v49 = vmul.f32 %v9451_v58, %v16266_v38  ;;  %v1205_v59 = vmul.f32 %v9451_v58, %v16267_v51 }
 0x254   :  { %v2103_v17 = vmax.f32 %v1847_v55, 0.0  ;;  %v1444_v30 = vadd.f32 %v1188_v8, %v852_v14  ;;  %v1460_v26 = vadd.f32 %v1204_v28, %v868_v5  ;;  %v262_v62 = vmul.f32 %v9475_v12, %v16262_v24  ;;  %16271 = vst [vmem:[#allocation39_spill] sm:$0xff] %v9784_v31  ;;  %v9786_v52 = vpop.f32.mrf.mxu1 }
 0x255   :  { %v853_v47 = vadd.f32 %v597_v27, %v261_v11  ;;  %v869_v19 = vadd.f32 %v613_v34, %v277_v40  ;;  %v278_v57 = vmul.f32 %v9475_v12, %v16263_v18  ;;  %v598_v61 = vmul.f32 %v9461_v7, %v16264_v32  ;;  %16272 = vst [vmem:[#allocation88_spill] sm:$0xff] %v9786_v52  ;;  %v9791_v55 = vpop.f32.mrf.mxu2 }
 0x256   :  { %v2295_v13 = vpack.c.bf16 %v2103_v17, %v2087_v6  ;;  %v1796_v45 = vadd.f32 %v16269_v48, %v1444_v30  ;;  %v1812_v10 = vadd.f32 %v16270_v4, %v1460_v26  ;;  %v614_v15 = vmul.f32 %v9461_v7, %v16265_v33  ;;  %v9793_v6 = vpop.f32.mrf.mxu3 }
 0x257   :  { %2703 = vmatmul.bf16.gmra.mxu0 %v9769_v20  ;;  %v1445_v2 = vadd.f32 %v1189_v49, %v853_v47  ;;  %v1461_v29 = vadd.f32 %v1205_v59, %v869_v19  ;;  %v854_v46 = vadd.f32 %v598_v61, %v262_v62  ;;  %v1190_v37 = vmul.f32 %v9463_v50, %v16266_v38  ;;  %v16273_v19 = vld [vmem:[#allocation73_spill] sm:$0xff] }
 0x258   :  { %2752 = vmatmul.bf16.gmra.mxu1 %v9769_v20  ;;  %3227 = vmatpush.bf16.msrb.mxu3 %v2295_v13  ;;  %v1206_v1 = vmul.f32 %v9463_v50, %v16267_v51  ;;  %v2052_v56 = vmax.f32 %v1796_v45, 0.0  ;;  %v2068_v21 = vmax.f32 %v1812_v10, 0.0  ;;  %v870_v42 = vadd.f32 %v614_v15, %v278_v57  ;;  %v16274_v57 = vld [vmem:[#allocation51_spill] sm:$0xff] }
 0x259   :  { %v1797_v44 = vadd.f32 %v16269_v48, %v1445_v2  ;;  %2801 = vmatmul.bf16.gmra.mxu2 %v9769_v20  ;;  %v1813_v53 = vadd.f32 %v16270_v4, %v1461_v29  ;;  %v1446_v63 = vadd.f32 %v1190_v37, %v854_v46  ;;  %v279_v8 = vmul.f32 %v9499_v22, %v16263_v18  ;;  %v16275_v45 = vld [vmem:[#allocation43_spill] sm:$0xff] }
 0x25a   :  { %2850 = vmatmul.bf16.gmra.mxu3 %v9769_v20  ;;  %v2276_v28 = vpack.c.bf16 %v2068_v21, %v2052_v56  ;;  %v1462_v11 = vadd.f32 %v1206_v1, %v870_v42  ;;  %v263_v14 = vmul.f32 %v9499_v22, %v16262_v24  ;;  %v599_v5 = vmul.f32 %v9477_v9, %v16264_v32  ;;  %v16277_v29 = vld [vmem:[#allocation87_spill] sm:$0xff]  ;;  %v16278_v56 = vld [vmem:[#allocation60_spill] sm:$0xff] }
 0x25b   :  { %v2053_v40 = vmax.f32 %v1797_v44, 0.0  ;;  %v2069_v27 = vmax.f32 %v1813_v53, 0.0  ;;  %v1798_v17 = vadd.f32 %v16269_v48, %v1446_v63  ;;  %v615_v34 = vmul.f32 %v9477_v9, %v16265_v33 }
 0x25c   :  { %3081 = vmatpush.bf16.msrb.mxu0 %v2276_v28  ;;  %v1814_v18 = vadd.f32 %v16270_v4, %v1462_v11  ;;  %v855_v49 = vadd.f32 %v599_v5, %v263_v14  ;;  %v1191_v59 = vmul.f32 %v9479_v54, %v16266_v38  ;;  %v1207_v24 = vmul.f32 %v9479_v54, %v16267_v51  ;;  %v16276_v51 = vld [vmem:[#allocation55_spill] sm:$0xff]  ;;  %v9829_v28 = vpop.f32.mrf.mxu1 }
 0x25d   :  { %v2277_v30 = vpack.c.bf16 %v2069_v27, %v2053_v40  ;;  %v871_v26 = vadd.f32 %v615_v34, %v279_v8  ;;  %v2054_v32 = vmax.f32 %v1798_v17, 0.0  ;;  %v228_v33 = vmul.f32 %v9438_v39, %v16273_v19  ;;  %v9827_v8 = vpop.f32.mrf.mxu0  ;;  %v9835_v40 = vpop.f32.mrf.mxu2 }
 0x25e   :  { %v2070_v47 = vmax.f32 %v1814_v18, 0.0  ;;  %v1447_v62 = vadd.f32 %v1191_v59, %v855_v49  ;;  %v244_v61 = vmul.f32 %v9438_v39, %v16274_v57  ;;  %v564_v10 = vmul.f32 %v9440_v0, %v16275_v45  ;;  %v9837_v27 = vpop.f32.mrf.mxu3 }
 0x25f   :  { %3130 = vmatpush.bf16.msrb.mxu1 %v2277_v30  ;;  %v1463_v13 = vadd.f32 %v1207_v24, %v871_v26  ;;  %v580_v15 = vmul.f32 %v9440_v0, %v16276_v51  ;;  %v1156_v46 = vmul.f32 %v9442_v60, %v16277_v29  ;;  %v1172_v21 = vmul.f32 %v9442_v60, %v16278_v56  ;;  %v16279_v24 = vld [vmem:[#allocation89_spill] sm:$0xff] }
 0x260   :  { %v2278_v38 = vpack.c.bf16 %v2070_v47, %v2054_v32  ;;  %v1799_v2 = vadd.f32 %v16269_v48, %v1447_v62  ;;  %v820_v1 = vadd.f32 %v564_v10, %v228_v33  ;;  %v229_v44 = vmul.f32 %v9473_v43, %v16273_v19  ;;  %v9849_v47 = vld [vmem:[%s15282_s2 + $0x18] sm:$0xff] }
 0x261   :  { %v1815_v37 = vadd.f32 %v16270_v4, %v1463_v13  ;;  %v836_v53 = vadd.f32 %v580_v15, %v244_v61  ;;  %v245_v48 = vmul.f32 %v9473_v43, %v16274_v57  ;;  %v565_v63 = vmul.f32 %v9449_v41, %v16275_v45  ;;  %16280 = vst [vmem:[#allocation81_spill] sm:$0xff] %v9849_v47  ;;  %v16281_v62 = vld [vmem:[#allocation80_spill] sm:$0xff] }
 0x262   :  { %3179 = vmatpush.bf16.msrb.mxu2 %v2278_v38  ;;  %v2055_v42 = vmax.f32 %v1799_v2, 0.0  ;;  %v1412_v11 = vadd.f32 %v1156_v46, %v820_v1  ;;  %v581_v14 = vmul.f32 %v9449_v41, %v16276_v51  ;;  %v1157_v5 = vmul.f32 %v9451_v58, %v16277_v29 }
 0x263   :  { %v2071_v4 = vmax.f32 %v1815_v37, 0.0  ;;  %v1428_v17 = vadd.f32 %v1172_v21, %v836_v53  ;;  %v821_v34 = vadd.f32 %v565_v63, %v229_v44  ;;  %v1173_v18 = vmul.f32 %v9451_v58, %v16278_v56 }
 0x264   :  { %v230_v49 = vmul.f32 %v9475_v12, %v16273_v19  ;;  %v1764_v30 = vadd.f32 %v16279_v24, %v1412_v11  ;;  %v837_v26 = vadd.f32 %v581_v14, %v245_v48  ;;  %v246_v32 = vmul.f32 %v9475_v12, %v16274_v57 }
 0x265   :  { %v2279_v59 = vpack.c.bf16 %v2071_v4, %v2055_v42  ;;  %v1780_v13 = vadd.f32 %v16281_v62, %v1428_v17  ;;  %v1413_v33 = vadd.f32 %v1157_v5, %v821_v34  ;;  %v566_v61 = vmul.f32 %v9461_v7, %v16275_v45 }
 0x266   :  { %v582_v10 = vmul.f32 %v9461_v7, %v16276_v51  ;;  %v2020_v38 = vmax.f32 %v1764_v30, 0.0  ;;  %v1429_v2 = vadd.f32 %v1173_v18, %v837_v26  ;;  %v1158_v15 = vmul.f32 %v9463_v50, %v16277_v29 }
 0x267   :  { %2708 = vmatmul.bf16.gmra.mxu0 %v9849_v47  ;;  %3228 = vmatpush.bf16.msrb.mxu3 %v2279_v59  ;;  %v1174_v46 = vmul.f32 %v9463_v50, %v16278_v56  ;;  %v2036_v37 = vmax.f32 %v1780_v13, 0.0  ;;  %v1765_v1 = vadd.f32 %v16279_v24, %v1413_v33  ;;  %v822_v21 = vadd.f32 %v566_v61, %v230_v49  ;;  %v9882_v13 = vpop.f32.mrf.mxu1  ;;  %v9884_v61 = vpop.f32.mrf.mxu2 }
 0x268   :  { %2757 = vmatmul.bf16.gmra.mxu1 %v9849_v47  ;;  %v838_v44 = vadd.f32 %v582_v10, %v246_v32  ;;  %v1781_v42 = vadd.f32 %v16281_v62, %v1429_v2  ;;  %v231_v53 = vmul.f32 %v9499_v22, %v16273_v19  ;;  %v247_v48 = vmul.f32 %v9499_v22, %v16274_v57  ;;  %v9880_v32 = vpop.f32.mrf.mxu0  ;;  %v16282_v2 = vld [vmem:[#allocation37_spill] sm:$0xff] }
 0x269   :  { %2806 = vmatmul.bf16.gmra.mxu2 %v9849_v47  ;;  %v567_v63 = vmul.f32 %v9477_v9, %v16275_v45  ;;  %v2260_v4 = vpack.c.bf16 %v2036_v37, %v2020_v38  ;;  %v2021_v11 = vmax.f32 %v1765_v1, 0.0  ;;  %v1414_v14 = vadd.f32 %v1158_v15, %v822_v21  ;;  %v16283_v15 = vld [vmem:[#allocation56_spill] sm:$0xff]  ;;  %v16284_v1 = vld [vmem:[#allocation58_spill] sm:$0xff] }
 0x26a   :  { %2855 = vmatmul.bf16.gmra.mxu3 %v9849_v47  ;;  %v1430_v5 = vadd.f32 %v1174_v46, %v838_v44  ;;  %v2037_v17 = vmax.f32 %v1781_v42, 0.0  ;;  %v583_v34 = vmul.f32 %v9477_v9, %v16276_v51  ;;  %v1159_v49 = vmul.f32 %v9479_v54, %v16277_v29  ;;  %v9886_v29 = vpop.f32.mrf.mxu3  ;;  %v16285_v44 = vld [vmem:[#allocation22_spill] sm:$0xff] }
 0x26b   :  { %v823_v18 = vadd.f32 %v567_v63, %v231_v53  ;;  %3082 = vmatpush.bf16.msrb.mxu0 %v2260_v4  ;;  %v1766_v19 = vadd.f32 %v16279_v24, %v1414_v14  ;;  %v1175_v45 = vmul.f32 %v9479_v54, %v16278_v56  ;;  %v196_v56 = vmul.f32 %v9438_v39, %v16282_v2  ;;  %v16286_v53 = vld [vmem:[#allocation34_spill] sm:$0xff] }
 0x26c   :  { %v1782_v57 = vadd.f32 %v16281_v62, %v1430_v5  ;;  %v2261_v59 = vpack.c.bf16 %v2037_v17, %v2021_v11  ;;  %v839_v30 = vadd.f32 %v583_v34, %v247_v48  ;;  %v212_v46 = vmul.f32 %v9438_v39, %v16283_v15 }
 0x26d   :  { %v1415_v26 = vadd.f32 %v1159_v49, %v823_v18  ;;  %v2022_v51 = vmax.f32 %v1766_v19, 0.0  ;;  %v532_v21 = vmul.f32 %v9440_v0, %v16284_v1  ;;  %v548_v42 = vmul.f32 %v9440_v0, %v16285_v44 }
 0x26e   :  { %v2038_v33 = vmax.f32 %v1782_v57, 0.0  ;;  %3131 = vmatpush.bf16.msrb.mxu1 %v2261_v59  ;;  %v1431_v10 = vadd.f32 %v1175_v45, %v839_v30  ;;  %v1124_v48 = vmul.f32 %v9442_v60, %v16286_v53  ;;  %v197_v14 = vmul.f32 %v9473_v43, %v16282_v2 }
 0x26f   :  { %v1767_v38 = vadd.f32 %v16279_v24, %v1415_v26  ;;  %v16287_v24 = vld [vmem:[#allocation18_spill] sm:$0xff]  ;;  %v788_v5 = vadd.f32 %v532_v21, %v196_v56  ;;  %v804_v17 = vadd.f32 %v548_v42, %v212_v46  ;;  %v213_v34 = vmul.f32 %v9473_v43, %v16283_v15  ;;  %v9923_v56 = vld [vmem:[%s15282_s2 + $0x20] sm:$0xff]  ;;  %v16290_v21 = vld [vmem:[#allocation19_spill] sm:$0xff] }
 0x270   :  { %v2262_v37 = vpack.c.bf16 %v2038_v33, %v2022_v51  ;;  %v1783_v63 = vadd.f32 %v16281_v62, %v1431_v10  ;;  %v1140_v11 = vmul.f32 %v9442_v60, %v16287_v24  ;;  %v533_v18 = vmul.f32 %v9449_v41, %v16284_v1  ;;  %16288 = vst [vmem:[#allocation84_spill] sm:$0xff] %v9923_v56  ;;  %v16289_v46 = vld [vmem:[#allocation66_spill] sm:$0xff] }
 0x271   :  { %v2023_v4 = vmax.f32 %v1767_v38, 0.0  ;;  %v549_v62 = vmul.f32 %v9449_v41, %v16285_v44  ;;  %v1125_v19 = vmul.f32 %v9451_v58, %v16286_v53  ;;  %v1141_v57 = vmul.f32 %v9451_v58, %v16287_v24 }
 0x272   :  { %3180 = vmatpush.bf16.msrb.mxu2 %v2262_v37  ;;  %v2039_v49 = vmax.f32 %v1783_v63, 0.0  ;;  %v1380_v45 = vadd.f32 %v1124_v48, %v788_v5  ;;  %v1396_v59 = vadd.f32 %v1140_v11, %v804_v17  ;;  %v789_v30 = vadd.f32 %v533_v18, %v197_v14  ;;  %v9935_v17 = vpop.f32.mrf.mxu0 }
 0x273   :  { %v198_v26 = vmul.f32 %v9475_v12, %v16282_v2  ;;  %v805_v33 = vadd.f32 %v549_v62, %v213_v34  ;;  %v214_v10 = vmul.f32 %v9475_v12, %v16283_v15  ;;  %v534_v38 = vmul.f32 %v9461_v7, %v16284_v1  ;;  %v9937_v34 = vpop.f32.mrf.mxu1 }
 0x274   :  { %v2263_v51 = vpack.c.bf16 %v2039_v49, %v2023_v4  ;;  %v1732_v37 = vadd.f32 %v16289_v46, %v1380_v45  ;;  %v1748_v42 = vadd.f32 %v16290_v21, %v1396_v59  ;;  %v1381_v48 = vadd.f32 %v1125_v19, %v789_v30  ;;  %v9940_v45 = vpop.f32.mrf.mxu2  ;;  %v9942_v59 = vpop.f32.mrf.mxu3 }
 0x275   :  { %v550_v63 = vmul.f32 %v9461_v7, %v16285_v44  ;;  %v1397_v4 = vadd.f32 %v1141_v57, %v805_v33  ;;  %v790_v11 = vadd.f32 %v534_v38, %v198_v26  ;;  %v1126_v14 = vmul.f32 %v9463_v50, %v16286_v53 }
 0x276   :  { %3229 = vmatpush.bf16.msrb.mxu3 %v2263_v51  ;;  %v1142_v5 = vmul.f32 %v9463_v50, %v16287_v24  ;;  %v1988_v18 = vmax.f32 %v1732_v37, 0.0  ;;  %v2004_v49 = vmax.f32 %v1748_v42, 0.0  ;;  %v1733_v62 = vadd.f32 %v16289_v46, %v1381_v48 }
 0x277   :  { %2713 = vmatmul.bf16.gmra.mxu0 %v9923_v56  ;;  %v806_v19 = vadd.f32 %v550_v63, %v214_v10  ;;  %v1749_v57 = vadd.f32 %v16290_v21, %v1397_v4  ;;  %v1382_v30 = vadd.f32 %v1126_v14, %v790_v11  ;;  %v199_v26 = vmul.f32 %v9499_v22, %v16282_v2 }
 0x278   :  { %2762 = vmatmul.bf16.gmra.mxu1 %v9923_v56  ;;  %v2244_v51 = vpack.c.bf16 %v2004_v49, %v1988_v18  ;;  %v215_v38 = vmul.f32 %v9499_v22, %v16283_v15  ;;  %v535_v10 = vmul.f32 %v9477_v9, %v16284_v1  ;;  %v1989_v37 = vmax.f32 %v1733_v62, 0.0 }
 0x279   :  { %2811 = vmatmul.bf16.gmra.mxu2 %v9923_v56  ;;  %v1398_v33 = vadd.f32 %v1142_v5, %v806_v19  ;;  %v2005_v42 = vmax.f32 %v1749_v57, 0.0  ;;  %v1734_v48 = vadd.f32 %v16289_v46, %v1382_v30  ;;  %v551_v63 = vmul.f32 %v9477_v9, %v16285_v44  ;;  %v16291_v19 = vld [vmem:[#allocation94_spill] sm:$0xff]  ;;  %v16292_v57 = vld [vmem:[#allocation67_spill] sm:$0xff] }
 0x27a   :  { %2860 = vmatmul.bf16.gmra.mxu3 %v9923_v56  ;;  %3083 = vmatpush.bf16.msrb.mxu0 %v2244_v51  ;;  %v791_v11 = vadd.f32 %v535_v10, %v199_v26  ;;  %v1127_v2 = vmul.f32 %v9479_v54, %v16286_v53  ;;  %v1143_v15 = vmul.f32 %v9479_v54, %v16287_v24  ;;  %v16293_v26 = vld [vmem:[#allocation82_spill] sm:$0xff]  ;;  %v9967_v53 = vpop.f32.mrf.mxu0  ;;  %v16294_v10 = vld [vmem:[#allocation64_spill] sm:$0xff]  ;;  %v10040_v56 = vpop.permute.xlu0 %2423 }
 0x27b   :  { %v1750_v4 = vadd.f32 %v16290_v21, %v1398_v33  ;;  %v2245_v14 = vpack.c.bf16 %v2005_v42, %v1989_v37  ;;  %v807_v5 = vadd.f32 %v551_v63, %v215_v38  ;;  %v1990_v1 = vmax.f32 %v1734_v48, 0.0  ;;  %v9969_v33 = vpop.f32.mrf.mxu1  ;;  %v16295_v42 = vld [vmem:[#allocation83_spill] sm:$0xff]  ;;  %16301 = vst [vmem:[#allocation30_spill] sm:$0xff] %v10040_v56 }
 0x27c   :  { %v1383_v49 = vadd.f32 %v1127_v2, %v791_v11  ;;  %v164_v44 = vmul.f32 %v9438_v39, %v16291_v19  ;;  %v180_v30 = vmul.f32 %v9438_v39, %v16292_v57  ;;  %v500_v51 = vmul.f32 %v9440_v0, %v16293_v26  ;;  %v9976_v63 = vpop.f32.mrf.mxu2  ;;  %v16296_v2 = vld [vmem:[#allocation33_spill] sm:$0xff] }
 0x27d   :  { %v2006_v18 = vmax.f32 %v1750_v4, 0.0  ;;  %3132 = vmatpush.bf16.msrb.mxu1 %v2245_v14  ;;  %v1399_v62 = vadd.f32 %v1143_v15, %v807_v5  ;;  %v516_v37 = vmul.f32 %v9440_v0, %v16294_v10  ;;  %v1092_v48 = vmul.f32 %v9442_v60, %v16295_v42  ;;  %v9978_v4 = vpop.f32.mrf.mxu3 }
 0x27e   :  { %v1735_v38 = vadd.f32 %v16289_v46, %v1383_v49  ;;  %v756_v11 = vadd.f32 %v500_v51, %v164_v44  ;;  %v1108_v15 = vmul.f32 %v9442_v60, %v16296_v2  ;;  %v165_v14 = vmul.f32 %v9473_v43, %v16291_v19 }
 0x27f   :  { %v2246_v24 = vpack.c.bf16 %v2006_v18, %v1990_v1  ;;  %v1751_v39 = vadd.f32 %v16290_v21, %v1399_v62  ;;  %v772_v5 = vadd.f32 %v516_v37, %v180_v30  ;;  %v181_v0 = vmul.f32 %v9473_v43, %v16292_v57  ;;  %v9993_v62 = vpop.permute.xlu1 %2433 }
 0x280   :  { %v1991_v46 = vmax.f32 %v1735_v38, 0.0  ;;  %v501_v1 = vmul.f32 %v9449_v41, %v16293_v26  ;;  %v1348_v49 = vadd.f32 %v1092_v48, %v756_v11  ;;  %v517_v21 = vmul.f32 %v9449_v41, %v16294_v10  ;;  %16297 = vst [vmem:[#allocation85_spill] sm:$0xff] %v9993_v62  ;;  %v16298_v38 = vld [vmem:[#allocation53_spill] sm:$0xff]  ;;  %v16300_v11 = vld [vmem:[#allocation75_spill] sm:$0xff] }
 0x281   :  { %3181 = vmatpush.bf16.msrb.mxu2 %v2246_v24  ;;  %v2007_v18 = vmax.f32 %v1751_v39, 0.0  ;;  %v1093_v60 = vmul.f32 %v9451_v58, %v16295_v42  ;;  %v1364_v44 = vadd.f32 %v1108_v15, %v772_v5  ;;  %v1109_v30 = vmul.f32 %v9451_v58, %v16296_v2  ;;  %v10005_v39 = vld [vmem:[%s15282_s2 + $0x28] sm:$0xff] }
 0x282   :  { %v757_v51 = vadd.f32 %v501_v1, %v165_v14  ;;  %v166_v43 = vmul.f32 %v9475_v12, %v16291_v19  ;;  %v1700_v37 = vadd.f32 %v16298_v38, %v1348_v49  ;;  %v773_v48 = vadd.f32 %v517_v21, %v181_v0  ;;  %16299 = vst [vmem:[#allocation32_spill] sm:$0xff] %v10005_v39 }
 0x283   :  { %v2247_v24 = vpack.c.bf16 %v2007_v18, %v1991_v46  ;;  %v182_v41 = vmul.f32 %v9475_v12, %v16292_v57  ;;  %v1716_v15 = vadd.f32 %v16300_v11, %v1364_v44  ;;  %v502_v14 = vmul.f32 %v9461_v7, %v16293_v26  ;;  %v10018_v18 = vpop.f32.mrf.mxu0  ;;  %v10020_v49 = vpop.f32.mrf.mxu1 }
 0x284   :  { %v1349_v58 = vadd.f32 %v1093_v60, %v757_v51  ;;  %v518_v46 = vmul.f32 %v9461_v7, %v16294_v10  ;;  %v1956_v12 = vmax.f32 %v1700_v37, 0.0  ;;  %v1365_v5 = vadd.f32 %v1109_v30, %v773_v48  ;;  %v10023_v51 = vpop.f32.mrf.mxu2 }
 0x285   :  { %3230 = vmatpush.bf16.msrb.mxu3 %v2247_v24  ;;  %v1094_v0 = vmul.f32 %v9463_v50, %v16295_v42  ;;  %v1110_v1 = vmul.f32 %v9463_v50, %v16296_v2  ;;  %v1972_v21 = vmax.f32 %v1716_v15, 0.0  ;;  %v758_v44 = vadd.f32 %v502_v14, %v166_v43  ;;  %v10025_v24 = vpop.f32.mrf.mxu3 }
 0x286   :  { %v1701_v60 = vadd.f32 %v16298_v38, %v1349_v58  ;;  %v774_v7 = vadd.f32 %v518_v46, %v182_v41  ;;  %v1717_v30 = vadd.f32 %v16300_v11, %v1365_v5  ;;  %v167_v50 = vmul.f32 %v9499_v22, %v16291_v19 }
 0x287   :  { %2718 = vmatmul.bf16.gmra.mxu0 %v10005_v39  ;;  %v183_v37 = vmul.f32 %v9499_v22, %v16292_v57  ;;  %v503_v43 = vmul.f32 %v9477_v9, %v16293_v26  ;;  %v2228_v48 = vpack.c.bf16 %v1972_v21, %v1956_v12  ;;  %v1350_v15 = vadd.f32 %v1094_v0, %v758_v44 }
 0x288   :  { %2767 = vmatmul.bf16.gmra.mxu1 %v10005_v39  ;;  %v1957_v41 = vmax.f32 %v1701_v60, 0.0  ;;  %v1366_v58 = vadd.f32 %v1110_v1, %v774_v7  ;;  %v1973_v14 = vmax.f32 %v1717_v30, 0.0  ;;  %v519_v46 = vmul.f32 %v9477_v9, %v16294_v10  ;;  %v10046_v1 = vpop.permute.xlu2 %2438  ;;  %v10048_v9 = vpop.permute.xlu1 %2428 }
 0x289   :  { %2816 = vmatmul.bf16.gmra.mxu2 %v10005_v39  ;;  %v1095_v5 = vmul.f32 %v9479_v54, %v16295_v42  ;;  %3084 = vmatpush.bf16.msrb.mxu0 %v2228_v48  ;;  %v1702_v22 = vadd.f32 %v16298_v38, %v1350_v15  ;;  %v1111_v57 = vmul.f32 %v9479_v54, %v16296_v2  ;;  %v10063_v48 = vld [vmem:[%s15282_s2 + $0x30] sm:$0xff] }
 0x28a   :  { %2865 = vmatmul.bf16.gmra.mxu3 %v10005_v39  ;;  %v759_v39 = vadd.f32 %v503_v43, %v167_v50  ;;  %v1718_v19 = vadd.f32 %v16300_v11, %v1366_v58  ;;  %v2229_v26 = vpack.c.bf16 %v1973_v14, %v1957_v41  ;;  %v775_v12 = vadd.f32 %v519_v46, %v183_v37 }
 0x28b   :  { %16302 = vst [vmem:[#allocation48_spill] sm:$0xff] %v10046_v1  ;;  %v1958_v10 = vmax.f32 %v1702_v22, 0.0  ;;  %v10051_v44 = vpop.f32.mrf.mxu0  ;;  %v10053_v7 = vpop.f32.mrf.mxu1 }
 0x28c   :  { %v1351_v0 = vadd.f32 %v1095_v5, %v759_v39  ;;  %16303 = vst [vmem:[#allocation49_spill] sm:$0xff] %v10048_v9  ;;  %v1974_v21 = vmax.f32 %v1718_v19, 0.0  ;;  %3133 = vmatpush.bf16.msrb.mxu1 %v2229_v26  ;;  %v1367_v42 = vadd.f32 %v1111_v57, %v775_v12  ;;  %v10055_v50 = vpop.f32.mrf.mxu2 }
 0x28d   :  { %v10057_v54 = vpop.f32.mrf.mxu3  ;;  %16304 = vst [vmem:[#allocation65_spill] sm:$0xff] %v10063_v48 }
 0x28e   :  { %v1703_v60 = vadd.f32 %v16298_v38, %v1351_v0  ;;  %v2230_v30 = vpack.c.bf16 %v1974_v21, %v1958_v10  ;;  %v1719_v2 = vadd.f32 %v16300_v11, %v1367_v42  ;;  %v10066_v38 = vpop.permute.xlu0 %2418  ;;  %v10100_v10 = vld [vmem:[%s15282_s2 + $0x38] sm:$0xff] }
 0x28f   :  { %16311 = vst [vmem:[#allocation31_spill] sm:$0xff] %v10100_v10 }
 0x290   :  { %v1959_v39 = vmax.f32 %v1703_v60, 0.0  ;;  %3182 = vmatpush.bf16.msrb.mxu2 %v2230_v30  ;;  %v1975_v37 = vmax.f32 %v1719_v2, 0.0  ;;  %v10079_v14 = vpop.permute.xlu2 %2413  ;;  %v10081_v46 = vpop.permute.xlu1 %2403 }
 0x291   :  { %16307 = vst [vmem:[#allocation41_spill] sm:$0xff] %v10079_v14 }
 0x292   :  { %v2231_v43 = vpack.c.bf16 %v1975_v37, %v1959_v39 }
 0x293   :  { %v10069_v41 = vpop.f32.mrf.mxu0  ;;  %v10071_v15 = vpop.f32.mrf.mxu1 }
 0x294   :  { %3231 = vmatpush.bf16.msrb.mxu3 %v2231_v43  ;;  %v10073_v11 = vpop.f32.mrf.mxu2 }
 0x295   :  { %16305 = vst [vmem:[#allocation76_spill] sm:$0xff] %v10073_v11  ;;  %v10075_v58 = vpop.f32.mrf.mxu3 }
 0x296   :  { %16306 = vst [vmem:[#allocation35_spill] sm:$0xff] %v10075_v58  ;;  %v10091_v26 = vpop.permute.xlu0 %2393 }
 0x297   :  { %2723 = vmatmul.bf16.gmra.mxu0 %v10063_v48  ;;  %16308 = vst [vmem:[#allocation54_spill] sm:$0xff] %v10091_v26 }
 0x298   :  { %2772 = vmatmul.bf16.gmra.mxu1 %v10063_v48  ;;  %v10093_v12 = vpop.permute.xlu2 %2408  ;;  %v10095_v0 = vpop.permute.xlu1 %2398 }
 0x299   :  { %2821 = vmatmul.bf16.gmra.mxu2 %v10063_v48  ;;  %16309 = vst [vmem:[#allocation86_spill] sm:$0xff] %v10093_v12  ;;  %v2565_v1 = vadd.f32 %v10053_v7, %v10095_v0 }
 0x29a   :  { %2870 = vmatmul.bf16.gmra.mxu3 %v10063_v48  ;;  %16310 = vst [vmem:[#allocation28_spill] sm:$0xff] %v10095_v0 }
 0x29b   :  { %v10083_v5 = vpop.f32.mrf.mxu0  ;;  %v10085_v22 = vpop.f32.mrf.mxu1 }
 0x29c   :  { %v10087_v19 = vpop.f32.mrf.mxu2 }
 0x29d   :  { %v10089_v57 = vpop.f32.mrf.mxu3 }
 0x29e   :  { %v10114_v2 = vpop.permute.xlu0 %2388 }
 0x29f   :  { %16316 = vst [vmem:[#allocation17_spill] sm:$0xff] %v10114_v2 }
 0x2a0   :  { %v10116_v39 = vpop.permute.xlu2 %2383  ;;  %v10118_v37 = vpop.permute.xlu1 %2373 }
 0x2a1   :  { %16317 = vst [vmem:[#allocation68_spill] sm:$0xff] %v10116_v39 }
 0x2a2   :  { %16318 = vst [vmem:[#allocation15_spill] sm:$0xff] %v10118_v37 }
 0x2a3   :  { %v10104_v21 = vpop.f32.mrf.mxu0  ;;  %v10106_v42 = vpop.f32.mrf.mxu1 }
 0x2a4   :  { %16312 = vst [vmem:[#allocation90_spill] sm:$0xff] %v10104_v21  ;;  %v10108_v60 = vpop.f32.mrf.mxu2 }
 0x2a5   :  { %16313 = vst [vmem:[#allocation91_spill] sm:$0xff] %v10106_v42  ;;  %v10110_v30 = vpop.f32.mrf.mxu3 }
 0x2a6   :  { %16314 = vst [vmem:[#allocation93_spill] sm:$0xff] %v10108_v60  ;;  %v10129_v52 = vpop.permute.xlu0 %2363 }
 0x2a7   :  { %2728 = vmatmul.bf16.gmra.mxu0 %v10100_v10  ;;  %16315 = vst [vmem:[#allocation47_spill] sm:$0xff] %v10110_v30  ;;  %v10146_v30 = vadd.f32 %v9735_v3, %v10129_v52  ;;  %v10150_v60 = vadd.f32 %v9737_v36, %v10129_v52  ;;  %v10168_v3 = vadd.f32 %v9829_v28, %v10118_v37 }
 0x2a8   :  { %2777 = vmatmul.bf16.gmra.mxu1 %v10100_v10  ;;  %16319 = vst [vmem:[#allocation10_spill] sm:$0xff] %v10129_v52  ;;  %v10142_v11 = vpop.permute.xlu1 %2368  ;;  %v10152_v42 = vpop.permute.xlu2 %2378  ;;  %v10172_v36 = vadd.f32 %v9835_v40, %v10118_v37 }
 0x2a9   :  { %2826 = vmatmul.bf16.gmra.mxu2 %v10100_v10  ;;  %16320 = vst [vmem:[#allocation50_spill] sm:$0xff] %v10142_v11  ;;  %v10156_v21 = vadd.f32 %v9791_v55, %v10142_v11  ;;  %v10160_v14 = vadd.f32 %v9793_v6, %v10142_v11  ;;  %v10176_v55 = vadd.f32 %v9837_v27, %v10118_v37 }
 0x2aa   :  { %2875 = vmatmul.bf16.gmra.mxu3 %v10100_v10  ;;  %16321 = vst [vmem:[#allocation25_spill] sm:$0xff] %v10150_v60  ;;  %v10180_v6 = vadd.f32 %v9880_v32, %v10152_v42  ;;  %v10188_v28 = vadd.f32 %v9884_v61, %v10152_v42  ;;  %v10192_v40 = vadd.f32 %v9886_v29, %v10152_v42 }
 0x2ab   :  { %v10120_v43 = vpop.f32.mrf.mxu0  ;;  %v10122_v48 = vpop.f32.mrf.mxu1  ;;  %16322 = vst [vmem:[#allocation44_spill] sm:$0xff] %v10152_v42  ;;  %v2509_v32 = vadd.f32 %v9935_v17, %v10116_v39  ;;  %v10216_v61 = vadd.f32 %v9940_v45, %v10116_v39  ;;  %v10220_v29 = vadd.f32 %v9942_v59, %v10116_v39  ;;  %v2560_v17 = vadd.f32 %v9969_v33, %v10114_v2 }
 0x2ac   :  { %v10124_v23 = vpop.f32.mrf.mxu2  ;;  %16323 = vst [vmem:[#allocation27_spill] sm:$0xff] %v10156_v21  ;;  %v10232_v27 = vadd.f32 %v9978_v4, %v10114_v2  ;;  %v2514_v45 = vadd.f32 %v10018_v18, %v10091_v26  ;;  %v2563_v59 = vadd.f32 %v10020_v49, %v10091_v26  ;;  %v2661_v33 = vadd.f32 %v10025_v24, %v10091_v26 }
 0x2ad   :  { %v10126_v16 = vpop.f32.mrf.mxu3  ;;  %16324 = vst [vmem:[#allocation69_spill] sm:$0xff] %v10160_v14  ;;  %v3337_v4 = vmax.f32 %v2509_v32, 0.0  ;;  %v2614_v18 = vadd.f32 %v10055_v50, %v10095_v0  ;;  %v2663_v49 = vadd.f32 %v10057_v54, %v10095_v0  ;;  %v3354_v24 = vmax.f32 %v2560_v17, 0.0 }
 0x2ae   :  { %v3356_v7 = vmax.f32 %v10232_v27, 0.0  ;;  %v3369_v32 = vmax.f32 %v2514_v45, 0.0  ;;  %v3386_v54 = vmax.f32 %v2565_v1, 0.0  ;;  %v10262_v17 = vadd.f32 %v10071_v15, %v10081_v46 }
 0x2af   :  { %v3387_v21 = vmax.f32 %v2614_v18, 0.0  ;;  %v10268_v1 = vadd.f32 %v10083_v5, %v10093_v12  ;;  %v10272_v45 = vadd.f32 %v10085_v22, %v10093_v12  ;;  %v10280_v15 = vadd.f32 %v10089_v57, %v10093_v12 }
 0x2b3   :  { %v10132_v10 = vpop.f32.mrf.mxu0  ;;  %v10134_v31 = vpop.f32.mrf.mxu1 }
 0x2b4   :  { %v10136_v47 = vpop.f32.mrf.mxu2 }
 0x2b5   :  { %v10138_v58 = vpop.f32.mrf.mxu3 }
 0x2b7   :  { %2889 = vmatmul.bf16.vlgmr.msra.gmra.mxu0 %v9626_v35 }
 0x2b8   :  { %2938 = vmatmul.bf16.vlgmr.msra.gmra.mxu1 %v9626_v35 }
 0x2b9   :  { %2987 = vmatmul.bf16.vlgmr.msra.gmra.mxu2 %v9626_v35 }
 0x2ba   :  { %3036 = vmatmul.bf16.vlgmr.msra.gmra.mxu3 %v9626_v35  ;;  %v10164_v35 = vadd.f32 %v9827_v8, %v10118_v37  ;;  %v10184_v8 = vadd.f32 %v9882_v13, %v10152_v42  ;;  %v2558_v13 = vadd.f32 %v9937_v34, %v10116_v39  ;;  %v2511_v37 = vadd.f32 %v9967_v53, %v10114_v2 }
 0x2bb   :  { %v2530_v42 = vpop.f32.mrf.mxu0  ;;  %v2579_v52 = vpop.f32.mrf.mxu1  ;;  %v10228_v34 = vadd.f32 %v9976_v63, %v10114_v2  ;;  %v2612_v53 = vadd.f32 %v10023_v51, %v10091_v26  ;;  %v2516_v63 = vadd.f32 %v10051_v44, %v10095_v0  ;;  %v3372_v26 = vmax.f32 %v2661_v33, 0.0 }
 0x2bc   :  { %v10210_v11 = vpop.f32.mrf.mxu2  ;;  %v3338_v2 = vmax.f32 %v2558_v13, 0.0  ;;  %v3353_v14 = vmax.f32 %v2511_v37, 0.0  ;;  %v3370_v13 = vmax.f32 %v2563_v59, 0.0  ;;  %v3388_v51 = vmax.f32 %v2663_v49, 0.0 }
 0x2bd   :  { %v10212_v20 = vpop.f32.mrf.mxu3  ;;  %v3355_v44 = vmax.f32 %v10228_v34, 0.0  ;;  %v3371_v50 = vmax.f32 %v2612_v53, 0.0  ;;  %v3385_v60 = vmax.f32 %v2516_v63, 0.0  ;;  %v10258_v37 = vadd.f32 %v10069_v41, %v10081_v46 }
 0x2be   :  { %v10276_v41 = vadd.f32 %v10087_v19, %v10093_v12  ;;  %v10284_v59 = vadd.f32 %v10120_v43, %v10066_v38  ;;  %v10291_v5 = vadd.f32 %v2530_v42, %v10048_v9  ;;  %v10294_v22 = vadd.f32 %v2579_v52, %v10048_v9 }
 0x2bf   :  { %v10298_v57 = vpack.c.bf16 %v3385_v60, %v3369_v32  ;;  %v10300_v33 = vpack.c.bf16 %v3386_v54, %v3370_v13  ;;  %v10302_v43 = vpack.c.bf16 %v3387_v21, %v3371_v50  ;;  %v10304_v63 = vpack.c.bf16 %v3388_v51, %v3372_v26 }
 0x2c0   :  { %v10308_v18 = vpack.c.bf16 %v3354_v24, %v3338_v2  ;;  %v10312_v52 = vadd.f32 %v10124_v23, %v10066_v38  ;;  %v2529_v26 = vadd.f32 %v10132_v10, %v10040_v56  ;;  %v2627_v21 = vadd.f32 %v10136_v47, %v10040_v56  ;;  %v16325_v24 = vld [vmem:[#allocation48_spill] sm:$0xff] }
 0x2c1   :  { %v2676_v23 = vadd.f32 %v10138_v58, %v10040_v56  ;;  %v3481_v2 = vmax.f32 %v10291_v5, 0.0 }
 0x2c3   :  { %v2533_v0 = vpop.f32.mrf.mxu0  ;;  %v2582_v39 = vpop.f32.mrf.mxu1 }
 0x2c4   :  { %v2631_v27 = vpop.f32.mrf.mxu2  ;;  %v2534_v19 = vadd.f32 %v2533_v0, %v9993_v62  ;;  %v2583_v53 = vadd.f32 %v2582_v39, %v9993_v62  ;;  %v10316_v0 = vadd.f32 %v10126_v16, %v10066_v38  ;;  %v3482_v16 = vmax.f32 %v10294_v22, 0.0 }
 0x2c5   :  { %v2680_v34 = vpop.f32.mrf.mxu3  ;;  %v2632_v42 = vadd.f32 %v2631_v27, %v9993_v62  ;;  %v2629_v39 = vadd.f32 %v10210_v11, %v10048_v9 }
 0x2c6   :  { %v2681_v60 = vadd.f32 %v2680_v34, %v9993_v62  ;;  %v3497_v51 = vmax.f32 %v2534_v19, 0.0  ;;  %v16327_v19 = vmax.f32 %v10220_v29, 0.0  ;;  %v16332_v29 = vmax.f32 %v10172_v36, 0.0  ;;  %v16339_v36 = vld [vmem:[#allocation91_spill] sm:$0xff] }
 0x2c7   :  { %2894 = vmatmul.bf16.gmra.mxu0 %v9695_v25  ;;  %v3499_v50 = vmax.f32 %v2632_v42, 0.0  ;;  %v16329_v42 = vmax.f32 %v10180_v6, 0.0  ;;  %v16335_v6 = vmax.f32 %v10192_v40, 0.0 }
 0x2c8   :  { %2943 = vmatmul.bf16.gmra.mxu1 %v9695_v25  ;;  %v3500_v54 = vmax.f32 %v2681_v60, 0.0 }
 0x2c9   :  { %2992 = vmatmul.bf16.gmra.mxu2 %v9695_v25 }
 0x2ca   :  { %3041 = vmatmul.bf16.gmra.mxu3 %v9695_v25  ;;  %v10288_v25 = vadd.f32 %v10122_v48, %v10066_v38  ;;  %v10306_v48 = vpack.c.bf16 %v3353_v14, %v3337_v4  ;;  %v2578_v14 = vadd.f32 %v10134_v31, %v10040_v56  ;;  %v2678_v4 = vadd.f32 %v10212_v20, %v10048_v9 }
 0x2cb   :  { %v2535_v10 = vpop.f32.mrf.mxu0  ;;  %v2584_v49 = vpop.f32.mrf.mxu1  ;;  %v3498_v31 = vmax.f32 %v2583_v53, 0.0  ;;  %v16326_v20 = vmax.f32 %v10216_v61, 0.0  ;;  %v10344_v53 = vpack.c.bf16 %v3356_v7, %v16327_v19  ;;  %v16328_v56 = vmax.f32 %v10164_v35, 0.0 }
 0x2cc   :  { %v2536_v32 = vadd.f32 %v2535_v10, %v16325_v24  ;;  %v2585_v47 = vadd.f32 %v2584_v49, %v16325_v24  ;;  %v2633_v13 = vpop.f32.mrf.mxu2  ;;  %v16333_v7 = vmax.f32 %v10188_v28, 0.0  ;;  %v16334_v35 = vmax.f32 %v10176_v55, 0.0  ;;  %v16340_v55 = vld [vmem:[#allocation93_spill] sm:$0xff] }
 0x2cd   :  { %v2682_v58 = vpop.f32.mrf.mxu3  ;;  %v2634_v27 = vadd.f32 %v2633_v13, %v16325_v24  ;;  %v10340_v22 = vpack.c.bf16 %v3355_v44, %v16326_v20  ;;  %v10350_v60 = vpack.c.bf16 %v16329_v42, %v16328_v56  ;;  %v16330_v13 = vmax.f32 %v10168_v3, 0.0  ;;  %v16336_v20 = vld [vmem:[#allocation36_spill] sm:$0xff] }
 0x2ce   :  { %v2683_v34 = vadd.f32 %v2682_v58, %v16325_v24  ;;  %v3513_v11 = vmax.f32 %v2536_v32, 0.0  ;;  %v3514_v5 = vmax.f32 %v2585_v47, 0.0  ;;  %v16331_v32 = vmax.f32 %v10184_v8, 0.0 }
 0x2cf   :  { %v3515_v10 = vmax.f32 %v2634_v27, 0.0  ;;  %v10362_v58 = vpack.c.bf16 %v16333_v7, %v16332_v29  ;;  %v10368_v56 = vpack.c.bf16 %v16335_v6, %v16334_v35  ;;  %v3483_v27 = vmax.f32 %v2629_v39, 0.0  ;;  %v16341_v39 = vld [vmem:[#allocation47_spill] sm:$0xff]  ;;  %v16345_v6 = vld [vmem:[#allocation25_spill] sm:$0xff] }
 0x2d0   :  { %v3516_v49 = vmax.f32 %v2683_v34, 0.0  ;;  %v10356_v47 = vpack.c.bf16 %v16331_v32, %v16330_v13  ;;  %v3658_v61 = vpack.c.bf16 %v3513_v11, %v3497_v51  ;;  %v3659_v44 = vpack.c.bf16 %v3514_v5, %v3498_v31  ;;  %v16337_v51 = vld [vmem:[#allocation41_spill] sm:$0xff]  ;;  %v16338_v31 = vld [vmem:[#allocation90_spill] sm:$0xff] }
 0x2d1   :  { %v3484_v3 = vmax.f32 %v2678_v4, 0.0  ;;  %v3660_v34 = vpack.c.bf16 %v3515_v10, %v3499_v50  ;;  %v2524_v11 = vadd.f32 %v16338_v31, %v16337_v51  ;;  %v2573_v28 = vadd.f32 %v16339_v36, %v16337_v51 }
 0x2d2   :  { %v3661_v8 = vpack.c.bf16 %v3516_v49, %v3500_v54  ;;  %v3465_v5 = vmax.f32 %v2529_v26, 0.0  ;;  %v3466_v19 = vmax.f32 %v2578_v14, 0.0  ;;  %3819 = vmatpush.bf16.msra.mxu0 %v3658_v61  ;;  %3868 = vmatpush.bf16.msra.mxu1 %v3659_v44  ;;  %v2622_v40 = vadd.f32 %v16340_v55, %v16337_v51 }
 0x2d3   :  { %v2671_v4 = vadd.f32 %v16341_v39, %v16337_v51  ;;  %v3467_v50 = vmax.f32 %v2627_v21, 0.0  ;;  %v3468_v54 = vmax.f32 %v2676_v23, 0.0  ;;  %v10379_v10 = vpop.f32.mrf.mxu0  ;;  %v10381_v49 = vpop.f32.mrf.mxu1  ;;  %3917 = vmatpush.bf16.msra.mxu2 %v3660_v34  ;;  %v3449_v42 = vmax.f32 %v10284_v59, 0.0 }
 0x2d4   :  { %3966 = vmatpush.bf16.msra.mxu3 %v3661_v8  ;;  %v3450_v26 = vmax.f32 %v10288_v25, 0.0  ;;  %v10385_v14 = vpop.f32.mrf.mxu2  ;;  %v3642_v32 = vpack.c.bf16 %v3481_v2, %v3465_v5  ;;  %v3643_v61 = vpack.c.bf16 %v3482_v16, %v3466_v19  ;;  %v3451_v21 = vmax.f32 %v10312_v52, 0.0  ;;  %v16343_v2 = vld [vmem:[#allocation27_spill] sm:$0xff]  ;;  %v16347_v8 = vld [vmem:[#allocation69_spill] sm:$0xff] }
 0x2d5   :  { %v10387_v13 = vpop.f32.mrf.mxu3  ;;  %v3452_v23 = vmax.f32 %v10316_v0, 0.0  ;;  %v3644_v44 = vpack.c.bf16 %v3483_v27, %v3467_v50  ;;  %v3645_v29 = vpack.c.bf16 %v3484_v3, %v3468_v54  ;;  %v3433_v59 = vmax.f32 %v2524_v11, 0.0  ;;  %v16349_v0 = vld [vmem:[#allocation76_spill] sm:$0xff]  ;;  %v16350_v3 = vld [vmem:[#allocation35_spill] sm:$0xff] }
 0x2d6   :  { %v3434_v25 = vmax.f32 %v2573_v28, 0.0  ;;  %3820 = vmatpush.bf16.msra.mxu0 %v3642_v32  ;;  %3869 = vmatpush.bf16.msra.mxu1 %v3643_v61  ;;  %v16342_v7 = vmax.f32 %v10146_v30, 0.0  ;;  %v16344_v16 = vmax.f32 %v16343_v2, 0.0  ;;  %v16346_v34 = vmax.f32 %v16345_v6, 0.0 }
 0x2d7   :  { %2899 = vmatmul.bf16.gmra.mxu0 %v16336_v20  ;;  %v16348_v52 = vmax.f32 %v16347_v8, 0.0  ;;  %v2617_v27 = vadd.f32 %v16349_v0, %v10081_v46  ;;  %v3435_v11 = vmax.f32 %v2622_v40, 0.0  ;;  %v3436_v36 = vmax.f32 %v2671_v4, 0.0  ;;  %3918 = vmatpush.bf16.msra.mxu2 %v3644_v44 }
 0x2d8   :  { %2948 = vmatmul.bf16.gmra.mxu1 %v16336_v20  ;;  %v10398_v35 = vpack.c.bf16 %v16344_v16, %v16342_v7  ;;  %3967 = vmatpush.bf16.msra.mxu3 %v3645_v29  ;;  %v3417_v30 = vmax.f32 %v10268_v1, 0.0  ;;  %v3418_v28 = vmax.f32 %v10272_v45, 0.0  ;;  %v3626_v5 = vpack.c.bf16 %v3449_v42, %v3433_v59  ;;  %v16352_v29 = vld [vmem:[#allocation50_spill] sm:$0xff]  ;;  %v16353_v59 = vld [vmem:[#allocation39_spill] sm:$0xff]  ;;  %v16354_v7 = vld [vmem:[#allocation88_spill] sm:$0xff] }
 0x2d9   :  { %2997 = vmatmul.bf16.gmra.mxu2 %v16336_v20  ;;  %v10404_v31 = vpack.c.bf16 %v16348_v52, %v16346_v34  ;;  %v3627_v19 = vpack.c.bf16 %v3450_v26, %v3434_v25  ;;  %v3419_v55 = vmax.f32 %v10276_v41, 0.0  ;;  %v3420_v39 = vmax.f32 %v10280_v15, 0.0 }
 0x2da   :  { %3046 = vmatmul.bf16.gmra.mxu3 %v16336_v20  ;;  %v2666_v20 = vadd.f32 %v16350_v3, %v10081_v46  ;;  %v3628_v50 = vpack.c.bf16 %v3451_v21, %v3435_v11  ;;  %v3629_v54 = vpack.c.bf16 %v3452_v23, %v3436_v36  ;;  %v3401_v32 = vmax.f32 %v10258_v37, 0.0  ;;  %3821 = vmatpush.bf16.msra.mxu0 %v3626_v5 }
 0x2db   :  { %v3402_v61 = vmax.f32 %v10262_v17, 0.0  ;;  %3870 = vmatpush.bf16.msra.mxu1 %v3627_v19  ;;  %v3403_v40 = vmax.f32 %v2617_v27, 0.0  ;;  %v10416_v44 = vpop.f32.mrf.mxu0  ;;  %v10418_v1 = vpop.f32.mrf.mxu1  ;;  %v16351_v17 = vld [vmem:[#allocation81_spill] sm:$0xff]  ;;  %v2501_v25 = vadd.f32 %v16353_v59, %v16352_v29  ;;  %v2550_v2 = vadd.f32 %v16354_v7, %v16352_v29  ;;  %v16363_v7 = vld [vmem:[#allocation31_spill] sm:$0xff] }
 0x2dc   :  { %v3404_v4 = vmax.f32 %v2666_v20, 0.0  ;;  %3919 = vmatpush.bf16.msra.mxu2 %v3628_v50  ;;  %3968 = vmatpush.bf16.msra.mxu3 %v3629_v54  ;;  %v10420_v45 = vpop.f32.mrf.mxu2  ;;  %v3610_v15 = vpack.c.bf16 %v3417_v30, %v3401_v32 }
 0x2dd   :  { %v10422_v41 = vpop.f32.mrf.mxu3  ;;  %v3611_v42 = vpack.c.bf16 %v3418_v28, %v3402_v61  ;;  %v3612_v26 = vpack.c.bf16 %v3419_v55, %v3403_v40  ;;  %v3289_v8 = vmax.f32 %v2501_v25, 0.0  ;;  %v3290_v52 = vmax.f32 %v2550_v2, 0.0  ;;  %v16359_v28 = vld [vmem:[#allocation32_spill] sm:$0xff]  ;;  %v16360_v40 = vld [vmem:[#allocation65_spill] sm:$0xff] }
 0x2de   :  { %v3613_v37 = vpack.c.bf16 %v3420_v39, %v3404_v4  ;;  %3822 = vmatpush.bf16.msra.mxu0 %v3610_v15 }
 0x2df   :  { %3871 = vmatpush.bf16.msra.mxu1 %v3611_v42 }
 0x2e0   :  { %3920 = vmatpush.bf16.msra.mxu2 %v3612_v26  ;;  %3969 = vmatpush.bf16.msra.mxu3 %v3613_v37 }
 0x2e2   :  { %3823 = vmatpush.bf16.msra.mxu0 %v10298_v57  ;;  %v16355_v57 = vld [vmem:[#allocation10_spill] sm:$0xff] }
 0x2e3   :  { %3872 = vmatpush.bf16.msra.mxu1 %v10300_v33  ;;  %v10427_v21 = vpop.f32.mrf.mxu0  ;;  %v10429_v23 = vpop.f32.mrf.mxu1  ;;  %v16356_v33 = vld [vmem:[#allocation20_spill] sm:$0xff] }
 0x2e4   :  { %3921 = vmatpush.bf16.msra.mxu2 %v10302_v43  ;;  %3970 = vmatpush.bf16.msra.mxu3 %v10304_v63  ;;  %v10437_v16 = vpop.f32.mrf.mxu2  ;;  %v2499_v43 = vadd.f32 %v16356_v33, %v16355_v57  ;;  %v16357_v63 = vld [vmem:[#allocation57_spill] sm:$0xff] }
 0x2e5   :  { %v10439_v6 = vpop.f32.mrf.mxu3  ;;  %v2548_v34 = vadd.f32 %v16357_v63, %v16355_v57 }
 0x2e6   :  { %3824 = vmatpush.bf16.msra.mxu0 %v10306_v48  ;;  %v3273_v0 = vmax.f32 %v2499_v43, 0.0 }
 0x2e7   :  { %2904 = vmatmul.bf16.gmra.mxu0 %v16351_v17  ;;  %3873 = vmatpush.bf16.msra.mxu1 %v10308_v18  ;;  %v3274_v27 = vmax.f32 %v2548_v34, 0.0 }
 0x2e8   :  { %2953 = vmatmul.bf16.gmra.mxu1 %v16351_v17  ;;  %3922 = vmatpush.bf16.msra.mxu2 %v10340_v22  ;;  %v3546_v22 = vpack.c.bf16 %v3289_v8, %v3273_v0 }
 0x2e9   :  { %3002 = vmatmul.bf16.gmra.mxu2 %v16351_v17  ;;  %3971 = vmatpush.bf16.msra.mxu3 %v10344_v53  ;;  %v3547_v53 = vpack.c.bf16 %v3290_v52, %v3274_v27  ;;  %v6820_v27 = vld [vmem:[%s15282_s2] sm:$0xff] }
 0x2ea   :  { %3051 = vmatmul.bf16.gmra.mxu3 %v16351_v17  ;;  %3825 = vmatpush.bf16.msra.mxu0 %v10350_v60  ;;  %v16358_v60 = vld [vmem:[#allocation84_spill] sm:$0xff] }
 0x2eb   :  { %3874 = vmatpush.bf16.msra.mxu1 %v10356_v47  ;;  %v10454_v3 = vpop.f32.mrf.mxu0  ;;  %v10456_v20 = vpop.f32.mrf.mxu1 }
 0x2ec   :  { %3923 = vmatpush.bf16.msra.mxu2 %v10362_v58  ;;  %v10460_v48 = vpop.f32.mrf.mxu2 }
 0x2ed   :  { %3972 = vmatpush.bf16.msra.mxu3 %v10368_v56  ;;  %v10462_v18 = vpop.f32.mrf.mxu3 }
 0x2ee   :  { %3826 = vmatpush.bf16.msra.mxu0 %v3546_v22  ;;  %v10551_v22 = vadd.f32 %v10379_v10, %v16355_v57 }
 0x2ef   :  { %3875 = vmatpush.bf16.msra.mxu1 %v3547_v53 }
 0x2f0   :  { %3924 = vmatpush.bf16.msra.mxu2 %v10398_v35 }
 0x2f1   :  { %3973 = vmatpush.bf16.msra.mxu3 %v10404_v31 }
 0x2f3   :  { %v10467_v47 = vpop.f32.mrf.mxu0  ;;  %v10469_v11 = vpop.f32.mrf.mxu1 }
 0x2f4   :  { %v10471_v58 = vpop.f32.mrf.mxu2 }
 0x2f5   :  { %v10473_v56 = vpop.f32.mrf.mxu3 }
 0x2f7   :  { %2909 = vmatmul.bf16.gmra.mxu0 %v16358_v60 }
 0x2f8   :  { %2958 = vmatmul.bf16.gmra.mxu1 %v16358_v60 }
 0x2f9   :  { %3007 = vmatmul.bf16.gmra.mxu2 %v16358_v60 }
 0x2fa   :  { %3056 = vmatmul.bf16.gmra.mxu3 %v16358_v60 }
 0x2fb   :  { %v10478_v36 = vpop.f32.mrf.mxu0  ;;  %v10480_v35 = vpop.f32.mrf.mxu1 }
 0x2fc   :  { %v10482_v31 = vpop.f32.mrf.mxu2 }
 0x2fd   :  { %v10484_v30 = vpop.f32.mrf.mxu3 }
 0x303   :  { %v10487_v5 = vpop.f32.mrf.mxu0  ;;  %v10489_v19 = vpop.f32.mrf.mxu1 }
 0x304   :  { %v10491_v55 = vpop.f32.mrf.mxu2 }
 0x305   :  { %v10493_v39 = vpop.f32.mrf.mxu3 }
 0x307   :  { %2914 = vmatmul.bf16.gmra.mxu0 %v16359_v28 }
 0x308   :  { %2963 = vmatmul.bf16.gmra.mxu1 %v16359_v28 }
 0x309   :  { %3012 = vmatmul.bf16.gmra.mxu2 %v16359_v28 }
 0x30a   :  { %3061 = vmatmul.bf16.gmra.mxu3 %v16359_v28  ;;  %v10559_v28 = vadd.f32 %v10381_v49, %v16355_v57  ;;  %v10579_v49 = vadd.f32 %v10418_v1, %v16352_v29 }
 0x30b   :  { %v10498_v50 = vpop.f32.mrf.mxu0  ;;  %v10500_v54 = vpop.f32.mrf.mxu1 }
 0x30c   :  { %v10502_v32 = vpop.f32.mrf.mxu2  ;;  %16368 = vst [vmem:[#allocation9_spill] sm:$0xff] %v10559_v28 }
 0x30d   :  { %v10504_v61 = vpop.f32.mrf.mxu3  ;;  %16371 = vst [vmem:[#allocation6_spill] sm:$0xff] %v10579_v49 }
 0x313   :  { %v10507_v4 = vpop.f32.mrf.mxu0  ;;  %v10509_v15 = vpop.f32.mrf.mxu1 }
 0x314   :  { %v10511_v42 = vpop.f32.mrf.mxu2 }
 0x315   :  { %16361 = vst [vmem:[#allocation13_spill] sm:$0xff] %v10511_v42  ;;  %v10513_v26 = vpop.f32.mrf.mxu3  ;;  %v10575_v42 = vadd.f32 %v10416_v44, %v16352_v29 }
 0x316   :  { %16362 = vst [vmem:[#allocation7_spill] sm:$0xff] %v10513_v26 }
 0x317   :  { %2919 = vmatmul.bf16.gmra.mxu0 %v16360_v40 }
 0x318   :  { %2968 = vmatmul.bf16.gmra.mxu1 %v16360_v40 }
 0x319   :  { %3017 = vmatmul.bf16.gmra.mxu2 %v16360_v40 }
 0x31a   :  { %3066 = vmatmul.bf16.gmra.mxu3 %v16360_v40  ;;  %v10563_v40 = vadd.f32 %v10385_v14, %v16355_v57  ;;  %v10583_v14 = vadd.f32 %v10420_v45, %v16352_v29 }
 0x31b   :  { %v10518_v37 = vpop.f32.mrf.mxu0  ;;  %v10520_v17 = vpop.f32.mrf.mxu1 }
 0x31c   :  { %v10522_v59 = vpop.f32.mrf.mxu2  ;;  %16369 = vst [vmem:[#allocation12_spill] sm:$0xff] %v10563_v40 }
 0x31d   :  { %v10524_v25 = vpop.f32.mrf.mxu3  ;;  %16372 = vst [vmem:[#allocation38_spill] sm:$0xff] %v10583_v14 }
 0x323   :  { %v10527_v2 = vpop.f32.mrf.mxu0  ;;  %v10529_v33 = vpop.f32.mrf.mxu1 }
 0x324   :  { %16364 = vst [vmem:[#allocation77_spill] sm:$0xff] %v10527_v2  ;;  %v10531_v43 = vpop.f32.mrf.mxu2 }
 0x325   :  { %16365 = vst [vmem:[#allocation63_spill] sm:$0xff] %v10529_v33  ;;  %v10533_v63 = vpop.f32.mrf.mxu3 }
 0x326   :  { %16366 = vst [vmem:[#allocation61_spill] sm:$0xff] %v10531_v43 }
 0x327   :  { %2924 = vmatmul.bf16.gmra.mxu0 %v16363_v7  ;;  %16367 = vst [vmem:[#allocation70_spill] sm:$0xff] %v10533_v63 }
 0x328   :  { %2973 = vmatmul.bf16.gmra.mxu1 %v16363_v7 }
 0x329   :  { %3022 = vmatmul.bf16.gmra.mxu2 %v16363_v7 }
 0x32a   :  { %3071 = vmatmul.bf16.gmra.mxu3 %v16363_v7  ;;  %v10567_v7 = vadd.f32 %v10387_v13, %v16355_v57  ;;  %v10587_v13 = vadd.f32 %v10422_v41, %v16352_v29  ;;  %v16374_v57 = vld [vmem:[#allocation15_spill] sm:$0xff]  ;;  %v16375_v29 = vld [vmem:[#allocation44_spill] sm:$0xff] }
 0x32b   :  { %v10538_v34 = vpop.f32.mrf.mxu0  ;;  %v10540_v8 = vpop.f32.mrf.mxu1  ;;  %v10591_v63 = vadd.f32 %v10427_v21, %v16374_v57  ;;  %v10595_v44 = vadd.f32 %v10429_v23, %v16374_v57  ;;  %v10599_v1 = vadd.f32 %v10437_v16, %v16374_v57  ;;  %v10603_v45 = vadd.f32 %v10439_v6, %v16374_v57 }
 0x32c   :  { %v10542_v52 = vpop.f32.mrf.mxu2  ;;  %16370 = vst [vmem:[#allocation5_spill] sm:$0xff] %v10567_v7  ;;  %v10612_v21 = vadd.f32 %v10456_v20, %v16375_v29  ;;  %v10616_v23 = vadd.f32 %v10460_v48, %v16375_v29  ;;  %v10623_v41 = vadd.f32 %v10462_v18, %v16375_v29  ;;  %v16377_v7 = vld [vmem:[#allocation17_spill] sm:$0xff] }
 0x32d   :  { %v10544_v0 = vpop.f32.mrf.mxu3  ;;  %16373 = vst [vmem:[#allocation14_spill] sm:$0xff] %v10587_v13  ;;  %v2756_v13 = vadd.f32 %v10480_v35, %v16377_v7  ;;  %v10657_v48 = vadd.f32 %v10482_v31, %v16377_v7  ;;  %v16379_v31 = vld [vmem:[#allocation28_spill] sm:$0xff] }
 0x32e   :  { %v2712_v40 = vadd.f32 %v10498_v50, %v16379_v31  ;;  %v10693_v50 = vadd.f32 %v10509_v15, %v10081_v46  ;;  %v10709_v15 = vadd.f32 %v10524_v25, %v10093_v12 }
 0x330   :  { %v3389_v49 = vmax.f32 %v2712_v40, 0.0 }
 0x333   :  { %v10553_v53 = vpop.f32.mrf.mxu0  ;;  %v10555_v60 = vpop.f32.mrf.mxu1 }
 0x334   :  { %v10569_v26 = vpop.f32.mrf.mxu2 }
 0x335   :  { %v10571_v10 = vpop.f32.mrf.mxu3 }
 0x337   :  { %3085 = vmatmul.bf16.vlgmr.msrb.gmra.mxu0 %v6820_v27 }
 0x338   :  { %3134 = vmatmul.bf16.vlgmr.msrb.gmra.mxu1 %v6820_v27 }
 0x339   :  { %3183 = vmatmul.bf16.vlgmr.msrb.gmra.mxu2 %v6820_v27 }
 0x33a   :  { %3232 = vmatmul.bf16.vlgmr.msrb.gmra.mxu3 %v6820_v27  ;;  %v10608_v27 = vadd.f32 %v10454_v3, %v16375_v29  ;;  %v16376_v29 = vld [vmem:[#allocation68_spill] sm:$0xff] }
 0x33b   :  { %v10638_v57 = vadd.f32 %v10467_v47, %v16376_v29  ;;  %v2726_v20 = vpop.f32.mrf.mxu0  ;;  %v2775_v33 = vpop.f32.mrf.mxu1  ;;  %v2754_v16 = vadd.f32 %v10469_v11, %v16376_v29  ;;  %v10645_v6 = vadd.f32 %v10471_v58, %v16376_v29  ;;  %v10649_v43 = vadd.f32 %v10473_v56, %v16376_v29  ;;  %v16378_v58 = vld [vmem:[#allocation54_spill] sm:$0xff] }
 0x33c   :  { %v2824_v3 = vpop.f32.mrf.mxu2  ;;  %v2707_v47 = vadd.f32 %v10478_v36, %v16377_v7  ;;  %v10661_v11 = vadd.f32 %v10484_v30, %v16377_v7  ;;  %v2710_v56 = vadd.f32 %v10487_v5, %v16378_v58  ;;  %v2759_v29 = vadd.f32 %v10489_v19, %v16378_v58 }
 0x33d   :  { %v2873_v18 = vpop.f32.mrf.mxu3  ;;  %v2808_v36 = vadd.f32 %v10491_v55, %v16378_v58  ;;  %v2857_v35 = vadd.f32 %v10493_v39, %v16378_v58  ;;  %v3341_v14 = vmax.f32 %v10638_v57, 0.0  ;;  %v2761_v30 = vadd.f32 %v10500_v54, %v16379_v31  ;;  %v6821_v54 = vld [vmem:[%s15282_s2 + $0x8] sm:$0xff] }
 0x33e   :  { %v2810_v5 = vadd.f32 %v10502_v32, %v16379_v31  ;;  %v3342_v7 = vmax.f32 %v2754_v16, 0.0  ;;  %v2859_v55 = vadd.f32 %v10504_v61, %v16379_v31  ;;  %v3357_v39 = vmax.f32 %v2707_v47, 0.0 }
 0x33f   :  { %v3358_v58 = vmax.f32 %v2756_v13, 0.0  ;;  %v3373_v32 = vmax.f32 %v2710_v56, 0.0  ;;  %v3374_v16 = vmax.f32 %v2759_v29, 0.0  ;;  %v3375_v51 = vmax.f32 %v2808_v36, 0.0 }
 0x340   :  { %v3376_v19 = vmax.f32 %v2857_v35, 0.0  ;;  %v3390_v2 = vmax.f32 %v2761_v30, 0.0  ;;  %v3391_v28 = vmax.f32 %v2810_v5, 0.0  ;;  %v10689_v61 = vadd.f32 %v10507_v4, %v10081_v46 }
 0x341   :  { %v3392_v57 = vmax.f32 %v2859_v55, 0.0  ;;  %v10697_v56 = vadd.f32 %v10518_v37, %v10093_v12  ;;  %v10701_v29 = vadd.f32 %v10520_v17, %v10093_v12  ;;  %v10705_v4 = vadd.f32 %v10522_v59, %v10093_v12 }
 0x342   :  { %v10713_v37 = vadd.f32 %v10538_v34, %v10066_v38  ;;  %v10717_v17 = vadd.f32 %v10540_v8, %v10066_v38  ;;  %v10720_v35 = vadd.f32 %v2726_v20, %v10048_v9  ;;  %v10723_v30 = vadd.f32 %v2775_v33, %v10048_v9 }
 0x343   :  { %v2729_v13 = vpop.f32.mrf.mxu0  ;;  %v2778_v47 = vpop.f32.mrf.mxu1  ;;  %v10726_v59 = vadd.f32 %v2824_v3, %v10048_v9  ;;  %v10729_v25 = vadd.f32 %v2873_v18, %v10048_v9  ;;  %v10733_v55 = vpack.c.bf16 %v3389_v49, %v3373_v32  ;;  %v10735_v8 = vpack.c.bf16 %v3390_v2, %v3374_v16 }
 0x344   :  { %v2827_v40 = vpop.f32.mrf.mxu2  ;;  %v2730_v34 = vadd.f32 %v2729_v13, %v9993_v62  ;;  %v2779_v5 = vadd.f32 %v2778_v47, %v9993_v62  ;;  %v10739_v20 = vpack.c.bf16 %v3392_v57, %v3376_v19  ;;  %v10741_v33 = vpack.c.bf16 %v3357_v39, %v3341_v14 }
 0x345   :  { %v2876_v36 = vpop.f32.mrf.mxu3  ;;  %v10743_v12 = vpack.c.bf16 %v3358_v58, %v3342_v7  ;;  %v10747_v3 = vadd.f32 %v10542_v52, %v10066_v38  ;;  %v10751_v18 = vadd.f32 %v10544_v0, %v10066_v38  ;;  %v2828_v49 = vadd.f32 %v2827_v40, %v9993_v62 }
 0x346   :  { %v2877_v2 = vadd.f32 %v2876_v36, %v9993_v62  ;;  %v3485_v58 = vmax.f32 %v10720_v35, 0.0  ;;  %v3486_v0 = vmax.f32 %v10723_v30, 0.0  ;;  %v3487_v19 = vmax.f32 %v10726_v59, 0.0 }
 0x347   :  { %3090 = vmatmul.bf16.gmra.mxu0 %v6821_v54  ;;  %v3488_v39 = vmax.f32 %v10729_v25, 0.0  ;;  %v3502_v16 = vmax.f32 %v2779_v5, 0.0  ;;  %v3503_v40 = vmax.f32 %v2828_v49, 0.0  ;;  %v16381_v25 = vmax.f32 %v10645_v6, 0.0 }
 0x348   :  { %3139 = vmatmul.bf16.gmra.mxu1 %v6821_v54  ;;  %v16383_v5 = vmax.f32 %v10649_v43, 0.0  ;;  %v16387_v6 = vmax.f32 %v10595_v44, 0.0 }
 0x349   :  { %3188 = vmatmul.bf16.gmra.mxu2 %v6821_v54 }
 0x34a   :  { %3237 = vmatmul.bf16.gmra.mxu3 %v6821_v54  ;;  %v10737_v54 = vpack.c.bf16 %v3391_v28, %v3375_v51  ;;  %v16380_v51 = vld [vmem:[#allocation30_spill] sm:$0xff] }
 0x34b   :  { %v2725_v28 = vadd.f32 %v10553_v53, %v16380_v51  ;;  %v2774_v14 = vadd.f32 %v10555_v60, %v16380_v51  ;;  %v2823_v7 = vadd.f32 %v10569_v26, %v16380_v51  ;;  %v2872_v52 = vadd.f32 %v10571_v10, %v16380_v51  ;;  %v2731_v57 = vpop.f32.mrf.mxu0  ;;  %v2780_v32 = vpop.f32.mrf.mxu1 }
 0x34c   :  { %v3501_v53 = vmax.f32 %v2730_v34, 0.0  ;;  %v2732_v60 = vadd.f32 %v2731_v57, %v16325_v24  ;;  %v2781_v13 = vadd.f32 %v2780_v32, %v16325_v24  ;;  %v2829_v26 = vpop.f32.mrf.mxu2  ;;  %v3504_v10 = vmax.f32 %v2877_v2, 0.0 }
 0x34d   :  { %v2878_v47 = vpop.f32.mrf.mxu3  ;;  %v2830_v36 = vadd.f32 %v2829_v26, %v16325_v24  ;;  %v16382_v51 = vmax.f32 %v10657_v48, 0.0  ;;  %v16384_v57 = vmax.f32 %v10661_v11, 0.0  ;;  %v16385_v26 = vmax.f32 %v10591_v63, 0.0 }
 0x34e   :  { %v2879_v35 = vadd.f32 %v2878_v47, %v16325_v24  ;;  %v3517_v30 = vmax.f32 %v2732_v60, 0.0  ;;  %v3518_v59 = vmax.f32 %v2781_v13, 0.0  ;;  %v16386_v47 = vmax.f32 %v10608_v27, 0.0 }
 0x34f   :  { %v10775_v34 = vpack.c.bf16 %v16382_v51, %v16381_v25  ;;  %v10781_v32 = vpack.c.bf16 %v16384_v57, %v16383_v5  ;;  %v3519_v49 = vmax.f32 %v2830_v36, 0.0  ;;  %v16388_v48 = vmax.f32 %v10612_v21, 0.0 }
 0x350   :  { %v3520_v2 = vmax.f32 %v2879_v35, 0.0  ;;  %v10787_v60 = vpack.c.bf16 %v16386_v47, %v16385_v26  ;;  %v3662_v13 = vpack.c.bf16 %v3517_v30, %v3501_v53  ;;  %v3663_v43 = vpack.c.bf16 %v3518_v59, %v3502_v16  ;;  %v16395_v16 = vld [vmem:[#allocation9_spill] sm:$0xff]  ;;  %v16397_v30 = vld [vmem:[#allocation6_spill] sm:$0xff] }
 0x351   :  { %v10793_v51 = vpack.c.bf16 %v16388_v48, %v16387_v6  ;;  %v16389_v11 = vmax.f32 %v10599_v1, 0.0  ;;  %v16390_v25 = vmax.f32 %v10616_v23, 0.0  ;;  %v16391_v63 = vmax.f32 %v10603_v45, 0.0  ;;  %v6822_v45 = vld [vmem:[%s15282_s2 + $0x10] sm:$0xff]  ;;  %v16402_v26 = vld [vmem:[#allocation61_spill] sm:$0xff]  ;;  %v16403_v6 = vld [vmem:[#allocation70_spill] sm:$0xff] }
 0x352   :  { %v16392_v27 = vmax.f32 %v10623_v41, 0.0  ;;  %v3664_v5 = vpack.c.bf16 %v3519_v49, %v3503_v40  ;;  %v3665_v44 = vpack.c.bf16 %v3520_v2, %v3504_v10  ;;  %v16393_v21 = vmax.f32 %v10551_v22, 0.0  ;;  %v16399_v41 = vld [vmem:[#allocation41_spill] sm:$0xff]  ;;  %v16401_v22 = vld [vmem:[#allocation63_spill] sm:$0xff]  ;;  %4015 = vmatpush.bf16.msrb.mxu0 %v3662_v13  ;;  %4064 = vmatpush.bf16.msrb.mxu1 %v3663_v43 }
 0x353   :  { %v10799_v36 = vpack.c.bf16 %v16390_v25, %v16389_v11  ;;  %v16394_v57 = vmax.f32 %v10575_v42, 0.0  ;;  %v16396_v1 = vmax.f32 %v16395_v16, 0.0  ;;  %v16398_v23 = vmax.f32 %v16397_v30, 0.0  ;;  %v16400_v40 = vld [vmem:[#allocation77_spill] sm:$0xff]  ;;  %v16406_v30 = vld [vmem:[#allocation38_spill] sm:$0xff] }
 0x354   :  { %v10805_v35 = vpack.c.bf16 %v16392_v27, %v16391_v63  ;;  %v2720_v10 = vadd.f32 %v16400_v40, %v16399_v41  ;;  %v2769_v49 = vadd.f32 %v16401_v22, %v16399_v41  ;;  %v3469_v42 = vmax.f32 %v2725_v28, 0.0  ;;  %v10830_v63 = vpop.f32.mrf.mxu0  ;;  %v10832_v27 = vpop.f32.mrf.mxu1  ;;  %4113 = vmatpush.bf16.msrb.mxu2 %v3664_v5  ;;  %4162 = vmatpush.bf16.msrb.mxu3 %v3665_v44  ;;  %v16410_v22 = vld [vmem:[#allocation14_spill] sm:$0xff] }
 0x355   :  { %v10811_v53 = vpack.c.bf16 %v16394_v57, %v16393_v21  ;;  %v10817_v59 = vpack.c.bf16 %v16398_v23, %v16396_v1  ;;  %v3470_v2 = vmax.f32 %v2774_v14, 0.0  ;;  %v2818_v47 = vadd.f32 %v16402_v26, %v16399_v41  ;;  %v10836_v14 = vpop.f32.mrf.mxu2  ;;  %v10838_v13 = vpop.f32.mrf.mxu3 }
 0x356   :  { %v2867_v48 = vadd.f32 %v16403_v6, %v16399_v41  ;;  %v3471_v11 = vmax.f32 %v2823_v7, 0.0  ;;  %v3472_v25 = vmax.f32 %v2872_v52, 0.0  ;;  %v3453_v21 = vmax.f32 %v10713_v37, 0.0  ;;  %v16404_v37 = vld [vmem:[#allocation12_spill] sm:$0xff] }
 0x357   :  { %3095 = vmatmul.bf16.gmra.mxu0 %v6822_v45  ;;  %v3454_v28 = vmax.f32 %v10717_v17, 0.0  ;;  %v3646_v43 = vpack.c.bf16 %v3485_v58, %v3469_v42  ;;  %v3647_v57 = vpack.c.bf16 %v3486_v0, %v3470_v2  ;;  %v3455_v7 = vmax.f32 %v10747_v3, 0.0  ;;  %v16408_v58 = vld [vmem:[#allocation5_spill] sm:$0xff] }
 0x358   :  { %3144 = vmatmul.bf16.gmra.mxu1 %v6822_v45  ;;  %v3456_v52 = vmax.f32 %v10751_v18, 0.0  ;;  %v3648_v16 = vpack.c.bf16 %v3487_v19, %v3471_v11  ;;  %v3649_v1 = vpack.c.bf16 %v3488_v39, %v3472_v25  ;;  %v3437_v5 = vmax.f32 %v2720_v10, 0.0  ;;  %v16412_v3 = vld [vmem:[#allocation13_spill] sm:$0xff]  ;;  %v16413_v19 = vld [vmem:[#allocation7_spill] sm:$0xff] }
 0x359   :  { %3193 = vmatmul.bf16.gmra.mxu2 %v6822_v45  ;;  %v3438_v44 = vmax.f32 %v2769_v49, 0.0  ;;  %4016 = vmatpush.bf16.msrb.mxu0 %v3646_v43  ;;  %v16405_v17 = vmax.f32 %v16404_v37, 0.0  ;;  %v16407_v23 = vmax.f32 %v16406_v30, 0.0  ;;  %v16409_v0 = vmax.f32 %v16408_v58, 0.0 }
 0x35a   :  { %3242 = vmatmul.bf16.gmra.mxu3 %v6822_v45  ;;  %4065 = vmatpush.bf16.msrb.mxu1 %v3647_v57  ;;  %v16411_v42 = vmax.f32 %v16410_v22, 0.0  ;;  %v2813_v18 = vadd.f32 %v16412_v3, %v10081_v46  ;;  %v2862_v39 = vadd.f32 %v16413_v19, %v10081_v46  ;;  %v3439_v45 = vmax.f32 %v2818_v47, 0.0  ;;  %v6826_v3 = vld [vmem:[%s15282_s2 + $0x30] sm:$0xff] }
 0x35b   :  { %v3552_v40 = vpack.c.bf16 %v16407_v23, %v16405_v17  ;;  %v3440_v10 = vmax.f32 %v2867_v48, 0.0  ;;  %4114 = vmatpush.bf16.msrb.mxu2 %v3648_v16  ;;  %4163 = vmatpush.bf16.msrb.mxu3 %v3649_v1  ;;  %v3421_v49 = vmax.f32 %v10697_v56, 0.0  ;;  %v3422_v26 = vmax.f32 %v10701_v29, 0.0 }
 0x35c   :  { %v3553_v2 = vpack.c.bf16 %v16411_v42, %v16409_v0  ;;  %v3630_v6 = vpack.c.bf16 %v3453_v21, %v3437_v5  ;;  %v3631_v11 = vpack.c.bf16 %v3454_v28, %v3438_v44  ;;  %v3423_v25 = vmax.f32 %v10705_v4, 0.0  ;;  %v10860_v16 = vpop.f32.mrf.mxu0  ;;  %v10862_v56 = vpop.f32.mrf.mxu1 }
 0x35d   :  { %v3424_v43 = vmax.f32 %v10709_v15, 0.0  ;;  %v3632_v57 = vpack.c.bf16 %v3455_v7, %v3439_v45  ;;  %v3633_v37 = vpack.c.bf16 %v3456_v52, %v3440_v10  ;;  %v3405_v17 = vmax.f32 %v10689_v61, 0.0  ;;  %v10864_v29 = vpop.f32.mrf.mxu2  ;;  %v10866_v4 = vpop.f32.mrf.mxu3 }
 0x35e   :  { %v3406_v30 = vmax.f32 %v10693_v50, 0.0  ;;  %4017 = vmatpush.bf16.msrb.mxu0 %v3630_v6  ;;  %4066 = vmatpush.bf16.msrb.mxu1 %v3631_v11  ;;  %v3407_v47 = vmax.f32 %v2813_v18, 0.0  ;;  %v3408_v48 = vmax.f32 %v2862_v39, 0.0  ;;  %v6823_v50 = vld [vmem:[%s15282_s2 + $0x18] sm:$0xff] }
 0x35f   :  { %4115 = vmatpush.bf16.msrb.mxu2 %v3632_v57  ;;  %4164 = vmatpush.bf16.msrb.mxu3 %v3633_v37  ;;  %v3614_v15 = vpack.c.bf16 %v3421_v49, %v3405_v17  ;;  %v6827_v11 = vld [vmem:[%s15282_s2 + $0x38] sm:$0xff] }
 0x360   :  { %v3615_v21 = vpack.c.bf16 %v3422_v26, %v3406_v30  ;;  %v3616_v28 = vpack.c.bf16 %v3423_v25, %v3407_v47  ;;  %v3617_v61 = vpack.c.bf16 %v3424_v43, %v3408_v48 }
 0x362   :  { %4018 = vmatpush.bf16.msrb.mxu0 %v3614_v15  ;;  %4067 = vmatpush.bf16.msrb.mxu1 %v3615_v21  ;;  %v16420_v15 = vld [vmem:[#allocation10_spill] sm:$0xff] }
 0x363   :  { %4116 = vmatpush.bf16.msrb.mxu2 %v3616_v28  ;;  %4165 = vmatpush.bf16.msrb.mxu3 %v3617_v61  ;;  %v10979_v21 = vadd.f32 %v10830_v63, %v16420_v15  ;;  %v10983_v28 = vadd.f32 %v10832_v27, %v16420_v15 }
 0x364   :  { %v10873_v7 = vpop.f32.mrf.mxu0  ;;  %v10875_v52 = vpop.f32.mrf.mxu1 }
 0x365   :  { %v10879_v1 = vpop.f32.mrf.mxu2  ;;  %v10881_v5 = vpop.f32.mrf.mxu3 }
 0x366   :  { %4019 = vmatpush.bf16.msrb.mxu0 %v10733_v55  ;;  %4068 = vmatpush.bf16.msrb.mxu1 %v10735_v8 }
 0x367   :  { %3100 = vmatmul.bf16.gmra.mxu0 %v6823_v50  ;;  %4117 = vmatpush.bf16.msrb.mxu2 %v10737_v54 }
 0x368   :  { %4166 = vmatpush.bf16.msrb.mxu3 %v10739_v20  ;;  %3149 = vmatmul.bf16.gmra.mxu1 %v6823_v50 }
 0x369   :  { %3198 = vmatmul.bf16.gmra.mxu2 %v6823_v50 }
 0x36a   :  { %3247 = vmatmul.bf16.gmra.mxu3 %v6823_v50  ;;  %4020 = vmatpush.bf16.msrb.mxu0 %v10741_v33 }
 0x36b   :  { %4069 = vmatpush.bf16.msrb.mxu1 %v10743_v12  ;;  %4118 = vmatpush.bf16.msrb.mxu2 %v10775_v34  ;;  %v6824_v12 = vld [vmem:[%s15282_s2 + $0x20] sm:$0xff] }
 0x36c   :  { %4167 = vmatpush.bf16.msrb.mxu3 %v10781_v32  ;;  %v10889_v55 = vpop.f32.mrf.mxu0  ;;  %v10891_v8 = vpop.f32.mrf.mxu1 }
 0x36d   :  { %v10895_v54 = vpop.f32.mrf.mxu2  ;;  %v10897_v20 = vpop.f32.mrf.mxu3 }
 0x36e   :  { %4021 = vmatpush.bf16.msrb.mxu0 %v10787_v60 }
 0x36f   :  { %4070 = vmatpush.bf16.msrb.mxu1 %v10793_v51  ;;  %4119 = vmatpush.bf16.msrb.mxu2 %v10799_v36 }
 0x370   :  { %4168 = vmatpush.bf16.msrb.mxu3 %v10805_v35 }
 0x372   :  { %4022 = vmatpush.bf16.msrb.mxu0 %v10811_v53 }
 0x373   :  { %4071 = vmatpush.bf16.msrb.mxu1 %v10817_v59  ;;  %4120 = vmatpush.bf16.msrb.mxu2 %v3552_v40  ;;  %v6825_v59 = vld [vmem:[%s15282_s2 + $0x28] sm:$0xff] }
 0x374   :  { %4169 = vmatpush.bf16.msrb.mxu3 %v3553_v2  ;;  %v10904_v33 = vpop.f32.mrf.mxu0  ;;  %v10906_v34 = vpop.f32.mrf.mxu1 }
 0x375   :  { %v10908_v32 = vpop.f32.mrf.mxu2  ;;  %v10910_v60 = vpop.f32.mrf.mxu3 }
 0x377   :  { %3105 = vmatmul.bf16.gmra.mxu0 %v6824_v12 }
 0x378   :  { %3154 = vmatmul.bf16.gmra.mxu1 %v6824_v12 }
 0x379   :  { %3203 = vmatmul.bf16.gmra.mxu2 %v6824_v12 }
 0x37a   :  { %3252 = vmatmul.bf16.gmra.mxu3 %v6824_v12  ;;  %v10991_v12 = vadd.f32 %v10836_v14, %v16420_v15 }
 0x37c   :  { %v10912_v51 = vpop.f32.mrf.mxu0  ;;  %v10914_v36 = vpop.f32.mrf.mxu1  ;;  %16421 = vst [vmem:[#allocation21_spill] sm:$0xff] %v10991_v12  ;;  %v16432_v12 = vld [vmem:[#allocation54_spill] sm:$0xff] }
 0x37d   :  { %v10916_v35 = vpop.f32.mrf.mxu2  ;;  %v10918_v53 = vpop.f32.mrf.mxu3 }
 0x384   :  { %v10923_v44 = vpop.f32.mrf.mxu0  ;;  %v10925_v23 = vpop.f32.mrf.mxu1 }
 0x385   :  { %v10927_v40 = vpop.f32.mrf.mxu2  ;;  %v10929_v58 = vpop.f32.mrf.mxu3 }
 0x387   :  { %3110 = vmatmul.bf16.gmra.mxu0 %v6825_v59 }
 0x388   :  { %3159 = vmatmul.bf16.gmra.mxu1 %v6825_v59 }
 0x389   :  { %3208 = vmatmul.bf16.gmra.mxu2 %v6825_v59 }
 0x38a   :  { %3257 = vmatmul.bf16.gmra.mxu3 %v6825_v59  ;;  %v10995_v59 = vadd.f32 %v10838_v13, %v16420_v15  ;;  %v16427_v15 = vld [vmem:[#allocation15_spill] sm:$0xff] }
 0x38c   :  { %v10931_v0 = vpop.f32.mrf.mxu0  ;;  %v10933_v22 = vpop.f32.mrf.mxu1  ;;  %16422 = vst [vmem:[#allocation62_spill] sm:$0xff] %v10995_v59  ;;  %v16430_v59 = vld [vmem:[#allocation68_spill] sm:$0xff] }
 0x38d   :  { %v10935_v42 = vpop.f32.mrf.mxu2  ;;  %v10937_v2 = vpop.f32.mrf.mxu3 }
 0x394   :  { %v10942_v18 = vpop.f32.mrf.mxu0  ;;  %v10944_v19 = vpop.f32.mrf.mxu1 }
 0x395   :  { %v10946_v39 = vpop.f32.mrf.mxu2  ;;  %v10948_v45 = vpop.f32.mrf.mxu3 }
 0x396   :  { %16414 = vst [vmem:[#allocation11_spill] sm:$0xff] %v10946_v39  ;;  %v11019_v39 = vadd.f32 %v10873_v7, %v16427_v15 }
 0x397   :  { %3115 = vmatmul.bf16.gmra.mxu0 %v6826_v3  ;;  %16415 = vst [vmem:[#allocation8_spill] sm:$0xff] %v10948_v45 }
 0x398   :  { %3164 = vmatmul.bf16.gmra.mxu1 %v6826_v3 }
 0x399   :  { %3213 = vmatmul.bf16.gmra.mxu2 %v6826_v3 }
 0x39a   :  { %3262 = vmatmul.bf16.gmra.mxu3 %v6826_v3 }
 0x39c   :  { %v10950_v10 = vpop.f32.mrf.mxu0  ;;  %v10952_v49 = vpop.f32.mrf.mxu1 }
 0x39d   :  { %v10954_v26 = vpop.f32.mrf.mxu2  ;;  %v10956_v6 = vpop.f32.mrf.mxu3 }
 0x3a4   :  { %v10961_v25 = vpop.f32.mrf.mxu0  ;;  %v10963_v43 = vpop.f32.mrf.mxu1 }
 0x3a5   :  { %16416 = vst [vmem:[#allocation23_spill] sm:$0xff] %v10961_v25  ;;  %v10965_v57 = vpop.f32.mrf.mxu2  ;;  %v10967_v37 = vpop.f32.mrf.mxu3 }
 0x3a6   :  { %16417 = vst [vmem:[#allocation78_spill] sm:$0xff] %v10963_v43 }
 0x3a7   :  { %3120 = vmatmul.bf16.gmra.mxu0 %v6827_v11  ;;  %16418 = vst [vmem:[#allocation79_spill] sm:$0xff] %v10965_v57 }
 0x3a8   :  { %16419 = vst [vmem:[#allocation26_spill] sm:$0xff] %v10967_v37  ;;  %3169 = vmatmul.bf16.gmra.mxu1 %v6827_v11  ;;  %v16429_v37 = vld [vmem:[#allocation44_spill] sm:$0xff] }
 0x3a9   :  { %3218 = vmatmul.bf16.gmra.mxu2 %v6827_v11  ;;  %v11052_v57 = vadd.f32 %v10895_v54, %v16429_v37  ;;  %v11056_v7 = vadd.f32 %v10897_v20, %v16429_v37  ;;  %v2906_v20 = vadd.f32 %v10923_v44, %v16432_v12  ;;  %v3006_v44 = vadd.f32 %v10935_v42, %v16379_v31 }
 0x3aa   :  { %3267 = vmatmul.bf16.gmra.mxu3 %v6827_v11  ;;  %v16423_v11 = vld [vmem:[#allocation50_spill] sm:$0xff] }
 0x3ab   :  { %v11003_v27 = vadd.f32 %v10860_v16, %v16423_v11  ;;  %v11007_v45 = vadd.f32 %v10862_v56, %v16423_v11  ;;  %v11011_v14 = vadd.f32 %v10864_v29, %v16423_v11  ;;  %v11015_v13 = vadd.f32 %v10866_v4, %v16423_v11  ;;  %v11036_v4 = vld [vmem:[%s15282_s2 + $0x40] sm:$0xff] }
 0x3ac   :  { %v10969_v17 = vpop.f32.mrf.mxu0  ;;  %v10971_v30 = vpop.f32.mrf.mxu1  ;;  %v11023_v16 = vadd.f32 %v10875_v52, %v16427_v15  ;;  %v11027_v56 = vadd.f32 %v10879_v1, %v16427_v15  ;;  %v11031_v29 = vadd.f32 %v10881_v5, %v16427_v15  ;;  %16428 = vst [vmem:[#allocation52_spill] sm:$0xff] %v11036_v4  ;;  %v11042_v52 = vadd.f32 %v10889_v55, %v16429_v37 }
 0x3ad   :  { %v10973_v47 = vpop.f32.mrf.mxu2  ;;  %v10975_v48 = vpop.f32.mrf.mxu3  ;;  %16424 = vst [vmem:[#allocation74_spill] sm:$0xff] %v11007_v45  ;;  %v11046_v1 = vadd.f32 %v10891_v8, %v16429_v37  ;;  %v11074_v5 = vadd.f32 %v10904_v33, %v16430_v59  ;;  %v11078_v15 = vadd.f32 %v10906_v34, %v16430_v59  ;;  %v11084_v37 = vadd.f32 %v10908_v32, %v16430_v59 }
 0x3ae   :  { %16425 = vst [vmem:[#allocation29_spill] sm:$0xff] %v11011_v14  ;;  %v11088_v8 = vadd.f32 %v10910_v60, %v16430_v59  ;;  %v2955_v11 = vadd.f32 %v10925_v23, %v16432_v12  ;;  %v3004_v32 = vadd.f32 %v10927_v40, %v16432_v12  ;;  %v3053_v60 = vadd.f32 %v10929_v58, %v16432_v12 }
 0x3af   :  { %16426 = vst [vmem:[#allocation16_spill] sm:$0xff] %v11015_v13  ;;  %v16431_v13 = vld [vmem:[#allocation17_spill] sm:$0xff]  ;;  %v2908_v59 = vadd.f32 %v10931_v0, %v16379_v31  ;;  %v3346_v43 = vmax.f32 %v11078_v15, 0.0  ;;  %v3055_v23 = vadd.f32 %v10937_v2, %v16379_v31  ;;  %v3377_v12 = vmax.f32 %v2906_v20, 0.0 }
 0x3b0   :  { %v2903_v34 = vadd.f32 %v10912_v51, %v16431_v13  ;;  %v2952_v14 = vadd.f32 %v10914_v36, %v16431_v13  ;;  %v2957_v51 = vadd.f32 %v10933_v22, %v16379_v31  ;;  %v3345_v36 = vmax.f32 %v11074_v5, 0.0 }
 0x3b1   :  { %v11116_v0 = vadd.f32 %v10916_v35, %v16431_v13  ;;  %v11120_v22 = vadd.f32 %v10918_v53, %v16431_v13  ;;  %v3378_v25 = vmax.f32 %v2955_v11, 0.0  ;;  %v3379_v42 = vmax.f32 %v3004_v32, 0.0 }
 0x3b2   :  { %v3361_v5 = vmax.f32 %v2903_v34, 0.0  ;;  %v3362_v15 = vmax.f32 %v2952_v14, 0.0  ;;  %v3380_v41 = vmax.f32 %v3053_v60, 0.0  ;;  %v3393_v45 = vmax.f32 %v2908_v59, 0.0  ;;  %v16433_v34 = vld [vmem:[#allocation86_spill] sm:$0xff] }
 0x3b3   :  { %v3394_v2 = vmax.f32 %v2957_v51, 0.0  ;;  %v3395_v31 = vmax.f32 %v3006_v44, 0.0  ;;  %v3396_v40 = vmax.f32 %v3055_v23, 0.0  ;;  %v11124_v58 = vadd.f32 %v10942_v18, %v10081_v46 }
 0x3b4   :  { %v10985_v61 = vpop.f32.mrf.mxu0  ;;  %v10987_v50 = vpop.f32.mrf.mxu1  ;;  %v11128_v35 = vadd.f32 %v10944_v19, %v10081_v46  ;;  %v11132_v14 = vadd.f32 %v10950_v10, %v16433_v34  ;;  %v11136_v59 = vadd.f32 %v10952_v49, %v16433_v34  ;;  %v11140_v11 = vadd.f32 %v10954_v26, %v16433_v34 }
 0x3b5   :  { %v10997_v3 = vpop.f32.mrf.mxu2  ;;  %v10999_v63 = vpop.f32.mrf.mxu3  ;;  %v11144_v18 = vadd.f32 %v10956_v6, %v16433_v34  ;;  %v11148_v32 = vadd.f32 %v10969_v17, %v10066_v38  ;;  %v11152_v10 = vadd.f32 %v10971_v30, %v10066_v38  ;;  %v11156_v49 = vadd.f32 %v10973_v47, %v10066_v38  ;;  %v11177_v47 = vld [vmem:[%s15282_s2 + $0x48] sm:$0xff] }
 0x3b6   :  { %v11160_v26 = vadd.f32 %v10975_v48, %v10066_v38  ;;  %16434 = vst [vmem:[#allocation46_spill] sm:$0xff] %v11177_v47  ;;  %v11183_v44 = vpack.c.bf16 %v3394_v2, %v3378_v25  ;;  %v11192_v23 = vpack.c.bf16 %v3361_v5, %v3345_v36  ;;  %v11199_v25 = vpack.c.bf16 %v3362_v15, %v3346_v43 }
 0x3b7   :  { %3827 = vmatmul.bf16.vlgmr.msra.gmra.mxu0 %v11036_v4 }
 0x3b8   :  { %3876 = vmatmul.bf16.vlgmr.msra.gmra.mxu1 %v11036_v4 }
 0x3b9   :  { %3925 = vmatmul.bf16.vlgmr.msra.gmra.mxu2 %v11036_v4 }
 0x3ba   :  { %3974 = vmatmul.bf16.vlgmr.msra.gmra.mxu3 %v11036_v4 }
 0x3bc   :  { %v2922_v4 = vpop.f32.mrf.mxu0  ;;  %v2971_v54 = vpop.f32.mrf.mxu1 }
 0x3bd   :  { %v3020_v33 = vpop.f32.mrf.mxu2  ;;  %v3069_v55 = vpop.f32.mrf.mxu3  ;;  %v11163_v6 = vadd.f32 %v2922_v4, %v10048_v9  ;;  %v11166_v60 = vadd.f32 %v2971_v54, %v10048_v9  ;;  %v11181_v4 = vpack.c.bf16 %v3393_v45, %v3377_v12  ;;  %v3363_v54 = vmax.f32 %v11116_v0, 0.0  ;;  %v16435_v12 = vld [vmem:[#allocation30_spill] sm:$0xff] }
 0x3be   :  { %v11169_v17 = vadd.f32 %v3020_v33, %v10048_v9  ;;  %v11172_v30 = vadd.f32 %v3069_v55, %v10048_v9  ;;  %v11188_v55 = vpack.c.bf16 %v3395_v31, %v3379_v42  ;;  %v11190_v33 = vpack.c.bf16 %v3396_v40, %v3380_v41 }
 0x3bf   :  { %v2921_v31 = vadd.f32 %v10985_v61, %v16435_v12  ;;  %v2970_v41 = vadd.f32 %v10987_v50, %v16435_v12  ;;  %v3019_v36 = vadd.f32 %v10997_v3, %v16435_v12  ;;  %v3068_v40 = vadd.f32 %v10999_v63, %v16435_v12 }
 0x3c0   :  { %v3489_v0 = vmax.f32 %v11163_v6, 0.0  ;;  %v3491_v5 = vmax.f32 %v11169_v17, 0.0  ;;  %v3492_v43 = vmax.f32 %v11172_v30, 0.0  ;;  %v16436_v30 = vmax.f32 %v11084_v37, 0.0 }
 0x3c1   :  { %v16438_v9 = vmax.f32 %v11019_v39, 0.0  ;;  %v16444_v39 = vmax.f32 %v11031_v29, 0.0  ;;  %v16452_v29 = vld [vmem:[#allocation23_spill] sm:$0xff] }
 0x3c4   :  { %v2925_v53 = vpop.f32.mrf.mxu0  ;;  %v2974_v13 = vpop.f32.mrf.mxu1 }
 0x3c5   :  { %v3023_v19 = vpop.f32.mrf.mxu2  ;;  %v3072_v20 = vpop.f32.mrf.mxu3  ;;  %v2926_v48 = vadd.f32 %v2925_v53, %v9993_v62  ;;  %v2975_v51 = vadd.f32 %v2974_v13, %v9993_v62  ;;  %v3364_v53 = vmax.f32 %v11120_v22, 0.0  ;;  %v3490_v22 = vmax.f32 %v11166_v60, 0.0 }
 0x3c6   :  { %v3024_v13 = vadd.f32 %v3023_v19, %v9993_v62  ;;  %v3073_v45 = vadd.f32 %v3072_v20, %v9993_v62  ;;  %v11219_v62 = vpack.c.bf16 %v3363_v54, %v16436_v30 }
 0x3c7   :  { %3832 = vmatmul.bf16.gmra.mxu0 %v11177_v47  ;;  %v3505_v61 = vmax.f32 %v2926_v48, 0.0  ;;  %v3506_v2 = vmax.f32 %v2975_v51, 0.0  ;;  %v16437_v48 = vmax.f32 %v11088_v8, 0.0  ;;  %v16442_v8 = vmax.f32 %v11027_v56, 0.0 }
 0x3c8   :  { %3881 = vmatmul.bf16.gmra.mxu1 %v11177_v47  ;;  %v3508_v63 = vmax.f32 %v3073_v45, 0.0  ;;  %v16448_v56 = vmax.f32 %v10983_v28, 0.0 }
 0x3c9   :  { %3930 = vmatmul.bf16.gmra.mxu2 %v11177_v47  ;;  %v11223_v51 = vpack.c.bf16 %v3364_v53, %v16437_v48  ;;  %v16443_v53 = vmax.f32 %v11052_v57, 0.0 }
 0x3ca   :  { %3979 = vmatmul.bf16.gmra.mxu3 %v11177_v47  ;;  %v3507_v47 = vmax.f32 %v3024_v13, 0.0  ;;  %v16439_v13 = vmax.f32 %v11042_v52, 0.0  ;;  %v16445_v52 = vmax.f32 %v11056_v7, 0.0  ;;  %v16453_v7 = vld [vmem:[#allocation78_spill] sm:$0xff] }
 0x3cc   :  { %v2927_v15 = vpop.f32.mrf.mxu0  ;;  %v2976_v42 = vpop.f32.mrf.mxu1  ;;  %v11229_v45 = vpack.c.bf16 %v16439_v13, %v16438_v9  ;;  %v11247_v9 = vpack.c.bf16 %v16445_v52, %v16444_v39  ;;  %v3476_v13 = vmax.f32 %v3068_v40, 0.0  ;;  %v3459_v39 = vmax.f32 %v11156_v49, 0.0  ;;  %v11296_v49 = vld [vmem:[%s15282_s2 + $0x50] sm:$0xff] }
 0x3cd   :  { %v2928_v50 = vadd.f32 %v2927_v15, %v16325_v24  ;;  %v2977_v19 = vadd.f32 %v2976_v42, %v16325_v24  ;;  %v3025_v3 = vpop.f32.mrf.mxu2  ;;  %v3074_v20 = vpop.f32.mrf.mxu3  ;;  %16464 = vst [vmem:[#allocation71_spill] sm:$0xff] %v11296_v49 }
 0x3ce   :  { %v3026_v6 = vadd.f32 %v3025_v3, %v16325_v24  ;;  %v3075_v60 = vadd.f32 %v3074_v20, %v16325_v24  ;;  %v16440_v3 = vmax.f32 %v11023_v16, 0.0  ;;  %v11241_v20 = vpack.c.bf16 %v16443_v53, %v16442_v8 }
 0x3cf   :  { %v3521_v12 = vmax.f32 %v2928_v50, 0.0  ;;  %v3522_v17 = vmax.f32 %v2977_v19, 0.0  ;;  %v16441_v50 = vmax.f32 %v11046_v1, 0.0  ;;  %v16446_v1 = vmax.f32 %v10979_v21, 0.0  ;;  %v16454_v21 = vld [vmem:[#allocation79_spill] sm:$0xff] }
 0x3d0   :  { %v3523_v15 = vmax.f32 %v3026_v6, 0.0  ;;  %v3524_v42 = vmax.f32 %v3075_v60, 0.0  ;;  %v16447_v60 = vmax.f32 %v11003_v27, 0.0  ;;  %v3457_v8 = vmax.f32 %v11148_v32, 0.0 }
 0x3d1   :  { %v11235_v19 = vpack.c.bf16 %v16441_v50, %v16440_v3  ;;  %v3666_v37 = vpack.c.bf16 %v3521_v12, %v3505_v61  ;;  %v3667_v54 = vpack.c.bf16 %v3522_v17, %v3506_v2  ;;  %v16449_v61 = vld [vmem:[#allocation74_spill] sm:$0xff]  ;;  %v16451_v17 = vld [vmem:[#allocation41_spill] sm:$0xff]  ;;  %v3653_v52 = vpack.c.bf16 %v3492_v43, %v3476_v13  ;;  %v16466_v43 = vld [vmem:[#allocation8_spill] sm:$0xff] }
 0x3d2   :  { %v3668_v6 = vpack.c.bf16 %v3523_v15, %v3507_v47  ;;  %v3669_v16 = vpack.c.bf16 %v3524_v42, %v3508_v63  ;;  %v11253_v12 = vpack.c.bf16 %v16447_v60, %v16446_v1  ;;  %v16450_v57 = vmax.f32 %v16449_v61, 0.0  ;;  %v16455_v15 = vld [vmem:[#allocation26_spill] sm:$0xff] }
 0x3d3   :  { %v2916_v30 = vadd.f32 %v16452_v29, %v16451_v17  ;;  %v2965_v48 = vadd.f32 %v16453_v7, %v16451_v17  ;;  %v3473_v47 = vmax.f32 %v2921_v31, 0.0  ;;  %v3474_v63 = vmax.f32 %v2970_v41, 0.0  ;;  %4211 = vmatpush.bf16.msra.mxu0 %v3666_v37  ;;  %4260 = vmatpush.bf16.msra.mxu1 %v3667_v54  ;;  %v16460_v61 = vld [vmem:[#allocation62_spill] sm:$0xff] }
 0x3d4   :  { %v11259_v2 = vpack.c.bf16 %v16450_v57, %v16448_v56  ;;  %v3014_v27 = vadd.f32 %v16454_v21, %v16451_v17  ;;  %v3063_v28 = vadd.f32 %v16455_v15, %v16451_v17  ;;  %v3475_v42 = vmax.f32 %v3019_v36, 0.0  ;;  %v11269_v3 = vpop.f32.mrf.mxu0  ;;  %v11271_v50 = vpop.f32.mrf.mxu1  ;;  %4309 = vmatpush.bf16.msra.mxu2 %v3668_v6  ;;  %4358 = vmatpush.bf16.msra.mxu3 %v3669_v16  ;;  %v16456_v6 = vld [vmem:[#allocation21_spill] sm:$0xff] }
 0x3d5   :  { %v3458_v31 = vmax.f32 %v11152_v10, 0.0  ;;  %v11275_v41 = vpop.f32.mrf.mxu2  ;;  %v11277_v37 = vpop.f32.mrf.mxu3  ;;  %v3650_v54 = vpack.c.bf16 %v3489_v0, %v3473_v47  ;;  %v3651_v53 = vpack.c.bf16 %v3490_v22, %v3474_v63  ;;  %v3460_v36 = vmax.f32 %v11160_v26, 0.0  ;;  %v16458_v16 = vld [vmem:[#allocation29_spill] sm:$0xff]  ;;  %v16462_v0 = vld [vmem:[#allocation16_spill] sm:$0xff]  ;;  %v16465_v26 = vld [vmem:[#allocation11_spill] sm:$0xff] }
 0x3d6   :  { %v3652_v40 = vpack.c.bf16 %v3491_v5, %v3475_v42  ;;  %v3441_v1 = vmax.f32 %v2916_v30, 0.0  ;;  %v3442_v60 = vmax.f32 %v2965_v48, 0.0  ;;  %v16457_v32 = vmax.f32 %v16456_v6, 0.0 }
 0x3d7   :  { %4212 = vmatpush.bf16.msra.mxu0 %v3650_v54  ;;  %4261 = vmatpush.bf16.msra.mxu1 %v3651_v53  ;;  %v16459_v10 = vmax.f32 %v16458_v16, 0.0  ;;  %v16461_v57 = vmax.f32 %v16460_v61, 0.0  ;;  %v16463_v22 = vmax.f32 %v16462_v0, 0.0  ;;  %v3009_v5 = vadd.f32 %v16465_v26, %v10081_v46 }
 0x3d8   :  { %v3058_v30 = vadd.f32 %v16466_v43, %v10081_v46  ;;  %v3443_v7 = vmax.f32 %v3014_v27, 0.0  ;;  %v3444_v48 = vmax.f32 %v3063_v28, 0.0  ;;  %4310 = vmatpush.bf16.msra.mxu2 %v3652_v40  ;;  %4359 = vmatpush.bf16.msra.mxu3 %v3653_v52  ;;  %v3425_v47 = vmax.f32 %v11132_v14, 0.0 }
 0x3d9   :  { %v11285_v56 = vpack.c.bf16 %v16459_v10, %v16457_v32  ;;  %v11291_v29 = vpack.c.bf16 %v16463_v22, %v16461_v57  ;;  %v3426_v63 = vmax.f32 %v11136_v59, 0.0  ;;  %v3634_v21 = vpack.c.bf16 %v3457_v8, %v3441_v1  ;;  %3837 = vmatmul.bf16.gmra.mxu0 %v11296_v49  ;;  %3886 = vmatmul.bf16.gmra.mxu1 %v11296_v49 }
 0x3da   :  { %v3635_v15 = vpack.c.bf16 %v3458_v31, %v3442_v60  ;;  %v3427_v42 = vmax.f32 %v11140_v11, 0.0  ;;  %v3428_v13 = vmax.f32 %v11144_v18, 0.0  ;;  %v3636_v54 = vpack.c.bf16 %v3459_v39, %v3443_v7  ;;  %3935 = vmatmul.bf16.gmra.mxu2 %v11296_v49  ;;  %3984 = vmatmul.bf16.gmra.mxu3 %v11296_v49 }
 0x3db   :  { %v3637_v53 = vpack.c.bf16 %v3460_v36, %v3444_v48  ;;  %v3409_v14 = vmax.f32 %v11124_v58, 0.0  ;;  %v3410_v59 = vmax.f32 %v11128_v35, 0.0  ;;  %4213 = vmatpush.bf16.msra.mxu0 %v3634_v21  ;;  %v3411_v27 = vmax.f32 %v3009_v5, 0.0 }
 0x3dc   :  { %4262 = vmatpush.bf16.msra.mxu1 %v3635_v15  ;;  %v3412_v28 = vmax.f32 %v3058_v30, 0.0  ;;  %v11312_v8 = vpop.f32.mrf.mxu0  ;;  %v11314_v31 = vpop.f32.mrf.mxu1  ;;  %4311 = vmatpush.bf16.msra.mxu2 %v3636_v54  ;;  %v11422_v30 = vld [vmem:[%s15282_s2 + $0x70] sm:$0xff]  ;;  %v11447_v54 = vld [vmem:[%s15282_s2 + $0x78] sm:$0xff] }
 0x3dd   :  { %4360 = vmatpush.bf16.msra.mxu3 %v3637_v53  ;;  %v11316_v11 = vpop.f32.mrf.mxu2  ;;  %v11318_v18 = vpop.f32.mrf.mxu3  ;;  %v3618_v39 = vpack.c.bf16 %v3425_v47, %v3409_v14  ;;  %v3619_v36 = vpack.c.bf16 %v3426_v63, %v3410_v59  ;;  %v3620_v40 = vpack.c.bf16 %v3427_v42, %v3411_v27  ;;  %16472 = vst [vmem:[#allocation72_spill] sm:$0xff] %v11422_v30 }
 0x3de   :  { %v3621_v58 = vpack.c.bf16 %v3428_v13, %v3412_v28  ;;  %16477 = vst [vmem:[#allocation55_spill] sm:$0xff] %v11447_v54  ;;  %v16478_v28 = vld [vmem:[#allocation10_spill] sm:$0xff] }
 0x3df   :  { %4214 = vmatpush.bf16.msra.mxu0 %v3618_v39  ;;  %v11463_v39 = vadd.f32 %v11269_v3, %v16478_v28 }
 0x3e0   :  { %4263 = vmatpush.bf16.msra.mxu1 %v3619_v36  ;;  %4312 = vmatpush.bf16.msra.mxu2 %v3620_v40  ;;  %v11467_v36 = vadd.f32 %v11271_v50, %v16478_v28 }
 0x3e1   :  { %4361 = vmatpush.bf16.msra.mxu3 %v3621_v58 }
 0x3e3   :  { %4215 = vmatpush.bf16.msra.mxu0 %v11181_v4  ;;  %v11337_v4 = vld [vmem:[%s15282_s2 + $0x58] sm:$0xff] }
 0x3e4   :  { %4264 = vmatpush.bf16.msra.mxu1 %v11183_v44  ;;  %v11322_v35 = vpop.f32.mrf.mxu0  ;;  %v11324_v52 = vpop.f32.mrf.mxu1  ;;  %4313 = vmatpush.bf16.msra.mxu2 %v11188_v55  ;;  %16467 = vst [vmem:[#allocation42_spill] sm:$0xff] %v11337_v4 }
 0x3e5   :  { %4362 = vmatpush.bf16.msra.mxu3 %v11190_v33  ;;  %v11328_v1 = vpop.f32.mrf.mxu2  ;;  %v11330_v60 = vpop.f32.mrf.mxu3 }
 0x3e7   :  { %4216 = vmatpush.bf16.msra.mxu0 %v11192_v23 }
 0x3e8   :  { %4265 = vmatpush.bf16.msra.mxu1 %v11199_v25  ;;  %4314 = vmatpush.bf16.msra.mxu2 %v11219_v62 }
 0x3e9   :  { %4363 = vmatpush.bf16.msra.mxu3 %v11223_v51  ;;  %3842 = vmatmul.bf16.gmra.mxu0 %v11337_v4 }
 0x3ea   :  { %3891 = vmatmul.bf16.gmra.mxu1 %v11337_v4  ;;  %3940 = vmatmul.bf16.gmra.mxu2 %v11337_v4 }
 0x3eb   :  { %3989 = vmatmul.bf16.gmra.mxu3 %v11337_v4  ;;  %4217 = vmatpush.bf16.msra.mxu0 %v11229_v45 }
 0x3ec   :  { %4266 = vmatpush.bf16.msra.mxu1 %v11235_v19  ;;  %v11347_v44 = vpop.f32.mrf.mxu0  ;;  %v11349_v55 = vpop.f32.mrf.mxu1  ;;  %4315 = vmatpush.bf16.msra.mxu2 %v11241_v20  ;;  %v11372_v19 = vld [vmem:[%s15282_s2 + $0x60] sm:$0xff] }
 0x3ed   :  { %4364 = vmatpush.bf16.msra.mxu3 %v11247_v9  ;;  %v11353_v62 = vpop.f32.mrf.mxu2  ;;  %v11355_v33 = vpop.f32.mrf.mxu3  ;;  %16468 = vst [vmem:[#allocation40_spill] sm:$0xff] %v11372_v19 }
 0x3ef   :  { %4218 = vmatpush.bf16.msra.mxu0 %v11253_v12 }
 0x3f0   :  { %4267 = vmatpush.bf16.msra.mxu1 %v11259_v2  ;;  %4316 = vmatpush.bf16.msra.mxu2 %v11285_v56  ;;  %v11397_v56 = vld [vmem:[%s15282_s2 + $0x68] sm:$0xff] }
 0x3f1   :  { %4365 = vmatpush.bf16.msra.mxu3 %v11291_v29  ;;  %16469 = vst [vmem:[#allocation45_spill] sm:$0xff] %v11397_v56 }
 0x3f4   :  { %v11361_v23 = vpop.f32.mrf.mxu0  ;;  %v11363_v25 = vpop.f32.mrf.mxu1 }
 0x3f5   :  { %v11365_v51 = vpop.f32.mrf.mxu2  ;;  %v11367_v45 = vpop.f32.mrf.mxu3 }
 0x3f9   :  { %3847 = vmatmul.bf16.gmra.mxu0 %v11372_v19 }
 0x3fa   :  { %3896 = vmatmul.bf16.gmra.mxu1 %v11372_v19  ;;  %3945 = vmatmul.bf16.gmra.mxu2 %v11372_v19 }
 0x3fb   :  { %3994 = vmatmul.bf16.gmra.mxu3 %v11372_v19  ;;  %v16481_v19 = vld [vmem:[#allocation50_spill] sm:$0xff] }
 0x3fc   :  { %v11378_v20 = vpop.f32.mrf.mxu0  ;;  %v11380_v9 = vpop.f32.mrf.mxu1  ;;  %v11487_v50 = vadd.f32 %v11312_v8, %v16481_v19  ;;  %v11491_v4 = vadd.f32 %v11314_v31, %v16481_v19 }
 0x3fd   :  { %v11382_v12 = vpop.f32.mrf.mxu2  ;;  %v11384_v2 = vpop.f32.mrf.mxu3 }
 0x404   :  { %v11386_v6 = vpop.f32.mrf.mxu0  ;;  %v11388_v32 = vpop.f32.mrf.mxu1 }
 0x405   :  { %v11390_v16 = vpop.f32.mrf.mxu2  ;;  %v11392_v10 = vpop.f32.mrf.mxu3 }
 0x409   :  { %3852 = vmatmul.bf16.gmra.mxu0 %v11397_v56 }
 0x40a   :  { %3901 = vmatmul.bf16.gmra.mxu1 %v11397_v56  ;;  %3950 = vmatmul.bf16.gmra.mxu2 %v11397_v56 }
 0x40b   :  { %3999 = vmatmul.bf16.gmra.mxu3 %v11397_v56 }
 0x40c   :  { %v11403_v61 = vpop.f32.mrf.mxu0  ;;  %v11405_v57 = vpop.f32.mrf.mxu1 }
 0x40d   :  { %v11407_v0 = vpop.f32.mrf.mxu2  ;;  %v11409_v22 = vpop.f32.mrf.mxu3 }
 0x414   :  { %v11411_v29 = vpop.f32.mrf.mxu0  ;;  %v11413_v26 = vpop.f32.mrf.mxu1 }
 0x415   :  { %v11415_v5 = vpop.f32.mrf.mxu2  ;;  %v11417_v43 = vpop.f32.mrf.mxu3 }
 0x416   :  { %16470 = vst [vmem:[#allocation24_spill] sm:$0xff] %v11415_v5 }
 0x417   :  { %16471 = vst [vmem:[#allocation59_spill] sm:$0xff] %v11417_v43 }
 0x419   :  { %3857 = vmatmul.bf16.gmra.mxu0 %v11422_v30 }
 0x41a   :  { %3906 = vmatmul.bf16.gmra.mxu1 %v11422_v30  ;;  %3955 = vmatmul.bf16.gmra.mxu2 %v11422_v30 }
 0x41b   :  { %4004 = vmatmul.bf16.gmra.mxu3 %v11422_v30  ;;  %v11479_v30 = vadd.f32 %v11277_v37, %v16478_v28  ;;  %v11499_v37 = vadd.f32 %v11318_v18, %v16481_v19  ;;  %v16486_v18 = vld [vmem:[#allocation52_spill] sm:$0xff] }
 0x41c   :  { %v11428_v7 = vpop.f32.mrf.mxu0  ;;  %v11430_v48 = vpop.f32.mrf.mxu1 }
 0x41d   :  { %v11432_v47 = vpop.f32.mrf.mxu2  ;;  %v11434_v63 = vpop.f32.mrf.mxu3  ;;  %16480 = vst [vmem:[#allocation60_spill] sm:$0xff] %v11479_v30  ;;  %v16487_v30 = vld [vmem:[#allocation68_spill] sm:$0xff] }
 0x41e   :  { %16483 = vst [vmem:[#allocation80_spill] sm:$0xff] %v11499_v37  ;;  %v11553_v5 = vadd.f32 %v11361_v23, %v16487_v30  ;;  %v11563_v43 = vadd.f32 %v11365_v51, %v16487_v30  ;;  %v16488_v37 = vld [vmem:[#allocation17_spill] sm:$0xff] }
 0x424   :  { %v11436_v21 = vpop.f32.mrf.mxu0  ;;  %v11438_v15 = vpop.f32.mrf.mxu1 }
 0x425   :  { %16473 = vst [vmem:[#allocation92_spill] sm:$0xff] %v11436_v21  ;;  %v11440_v42 = vpop.f32.mrf.mxu2  ;;  %v11442_v13 = vpop.f32.mrf.mxu3 }
 0x426   :  { %16474 = vst [vmem:[#allocation73_spill] sm:$0xff] %v11438_v15 }
 0x427   :  { %16475 = vst [vmem:[#allocation51_spill] sm:$0xff] %v11440_v42 }
 0x428   :  { %16476 = vst [vmem:[#allocation43_spill] sm:$0xff] %v11442_v13 }
 0x429   :  { %3862 = vmatmul.bf16.gmra.mxu0 %v11447_v54 }
 0x42a   :  { %3911 = vmatmul.bf16.gmra.mxu1 %v11447_v54  ;;  %3960 = vmatmul.bf16.gmra.mxu2 %v11447_v54 }
 0x42b   :  { %4009 = vmatmul.bf16.gmra.mxu3 %v11447_v54  ;;  %v11475_v54 = vadd.f32 %v11275_v41, %v16478_v28  ;;  %v11495_v41 = vadd.f32 %v11316_v11, %v16481_v19  ;;  %v16484_v28 = vld [vmem:[#allocation15_spill] sm:$0xff]  ;;  %v16485_v19 = vld [vmem:[#allocation44_spill] sm:$0xff] }
 0x42c   :  { %v11453_v53 = vpop.f32.mrf.mxu0  ;;  %v11455_v14 = vpop.f32.mrf.mxu1  ;;  %v11503_v49 = vadd.f32 %v11322_v35, %v16484_v28  ;;  %v11507_v8 = vadd.f32 %v11324_v52, %v16484_v28  ;;  %v11511_v31 = vadd.f32 %v11328_v1, %v16484_v28  ;;  %v11515_v11 = vadd.f32 %v11330_v60, %v16484_v28 }
 0x42d   :  { %v11457_v59 = vpop.f32.mrf.mxu2  ;;  %v11459_v27 = vpop.f32.mrf.mxu3  ;;  %16479 = vst [vmem:[#allocation87_spill] sm:$0xff] %v11475_v54  ;;  %v11521_v35 = vadd.f32 %v11347_v44, %v16485_v19  ;;  %v11525_v52 = vadd.f32 %v11349_v55, %v16485_v19  ;;  %v11531_v60 = vadd.f32 %v11353_v62, %v16485_v19  ;;  %v11535_v28 = vadd.f32 %v11355_v33, %v16485_v19  ;;  %v16489_v54 = vld [vmem:[#allocation54_spill] sm:$0xff] }
 0x42e   :  { %16482 = vst [vmem:[#allocation89_spill] sm:$0xff] %v11495_v41  ;;  %v11557_v1 = vadd.f32 %v11363_v25, %v16487_v30  ;;  %v11567_v55 = vadd.f32 %v11367_v45, %v16487_v30  ;;  %v3099_v25 = vadd.f32 %v11378_v20, %v16488_v37  ;;  %v3148_v41 = vadd.f32 %v11380_v9, %v16488_v37  ;;  %v16490_v30 = vld [vmem:[#allocation28_spill] sm:$0xff] }
 0x42f   :  { %v3102_v33 = vadd.f32 %v11386_v6, %v16489_v54  ;;  %v3151_v19 = vadd.f32 %v11388_v32, %v16489_v54  ;;  %v3200_v51 = vadd.f32 %v11390_v16, %v16489_v54  ;;  %v3249_v45 = vadd.f32 %v11392_v10, %v16489_v54 }
 0x430   :  { %v3104_v13 = vadd.f32 %v11403_v61, %v16490_v30  ;;  %v3153_v20 = vadd.f32 %v11405_v57, %v16490_v30  ;;  %v3349_v9 = vmax.f32 %v11553_v5, 0.0  ;;  %v3350_v42 = vmax.f32 %v11557_v1, 0.0 }
 0x431   :  { %v3202_v6 = vadd.f32 %v11407_v0, %v16490_v30  ;;  %v3251_v32 = vadd.f32 %v11409_v22, %v16490_v30  ;;  %v11595_v61 = vadd.f32 %v11382_v12, %v16488_v37  ;;  %v11599_v57 = vadd.f32 %v11384_v2, %v16488_v37 }
 0x432   :  { %v3365_v5 = vmax.f32 %v3099_v25, 0.0  ;;  %v3366_v54 = vmax.f32 %v3148_v41, 0.0  ;;  %v3381_v1 = vmax.f32 %v3102_v33, 0.0  ;;  %v3382_v15 = vmax.f32 %v3151_v19, 0.0 }
 0x433   :  { %v3383_v0 = vmax.f32 %v3200_v51, 0.0  ;;  %v3384_v21 = vmax.f32 %v3249_v45, 0.0  ;;  %v3397_v17 = vmax.f32 %v3104_v13, 0.0  ;;  %v3398_v22 = vmax.f32 %v3153_v20, 0.0  ;;  %v16492_v45 = vld [vmem:[#allocation85_spill] sm:$0xff] }
 0x434   :  { %v11469_v40 = vpop.f32.mrf.mxu0  ;;  %v11471_v58 = vpop.f32.mrf.mxu1  ;;  %v3399_v30 = vmax.f32 %v3202_v6, 0.0  ;;  %v3400_v16 = vmax.f32 %v3251_v32, 0.0  ;;  %v11603_v10 = vadd.f32 %v11411_v29, %v10081_v46  ;;  %v11607_v12 = vadd.f32 %v11413_v26, %v10081_v46 }
 0x435   :  { %v11481_v56 = vpop.f32.mrf.mxu2  ;;  %v11483_v3 = vpop.f32.mrf.mxu3  ;;  %v11611_v41 = vadd.f32 %v11428_v7, %v16433_v34  ;;  %v11615_v13 = vadd.f32 %v11430_v48, %v16433_v34  ;;  %v11619_v33 = vadd.f32 %v11432_v47, %v16433_v34  ;;  %v11623_v29 = vadd.f32 %v11434_v63, %v16433_v34  ;;  %v16491_v34 = vld [vmem:[#allocation49_spill] sm:$0xff] }
 0x436   :  { %v11627_v25 = vadd.f32 %v11453_v53, %v10066_v38  ;;  %v11631_v7 = vadd.f32 %v11455_v14, %v10066_v38  ;;  %v11635_v48 = vadd.f32 %v11457_v59, %v10066_v38  ;;  %v11639_v47 = vadd.f32 %v11459_v27, %v10066_v38 }
 0x437   :  { %v11655_v6 = vpack.c.bf16 %v3397_v17, %v3381_v1  ;;  %v11657_v38 = vpack.c.bf16 %v3398_v22, %v3382_v15  ;;  %v3367_v27 = vmax.f32 %v11595_v61, 0.0  ;;  %v3368_v32 = vmax.f32 %v11599_v57, 0.0  ;;  %v16494_v61 = vld [vmem:[#allocation30_spill] sm:$0xff] }
 0x438   :  { %v11673_v15 = vpack.c.bf16 %v3366_v54, %v3350_v42  ;;  %v3117_v1 = vadd.f32 %v11469_v40, %v16494_v61 }
 0x439   :  { %4023 = vmatmul.bf16.vlgmr.msrb.gmra.mxu0 %v16486_v18 }
 0x43a   :  { %4072 = vmatmul.bf16.vlgmr.msrb.gmra.mxu1 %v16486_v18  ;;  %4121 = vmatmul.bf16.vlgmr.msrb.gmra.mxu2 %v16486_v18 }
 0x43b   :  { %4170 = vmatmul.bf16.vlgmr.msrb.gmra.mxu3 %v16486_v18 }
 0x43c   :  { %v3118_v18 = vpop.f32.mrf.mxu0  ;;  %v3167_v62 = vpop.f32.mrf.mxu1 }
 0x43d   :  { %v3216_v23 = vpop.f32.mrf.mxu2  ;;  %v3265_v44 = vpop.f32.mrf.mxu3  ;;  %v11642_v63 = vadd.f32 %v3118_v18, %v16491_v34  ;;  %v11645_v51 = vadd.f32 %v3167_v62, %v16491_v34  ;;  %v16493_v18 = vld [vmem:[#allocation46_spill] sm:$0xff]  ;;  %v11662_v62 = vpack.c.bf16 %v3399_v30, %v3383_v0 }
 0x43e   :  { %v11648_v53 = vadd.f32 %v3216_v23, %v16491_v34  ;;  %v11651_v14 = vadd.f32 %v3265_v44, %v16491_v34  ;;  %v11664_v23 = vpack.c.bf16 %v3400_v16, %v3384_v21  ;;  %v11666_v44 = vpack.c.bf16 %v3365_v5, %v3349_v9 }
 0x43f   :  { %v3166_v21 = vadd.f32 %v11471_v58, %v16494_v61  ;;  %v3215_v9 = vadd.f32 %v11481_v56, %v16494_v61  ;;  %v3264_v16 = vadd.f32 %v11483_v3, %v16494_v61  ;;  %v3493_v57 = vmax.f32 %v11642_v63, 0.0 }
 0x440   :  { %v3494_v5 = vmax.f32 %v11645_v51, 0.0  ;;  %v3495_v0 = vmax.f32 %v11648_v53, 0.0  ;;  %v3496_v42 = vmax.f32 %v11651_v14, 0.0  ;;  %v16495_v14 = vmax.f32 %v11563_v43, 0.0 }
 0x444   :  { %v3121_v2 = vpop.f32.mrf.mxu0  ;;  %v3170_v37 = vpop.f32.mrf.mxu1 }
 0x445   :  { %v3219_v26 = vpop.f32.mrf.mxu2  ;;  %v3268_v19 = vpop.f32.mrf.mxu3  ;;  %v3122_v20 = vadd.f32 %v3121_v2, %v16492_v45  ;;  %v3171_v59 = vadd.f32 %v3170_v37, %v16492_v45 }
 0x446   :  { %v3220_v2 = vadd.f32 %v3219_v26, %v16492_v45  ;;  %v3269_v17 = vadd.f32 %v3268_v19, %v16492_v45  ;;  %v11693_v45 = vpack.c.bf16 %v3367_v27, %v16495_v14  ;;  %v16513_v14 = vld [vmem:[#allocation43_spill] sm:$0xff] }
 0x447   :  { %v3509_v40 = vmax.f32 %v3122_v20, 0.0  ;;  %v3510_v30 = vmax.f32 %v3171_v59, 0.0  ;;  %v16496_v20 = vmax.f32 %v11567_v55, 0.0  ;;  %v16501_v55 = vmax.f32 %v11511_v31, 0.0 }
 0x448   :  { %v3511_v19 = vmax.f32 %v3220_v2, 0.0  ;;  %v3512_v3 = vmax.f32 %v3269_v17, 0.0  ;;  %v16498_v2 = vmax.f32 %v11521_v35, 0.0  ;;  %v16504_v35 = vmax.f32 %v11535_v28, 0.0  ;;  %v16511_v28 = vld [vmem:[#allocation73_spill] sm:$0xff] }
 0x449   :  { %4028 = vmatmul.bf16.gmra.mxu0 %v16493_v18  ;;  %v11697_v59 = vpack.c.bf16 %v3368_v32, %v16496_v20  ;;  %v16502_v32 = vmax.f32 %v11531_v60, 0.0  ;;  %v16507_v31 = vmax.f32 %v11467_v36, 0.0  ;;  %v16508_v60 = vmax.f32 %v11491_v4, 0.0 }
 0x44a   :  { %4077 = vmatmul.bf16.gmra.mxu1 %v16493_v18  ;;  %4126 = vmatmul.bf16.gmra.mxu2 %v16493_v18  ;;  %v3479_v20 = vmax.f32 %v3215_v9, 0.0  ;;  %v3480_v4 = vmax.f32 %v3264_v16, 0.0  ;;  %v3464_v9 = vmax.f32 %v11639_v47, 0.0 }
 0x44b   :  { %4175 = vmatmul.bf16.gmra.mxu3 %v16493_v18 }
 0x44c   :  { %v3123_v54 = vpop.f32.mrf.mxu0  ;;  %v3172_v22 = vpop.f32.mrf.mxu1  ;;  %v3656_v16 = vpack.c.bf16 %v3495_v0, %v3479_v20  ;;  %v16523_v0 = vld [vmem:[#allocation59_spill] sm:$0xff] }
 0x44d   :  { %v3124_v58 = vadd.f32 %v3123_v54, %v16325_v24  ;;  %v3173_v37 = vadd.f32 %v3172_v22, %v16325_v24  ;;  %v3221_v56 = vpop.f32.mrf.mxu2  ;;  %v3270_v26 = vpop.f32.mrf.mxu3  ;;  %v16497_v54 = vmax.f32 %v11503_v49, 0.0  ;;  %v16500_v22 = vmax.f32 %v11525_v52, 0.0 }
 0x44e   :  { %v3222_v34 = vadd.f32 %v3221_v56, %v16325_v24  ;;  %v3271_v63 = vadd.f32 %v3270_v26, %v16325_v24  ;;  %v16499_v24 = vmax.f32 %v11507_v8, 0.0  ;;  %v16503_v49 = vmax.f32 %v11515_v11, 0.0  ;;  %v16510_v11 = vld [vmem:[#allocation92_spill] sm:$0xff] }
 0x44f   :  { %v3525_v51 = vmax.f32 %v3124_v58, 0.0  ;;  %v3526_v53 = vmax.f32 %v3173_v37, 0.0  ;;  %v11703_v17 = vpack.c.bf16 %v16498_v2, %v16497_v54  ;;  %v11715_v37 = vpack.c.bf16 %v16502_v32, %v16501_v55 }
 0x450   :  { %v3527_v18 = vmax.f32 %v3222_v34, 0.0  ;;  %v3528_v61 = vmax.f32 %v3271_v63, 0.0  ;;  %v11709_v58 = vpack.c.bf16 %v16500_v22, %v16499_v24  ;;  %v11721_v56 = vpack.c.bf16 %v16504_v35, %v16503_v49  ;;  %v16509_v63 = vld [vmem:[#allocation41_spill] sm:$0xff]  ;;  %v16514_v49 = vld [vmem:[#allocation87_spill] sm:$0xff] }
 0x451   :  { %v3670_v43 = vpack.c.bf16 %v3525_v51, %v3509_v40  ;;  %v3671_v27 = vpack.c.bf16 %v3526_v53, %v3510_v30  ;;  %v16505_v52 = vmax.f32 %v11463_v39, 0.0  ;;  %v16506_v34 = vmax.f32 %v11487_v50, 0.0  ;;  %v16512_v39 = vld [vmem:[#allocation51_spill] sm:$0xff]  ;;  %v16516_v35 = vld [vmem:[#allocation89_spill] sm:$0xff] }
 0x452   :  { %v3672_v26 = vpack.c.bf16 %v3527_v18, %v3511_v19  ;;  %v3673_v8 = vpack.c.bf16 %v3528_v61, %v3512_v3  ;;  %v11733_v30 = vpack.c.bf16 %v16508_v60, %v16507_v31  ;;  %v3112_v51 = vadd.f32 %v16510_v11, %v16509_v63 }
 0x453   :  { %v11727_v40 = vpack.c.bf16 %v16506_v34, %v16505_v52  ;;  %v3161_v53 = vadd.f32 %v16511_v28, %v16509_v63  ;;  %v3477_v19 = vmax.f32 %v3117_v1, 0.0  ;;  %v3478_v3 = vmax.f32 %v3166_v21, 0.0  ;;  %4407 = vmatpush.bf16.msrb.mxu0 %v3670_v43  ;;  %4456 = vmatpush.bf16.msrb.mxu1 %v3671_v27 }
 0x454   :  { %v3210_v50 = vadd.f32 %v16512_v39, %v16509_v63  ;;  %v3259_v36 = vadd.f32 %v16513_v14, %v16509_v63  ;;  %v11743_v18 = vpop.f32.mrf.mxu0  ;;  %v11745_v61 = vpop.f32.mrf.mxu1  ;;  %4505 = vmatpush.bf16.msrb.mxu2 %v3672_v26  ;;  %4554 = vmatpush.bf16.msrb.mxu3 %v3673_v8  ;;  %v3461_v54 = vmax.f32 %v11627_v25, 0.0  ;;  %v3462_v1 = vmax.f32 %v11631_v7, 0.0  ;;  %v16518_v8 = vld [vmem:[#allocation60_spill] sm:$0xff] }
 0x455   :  { %v11749_v21 = vpop.f32.mrf.mxu2  ;;  %v11751_v2 = vpop.f32.mrf.mxu3  ;;  %v3654_v24 = vpack.c.bf16 %v3493_v57, %v3477_v19  ;;  %v3655_v22 = vpack.c.bf16 %v3494_v5, %v3478_v3  ;;  %v3463_v43 = vmax.f32 %v11635_v48, 0.0  ;;  %v3657_v27 = vpack.c.bf16 %v3496_v42, %v3480_v4  ;;  %v16520_v57 = vld [vmem:[#allocation80_spill] sm:$0xff] }
 0x456   :  { %v3445_v55 = vmax.f32 %v3112_v51, 0.0  ;;  %v3446_v32 = vmax.f32 %v3161_v53, 0.0  ;;  %v16515_v25 = vmax.f32 %v16514_v49, 0.0  ;;  %v16517_v7 = vmax.f32 %v16516_v35, 0.0  ;;  %v16522_v48 = vld [vmem:[#allocation24_spill] sm:$0xff]  ;;  %v16524_v53 = vld [vmem:[#allocation71_spill] sm:$0xff] }
 0x457   :  { %4408 = vmatpush.bf16.msrb.mxu0 %v3654_v24  ;;  %4457 = vmatpush.bf16.msrb.mxu1 %v3655_v22  ;;  %v16519_v52 = vmax.f32 %v16518_v8, 0.0  ;;  %v16521_v5 = vmax.f32 %v16520_v57, 0.0  ;;  %v3205_v47 = vadd.f32 %v16522_v48, %v10081_v46  ;;  %v3254_v42 = vadd.f32 %v16523_v0, %v10081_v46  ;;  %v16530_v35 = vld [vmem:[#allocation45_spill] sm:$0xff] }
 0x458   :  { %v11759_v26 = vpack.c.bf16 %v16517_v7, %v16515_v25  ;;  %v3447_v31 = vmax.f32 %v3210_v50, 0.0  ;;  %v3448_v60 = vmax.f32 %v3259_v36, 0.0  ;;  %4506 = vmatpush.bf16.msrb.mxu2 %v3656_v16  ;;  %4555 = vmatpush.bf16.msrb.mxu3 %v3657_v27  ;;  %v3429_v63 = vmax.f32 %v11611_v41, 0.0  ;;  %v11857_v25 = vpop.permute.xlu1 %3753  ;;  %v11863_v7 = vpop.permute.xlu0 %3768 }
 0x459   :  { %v11765_v34 = vpack.c.bf16 %v16521_v5, %v16519_v52  ;;  %v3430_v11 = vmax.f32 %v11615_v13, 0.0  ;;  %v3638_v51 = vpack.c.bf16 %v3461_v54, %v3445_v55  ;;  %v3639_v28 = vpack.c.bf16 %v3462_v1, %v3446_v32  ;;  %4033 = vmatmul.bf16.gmra.mxu0 %v16524_v53  ;;  %16529 = vst [vmem:[#allocation58_spill] sm:$0xff] %v11857_v25 }
 0x45a   :  { %4082 = vmatmul.bf16.gmra.mxu1 %v16524_v53  ;;  %v3431_v19 = vmax.f32 %v11619_v33, 0.0  ;;  %v3432_v3 = vmax.f32 %v11623_v29, 0.0  ;;  %v3640_v39 = vpack.c.bf16 %v3463_v43, %v3447_v31  ;;  %v3641_v46 = vpack.c.bf16 %v3464_v9, %v3448_v60  ;;  %4131 = vmatmul.bf16.gmra.mxu2 %v16524_v53  ;;  %v11845_v9 = vpop.permute.xlu2 %3763  ;;  %16531 = vst [vmem:[#allocation22_spill] sm:$0xff] %v11863_v7  ;;  %v16536_v60 = vld [vmem:[#allocation72_spill] sm:$0xff] }
 0x45b   :  { %4180 = vmatmul.bf16.gmra.mxu3 %v16524_v53  ;;  %v3413_v41 = vmax.f32 %v11603_v10, 0.0  ;;  %v3414_v13 = vmax.f32 %v11607_v12, 0.0  ;;  %4409 = vmatpush.bf16.msrb.mxu0 %v3638_v51  ;;  %v3415_v50 = vmax.f32 %v3205_v47, 0.0  ;;  %v3416_v14 = vmax.f32 %v3254_v42, 0.0  ;;  %16527 = vst [vmem:[#allocation37_spill] sm:$0xff] %v11845_v9 }
 0x45c   :  { %4458 = vmatpush.bf16.msrb.mxu1 %v3639_v28  ;;  %v11781_v36 = vpop.f32.mrf.mxu0  ;;  %v11783_v20 = vpop.f32.mrf.mxu1  ;;  %4507 = vmatpush.bf16.msrb.mxu2 %v3640_v39 }
 0x45d   :  { %4556 = vmatpush.bf16.msrb.mxu3 %v3641_v46  ;;  %v11785_v33 = vpop.f32.mrf.mxu2  ;;  %v11787_v29 = vpop.f32.mrf.mxu3  ;;  %v3622_v4 = vpack.c.bf16 %v3429_v63, %v3413_v41  ;;  %v3623_v54 = vpack.c.bf16 %v3430_v11, %v3414_v13  ;;  %v3624_v1 = vpack.c.bf16 %v3431_v19, %v3415_v50  ;;  %v3625_v10 = vpack.c.bf16 %v3432_v3, %v3416_v14 }
 0x45f   :  { %4410 = vmatpush.bf16.msrb.mxu0 %v3622_v4  ;;  %v16546_v4 = vld [vmem:[#allocation55_spill] sm:$0xff] }
 0x460   :  { %4459 = vmatpush.bf16.msrb.mxu1 %v3623_v54  ;;  %4508 = vmatpush.bf16.msrb.mxu2 %v3624_v1  ;;  %v11885_v31 = vpop.permute.xlu0 %3743 }
 0x461   :  { %4557 = vmatpush.bf16.msrb.mxu3 %v3625_v10  ;;  %16535 = vst [vmem:[#allocation19_spill] sm:$0xff] %v11885_v31 }
 0x462   :  { %v11855_v49 = vpop.permute.xlu2 %3758 }
 0x463   :  { %4411 = vmatpush.bf16.msrb.mxu0 %v11655_v6  ;;  %v16525_v6 = vld [vmem:[#allocation42_spill] sm:$0xff]  ;;  %16528 = vst [vmem:[#allocation56_spill] sm:$0xff] %v11855_v49 }
 0x464   :  { %4460 = vmatpush.bf16.msrb.mxu1 %v11657_v38  ;;  %v11791_v12 = vpop.f32.mrf.mxu0  ;;  %v11793_v24 = vpop.f32.mrf.mxu1  ;;  %4509 = vmatpush.bf16.msrb.mxu2 %v11662_v62 }
 0x465   :  { %4558 = vmatpush.bf16.msrb.mxu3 %v11664_v23  ;;  %v11797_v22 = vpop.f32.mrf.mxu2  ;;  %v11799_v43 = vpop.f32.mrf.mxu3 }
 0x467   :  { %4412 = vmatpush.bf16.msrb.mxu0 %v11666_v44 }
 0x468   :  { %4461 = vmatpush.bf16.msrb.mxu1 %v11673_v15  ;;  %4510 = vmatpush.bf16.msrb.mxu2 %v11693_v45  ;;  %v11903_v3 = vpop.permute.xlu0 %3738 }
 0x469   :  { %4559 = vmatpush.bf16.msrb.mxu3 %v11697_v59  ;;  %4038 = vmatmul.bf16.gmra.mxu0 %v16525_v6  ;;  %16539 = vst [vmem:[#allocation82_spill] sm:$0xff] %v11903_v3 }
 0x46a   :  { %4087 = vmatmul.bf16.gmra.mxu1 %v16525_v6  ;;  %4136 = vmatmul.bf16.gmra.mxu2 %v16525_v6  ;;  %v11873_v5 = vpop.permute.xlu2 %3733 }
 0x46b   :  { %4185 = vmatmul.bf16.gmra.mxu3 %v16525_v6  ;;  %4413 = vmatpush.bf16.msrb.mxu0 %v11703_v17 }
 0x46c   :  { %4462 = vmatpush.bf16.msrb.mxu1 %v11709_v58  ;;  %v11811_v38 = vpop.f32.mrf.mxu0  ;;  %v11813_v62 = vpop.f32.mrf.mxu1  ;;  %4511 = vmatpush.bf16.msrb.mxu2 %v11715_v37  ;;  %v16526_v58 = vld [vmem:[#allocation40_spill] sm:$0xff] }
 0x46d   :  { %4560 = vmatpush.bf16.msrb.mxu3 %v11721_v56  ;;  %v11817_v23 = vpop.f32.mrf.mxu2  ;;  %v11819_v44 = vpop.f32.mrf.mxu3 }
 0x46f   :  { %4414 = vmatpush.bf16.msrb.mxu0 %v11727_v40 }
 0x470   :  { %4463 = vmatpush.bf16.msrb.mxu1 %v11733_v30  ;;  %4512 = vmatpush.bf16.msrb.mxu2 %v11759_v26  ;;  %v11921_v54 = vpop.permute.xlu0 %3713 }
 0x471   :  { %4561 = vmatpush.bf16.msrb.mxu3 %v11765_v34  ;;  %v11875_v34 = vpop.permute.xlu1 %3748  ;;  %16547 = vst [vmem:[#allocation36_spill] sm:$0xff] %v11921_v54 }
 0x472   :  { %16532 = vst [vmem:[#allocation34_spill] sm:$0xff] %v11875_v34  ;;  %v11899_v53 = vpop.permute.xlu2 %3728 }
 0x473   :  { %16537 = vst [vmem:[#allocation94_spill] sm:$0xff] %v11899_v53 }
 0x474   :  { %v11825_v15 = vpop.f32.mrf.mxu0  ;;  %v11827_v45 = vpop.f32.mrf.mxu1 }
 0x475   :  { %v11829_v59 = vpop.f32.mrf.mxu2  ;;  %v11831_v17 = vpop.f32.mrf.mxu3 }
 0x479   :  { %4043 = vmatmul.bf16.gmra.mxu0 %v16526_v58  ;;  %v11901_v19 = vpop.permute.xlu1 %3723 }
 0x47a   :  { %4092 = vmatmul.bf16.gmra.mxu1 %v16526_v58  ;;  %4141 = vmatmul.bf16.gmra.mxu2 %v16526_v58  ;;  %16538 = vst [vmem:[#allocation67_spill] sm:$0xff] %v11901_v19  ;;  %v11913_v50 = vpop.permute.xlu2 %3703 }
 0x47b   :  { %4190 = vmatmul.bf16.gmra.mxu3 %v16526_v58  ;;  %16544 = vst [vmem:[#allocation75_spill] sm:$0xff] %v11913_v50  ;;  %v11979_v7 = vadd.f32 %v11791_v12, %v11913_v50 }
 0x47c   :  { %v11837_v37 = vpop.f32.mrf.mxu0  ;;  %v11839_v56 = vpop.f32.mrf.mxu1 }
 0x47d   :  { %v11841_v40 = vpop.f32.mrf.mxu2  ;;  %v11843_v30 = vpop.f32.mrf.mxu3 }
 0x481   :  { %v11915_v14 = vpop.permute.xlu1 %3718 }
 0x482   :  { %16545 = vst [vmem:[#allocation48_spill] sm:$0xff] %v11915_v14 }
 0x484   :  { %v11847_v16 = vpop.f32.mrf.mxu0  ;;  %v11849_v27 = vpop.f32.mrf.mxu1 }
 0x485   :  { %v11851_v55 = vpop.f32.mrf.mxu2  ;;  %v11853_v32 = vpop.f32.mrf.mxu3 }
 0x489   :  { %4048 = vmatmul.bf16.gmra.mxu0 %v16530_v35 }
 0x48a   :  { %4097 = vmatmul.bf16.gmra.mxu1 %v16530_v35  ;;  %4146 = vmatmul.bf16.gmra.mxu2 %v16530_v35 }
 0x48b   :  { %4195 = vmatmul.bf16.gmra.mxu3 %v16530_v35  ;;  %v11931_v35 = vpop.permute.xlu2 %3698 }
 0x48c   :  { %v11865_v26 = vpop.f32.mrf.mxu0  ;;  %v11867_v8 = vpop.f32.mrf.mxu1  ;;  %16548 = vst [vmem:[#allocation90_spill] sm:$0xff] %v11931_v35  ;;  %v11965_v31 = vadd.f32 %v11783_v20, %v11931_v35  ;;  %v11987_v20 = vadd.f32 %v11797_v22, %v11913_v50  ;;  %v12048_v22 = vadd.f32 %v11831_v17, %v11921_v54  ;;  %v3991_v17 = vadd.f32 %v11853_v32, %v11901_v19 }
 0x48d   :  { %v11869_v52 = vpop.f32.mrf.mxu2  ;;  %v11871_v57 = vpop.f32.mrf.mxu3 }
 0x48e   :  { %16553 = vst [vmem:[#allocation25_spill] sm:$0xff] %v11965_v31 }
 0x494   :  { %v11877_v48 = vpop.f32.mrf.mxu0  ;;  %v11879_v47 = vpop.f32.mrf.mxu1 }
 0x495   :  { %v11881_v0 = vpop.f32.mrf.mxu2  ;;  %v11883_v42 = vpop.f32.mrf.mxu3  ;;  %v12084_v32 = vadd.f32 %v11877_v48, %v11873_v5 }
 0x496   :  { %16533 = vst [vmem:[#allocation18_spill] sm:$0xff] %v11881_v0 }
 0x497   :  { %16534 = vst [vmem:[#allocation66_spill] sm:$0xff] %v11883_v42 }
 0x499   :  { %4053 = vmatmul.bf16.gmra.mxu0 %v16536_v60 }
 0x49a   :  { %4102 = vmatmul.bf16.gmra.mxu1 %v16536_v60  ;;  %4151 = vmatmul.bf16.gmra.mxu2 %v16536_v60 }
 0x49b   :  { %4200 = vmatmul.bf16.gmra.mxu3 %v16536_v60  ;;  %v11933_v60 = vpop.permute.xlu1 %3693 }
 0x49c   :  { %v11891_v63 = vpop.f32.mrf.mxu0  ;;  %v11893_v11 = vpop.f32.mrf.mxu1  ;;  %16549 = vst [vmem:[#allocation91_spill] sm:$0xff] %v11933_v60  ;;  %v11937_v42 = vadd.f32 %v11743_v18, %v11933_v60 }
 0x49d   :  { %v11895_v51 = vpop.f32.mrf.mxu2  ;;  %v11897_v28 = vpop.f32.mrf.mxu3 }
 0x49e   :  { %v12104_v48 = vadd.f32 %v11897_v28, %v11903_v3 }
 0x4a4   :  { %v11905_v39 = vpop.f32.mrf.mxu0  ;;  %v11907_v46 = vpop.f32.mrf.mxu1 }
 0x4a5   :  { %16540 = vst [vmem:[#allocation64_spill] sm:$0xff] %v11905_v39  ;;  %v11909_v41 = vpop.f32.mrf.mxu2  ;;  %v11911_v13 = vpop.f32.mrf.mxu3 }
 0x4a6   :  { %16541 = vst [vmem:[#allocation83_spill] sm:$0xff] %v11907_v46  ;;  %v11953_v46 = vadd.f32 %v11751_v2, %v11933_v60  ;;  %v11973_v2 = vadd.f32 %v11787_v29, %v11931_v35 }
 0x4a7   :  { %16542 = vst [vmem:[#allocation33_spill] sm:$0xff] %v11909_v41  ;;  %v11949_v41 = vadd.f32 %v11749_v21, %v11933_v60  ;;  %v11969_v21 = vadd.f32 %v11785_v33, %v11931_v35  ;;  %v11991_v33 = vadd.f32 %v11799_v43, %v11913_v50 }
 0x4a8   :  { %16543 = vst [vmem:[#allocation53_spill] sm:$0xff] %v11911_v13 }
 0x4a9   :  { %4058 = vmatmul.bf16.gmra.mxu0 %v16546_v4  ;;  %16550 = vst [vmem:[#allocation93_spill] sm:$0xff] %v11949_v41  ;;  %v4702_v41 = vmax.f32 %v3991_v17, 0.0 }
 0x4aa   :  { %4107 = vmatmul.bf16.gmra.mxu1 %v16546_v4  ;;  %4156 = vmatmul.bf16.gmra.mxu2 %v16546_v4  ;;  %16551 = vst [vmem:[#allocation47_spill] sm:$0xff] %v11953_v46 }
 0x4ab   :  { %4205 = vmatmul.bf16.gmra.mxu3 %v16546_v4  ;;  %v11941_v4 = vadd.f32 %v11745_v61, %v11933_v60  ;;  %v11961_v61 = vadd.f32 %v11781_v36, %v11931_v35  ;;  %16554 = vst [vmem:[#allocation69_spill] sm:$0xff] %v11969_v21  ;;  %v11975_v60 = vpop.permute.xlu0 %3708  ;;  %v11983_v36 = vadd.f32 %v11793_v24, %v11913_v50 }
 0x4ac   :  { %v11923_v1 = vpop.f32.mrf.mxu0  ;;  %v11925_v10 = vpop.f32.mrf.mxu1  ;;  %16555 = vst [vmem:[#allocation76_spill] sm:$0xff] %v11973_v2  ;;  %v11997_v12 = vadd.f32 %v11811_v38, %v11975_v60  ;;  %v12001_v24 = vadd.f32 %v11813_v62, %v11975_v60  ;;  %v12007_v43 = vadd.f32 %v11817_v23, %v11975_v60  ;;  %v12011_v29 = vadd.f32 %v11819_v44, %v11975_v60  ;;  %v12016_v38 = vld [vmem:[%s15282_s2 + $0x40] sm:$0xff] }
 0x4ad   :  { %v11927_v6 = vpop.f32.mrf.mxu2  ;;  %v11929_v58 = vpop.f32.mrf.mxu3  ;;  %16556 = vst [vmem:[#allocation35_spill] sm:$0xff] %v11975_v60  ;;  %v12034_v23 = vadd.f32 %v11825_v15, %v11921_v54  ;;  %v12044_v50 = vadd.f32 %v11829_v59, %v11921_v54  ;;  %v3890_v2 = vadd.f32 %v11839_v56, %v11915_v14  ;;  %v3844_v35 = vadd.f32 %v11847_v16, %v11901_v19 }
 0x4ae   :  { %16557 = vst [vmem:[#allocation81_spill] sm:$0xff] %v12016_v38  ;;  %v3893_v60 = vadd.f32 %v11849_v27, %v11901_v19  ;;  %v3942_v59 = vadd.f32 %v11851_v55, %v11901_v19  ;;  %v3944_v16 = vadd.f32 %v11869_v52, %v11899_v53  ;;  %v3993_v27 = vadd.f32 %v11871_v57, %v11899_v53 }
 0x4af   :  { %v4667_v56 = vmax.f32 %v12034_v23, 0.0  ;;  %v4699_v19 = vmax.f32 %v3844_v35, 0.0  ;;  %v12092_v35 = vadd.f32 %v11891_v63, %v11903_v3  ;;  %v12112_v63 = vadd.f32 %v11925_v10, %v11875_v34 }
 0x4b0   :  { %v4700_v21 = vmax.f32 %v3893_v60, 0.0  ;;  %v4701_v52 = vmax.f32 %v3942_v59, 0.0  ;;  %v4718_v55 = vmax.f32 %v3993_v27, 0.0  ;;  %v12100_v60 = vadd.f32 %v11895_v51, %v11903_v3 }
 0x4b1   :  { %v12120_v51 = vadd.f32 %v11929_v58, %v11875_v34 }
 0x4b4   :  { %v11943_v0 = vpop.f32.mrf.mxu0  ;;  %v11945_v13 = vpop.f32.mrf.mxu1 }
 0x4b5   :  { %v11955_v39 = vpop.f32.mrf.mxu2  ;;  %v11957_v18 = vpop.f32.mrf.mxu3 }
 0x4b6   :  { %16552 = vst [vmem:[#allocation27_spill] sm:$0xff] %v11957_v18  ;;  %v12038_v18 = vadd.f32 %v11827_v45, %v11921_v54  ;;  %v3841_v45 = vadd.f32 %v11837_v37, %v11915_v14  ;;  %v3846_v54 = vadd.f32 %v11865_v26, %v11899_v53  ;;  %v3895_v37 = vadd.f32 %v11867_v8, %v11899_v53 }
 0x4b7   :  { %v12076_v26 = vadd.f32 %v11841_v40, %v11915_v14  ;;  %v12080_v8 = vadd.f32 %v11843_v30, %v11915_v14  ;;  %v4717_v53 = vmax.f32 %v3944_v16, 0.0  ;;  %v12088_v40 = vadd.f32 %v11879_v47, %v11873_v5 }
 0x4b8   :  { %v4668_v46 = vmax.f32 %v12038_v18, 0.0  ;;  %v4683_v23 = vmax.f32 %v3841_v45, 0.0  ;;  %v4684_v18 = vmax.f32 %v3890_v2, 0.0  ;;  %v4715_v31 = vmax.f32 %v3846_v54, 0.0 }
 0x4b9   :  { %4219 = vmatmul.bf16.vlgmr.msra.gmra.mxu0 %v12016_v38  ;;  %v4716_v57 = vmax.f32 %v3895_v37, 0.0  ;;  %v12096_v54 = vadd.f32 %v11893_v11, %v11903_v3  ;;  %v12108_v45 = vadd.f32 %v11923_v1, %v11875_v34  ;;  %v12116_v11 = vadd.f32 %v11927_v6, %v11875_v34 }
 0x4ba   :  { %4268 = vmatmul.bf16.vlgmr.msra.gmra.mxu1 %v12016_v38  ;;  %4317 = vmatmul.bf16.vlgmr.msra.gmra.mxu2 %v12016_v38  ;;  %v12136_v37 = vpack.c.bf16 %v4715_v31, %v4699_v19  ;;  %v4686_v31 = vmax.f32 %v12080_v8, 0.0  ;;  %v12159_v16 = vpack.c.bf16 %v4684_v18, %v4668_v46 }
 0x4bb   :  { %4366 = vmatmul.bf16.vlgmr.msra.gmra.mxu3 %v12016_v38  ;;  %v12138_v58 = vpack.c.bf16 %v4716_v57, %v4700_v21 }
 0x4bc   :  { %v3860_v38 = vpop.f32.mrf.mxu0  ;;  %v3909_v44 = vpop.f32.mrf.mxu1 }
 0x4bd   :  { %v3958_v15 = vpop.f32.mrf.mxu2  ;;  %v4007_v62 = vpop.f32.mrf.mxu3  ;;  %v12123_v28 = vadd.f32 %v3860_v38, %v11855_v49  ;;  %v12126_v59 = vadd.f32 %v3909_v44, %v11855_v49  ;;  %v4685_v38 = vmax.f32 %v12076_v26, 0.0  ;;  %v12144_v44 = vld [vmem:[%s15282_s2 + $0x48] sm:$0xff]  ;;  %v16559_v27 = vld [vmem:[#allocation27_spill] sm:$0xff] }
 0x4be   :  { %v12129_v1 = vadd.f32 %v3958_v15, %v11855_v49  ;;  %v12132_v10 = vadd.f32 %v4007_v62, %v11855_v49  ;;  %16558 = vst [vmem:[#allocation39_spill] sm:$0xff] %v12144_v44  ;;  %v12148_v62 = vpack.c.bf16 %v4717_v53, %v4701_v52  ;;  %v12150_v15 = vpack.c.bf16 %v4718_v55, %v4702_v41 }
 0x4bf   :  { %v3859_v53 = vadd.f32 %v11943_v0, %v11857_v25  ;;  %v3908_v41 = vadd.f32 %v11945_v13, %v11857_v25  ;;  %v4006_v55 = vadd.f32 %v16559_v27, %v11857_v25  ;;  %v4811_v26 = vmax.f32 %v12123_v28, 0.0 }
 0x4c0   :  { %v4812_v8 = vmax.f32 %v12126_v59, 0.0  ;;  %v4814_v46 = vmax.f32 %v12132_v10, 0.0  ;;  %v16561_v10 = vmax.f32 %v12044_v50, 0.0  ;;  %v16563_v49 = vmax.f32 %v11979_v7, 0.0 }
 0x4c1   :  { %v16569_v7 = vmax.f32 %v11991_v33, 0.0  ;;  %v16577_v33 = vld [vmem:[#allocation64_spill] sm:$0xff] }
 0x4c4   :  { %v3863_v30 = vpop.f32.mrf.mxu0  ;;  %v3912_v14 = vpop.f32.mrf.mxu1 }
 0x4c5   :  { %v3961_v47 = vpop.f32.mrf.mxu2  ;;  %v4010_v2 = vpop.f32.mrf.mxu3  ;;  %v3864_v17 = vadd.f32 %v3863_v30, %v11845_v9  ;;  %v3913_v6 = vadd.f32 %v3912_v14, %v11845_v9  ;;  %v12152_v14 = vpack.c.bf16 %v4683_v23, %v4667_v56  ;;  %v3957_v56 = vadd.f32 %v11955_v39, %v11857_v25  ;;  %v16560_v30 = vld [vmem:[#allocation22_spill] sm:$0xff] }
 0x4c6   :  { %v3962_v19 = vadd.f32 %v3961_v47, %v11845_v9  ;;  %v4011_v21 = vadd.f32 %v4010_v2, %v11845_v9  ;;  %v4813_v23 = vmax.f32 %v12129_v1, 0.0  ;;  %v12179_v9 = vpack.c.bf16 %v4685_v38, %v16561_v10 }
 0x4c7   :  { %v4827_v0 = vmax.f32 %v3864_v17, 0.0  ;;  %v4828_v57 = vmax.f32 %v3913_v6, 0.0  ;;  %v16562_v17 = vmax.f32 %v12048_v22, 0.0  ;;  %v16567_v22 = vmax.f32 %v11987_v20, 0.0 }
 0x4c8   :  { %v4830_v27 = vmax.f32 %v4011_v21, 0.0  ;;  %v16573_v20 = vmax.f32 %v11941_v4, 0.0 }
 0x4c9   :  { %4224 = vmatmul.bf16.gmra.mxu0 %v12144_v44  ;;  %v12183_v6 = vpack.c.bf16 %v4686_v31, %v16562_v17  ;;  %v16568_v31 = vmax.f32 %v12007_v43, 0.0 }
 0x4ca   :  { %4273 = vmatmul.bf16.gmra.mxu1 %v12144_v44  ;;  %4322 = vmatmul.bf16.gmra.mxu2 %v12144_v44 }
 0x4cb   :  { %4371 = vmatmul.bf16.gmra.mxu3 %v12144_v44  ;;  %v4829_v44 = vmax.f32 %v3962_v19, 0.0  ;;  %v16564_v19 = vmax.f32 %v11997_v12, 0.0  ;;  %v16570_v12 = vmax.f32 %v12011_v29, 0.0  ;;  %v16578_v29 = vld [vmem:[#allocation83_spill] sm:$0xff] }
 0x4cc   :  { %v3865_v18 = vpop.f32.mrf.mxu0  ;;  %v3914_v52 = vpop.f32.mrf.mxu1 }
 0x4cd   :  { %v3866_v13 = vadd.f32 %v3865_v18, %v16560_v30  ;;  %v3915_v47 = vadd.f32 %v3914_v52, %v16560_v30  ;;  %v3963_v39 = vpop.f32.mrf.mxu2  ;;  %v4012_v2 = vpop.f32.mrf.mxu3  ;;  %v12189_v21 = vpack.c.bf16 %v16564_v19, %v16563_v49  ;;  %v12207_v49 = vpack.c.bf16 %v16570_v12, %v16569_v7 }
 0x4ce   :  { %v3964_v28 = vadd.f32 %v3963_v39, %v16560_v30  ;;  %v4013_v59 = vadd.f32 %v4012_v2, %v16560_v30  ;;  %v16565_v39 = vmax.f32 %v11983_v36, 0.0  ;;  %v12201_v2 = vpack.c.bf16 %v16568_v31, %v16567_v22 }
 0x4cf   :  { %v4843_v25 = vmax.f32 %v3866_v13, 0.0  ;;  %v4844_v1 = vmax.f32 %v3915_v47, 0.0  ;;  %v16566_v13 = vmax.f32 %v12001_v24, 0.0  ;;  %v16571_v24 = vmax.f32 %v11937_v42, 0.0  ;;  %v16579_v42 = vld [vmem:[#allocation33_spill] sm:$0xff] }
 0x4d0   :  { %v4845_v18 = vmax.f32 %v3964_v28, 0.0  ;;  %v4846_v52 = vmax.f32 %v4013_v59, 0.0  ;;  %v16572_v59 = vmax.f32 %v11961_v61, 0.0  ;;  %v4798_v19 = vmax.f32 %v4006_v55, 0.0 }
 0x4d1   :  { %v12195_v47 = vpack.c.bf16 %v16566_v13, %v16565_v39  ;;  %v4988_v50 = vpack.c.bf16 %v4843_v25, %v4827_v0  ;;  %v4989_v38 = vpack.c.bf16 %v4844_v1, %v4828_v57  ;;  %v16574_v0 = vld [vmem:[#allocation25_spill] sm:$0xff]  ;;  %v16576_v1 = vld [vmem:[#allocation19_spill] sm:$0xff]  ;;  %v4779_v22 = vmax.f32 %v12108_v45, 0.0 }
 0x4d2   :  { %v4990_v28 = vpack.c.bf16 %v4845_v18, %v4829_v44  ;;  %v4991_v36 = vpack.c.bf16 %v4846_v52, %v4830_v27  ;;  %v12213_v25 = vpack.c.bf16 %v16572_v59, %v16571_v24  ;;  %v16575_v43 = vmax.f32 %v16574_v0, 0.0  ;;  %v16580_v18 = vld [vmem:[#allocation53_spill] sm:$0xff]  ;;  %v16585_v0 = vld [vmem:[#allocation47_spill] sm:$0xff] }
 0x4d3   :  { %v3854_v10 = vadd.f32 %v16577_v33, %v16576_v1  ;;  %v3903_v17 = vadd.f32 %v16578_v29, %v16576_v1  ;;  %v4795_v44 = vmax.f32 %v3859_v53, 0.0  ;;  %v4796_v27 = vmax.f32 %v3908_v41, 0.0  ;;  %5149 = vmatpush.bf16.msra.mxu0 %v4988_v50  ;;  %5198 = vmatpush.bf16.msra.mxu1 %v4989_v38 }
 0x4d4   :  { %v12219_v57 = vpack.c.bf16 %v16575_v43, %v16573_v20  ;;  %v3952_v61 = vadd.f32 %v16579_v42, %v16576_v1  ;;  %v4001_v4 = vadd.f32 %v16580_v18, %v16576_v1  ;;  %v4797_v52 = vmax.f32 %v3957_v56, 0.0  ;;  %v12229_v39 = vpop.f32.mrf.mxu0  ;;  %v12231_v13 = vpop.f32.mrf.mxu1  ;;  %5247 = vmatpush.bf16.msra.mxu2 %v4990_v28  ;;  %5296 = vmatpush.bf16.msra.mxu3 %v4991_v36  ;;  %v16581_v28 = vld [vmem:[#allocation93_spill] sm:$0xff]  ;;  %v12262_v18 = vld [vmem:[%s15282_s2 + $0x50] sm:$0xff] }
 0x4d5   :  { %v4780_v53 = vmax.f32 %v12112_v63, 0.0  ;;  %v12235_v41 = vpop.f32.mrf.mxu2  ;;  %v12237_v50 = vpop.f32.mrf.mxu3  ;;  %v4972_v38 = vpack.c.bf16 %v4811_v26, %v4795_v44  ;;  %v4973_v31 = vpack.c.bf16 %v4812_v8, %v4796_v27  ;;  %v4781_v7 = vmax.f32 %v12116_v11, 0.0  ;;  %v16583_v36 = vld [vmem:[#allocation69_spill] sm:$0xff]  ;;  %v16587_v26 = vld [vmem:[#allocation76_spill] sm:$0xff]  ;;  %v16589_v11 = vld [vmem:[#allocation18_spill] sm:$0xff]  ;;  %16591 = vst [vmem:[#allocation88_spill] sm:$0xff] %v12262_v18 }
 0x4d6   :  { %v4782_v56 = vmax.f32 %v12120_v51, 0.0  ;;  %v4974_v55 = vpack.c.bf16 %v4813_v23, %v4797_v52  ;;  %v4975_v12 = vpack.c.bf16 %v4814_v46, %v4798_v19  ;;  %v4763_v24 = vmax.f32 %v3854_v10, 0.0  ;;  %v16590_v23 = vld [vmem:[#allocation66_spill] sm:$0xff] }
 0x4d7   :  { %v4764_v59 = vmax.f32 %v3903_v17, 0.0  ;;  %5150 = vmatpush.bf16.msra.mxu0 %v4972_v38  ;;  %5199 = vmatpush.bf16.msra.mxu1 %v4973_v31  ;;  %v16582_v45 = vmax.f32 %v16581_v28, 0.0  ;;  %v16584_v63 = vmax.f32 %v16583_v36, 0.0  ;;  %v16586_v43 = vmax.f32 %v16585_v0, 0.0 }
 0x4d8   :  { %v16588_v8 = vmax.f32 %v16587_v26, 0.0  ;;  %v3947_v51 = vadd.f32 %v16589_v11, %v11873_v5  ;;  %v3996_v46 = vadd.f32 %v16590_v23, %v11873_v5  ;;  %v4765_v10 = vmax.f32 %v3952_v61, 0.0  ;;  %5248 = vmatpush.bf16.msra.mxu2 %v4974_v55  ;;  %5297 = vmatpush.bf16.msra.mxu3 %v4975_v12 }
 0x4d9   :  { %v12245_v20 = vpack.c.bf16 %v16584_v63, %v16582_v45  ;;  %v4766_v29 = vmax.f32 %v4001_v4, 0.0  ;;  %v4747_v17 = vmax.f32 %v12092_v35, 0.0  ;;  %v4748_v44 = vmax.f32 %v12096_v54, 0.0  ;;  %4229 = vmatmul.bf16.gmra.mxu0 %v12262_v18 }
 0x4da   :  { %v12251_v33 = vpack.c.bf16 %v16588_v8, %v16586_v43  ;;  %v4956_v27 = vpack.c.bf16 %v4779_v22, %v4763_v24  ;;  %v4957_v42 = vpack.c.bf16 %v4780_v53, %v4764_v59  ;;  %4278 = vmatmul.bf16.gmra.mxu1 %v12262_v18  ;;  %v4749_v61 = vmax.f32 %v12100_v60, 0.0  ;;  %4327 = vmatmul.bf16.gmra.mxu2 %v12262_v18 }
 0x4db   :  { %v4750_v4 = vmax.f32 %v12104_v48, 0.0  ;;  %v4958_v52 = vpack.c.bf16 %v4781_v7, %v4765_v10  ;;  %v4959_v19 = vpack.c.bf16 %v4782_v56, %v4766_v29  ;;  %4376 = vmatmul.bf16.gmra.mxu3 %v12262_v18  ;;  %v4731_v35 = vmax.f32 %v12084_v32, 0.0 }
 0x4dc   :  { %v4732_v54 = vmax.f32 %v12088_v40, 0.0  ;;  %5151 = vmatpush.bf16.msra.mxu0 %v4956_v27  ;;  %5200 = vmatpush.bf16.msra.mxu1 %v4957_v42  ;;  %v4733_v22 = vmax.f32 %v3947_v51, 0.0  ;;  %v4734_v53 = vmax.f32 %v3996_v46, 0.0  ;;  %v12272_v38 = vpop.f32.mrf.mxu0  ;;  %v12274_v31 = vpop.f32.mrf.mxu1  ;;  %v12382_v46 = vld [vmem:[%s15282_s2 + $0x70] sm:$0xff] }
 0x4dd   :  { %5249 = vmatpush.bf16.msra.mxu2 %v4958_v52  ;;  %5298 = vmatpush.bf16.msra.mxu3 %v4959_v19  ;;  %v12276_v60 = vpop.f32.mrf.mxu2  ;;  %v12278_v48 = vpop.f32.mrf.mxu3  ;;  %v4940_v7 = vpack.c.bf16 %v4747_v17, %v4731_v35  ;;  %16597 = vst [vmem:[#allocation31_spill] sm:$0xff] %v12382_v46  ;;  %v12407_v52 = vld [vmem:[%s15282_s2 + $0x78] sm:$0xff] }
 0x4de   :  { %v4941_v56 = vpack.c.bf16 %v4748_v44, %v4732_v54  ;;  %v4942_v55 = vpack.c.bf16 %v4749_v61, %v4733_v22  ;;  %v4943_v32 = vpack.c.bf16 %v4750_v4, %v4734_v53  ;;  %16602 = vst [vmem:[#allocation61_spill] sm:$0xff] %v12407_v52  ;;  %v16603_v53 = vld [vmem:[#allocation91_spill] sm:$0xff] }
 0x4e0   :  { %5152 = vmatpush.bf16.msra.mxu0 %v4940_v7  ;;  %5201 = vmatpush.bf16.msra.mxu1 %v4941_v56  ;;  %v12423_v7 = vadd.f32 %v12229_v39, %v16603_v53  ;;  %v12427_v56 = vadd.f32 %v12231_v13, %v16603_v53 }
 0x4e1   :  { %5250 = vmatpush.bf16.msra.mxu2 %v4942_v55  ;;  %5299 = vmatpush.bf16.msra.mxu3 %v4943_v32 }
 0x4e4   :  { %5153 = vmatpush.bf16.msra.mxu0 %v12136_v37  ;;  %5202 = vmatpush.bf16.msra.mxu1 %v12138_v58  ;;  %v12282_v40 = vpop.f32.mrf.mxu0  ;;  %v12284_v12 = vpop.f32.mrf.mxu1  ;;  %v12299_v37 = vld [vmem:[%s15282_s2 + $0x58] sm:$0xff] }
 0x4e5   :  { %5251 = vmatpush.bf16.msra.mxu2 %v12148_v62  ;;  %5300 = vmatpush.bf16.msra.mxu3 %v12150_v15  ;;  %v12288_v24 = vpop.f32.mrf.mxu2  ;;  %v12290_v59 = vpop.f32.mrf.mxu3  ;;  %16592 = vst [vmem:[#allocation20_spill] sm:$0xff] %v12299_v37 }
 0x4e8   :  { %5154 = vmatpush.bf16.msra.mxu0 %v12152_v14  ;;  %5203 = vmatpush.bf16.msra.mxu1 %v12159_v16 }
 0x4e9   :  { %5252 = vmatpush.bf16.msra.mxu2 %v12179_v9  ;;  %5301 = vmatpush.bf16.msra.mxu3 %v12183_v6 }
 0x4ea   :  { %4234 = vmatmul.bf16.gmra.mxu0 %v12299_v37  ;;  %4283 = vmatmul.bf16.gmra.mxu1 %v12299_v37 }
 0x4eb   :  { %4332 = vmatmul.bf16.gmra.mxu2 %v12299_v37  ;;  %4381 = vmatmul.bf16.gmra.mxu3 %v12299_v37 }
 0x4ec   :  { %5155 = vmatpush.bf16.msra.mxu0 %v12189_v21  ;;  %5204 = vmatpush.bf16.msra.mxu1 %v12195_v47  ;;  %v12307_v9 = vpop.f32.mrf.mxu0  ;;  %v12309_v58 = vpop.f32.mrf.mxu1  ;;  %v12332_v47 = vld [vmem:[%s15282_s2 + $0x60] sm:$0xff] }
 0x4ed   :  { %5253 = vmatpush.bf16.msra.mxu2 %v12201_v2  ;;  %5302 = vmatpush.bf16.msra.mxu3 %v12207_v49  ;;  %v12313_v62 = vpop.f32.mrf.mxu2  ;;  %v12315_v15 = vpop.f32.mrf.mxu3  ;;  %16593 = vst [vmem:[#allocation57_spill] sm:$0xff] %v12332_v47 }
 0x4f0   :  { %5156 = vmatpush.bf16.msra.mxu0 %v12213_v25  ;;  %5205 = vmatpush.bf16.msra.mxu1 %v12219_v57 }
 0x4f1   :  { %5254 = vmatpush.bf16.msra.mxu2 %v12245_v20  ;;  %5303 = vmatpush.bf16.msra.mxu3 %v12251_v33  ;;  %v12357_v20 = vld [vmem:[%s15282_s2 + $0x68] sm:$0xff] }
 0x4f2   :  { %16594 = vst [vmem:[#allocation84_spill] sm:$0xff] %v12357_v20 }
 0x4f4   :  { %v12321_v14 = vpop.f32.mrf.mxu0  ;;  %v12323_v16 = vpop.f32.mrf.mxu1 }
 0x4f5   :  { %v12325_v6 = vpop.f32.mrf.mxu2  ;;  %v12327_v21 = vpop.f32.mrf.mxu3 }
 0x4fa   :  { %4239 = vmatmul.bf16.gmra.mxu0 %v12332_v47  ;;  %4288 = vmatmul.bf16.gmra.mxu1 %v12332_v47 }
 0x4fb   :  { %4337 = vmatmul.bf16.gmra.mxu2 %v12332_v47  ;;  %4386 = vmatmul.bf16.gmra.mxu3 %v12332_v47  ;;  %v16606_v47 = vld [vmem:[#allocation90_spill] sm:$0xff] }
 0x4fc   :  { %v12338_v2 = vpop.f32.mrf.mxu0  ;;  %v12340_v49 = vpop.f32.mrf.mxu1  ;;  %v12447_v13 = vadd.f32 %v12272_v38, %v16606_v47  ;;  %v12451_v37 = vadd.f32 %v12274_v31, %v16606_v47 }
 0x4fd   :  { %v12342_v25 = vpop.f32.mrf.mxu2  ;;  %v12344_v57 = vpop.f32.mrf.mxu3 }
 0x504   :  { %v12346_v28 = vpop.f32.mrf.mxu0  ;;  %v12348_v45 = vpop.f32.mrf.mxu1 }
 0x505   :  { %v12350_v36 = vpop.f32.mrf.mxu2  ;;  %v12352_v63 = vpop.f32.mrf.mxu3 }
 0x50a   :  { %4244 = vmatmul.bf16.gmra.mxu0 %v12357_v20  ;;  %4293 = vmatmul.bf16.gmra.mxu1 %v12357_v20 }
 0x50b   :  { %4342 = vmatmul.bf16.gmra.mxu2 %v12357_v20  ;;  %4391 = vmatmul.bf16.gmra.mxu3 %v12357_v20 }
 0x50c   :  { %v12363_v0 = vpop.f32.mrf.mxu0  ;;  %v12365_v43 = vpop.f32.mrf.mxu1 }
 0x50d   :  { %v12367_v26 = vpop.f32.mrf.mxu2  ;;  %v12369_v8 = vpop.f32.mrf.mxu3 }
 0x514   :  { %v12371_v33 = vpop.f32.mrf.mxu0  ;;  %v12373_v11 = vpop.f32.mrf.mxu1 }
 0x515   :  { %v12375_v51 = vpop.f32.mrf.mxu2  ;;  %v12377_v23 = vpop.f32.mrf.mxu3 }
 0x516   :  { %16595 = vst [vmem:[#allocation32_spill] sm:$0xff] %v12375_v51 }
 0x517   :  { %16596 = vst [vmem:[#allocation65_spill] sm:$0xff] %v12377_v23 }
 0x51a   :  { %4249 = vmatmul.bf16.gmra.mxu0 %v12382_v46  ;;  %4298 = vmatmul.bf16.gmra.mxu1 %v12382_v46 }
 0x51b   :  { %4347 = vmatmul.bf16.gmra.mxu2 %v12382_v46  ;;  %4396 = vmatmul.bf16.gmra.mxu3 %v12382_v46  ;;  %v12439_v46 = vadd.f32 %v12237_v50, %v16603_v53  ;;  %v12459_v50 = vadd.f32 %v12278_v48, %v16606_v47  ;;  %v16611_v48 = vld [vmem:[#allocation81_spill] sm:$0xff] }
 0x51c   :  { %v12388_v10 = vpop.f32.mrf.mxu0  ;;  %v12390_v29 = vpop.f32.mrf.mxu1 }
 0x51d   :  { %v12392_v17 = vpop.f32.mrf.mxu2  ;;  %v12394_v44 = vpop.f32.mrf.mxu3  ;;  %16605 = vst [vmem:[#allocation12_spill] sm:$0xff] %v12439_v46  ;;  %v16612_v46 = vld [vmem:[#allocation36_spill] sm:$0xff] }
 0x51e   :  { %16608 = vst [vmem:[#allocation5_spill] sm:$0xff] %v12459_v50  ;;  %v12513_v51 = vadd.f32 %v12321_v14, %v16612_v46  ;;  %v16613_v50 = vld [vmem:[#allocation48_spill] sm:$0xff] }
 0x524   :  { %v12396_v27 = vpop.f32.mrf.mxu0  ;;  %v12398_v42 = vpop.f32.mrf.mxu1 }
 0x525   :  { %16598 = vst [vmem:[#allocation9_spill] sm:$0xff] %v12396_v27  ;;  %v12400_v61 = vpop.f32.mrf.mxu2  ;;  %v12402_v4 = vpop.f32.mrf.mxu3 }
 0x526   :  { %16599 = vst [vmem:[#allocation6_spill] sm:$0xff] %v12398_v42 }
 0x527   :  { %16600 = vst [vmem:[#allocation77_spill] sm:$0xff] %v12400_v61 }
 0x528   :  { %16601 = vst [vmem:[#allocation63_spill] sm:$0xff] %v12402_v4 }
 0x52a   :  { %4254 = vmatmul.bf16.gmra.mxu0 %v12407_v52  ;;  %4303 = vmatmul.bf16.gmra.mxu1 %v12407_v52 }
 0x52b   :  { %4352 = vmatmul.bf16.gmra.mxu2 %v12407_v52  ;;  %4401 = vmatmul.bf16.gmra.mxu3 %v12407_v52  ;;  %v12435_v52 = vadd.f32 %v12235_v41, %v16603_v53  ;;  %v12455_v41 = vadd.f32 %v12276_v60, %v16606_v47  ;;  %v16609_v53 = vld [vmem:[#allocation75_spill] sm:$0xff] }
 0x52c   :  { %v12413_v19 = vpop.f32.mrf.mxu0  ;;  %v12415_v35 = vpop.f32.mrf.mxu1  ;;  %v12463_v18 = vadd.f32 %v12282_v40, %v16609_v53  ;;  %v12467_v38 = vadd.f32 %v12284_v12, %v16609_v53  ;;  %v12471_v31 = vadd.f32 %v12288_v24, %v16609_v53  ;;  %v12475_v60 = vadd.f32 %v12290_v59, %v16609_v53  ;;  %v16610_v47 = vld [vmem:[#allocation35_spill] sm:$0xff] }
 0x52d   :  { %v12417_v54 = vpop.f32.mrf.mxu2  ;;  %v12419_v22 = vpop.f32.mrf.mxu3  ;;  %16604 = vst [vmem:[#allocation70_spill] sm:$0xff] %v12435_v52  ;;  %v12481_v40 = vadd.f32 %v12307_v9, %v16610_v47  ;;  %v12485_v12 = vadd.f32 %v12309_v58, %v16610_v47  ;;  %v12491_v59 = vadd.f32 %v12313_v62, %v16610_v47  ;;  %v12495_v23 = vadd.f32 %v12315_v15, %v16610_v47  ;;  %v16614_v52 = vld [vmem:[#allocation67_spill] sm:$0xff] }
 0x52e   :  { %16607 = vst [vmem:[#allocation38_spill] sm:$0xff] %v12455_v41  ;;  %v12517_v24 = vadd.f32 %v12323_v16, %v16612_v46  ;;  %v12523_v53 = vadd.f32 %v12325_v6, %v16612_v46  ;;  %v12527_v58 = vadd.f32 %v12327_v21, %v16612_v46  ;;  %v4037_v16 = vadd.f32 %v12338_v2, %v16613_v50  ;;  %v16615_v46 = vld [vmem:[#allocation94_spill] sm:$0xff] }
 0x52f   :  { %v4086_v41 = vadd.f32 %v12340_v49, %v16613_v50  ;;  %v4040_v15 = vadd.f32 %v12346_v28, %v16614_v52  ;;  %v4089_v47 = vadd.f32 %v12348_v45, %v16614_v52  ;;  %v4138_v6 = vadd.f32 %v12350_v36, %v16614_v52 }
 0x530   :  { %v4187_v21 = vadd.f32 %v12352_v63, %v16614_v52  ;;  %v4042_v4 = vadd.f32 %v12363_v0, %v16615_v46  ;;  %v4091_v2 = vadd.f32 %v12365_v43, %v16615_v46  ;;  %v4671_v49 = vmax.f32 %v12513_v51, 0.0 }
 0x531   :  { %v4672_v61 = vmax.f32 %v12517_v24, 0.0  ;;  %v4140_v28 = vadd.f32 %v12367_v26, %v16615_v46  ;;  %v4189_v45 = vadd.f32 %v12369_v8, %v16615_v46  ;;  %v12555_v0 = vadd.f32 %v12342_v25, %v16613_v50 }
 0x532   :  { %v12559_v43 = vadd.f32 %v12344_v57, %v16613_v50  ;;  %v4687_v51 = vmax.f32 %v4037_v16, 0.0  ;;  %v4688_v24 = vmax.f32 %v4086_v41, 0.0  ;;  %v4703_v52 = vmax.f32 %v4040_v15, 0.0 }
 0x533   :  { %v4704_v42 = vmax.f32 %v4089_v47, 0.0  ;;  %v4705_v26 = vmax.f32 %v4138_v6, 0.0  ;;  %v4706_v27 = vmax.f32 %v4187_v21, 0.0  ;;  %v4719_v1 = vmax.f32 %v4042_v4, 0.0 }
 0x534   :  { %v12429_v55 = vpop.f32.mrf.mxu0  ;;  %v12431_v32 = vpop.f32.mrf.mxu1  ;;  %v4720_v8 = vmax.f32 %v4091_v2, 0.0  ;;  %v4721_v46 = vmax.f32 %v4140_v28, 0.0  ;;  %v4722_v36 = vmax.f32 %v4189_v45, 0.0  ;;  %v12563_v63 = vadd.f32 %v12371_v33, %v11873_v5  ;;  %v16617_v2 = vld [vmem:[#allocation37_spill] sm:$0xff] }
 0x535   :  { %v12441_v20 = vpop.f32.mrf.mxu2  ;;  %v12443_v39 = vpop.f32.mrf.mxu3  ;;  %v12567_v25 = vadd.f32 %v12373_v11, %v11873_v5  ;;  %v12571_v41 = vadd.f32 %v12388_v10, %v11903_v3  ;;  %v12575_v47 = vadd.f32 %v12390_v29, %v11903_v3  ;;  %v12579_v4 = vadd.f32 %v12392_v17, %v11903_v3 }
 0x536   :  { %v12583_v33 = vadd.f32 %v12394_v44, %v11903_v3  ;;  %v12587_v16 = vadd.f32 %v12413_v19, %v11875_v34  ;;  %v12591_v10 = vadd.f32 %v12415_v35, %v11875_v34  ;;  %v12595_v29 = vadd.f32 %v12417_v54, %v11875_v34  ;;  %v16616_v44 = vld [vmem:[#allocation56_spill] sm:$0xff] }
 0x537   :  { %v12599_v17 = vadd.f32 %v12419_v22, %v11875_v34  ;;  %v12615_v45 = vpack.c.bf16 %v4719_v1, %v4703_v52  ;;  %v12617_v22 = vpack.c.bf16 %v4720_v8, %v4704_v42  ;;  %v16618_v34 = vld [vmem:[#allocation39_spill] sm:$0xff]  ;;  %v12633_v42 = vpack.c.bf16 %v4688_v24, %v4672_v61  ;;  %v16619_v52 = vld [vmem:[#allocation58_spill] sm:$0xff] }
 0x53a   :  { %4415 = vmatmul.bf16.vlgmr.msrb.gmra.mxu0 %v16611_v48  ;;  %4464 = vmatmul.bf16.vlgmr.msrb.gmra.mxu1 %v16611_v48 }
 0x53b   :  { %4513 = vmatmul.bf16.vlgmr.msrb.gmra.mxu2 %v16611_v48  ;;  %4562 = vmatmul.bf16.vlgmr.msrb.gmra.mxu3 %v16611_v48 }
 0x53c   :  { %v4056_v48 = vpop.f32.mrf.mxu0  ;;  %v4105_v62 = vpop.f32.mrf.mxu1 }
 0x53d   :  { %v4154_v14 = vpop.f32.mrf.mxu2  ;;  %v4203_v9 = vpop.f32.mrf.mxu3  ;;  %v12602_v6 = vadd.f32 %v4056_v48, %v16616_v44  ;;  %v12605_v21 = vadd.f32 %v4105_v62, %v16616_v44  ;;  %v4689_v48 = vmax.f32 %v12555_v0, 0.0  ;;  %v12622_v62 = vpack.c.bf16 %v4721_v46, %v4705_v26 }
 0x53e   :  { %v12608_v19 = vadd.f32 %v4154_v14, %v16616_v44  ;;  %v12611_v35 = vadd.f32 %v4203_v9, %v16616_v44  ;;  %v12624_v14 = vpack.c.bf16 %v4722_v36, %v4706_v27  ;;  %v12626_v9 = vpack.c.bf16 %v4687_v51, %v4671_v49 }
 0x53f   :  { %v4055_v46 = vadd.f32 %v12429_v55, %v16619_v52  ;;  %v4104_v27 = vadd.f32 %v12431_v32, %v16619_v52  ;;  %v4153_v49 = vadd.f32 %v12441_v20, %v16619_v52  ;;  %v4202_v36 = vadd.f32 %v12443_v39, %v16619_v52 }
 0x540   :  { %v4815_v0 = vmax.f32 %v12602_v6, 0.0  ;;  %v4818_v61 = vmax.f32 %v12611_v35, 0.0  ;;  %v16620_v35 = vmax.f32 %v12523_v53, 0.0  ;;  %v16622_v44 = vmax.f32 %v12463_v18, 0.0 }
 0x541   :  { %v16628_v18 = vmax.f32 %v12475_v60, 0.0  ;;  %v16635_v60 = vld [vmem:[#allocation9_spill] sm:$0xff] }
 0x544   :  { %v4059_v57 = vpop.f32.mrf.mxu0  ;;  %v4108_v50 = vpop.f32.mrf.mxu1 }
 0x545   :  { %v4157_v11 = vpop.f32.mrf.mxu2  ;;  %v4206_v15 = vpop.f32.mrf.mxu3  ;;  %v4060_v28 = vadd.f32 %v4059_v57, %v16617_v2  ;;  %v4109_v54 = vadd.f32 %v4108_v50, %v16617_v2  ;;  %v4690_v57 = vmax.f32 %v12559_v43, 0.0  ;;  %v4816_v43 = vmax.f32 %v12605_v21, 0.0 }
 0x546   :  { %v4158_v50 = vadd.f32 %v4157_v11, %v16617_v2  ;;  %v4207_v1 = vadd.f32 %v4206_v15, %v16617_v2  ;;  %v12653_v2 = vpack.c.bf16 %v4689_v48, %v16620_v35 }
 0x547   :  { %v4831_v55 = vmax.f32 %v4060_v28, 0.0  ;;  %v4832_v26 = vmax.f32 %v4109_v54, 0.0  ;;  %v16621_v28 = vmax.f32 %v12527_v58, 0.0  ;;  %v16626_v58 = vmax.f32 %v12471_v31, 0.0 }
 0x548   :  { %v4833_v15 = vmax.f32 %v4158_v50, 0.0  ;;  %v4834_v39 = vmax.f32 %v4207_v1, 0.0  ;;  %v16623_v50 = vmax.f32 %v12481_v40, 0.0  ;;  %v16629_v40 = vmax.f32 %v12495_v23, 0.0  ;;  %v16636_v23 = vld [vmem:[#allocation6_spill] sm:$0xff] }
 0x549   :  { %v12657_v54 = vpack.c.bf16 %v4690_v57, %v16621_v28  ;;  %v16627_v57 = vmax.f32 %v12491_v59, 0.0  ;;  %v16632_v31 = vmax.f32 %v12427_v56, 0.0  ;;  %v16633_v59 = vmax.f32 %v12451_v37, 0.0  ;;  %v16638_v28 = vld [vmem:[#allocation63_spill] sm:$0xff] }
 0x54a   :  { %4420 = vmatmul.bf16.gmra.mxu0 %v16618_v34  ;;  %4469 = vmatmul.bf16.gmra.mxu1 %v16618_v34  ;;  %v12663_v1 = vpack.c.bf16 %v16623_v50, %v16622_v44  ;;  %v12681_v44 = vpack.c.bf16 %v16629_v40, %v16628_v18  ;;  %v4802_v37 = vmax.f32 %v4202_v36, 0.0 }
 0x54b   :  { %4518 = vmatmul.bf16.gmra.mxu2 %v16618_v34  ;;  %4567 = vmatmul.bf16.gmra.mxu3 %v16618_v34  ;;  %v4817_v34 = vmax.f32 %v12608_v19, 0.0 }
 0x54c   :  { %v4061_v51 = vpop.f32.mrf.mxu0  ;;  %v4110_v24 = vpop.f32.mrf.mxu1 }
 0x54d   :  { %v4062_v32 = vadd.f32 %v4061_v51, %v16560_v30  ;;  %v4111_v8 = vadd.f32 %v4110_v24, %v16560_v30  ;;  %v4159_v20 = vpop.f32.mrf.mxu2  ;;  %v4208_v11 = vpop.f32.mrf.mxu3 }
 0x54e   :  { %v4160_v6 = vadd.f32 %v4159_v20, %v16560_v30  ;;  %v4209_v21 = vadd.f32 %v4208_v11, %v16560_v30  ;;  %v16624_v20 = vmax.f32 %v12467_v38, 0.0  ;;  %v12675_v11 = vpack.c.bf16 %v16627_v57, %v16626_v58 }
 0x54f   :  { %v4847_v52 = vmax.f32 %v4062_v32, 0.0  ;;  %v4848_v19 = vmax.f32 %v4111_v8, 0.0  ;;  %v16625_v32 = vmax.f32 %v12485_v12, 0.0  ;;  %v16630_v12 = vmax.f32 %v12423_v7, 0.0  ;;  %v16637_v7 = vld [vmem:[#allocation77_spill] sm:$0xff] }
 0x550   :  { %v4849_v51 = vmax.f32 %v4160_v6, 0.0  ;;  %v4850_v24 = vmax.f32 %v4209_v21, 0.0  ;;  %v16631_v21 = vmax.f32 %v12447_v13, 0.0  ;;  %v4785_v58 = vmax.f32 %v12595_v29, 0.0  ;;  %v16647_v29 = vld [vmem:[#allocation32_spill] sm:$0xff] }
 0x551   :  { %v12669_v8 = vpack.c.bf16 %v16625_v32, %v16624_v20  ;;  %v4992_v53 = vpack.c.bf16 %v4847_v52, %v4831_v55  ;;  %v4993_v48 = vpack.c.bf16 %v4848_v19, %v4832_v26  ;;  %v12693_v55 = vpack.c.bf16 %v16633_v59, %v16632_v31  ;;  %v16634_v26 = vld [vmem:[#allocation19_spill] sm:$0xff] }
 0x552   :  { %v4994_v6 = vpack.c.bf16 %v4849_v51, %v4833_v15  ;;  %v4995_v38 = vpack.c.bf16 %v4850_v24, %v4834_v39  ;;  %v12687_v52 = vpack.c.bf16 %v16631_v21, %v16630_v12  ;;  %v4050_v19 = vadd.f32 %v16635_v60, %v16634_v26  ;;  %v16643_v21 = vld [vmem:[#allocation12_spill] sm:$0xff] }
 0x553   :  { %v4099_v35 = vadd.f32 %v16636_v23, %v16634_v26  ;;  %v4799_v15 = vmax.f32 %v4055_v46, 0.0  ;;  %v4800_v39 = vmax.f32 %v4104_v27, 0.0  ;;  %5345 = vmatpush.bf16.msrb.mxu0 %v4992_v53  ;;  %5394 = vmatpush.bf16.msrb.mxu1 %v4993_v48  ;;  %v4148_v13 = vadd.f32 %v16637_v7, %v16634_v26  ;;  %v16649_v7 = vld [vmem:[#allocation88_spill] sm:$0xff] }
 0x554   :  { %v4197_v56 = vadd.f32 %v16638_v28, %v16634_v26  ;;  %v4801_v51 = vmax.f32 %v4153_v49, 0.0  ;;  %v12703_v24 = vpop.f32.mrf.mxu0  ;;  %v12705_v50 = vpop.f32.mrf.mxu1  ;;  %5443 = vmatpush.bf16.msrb.mxu2 %v4994_v6  ;;  %5492 = vmatpush.bf16.msrb.mxu3 %v4995_v38  ;;  %v4783_v20 = vmax.f32 %v12587_v16, 0.0  ;;  %v4784_v46 = vmax.f32 %v12591_v10, 0.0  ;;  %v16639_v6 = vld [vmem:[#allocation70_spill] sm:$0xff] }
 0x555   :  { %v12709_v27 = vpop.f32.mrf.mxu2  ;;  %v12711_v32 = vpop.f32.mrf.mxu3  ;;  %v4976_v53 = vpack.c.bf16 %v4815_v0, %v4799_v15  ;;  %v4977_v48 = vpack.c.bf16 %v4816_v43, %v4800_v39  ;;  %v4786_v49 = vmax.f32 %v12599_v17, 0.0  ;;  %v4979_v57 = vpack.c.bf16 %v4818_v61, %v4802_v37  ;;  %v16641_v38 = vld [vmem:[#allocation38_spill] sm:$0xff]  ;;  %v16645_v0 = vld [vmem:[#allocation5_spill] sm:$0xff] }
 0x556   :  { %v4978_v36 = vpack.c.bf16 %v4817_v34, %v4801_v51  ;;  %v4767_v18 = vmax.f32 %v4050_v19, 0.0  ;;  %v4768_v40 = vmax.f32 %v4099_v35, 0.0  ;;  %v16640_v16 = vmax.f32 %v16639_v6, 0.0  ;;  %v16648_v34 = vld [vmem:[#allocation65_spill] sm:$0xff] }
 0x557   :  { %5346 = vmatpush.bf16.msrb.mxu0 %v4976_v53  ;;  %5395 = vmatpush.bf16.msrb.mxu1 %v4977_v48  ;;  %v16642_v10 = vmax.f32 %v16641_v38, 0.0  ;;  %v16644_v31 = vmax.f32 %v16643_v21, 0.0  ;;  %v16646_v43 = vmax.f32 %v16645_v0, 0.0  ;;  %v4143_v17 = vadd.f32 %v16647_v29, %v11873_v5 }
 0x558   :  { %v4192_v61 = vadd.f32 %v16648_v34, %v11873_v5  ;;  %v4769_v60 = vmax.f32 %v4148_v13, 0.0  ;;  %v4770_v19 = vmax.f32 %v4197_v56, 0.0  ;;  %5444 = vmatpush.bf16.msrb.mxu2 %v4978_v36  ;;  %5493 = vmatpush.bf16.msrb.mxu3 %v4979_v57  ;;  %v4751_v23 = vmax.f32 %v12571_v41, 0.0  ;;  %v16655_v34 = vld [vmem:[#allocation31_spill] sm:$0xff] }
 0x559   :  { %v12719_v12 = vpack.c.bf16 %v16642_v10, %v16640_v16  ;;  %v12725_v59 = vpack.c.bf16 %v16646_v43, %v16644_v31  ;;  %v4752_v35 = vmax.f32 %v12575_v47, 0.0  ;;  %v4960_v15 = vpack.c.bf16 %v4783_v20, %v4767_v18  ;;  %v16652_v10 = vld [vmem:[#allocation84_spill] sm:$0xff] }
 0x55a   :  { %v4961_v39 = vpack.c.bf16 %v4784_v46, %v4768_v40  ;;  %4425 = vmatmul.bf16.gmra.mxu0 %v16649_v7  ;;  %4474 = vmatmul.bf16.gmra.mxu1 %v16649_v7  ;;  %v4753_v28 = vmax.f32 %v12579_v4, 0.0  ;;  %v4754_v51 = vmax.f32 %v12583_v33, 0.0  ;;  %v4962_v37 = vpack.c.bf16 %v4785_v58, %v4769_v60 }
 0x55b   :  { %v4963_v53 = vpack.c.bf16 %v4786_v49, %v4770_v19  ;;  %4523 = vmatmul.bf16.gmra.mxu2 %v16649_v7  ;;  %4572 = vmatmul.bf16.gmra.mxu3 %v16649_v7  ;;  %v4735_v41 = vmax.f32 %v12563_v63, 0.0  ;;  %v4736_v47 = vmax.f32 %v12567_v25, 0.0  ;;  %v4737_v13 = vmax.f32 %v4143_v17, 0.0 }
 0x55c   :  { %5347 = vmatpush.bf16.msrb.mxu0 %v4960_v15  ;;  %5396 = vmatpush.bf16.msrb.mxu1 %v4961_v39  ;;  %v4738_v56 = vmax.f32 %v4192_v61, 0.0  ;;  %v12741_v20 = vpop.f32.mrf.mxu0  ;;  %v12743_v46 = vpop.f32.mrf.mxu1 }
 0x55d   :  { %5445 = vmatpush.bf16.msrb.mxu2 %v4962_v37  ;;  %5494 = vmatpush.bf16.msrb.mxu3 %v4963_v53  ;;  %v12745_v4 = vpop.f32.mrf.mxu2  ;;  %v12747_v33 = vpop.f32.mrf.mxu3  ;;  %v4944_v48 = vpack.c.bf16 %v4751_v23, %v4735_v41  ;;  %v4945_v58 = vpack.c.bf16 %v4752_v35, %v4736_v47  ;;  %v4946_v49 = vpack.c.bf16 %v4753_v28, %v4737_v13  ;;  %v16660_v28 = vld [vmem:[#allocation61_spill] sm:$0xff]  ;;  %v16661_v47 = vld [vmem:[#allocation91_spill] sm:$0xff] }
 0x55e   :  { %v4947_v63 = vpack.c.bf16 %v4754_v51, %v4738_v56  ;;  %v12867_v13 = vadd.f32 %v12703_v24, %v16661_v47  ;;  %v12871_v56 = vadd.f32 %v12705_v50, %v16661_v47 }
 0x560   :  { %5348 = vmatpush.bf16.msrb.mxu0 %v4944_v48  ;;  %5397 = vmatpush.bf16.msrb.mxu1 %v4945_v58 }
 0x561   :  { %5446 = vmatpush.bf16.msrb.mxu2 %v4946_v49  ;;  %5495 = vmatpush.bf16.msrb.mxu3 %v4947_v63  ;;  %v12879_v49 = vadd.f32 %v12709_v27, %v16661_v47  ;;  %v12883_v63 = vadd.f32 %v12711_v32, %v16661_v47  ;;  %v16669_v47 = vld [vmem:[#allocation35_spill] sm:$0xff] }
 0x563   :  { %16662 = vst [vmem:[#allocation78_spill] sm:$0xff] %v12879_v49 }
 0x564   :  { %5349 = vmatpush.bf16.msrb.mxu0 %v12615_v45  ;;  %5398 = vmatpush.bf16.msrb.mxu1 %v12617_v22  ;;  %v12751_v25 = vpop.f32.mrf.mxu0  ;;  %v12753_v36 = vpop.f32.mrf.mxu1  ;;  %v16650_v45 = vld [vmem:[#allocation20_spill] sm:$0xff]  ;;  %16663 = vst [vmem:[#allocation79_spill] sm:$0xff] %v12883_v63 }
 0x565   :  { %5447 = vmatpush.bf16.msrb.mxu2 %v12622_v62  ;;  %5496 = vmatpush.bf16.msrb.mxu3 %v12624_v14  ;;  %v12757_v57 = vpop.f32.mrf.mxu2  ;;  %v12759_v18 = vpop.f32.mrf.mxu3 }
 0x568   :  { %5350 = vmatpush.bf16.msrb.mxu0 %v12626_v9  ;;  %5399 = vmatpush.bf16.msrb.mxu1 %v12633_v42 }
 0x569   :  { %5448 = vmatpush.bf16.msrb.mxu2 %v12653_v2  ;;  %5497 = vmatpush.bf16.msrb.mxu3 %v12657_v54 }
 0x56a   :  { %4430 = vmatmul.bf16.gmra.mxu0 %v16650_v45  ;;  %4479 = vmatmul.bf16.gmra.mxu1 %v16650_v45 }
 0x56b   :  { %4528 = vmatmul.bf16.gmra.mxu2 %v16650_v45  ;;  %4577 = vmatmul.bf16.gmra.mxu3 %v16650_v45 }
 0x56c   :  { %5351 = vmatpush.bf16.msrb.mxu0 %v12663_v1  ;;  %5400 = vmatpush.bf16.msrb.mxu1 %v12669_v8  ;;  %v12771_v22 = vpop.f32.mrf.mxu0  ;;  %v12773_v62 = vpop.f32.mrf.mxu1  ;;  %v16651_v8 = vld [vmem:[#allocation57_spill] sm:$0xff] }
 0x56d   :  { %5449 = vmatpush.bf16.msrb.mxu2 %v12675_v11  ;;  %5498 = vmatpush.bf16.msrb.mxu3 %v12681_v44  ;;  %v12777_v2 = vpop.f32.mrf.mxu2  ;;  %v12779_v14 = vpop.f32.mrf.mxu3 }
 0x570   :  { %5352 = vmatpush.bf16.msrb.mxu0 %v12687_v52  ;;  %5401 = vmatpush.bf16.msrb.mxu1 %v12693_v55 }
 0x571   :  { %5450 = vmatpush.bf16.msrb.mxu2 %v12719_v12  ;;  %5499 = vmatpush.bf16.msrb.mxu3 %v12725_v59 }
 0x574   :  { %v12785_v9 = vpop.f32.mrf.mxu0  ;;  %v12787_v42 = vpop.f32.mrf.mxu1 }
 0x575   :  { %v12789_v54 = vpop.f32.mrf.mxu2  ;;  %v12791_v1 = vpop.f32.mrf.mxu3 }
 0x57a   :  { %4435 = vmatmul.bf16.gmra.mxu0 %v16651_v8  ;;  %4484 = vmatmul.bf16.gmra.mxu1 %v16651_v8 }
 0x57b   :  { %4533 = vmatmul.bf16.gmra.mxu2 %v16651_v8  ;;  %4582 = vmatmul.bf16.gmra.mxu3 %v16651_v8  ;;  %v16664_v8 = vld [vmem:[#allocation90_spill] sm:$0xff] }
 0x57c   :  { %v12797_v11 = vpop.f32.mrf.mxu0  ;;  %v12799_v44 = vpop.f32.mrf.mxu1  ;;  %v12891_v50 = vadd.f32 %v12741_v20, %v16664_v8  ;;  %v12899_v27 = vadd.f32 %v12745_v4, %v16664_v8  ;;  %v12903_v32 = vadd.f32 %v12747_v33, %v16664_v8  ;;  %v12924_v33 = vld [vmem:[%s15282_s2 + $0x80] sm:$0xff] }
 0x57d   :  { %v12801_v52 = vpop.f32.mrf.mxu2  ;;  %v12803_v55 = vpop.f32.mrf.mxu3  ;;  %16668 = vst [vmem:[#allocation29_spill] sm:$0xff] %v12924_v33 }
 0x57e   :  { %16665 = vst [vmem:[#allocation26_spill] sm:$0xff] %v12899_v27  ;;  %v16672_v27 = vld [vmem:[#allocation67_spill] sm:$0xff] }
 0x57f   :  { %16666 = vst [vmem:[#allocation21_spill] sm:$0xff] %v12903_v32  ;;  %v16671_v32 = vld [vmem:[#allocation48_spill] sm:$0xff] }
 0x580   :  { %v4282_v63 = vadd.f32 %v12799_v44, %v16671_v32 }
 0x584   :  { %v12805_v40 = vpop.f32.mrf.mxu0  ;;  %v12807_v6 = vpop.f32.mrf.mxu1 }
 0x585   :  { %v12809_v16 = vpop.f32.mrf.mxu2  ;;  %v12811_v38 = vpop.f32.mrf.mxu3 }
 0x58a   :  { %4440 = vmatmul.bf16.gmra.mxu0 %v16652_v10  ;;  %4489 = vmatmul.bf16.gmra.mxu1 %v16652_v10 }
 0x58b   :  { %4538 = vmatmul.bf16.gmra.mxu2 %v16652_v10  ;;  %4587 = vmatmul.bf16.gmra.mxu3 %v16652_v10  ;;  %v12895_v10 = vadd.f32 %v12743_v46, %v16664_v8  ;;  %v4285_v8 = vadd.f32 %v12807_v6, %v16672_v27 }
 0x58c   :  { %v12817_v12 = vpop.f32.mrf.mxu0  ;;  %v12819_v21 = vpop.f32.mrf.mxu1 }
 0x58d   :  { %v12821_v31 = vpop.f32.mrf.mxu2  ;;  %v12823_v0 = vpop.f32.mrf.mxu3 }
 0x594   :  { %v12825_v43 = vpop.f32.mrf.mxu0  ;;  %v12827_v59 = vpop.f32.mrf.mxu1 }
 0x595   :  { %v12829_v29 = vpop.f32.mrf.mxu2  ;;  %v12831_v17 = vpop.f32.mrf.mxu3 }
 0x596   :  { %16653 = vst [vmem:[#allocation14_spill] sm:$0xff] %v12829_v29  ;;  %v16670_v29 = vld [vmem:[#allocation36_spill] sm:$0xff] }
 0x597   :  { %16654 = vst [vmem:[#allocation13_spill] sm:$0xff] %v12831_v17  ;;  %v12940_v17 = vadd.f32 %v12777_v2, %v16669_v47 }
 0x59a   :  { %4445 = vmatmul.bf16.gmra.mxu0 %v16655_v34  ;;  %4494 = vmatmul.bf16.gmra.mxu1 %v16655_v34 }
 0x59b   :  { %4543 = vmatmul.bf16.gmra.mxu2 %v16655_v34  ;;  %4592 = vmatmul.bf16.gmra.mxu3 %v16655_v34  ;;  %v16667_v34 = vld [vmem:[#allocation75_spill] sm:$0xff] }
 0x59c   :  { %v12837_v61 = vpop.f32.mrf.mxu0  ;;  %v12839_v60 = vpop.f32.mrf.mxu1  ;;  %v12911_v20 = vadd.f32 %v12753_v36, %v16667_v34  ;;  %v12915_v46 = vadd.f32 %v12757_v57, %v16667_v34  ;;  %v12919_v4 = vadd.f32 %v12759_v18, %v16667_v34  ;;  %v12930_v36 = vadd.f32 %v12771_v22, %v16669_v47 }
 0x59d   :  { %v12841_v19 = vpop.f32.mrf.mxu2  ;;  %v12843_v23 = vpop.f32.mrf.mxu3  ;;  %v12934_v57 = vadd.f32 %v12773_v62, %v16669_v47  ;;  %v12962_v18 = vadd.f32 %v12785_v9, %v16670_v29  ;;  %v12976_v62 = vadd.f32 %v12791_v1, %v16670_v29  ;;  %v4383_v1 = vadd.f32 %v12811_v38, %v16672_v27 }
 0x59e   :  { %v13012_v38 = vadd.f32 %v12825_v43, %v11873_v5  ;;  %v13032_v43 = vadd.f32 %v12843_v23, %v11903_v3  ;;  %v16675_v23 = vld [vmem:[#allocation56_spill] sm:$0xff] }
 0x59f   :  { %v4675_v44 = vmax.f32 %v12962_v18, 0.0 }
 0x5a4   :  { %v12845_v35 = vpop.f32.mrf.mxu0  ;;  %v12847_v15 = vpop.f32.mrf.mxu1 }
 0x5a5   :  { %16656 = vst [vmem:[#allocation7_spill] sm:$0xff] %v12845_v35  ;;  %v12849_v39 = vpop.f32.mrf.mxu2  ;;  %v12851_v7 = vpop.f32.mrf.mxu3 }
 0x5a6   :  { %16657 = vst [vmem:[#allocation86_spill] sm:$0xff] %v12847_v15  ;;  %v4710_v15 = vmax.f32 %v4383_v1, 0.0 }
 0x5a7   :  { %16658 = vst [vmem:[#allocation74_spill] sm:$0xff] %v12849_v39  ;;  %v4708_v39 = vmax.f32 %v4285_v8, 0.0  ;;  %v13028_v8 = vadd.f32 %v12841_v19, %v11903_v3 }
 0x5a8   :  { %16659 = vst [vmem:[#allocation23_spill] sm:$0xff] %v12851_v7 }
 0x5aa   :  { %4450 = vmatmul.bf16.gmra.mxu0 %v16660_v28  ;;  %4499 = vmatmul.bf16.gmra.mxu1 %v16660_v28 }
 0x5ab   :  { %4548 = vmatmul.bf16.gmra.mxu2 %v16660_v28  ;;  %4597 = vmatmul.bf16.gmra.mxu3 %v16660_v28  ;;  %v12907_v28 = vadd.f32 %v12751_v25, %v16667_v34  ;;  %v12944_v25 = vadd.f32 %v12779_v14, %v16669_v47  ;;  %v12966_v34 = vadd.f32 %v12787_v42, %v16670_v29 }
 0x5ac   :  { %v12857_v51 = vpop.f32.mrf.mxu0  ;;  %v12859_v37 = vpop.f32.mrf.mxu1  ;;  %v12972_v47 = vadd.f32 %v12789_v54, %v16670_v29  ;;  %v4233_v42 = vadd.f32 %v12797_v11, %v16671_v32  ;;  %v4236_v14 = vadd.f32 %v12805_v40, %v16672_v27  ;;  %v4334_v54 = vadd.f32 %v12809_v16, %v16672_v27  ;;  %v16673_v29 = vld [vmem:[#allocation94_spill] sm:$0xff] }
 0x5ad   :  { %v12861_v53 = vpop.f32.mrf.mxu2  ;;  %v12863_v41 = vpop.f32.mrf.mxu3  ;;  %v4238_v49 = vadd.f32 %v12817_v12, %v16673_v29  ;;  %v4287_v11 = vadd.f32 %v12819_v21, %v16673_v29  ;;  %v4676_v7 = vmax.f32 %v12966_v34, 0.0  ;;  %v4336_v40 = vadd.f32 %v12821_v31, %v16673_v29 }
 0x5ae   :  { %v4385_v6 = vadd.f32 %v12823_v0, %v16673_v29  ;;  %v13004_v12 = vadd.f32 %v12801_v52, %v16671_v32  ;;  %v13008_v21 = vadd.f32 %v12803_v55, %v16671_v32  ;;  %v4691_v18 = vmax.f32 %v4233_v42, 0.0  ;;  %v16674_v42 = vld [vmem:[#allocation34_spill] sm:$0xff] }
 0x5af   :  { %v4692_v34 = vmax.f32 %v4282_v63, 0.0  ;;  %v4707_v27 = vmax.f32 %v4236_v14, 0.0  ;;  %v4709_v31 = vmax.f32 %v4334_v54, 0.0  ;;  %v4723_v35 = vmax.f32 %v4238_v49, 0.0 }
 0x5b0   :  { %v4724_v0 = vmax.f32 %v4287_v11, 0.0  ;;  %v4725_v29 = vmax.f32 %v4336_v40, 0.0  ;;  %v4726_v16 = vmax.f32 %v4385_v6, 0.0  ;;  %v13016_v52 = vadd.f32 %v12827_v59, %v11873_v5  ;;  %v16677_v40 = vld [vmem:[#allocation37_spill] sm:$0xff] }
 0x5b1   :  { %v13020_v63 = vadd.f32 %v12837_v61, %v11903_v3  ;;  %v13024_v49 = vadd.f32 %v12839_v60, %v11903_v3  ;;  %v13036_v54 = vadd.f32 %v12857_v51, %v16674_v42  ;;  %v13040_v61 = vadd.f32 %v12859_v37, %v16674_v42 }
 0x5b2   :  { %v13044_v60 = vadd.f32 %v12861_v53, %v16674_v42  ;;  %v13048_v19 = vadd.f32 %v12863_v41, %v16674_v42  ;;  %v13065_v53 = vld [vmem:[%s15282_s2 + $0x88] sm:$0xff]  ;;  %v13071_v42 = vpack.c.bf16 %v4724_v0, %v4708_v39  ;;  %v13087_v39 = vpack.c.bf16 %v4692_v34, %v4676_v7 }
 0x5b3   :  { %16676 = vst [vmem:[#allocation62_spill] sm:$0xff] %v13065_v53  ;;  %v16681_v3 = vmax.f32 %v12907_v28, 0.0  ;;  %v16687_v28 = vmax.f32 %v12919_v4, 0.0  ;;  %v16693_v4 = vld [vmem:[#allocation7_spill] sm:$0xff] }
 0x5b4   :  { %v12873_v48 = vpop.f32.mrf.mxu0  ;;  %v12875_v58 = vpop.f32.mrf.mxu1 }
 0x5b5   :  { %v12885_v45 = vpop.f32.mrf.mxu2  ;;  %v12887_v24 = vpop.f32.mrf.mxu3 }
 0x5ba   :  { %5157 = vmatmul.bf16.vlgmr.msra.gmra.mxu0 %v12924_v33  ;;  %5206 = vmatmul.bf16.vlgmr.msra.gmra.mxu1 %v12924_v33 }
 0x5bb   :  { %5255 = vmatmul.bf16.vlgmr.msra.gmra.mxu2 %v12924_v33  ;;  %5304 = vmatmul.bf16.vlgmr.msra.gmra.mxu3 %v12924_v33 }
 0x5bc   :  { %v4252_v33 = vpop.f32.mrf.mxu0  ;;  %v4301_v2 = vpop.f32.mrf.mxu1 }
 0x5bd   :  { %v4350_v9 = vpop.f32.mrf.mxu2  ;;  %v4399_v22 = vpop.f32.mrf.mxu3  ;;  %v13051_v1 = vadd.f32 %v4252_v33, %v16675_v23  ;;  %v13054_v11 = vadd.f32 %v4301_v2, %v16675_v23  ;;  %v13069_v33 = vpack.c.bf16 %v4723_v35, %v4707_v27  ;;  %v4693_v2 = vmax.f32 %v13004_v12, 0.0  ;;  %v16678_v27 = vld [vmem:[#allocation58_spill] sm:$0xff] }
 0x5be   :  { %v13057_v51 = vadd.f32 %v4350_v9, %v16675_v23  ;;  %v13060_v37 = vadd.f32 %v4399_v22, %v16675_v23  ;;  %v13076_v22 = vpack.c.bf16 %v4725_v29, %v4709_v31  ;;  %v13078_v9 = vpack.c.bf16 %v4726_v16, %v4710_v15 }
 0x5bf   :  { %v13080_v23 = vpack.c.bf16 %v4691_v18, %v4675_v44  ;;  %v4251_v29 = vadd.f32 %v12873_v48, %v16678_v27  ;;  %v4300_v15 = vadd.f32 %v12875_v58, %v16678_v27  ;;  %v4349_v44 = vadd.f32 %v12885_v45, %v16678_v27 }
 0x5c0   :  { %v4398_v16 = vadd.f32 %v12887_v24, %v16678_v27  ;;  %v4819_v12 = vmax.f32 %v13051_v1, 0.0  ;;  %v4821_v18 = vmax.f32 %v13057_v51, 0.0  ;;  %v4822_v7 = vmax.f32 %v13060_v37, 0.0 }
 0x5c1   :  { %v16679_v37 = vmax.f32 %v12972_v47, 0.0 }
 0x5c4   :  { %v4255_v55 = vpop.f32.mrf.mxu0  ;;  %v4304_v32 = vpop.f32.mrf.mxu1 }
 0x5c5   :  { %v4353_v59 = vpop.f32.mrf.mxu2  ;;  %v4402_v14 = vpop.f32.mrf.mxu3  ;;  %v4256_v41 = vadd.f32 %v4255_v55, %v16677_v40  ;;  %v4305_v6 = vadd.f32 %v4304_v32, %v16677_v40  ;;  %v4694_v55 = vmax.f32 %v13008_v21, 0.0  ;;  %v4820_v21 = vmax.f32 %v13054_v11, 0.0 }
 0x5c6   :  { %v4354_v32 = vadd.f32 %v4353_v59, %v16677_v40  ;;  %v4403_v35 = vadd.f32 %v4402_v14, %v16677_v40  ;;  %v13107_v40 = vpack.c.bf16 %v4693_v2, %v16679_v37  ;;  %v16696_v37 = vld [vmem:[#allocation23_spill] sm:$0xff] }
 0x5c7   :  { %v4835_v48 = vmax.f32 %v4256_v41, 0.0  ;;  %v4836_v0 = vmax.f32 %v4305_v6, 0.0  ;;  %v16680_v41 = vmax.f32 %v12976_v62, 0.0  ;;  %v16685_v62 = vmax.f32 %v12915_v46, 0.0 }
 0x5c8   :  { %v4838_v24 = vmax.f32 %v4403_v35, 0.0  ;;  %v16691_v46 = vmax.f32 %v12871_v56, 0.0  ;;  %v4393_v56 = vadd.f32 %v16696_v37, %v16634_v26  ;;  %v4758_v37 = vmax.f32 %v13032_v43, 0.0 }
 0x5c9   :  { %v13111_v6 = vpack.c.bf16 %v4694_v55, %v16680_v41  ;;  %v16686_v55 = vmax.f32 %v12940_v17, 0.0  ;;  %v16692_v17 = vmax.f32 %v12895_v10, 0.0  ;;  %v4805_v41 = vmax.f32 %v4349_v44, 0.0 }
 0x5ca   :  { %5162 = vmatmul.bf16.gmra.mxu0 %v13065_v53  ;;  %5211 = vmatmul.bf16.gmra.mxu1 %v13065_v53  ;;  %v4806_v10 = vmax.f32 %v4398_v16, 0.0  ;;  %v4790_v44 = vmax.f32 %v13048_v19, 0.0  ;;  %v16706_v19 = vld [vmem:[#allocation14_spill] sm:$0xff] }
 0x5cb   :  { %5260 = vmatmul.bf16.gmra.mxu2 %v13065_v53  ;;  %5309 = vmatmul.bf16.gmra.mxu3 %v13065_v53  ;;  %v4837_v53 = vmax.f32 %v4354_v32, 0.0  ;;  %v16682_v32 = vmax.f32 %v12930_v36, 0.0  ;;  %v16688_v36 = vmax.f32 %v12944_v25, 0.0  ;;  %v16694_v25 = vld [vmem:[#allocation86_spill] sm:$0xff]  ;;  %v4982_v16 = vpack.c.bf16 %v4821_v18, %v4805_v41 }
 0x5cc   :  { %v4257_v34 = vpop.f32.mrf.mxu0  ;;  %v4306_v31 = vpop.f32.mrf.mxu1  ;;  %v4339_v18 = vadd.f32 %v16706_v19, %v11873_v5 }
 0x5cd   :  { %v4258_v58 = vadd.f32 %v4257_v34, %v16560_v30  ;;  %v4307_v59 = vadd.f32 %v4306_v31, %v16560_v30  ;;  %v4355_v45 = vpop.f32.mrf.mxu2  ;;  %v4404_v14 = vpop.f32.mrf.mxu3  ;;  %v13117_v35 = vpack.c.bf16 %v16682_v32, %v16681_v3  ;;  %v13135_v3 = vpack.c.bf16 %v16688_v36, %v16687_v28  ;;  %v16697_v36 = vld [vmem:[#allocation78_spill] sm:$0xff] }
 0x5ce   :  { %v4356_v1 = vadd.f32 %v4355_v45, %v16560_v30  ;;  %v4405_v11 = vadd.f32 %v4404_v14, %v16560_v30  ;;  %v16683_v45 = vmax.f32 %v12911_v20, 0.0  ;;  %v13129_v14 = vpack.c.bf16 %v16686_v55, %v16685_v62 }
 0x5cf   :  { %v4851_v27 = vmax.f32 %v4258_v58, 0.0  ;;  %v4852_v51 = vmax.f32 %v4307_v59, 0.0  ;;  %v16684_v58 = vmax.f32 %v12934_v57, 0.0  ;;  %v16689_v57 = vmax.f32 %v12867_v13, 0.0  ;;  %v16695_v13 = vld [vmem:[#allocation74_spill] sm:$0xff] }
 0x5d0   :  { %v4853_v34 = vmax.f32 %v4356_v1, 0.0  ;;  %v4854_v31 = vmax.f32 %v4405_v11, 0.0  ;;  %v16690_v11 = vmax.f32 %v12891_v50, 0.0  ;;  %v4344_v50 = vadd.f32 %v16695_v13, %v16634_v26 }
 0x5d1   :  { %v13123_v59 = vpack.c.bf16 %v16684_v58, %v16683_v45  ;;  %v4996_v47 = vpack.c.bf16 %v4851_v27, %v4835_v48  ;;  %v4997_v2 = vpack.c.bf16 %v4852_v51, %v4836_v0  ;;  %v13147_v48 = vpack.c.bf16 %v16692_v17, %v16691_v46 }
 0x5d2   :  { %v4998_v1 = vpack.c.bf16 %v4853_v34, %v4837_v53  ;;  %v4999_v20 = vpack.c.bf16 %v4854_v31, %v4838_v24  ;;  %v13141_v27 = vpack.c.bf16 %v16690_v11, %v16689_v57  ;;  %v4246_v0 = vadd.f32 %v16693_v4, %v16634_v26  ;;  %v16701_v57 = vld [vmem:[#allocation79_spill] sm:$0xff] }
 0x5d3   :  { %v4295_v51 = vadd.f32 %v16694_v25, %v16634_v26  ;;  %v4803_v53 = vmax.f32 %v4251_v29, 0.0  ;;  %v4804_v24 = vmax.f32 %v4300_v15, 0.0  ;;  %5541 = vmatpush.bf16.msra.mxu0 %v4996_v47  ;;  %5590 = vmatpush.bf16.msra.mxu1 %v4997_v2  ;;  %v4787_v32 = vmax.f32 %v13036_v54, 0.0 }
 0x5d4   :  { %v13157_v34 = vpop.f32.mrf.mxu0  ;;  %v13159_v31 = vpop.f32.mrf.mxu1  ;;  %5639 = vmatpush.bf16.msra.mxu2 %v4998_v1  ;;  %5688 = vmatpush.bf16.msra.mxu3 %v4999_v20  ;;  %v4788_v29 = vmax.f32 %v13040_v61, 0.0  ;;  %v4789_v2 = vmax.f32 %v13044_v60, 0.0  ;;  %v4983_v62 = vpack.c.bf16 %v4822_v7, %v4806_v10  ;;  %v4771_v55 = vmax.f32 %v4246_v0, 0.0  ;;  %v16699_v1 = vld [vmem:[#allocation26_spill] sm:$0xff]  ;;  %v13184_v60 = vld [vmem:[%s15282_s2 + $0x90] sm:$0xff]  ;;  %v16707_v7 = vld [vmem:[#allocation13_spill] sm:$0xff] }
 0x5d5   :  { %v13163_v15 = vpop.f32.mrf.mxu2  ;;  %v13165_v45 = vpop.f32.mrf.mxu3  ;;  %v4980_v58 = vpack.c.bf16 %v4819_v12, %v4803_v53  ;;  %v4981_v47 = vpack.c.bf16 %v4820_v21, %v4804_v24  ;;  %v4772_v28 = vmax.f32 %v4295_v51, 0.0  ;;  %v16698_v54 = vmax.f32 %v16697_v36, 0.0  ;;  %v16703_v12 = vld [vmem:[#allocation21_spill] sm:$0xff]  ;;  %16705 = vst [vmem:[#allocation16_spill] sm:$0xff] %v13184_v60 }
 0x5d6   :  { %v16700_v61 = vmax.f32 %v16699_v1, 0.0  ;;  %v16702_v11 = vmax.f32 %v16701_v57, 0.0  ;;  %v16704_v21 = vmax.f32 %v16703_v12, 0.0  ;;  %v4388_v17 = vadd.f32 %v16707_v7, %v11873_v5  ;;  %v13285_v1 = vld [vmem:[%s15282_s2 + $0xa8] sm:$0xff] }
 0x5d7   :  { %5542 = vmatpush.bf16.msra.mxu0 %v4980_v58  ;;  %5591 = vmatpush.bf16.msra.mxu1 %v4981_v47  ;;  %v4773_v4 = vmax.f32 %v4344_v50, 0.0  ;;  %v4774_v0 = vmax.f32 %v4393_v56, 0.0  ;;  %v4755_v25 = vmax.f32 %v13020_v63, 0.0  ;;  %v4756_v51 = vmax.f32 %v13024_v49, 0.0  ;;  %16710 = vst [vmem:[#allocation10_spill] sm:$0xff] %v13285_v1 }
 0x5d8   :  { %v13173_v20 = vpack.c.bf16 %v16700_v61, %v16698_v54  ;;  %v13179_v46 = vpack.c.bf16 %v16704_v21, %v16702_v11  ;;  %5640 = vmatpush.bf16.msra.mxu2 %v4982_v16  ;;  %5689 = vmatpush.bf16.msra.mxu3 %v4983_v62  ;;  %v4964_v53 = vpack.c.bf16 %v4787_v32, %v4771_v55  ;;  %v4757_v13 = vmax.f32 %v13028_v8, 0.0 }
 0x5d9   :  { %v4965_v24 = vpack.c.bf16 %v4788_v29, %v4772_v28  ;;  %v4966_v41 = vpack.c.bf16 %v4789_v2, %v4773_v4  ;;  %v4967_v10 = vpack.c.bf16 %v4790_v44, %v4774_v0  ;;  %v4739_v63 = vmax.f32 %v13012_v38, 0.0 }
 0x5da   :  { %5167 = vmatmul.bf16.gmra.mxu0 %v13184_v60  ;;  %5216 = vmatmul.bf16.gmra.mxu1 %v13184_v60  ;;  %v4740_v49 = vmax.f32 %v13016_v52, 0.0  ;;  %v4741_v50 = vmax.f32 %v4339_v18, 0.0  ;;  %v4742_v56 = vmax.f32 %v4388_v17, 0.0  ;;  %v13310_v18 = vld [vmem:[%s15282_s2 + $0xb0] sm:$0xff] }
 0x5db   :  { %5265 = vmatmul.bf16.gmra.mxu2 %v13184_v60  ;;  %5314 = vmatmul.bf16.gmra.mxu3 %v13184_v60  ;;  %v4948_v58 = vpack.c.bf16 %v4755_v25, %v4739_v63  ;;  %16713 = vst [vmem:[#allocation44_spill] sm:$0xff] %v13310_v18 }
 0x5dc   :  { %5543 = vmatpush.bf16.msra.mxu0 %v4964_v53  ;;  %5592 = vmatpush.bf16.msra.mxu1 %v4965_v24  ;;  %v13200_v32 = vpop.f32.mrf.mxu0  ;;  %v13202_v29 = vpop.f32.mrf.mxu1  ;;  %v4949_v47 = vpack.c.bf16 %v4756_v51, %v4740_v49  ;;  %v4950_v2 = vpack.c.bf16 %v4757_v13, %v4741_v50  ;;  %v4951_v38 = vpack.c.bf16 %v4758_v37, %v4742_v56  ;;  %v13335_v13 = vld [vmem:[%s15282_s2 + $0xb8] sm:$0xff]  ;;  %v16718_v49 = vld [vmem:[#allocation91_spill] sm:$0xff] }
 0x5dd   :  { %5641 = vmatpush.bf16.msra.mxu2 %v4966_v41  ;;  %5690 = vmatpush.bf16.msra.mxu3 %v4967_v10  ;;  %v13204_v8 = vpop.f32.mrf.mxu2  ;;  %v13206_v43 = vpop.f32.mrf.mxu3  ;;  %16717 = vst [vmem:[#allocation54_spill] sm:$0xff] %v13335_v13  ;;  %v13351_v50 = vadd.f32 %v13157_v34, %v16718_v49  ;;  %v13355_v56 = vadd.f32 %v13159_v31, %v16718_v49 }
 0x5e0   :  { %5544 = vmatpush.bf16.msra.mxu0 %v4948_v58  ;;  %5593 = vmatpush.bf16.msra.mxu1 %v4949_v47 }
 0x5e1   :  { %5642 = vmatpush.bf16.msra.mxu2 %v4950_v2  ;;  %5691 = vmatpush.bf16.msra.mxu3 %v4951_v38  ;;  %v13363_v2 = vadd.f32 %v13163_v15, %v16718_v49  ;;  %v13367_v38 = vadd.f32 %v13165_v45, %v16718_v49  ;;  %v16724_v49 = vld [vmem:[#allocation75_spill] sm:$0xff] }
 0x5e3   :  { %16719 = vst [vmem:[#allocation28_spill] sm:$0xff] %v13363_v2 }
 0x5e4   :  { %5545 = vmatpush.bf16.msra.mxu0 %v13069_v33  ;;  %5594 = vmatpush.bf16.msra.mxu1 %v13071_v42  ;;  %v13210_v52 = vpop.f32.mrf.mxu0  ;;  %v13212_v44 = vpop.f32.mrf.mxu1  ;;  %v13225_v42 = vld [vmem:[%s15282_s2 + $0x98] sm:$0xff]  ;;  %16720 = vst [vmem:[#allocation49_spill] sm:$0xff] %v13367_v38  ;;  %v16729_v38 = vld [vmem:[#allocation67_spill] sm:$0xff] }
 0x5e5   :  { %5643 = vmatpush.bf16.msra.mxu2 %v13076_v22  ;;  %5692 = vmatpush.bf16.msra.mxu3 %v13078_v9  ;;  %v13216_v16 = vpop.f32.mrf.mxu2  ;;  %v13218_v62 = vpop.f32.mrf.mxu3  ;;  %16708 = vst [vmem:[#allocation11_spill] sm:$0xff] %v13225_v42 }
 0x5e8   :  { %5546 = vmatpush.bf16.msra.mxu0 %v13080_v23  ;;  %5595 = vmatpush.bf16.msra.mxu1 %v13087_v39 }
 0x5e9   :  { %5644 = vmatpush.bf16.msra.mxu2 %v13107_v40  ;;  %5693 = vmatpush.bf16.msra.mxu3 %v13111_v6 }
 0x5ea   :  { %5172 = vmatmul.bf16.gmra.mxu0 %v13225_v42  ;;  %5221 = vmatmul.bf16.gmra.mxu1 %v13225_v42 }
 0x5eb   :  { %5270 = vmatmul.bf16.gmra.mxu2 %v13225_v42  ;;  %5319 = vmatmul.bf16.gmra.mxu3 %v13225_v42 }
 0x5ec   :  { %5547 = vmatpush.bf16.msra.mxu0 %v13117_v35  ;;  %5596 = vmatpush.bf16.msra.mxu1 %v13123_v59  ;;  %v13235_v23 = vpop.f32.mrf.mxu0  ;;  %v13237_v33 = vpop.f32.mrf.mxu1  ;;  %v13260_v59 = vld [vmem:[%s15282_s2 + $0xa0] sm:$0xff] }
 0x5ed   :  { %5645 = vmatpush.bf16.msra.mxu2 %v13129_v14  ;;  %5694 = vmatpush.bf16.msra.mxu3 %v13135_v3  ;;  %v13241_v40 = vpop.f32.mrf.mxu2  ;;  %v13243_v22 = vpop.f32.mrf.mxu3  ;;  %16709 = vst [vmem:[#allocation8_spill] sm:$0xff] %v13260_v59 }
 0x5f0   :  { %5548 = vmatpush.bf16.msra.mxu0 %v13141_v27  ;;  %5597 = vmatpush.bf16.msra.mxu1 %v13147_v48 }
 0x5f1   :  { %5646 = vmatpush.bf16.msra.mxu2 %v13173_v20  ;;  %5695 = vmatpush.bf16.msra.mxu3 %v13179_v46 }
 0x5f4   :  { %v13249_v9 = vpop.f32.mrf.mxu0  ;;  %v13251_v39 = vpop.f32.mrf.mxu1 }
 0x5f5   :  { %v13253_v6 = vpop.f32.mrf.mxu2  ;;  %v13255_v35 = vpop.f32.mrf.mxu3 }
 0x5fa   :  { %5177 = vmatmul.bf16.gmra.mxu0 %v13260_v59  ;;  %5226 = vmatmul.bf16.gmra.mxu1 %v13260_v59 }
 0x5fb   :  { %5275 = vmatmul.bf16.gmra.mxu2 %v13260_v59  ;;  %5324 = vmatmul.bf16.gmra.mxu3 %v13260_v59  ;;  %v13391_v59 = vadd.f32 %v13210_v52, %v16724_v49 }
 0x5fc   :  { %v13266_v14 = vpop.f32.mrf.mxu0  ;;  %v13268_v3 = vpop.f32.mrf.mxu1 }
 0x5fd   :  { %v13270_v27 = vpop.f32.mrf.mxu2  ;;  %v13272_v48 = vpop.f32.mrf.mxu3 }
 0x604   :  { %v13274_v55 = vpop.f32.mrf.mxu0  ;;  %v13276_v28 = vpop.f32.mrf.mxu1 }
 0x605   :  { %v13278_v36 = vpop.f32.mrf.mxu2  ;;  %v13280_v54 = vpop.f32.mrf.mxu3 }
 0x60a   :  { %5182 = vmatmul.bf16.gmra.mxu0 %v13285_v1  ;;  %5231 = vmatmul.bf16.gmra.mxu1 %v13285_v1 }
 0x60b   :  { %5280 = vmatmul.bf16.gmra.mxu2 %v13285_v1  ;;  %5329 = vmatmul.bf16.gmra.mxu3 %v13285_v1 }
 0x60c   :  { %v13291_v61 = vpop.f32.mrf.mxu0  ;;  %v13293_v20 = vpop.f32.mrf.mxu1 }
 0x60d   :  { %v13295_v57 = vpop.f32.mrf.mxu2  ;;  %v13297_v11 = vpop.f32.mrf.mxu3 }
 0x614   :  { %v13299_v12 = vpop.f32.mrf.mxu0  ;;  %v13301_v21 = vpop.f32.mrf.mxu1 }
 0x615   :  { %v13303_v46 = vpop.f32.mrf.mxu2  ;;  %v13305_v19 = vpop.f32.mrf.mxu3 }
 0x616   :  { %16711 = vst [vmem:[#allocation50_spill] sm:$0xff] %v13303_v46  ;;  %v16728_v46 = vld [vmem:[#allocation48_spill] sm:$0xff] }
 0x617   :  { %16712 = vst [vmem:[#allocation15_spill] sm:$0xff] %v13305_v19  ;;  %v16727_v19 = vld [vmem:[#allocation36_spill] sm:$0xff] }
 0x618   :  { %v13441_v60 = vadd.f32 %v13249_v9, %v16727_v19  ;;  %v13451_v42 = vadd.f32 %v13253_v6, %v16727_v19  ;;  %v4530_v6 = vadd.f32 %v13278_v36, %v16729_v38 }
 0x61a   :  { %5187 = vmatmul.bf16.gmra.mxu0 %v13310_v18  ;;  %5236 = vmatmul.bf16.gmra.mxu1 %v13310_v18 }
 0x61b   :  { %5285 = vmatmul.bf16.gmra.mxu2 %v13310_v18  ;;  %5334 = vmatmul.bf16.gmra.mxu3 %v13310_v18  ;;  %v16721_v18 = vld [vmem:[#allocation90_spill] sm:$0xff] }
 0x61c   :  { %v13316_v7 = vpop.f32.mrf.mxu0  ;;  %v13318_v17 = vpop.f32.mrf.mxu1  ;;  %v13375_v31 = vadd.f32 %v13200_v32, %v16721_v18  ;;  %v13379_v1 = vadd.f32 %v13202_v29, %v16721_v18  ;;  %v13383_v15 = vadd.f32 %v13204_v8, %v16721_v18  ;;  %v13387_v45 = vadd.f32 %v13206_v43, %v16721_v18  ;;  %v16725_v18 = vld [vmem:[#allocation35_spill] sm:$0xff]  ;;  %v16726_v43 = vld [vmem:[#allocation29_spill] sm:$0xff] }
 0x61d   :  { %v13320_v4 = vpop.f32.mrf.mxu2  ;;  %v13322_v0 = vpop.f32.mrf.mxu3  ;;  %v13395_v32 = vadd.f32 %v13212_v44, %v16724_v49  ;;  %v13399_v29 = vadd.f32 %v13216_v16, %v16724_v49  ;;  %v13403_v8 = vadd.f32 %v13218_v62, %v16724_v49  ;;  %v13409_v52 = vadd.f32 %v13235_v23, %v16725_v18 }
 0x61e   :  { %16722 = vst [vmem:[#allocation85_spill] sm:$0xff] %v13383_v15  ;;  %v13413_v44 = vadd.f32 %v13237_v33, %v16725_v18  ;;  %v13419_v62 = vadd.f32 %v13241_v40, %v16725_v18  ;;  %v13423_v49 = vadd.f32 %v13243_v22, %v16725_v18  ;;  %v13445_v16 = vadd.f32 %v13251_v39, %v16727_v19 }
 0x61f   :  { %16723 = vst [vmem:[#allocation46_spill] sm:$0xff] %v13387_v45  ;;  %v13455_v33 = vadd.f32 %v13255_v35, %v16727_v19  ;;  %v4429_v39 = vadd.f32 %v13266_v14, %v16728_v46  ;;  %v4478_v45 = vadd.f32 %v13268_v3, %v16728_v46  ;;  %v4432_v22 = vadd.f32 %v13274_v55, %v16729_v38  ;;  %v16730_v19 = vld [vmem:[#allocation94_spill] sm:$0xff] }
 0x620   :  { %v4481_v18 = vadd.f32 %v13276_v28, %v16729_v38  ;;  %v4579_v35 = vadd.f32 %v13280_v54, %v16729_v38  ;;  %v4434_v15 = vadd.f32 %v13291_v61, %v16730_v19  ;;  %v4483_v14 = vadd.f32 %v13293_v20, %v16730_v19 }
 0x621   :  { %v4679_v3 = vmax.f32 %v13441_v60, 0.0  ;;  %v4680_v2 = vmax.f32 %v13445_v16, 0.0  ;;  %v4532_v55 = vadd.f32 %v13295_v57, %v16730_v19  ;;  %v4581_v28 = vadd.f32 %v13297_v11, %v16730_v19 }
 0x622   :  { %v13483_v61 = vadd.f32 %v13270_v27, %v16728_v46  ;;  %v13487_v20 = vadd.f32 %v13272_v48, %v16728_v46  ;;  %v4695_v60 = vmax.f32 %v4429_v39, 0.0  ;;  %v4696_v38 = vmax.f32 %v4478_v45, 0.0  ;;  %v16732_v39 = vld [vmem:[#allocation82_spill] sm:$0xff] }
 0x623   :  { %v4711_v16 = vmax.f32 %v4432_v22, 0.0  ;;  %v4713_v57 = vmax.f32 %v4530_v6, 0.0  ;;  %v4728_v11 = vmax.f32 %v4483_v14, 0.0  ;;  %v4729_v19 = vmax.f32 %v4532_v55, 0.0  ;;  %v16733_v6 = vld [vmem:[#allocation34_spill] sm:$0xff] }
 0x624   :  { %v13324_v25 = vpop.f32.mrf.mxu0  ;;  %v13326_v51 = vpop.f32.mrf.mxu1  ;;  %v4730_v36 = vmax.f32 %v4581_v28, 0.0  ;;  %v13491_v54 = vadd.f32 %v13299_v12, %v11873_v5  ;;  %v13495_v27 = vadd.f32 %v13301_v21, %v11873_v5  ;;  %v13499_v45 = vadd.f32 %v13316_v7, %v16732_v39  ;;  %v16735_v28 = vld [vmem:[#allocation37_spill] sm:$0xff] }
 0x625   :  { %16714 = vst [vmem:[#allocation52_spill] sm:$0xff] %v13326_v51  ;;  %v13328_v53 = vpop.f32.mrf.mxu2  ;;  %v13330_v24 = vpop.f32.mrf.mxu3  ;;  %v4727_v51 = vmax.f32 %v4434_v15, 0.0  ;;  %v13503_v15 = vadd.f32 %v13318_v17, %v16732_v39  ;;  %v13507_v22 = vadd.f32 %v13320_v4, %v16732_v39  ;;  %v13511_v12 = vadd.f32 %v13322_v0, %v16732_v39  ;;  %v16734_v0 = vld [vmem:[#allocation56_spill] sm:$0xff] }
 0x626   :  { %16715 = vst [vmem:[#allocation68_spill] sm:$0xff] %v13328_v53  ;;  %v4714_v53 = vmax.f32 %v4579_v35, 0.0 }
 0x627   :  { %16716 = vst [vmem:[#allocation17_spill] sm:$0xff] %v13330_v24  ;;  %v4712_v24 = vmax.f32 %v4481_v18, 0.0 }
 0x628   :  { %16731 = vst [vmem:[#allocation30_spill] sm:$0xff] %v13495_v27  ;;  %v13543_v27 = vpack.c.bf16 %v4727_v51, %v4711_v16 }
 0x62a   :  { %5192 = vmatmul.bf16.gmra.mxu0 %v13335_v13  ;;  %5241 = vmatmul.bf16.gmra.mxu1 %v13335_v13 }
 0x62b   :  { %5290 = vmatmul.bf16.gmra.mxu2 %v13335_v13  ;;  %5339 = vmatmul.bf16.gmra.mxu3 %v13335_v13 }
 0x62c   :  { %v13341_v37 = vpop.f32.mrf.mxu0  ;;  %v13343_v41 = vpop.f32.mrf.mxu1 }
 0x62d   :  { %v13345_v10 = vpop.f32.mrf.mxu2  ;;  %v13347_v63 = vpop.f32.mrf.mxu3  ;;  %v13515_v35 = vadd.f32 %v13341_v37, %v16733_v6  ;;  %v13519_v7 = vadd.f32 %v13343_v41, %v16733_v6 }
 0x62e   :  { %v13523_v17 = vadd.f32 %v13345_v10, %v16733_v6  ;;  %v13527_v4 = vadd.f32 %v13347_v63, %v16733_v6  ;;  %v13545_v63 = vpack.c.bf16 %v4728_v11, %v4712_v24  ;;  %v16736_v6 = vld [vmem:[#allocation62_spill] sm:$0xff]  ;;  %v13561_v24 = vpack.c.bf16 %v4696_v38, %v4680_v2 }
 0x634   :  { %v13357_v58 = vpop.f32.mrf.mxu0  ;;  %v13359_v47 = vpop.f32.mrf.mxu1 }
 0x635   :  { %v13369_v13 = vpop.f32.mrf.mxu2  ;;  %v13371_v34 = vpop.f32.mrf.mxu3 }
 0x63a   :  { %5353 = vmatmul.bf16.vlgmr.msrb.gmra.mxu0 %v16726_v43  ;;  %5402 = vmatmul.bf16.vlgmr.msrb.gmra.mxu1 %v16726_v43 }
 0x63b   :  { %5451 = vmatmul.bf16.vlgmr.msrb.gmra.mxu2 %v16726_v43  ;;  %5500 = vmatmul.bf16.vlgmr.msrb.gmra.mxu3 %v16726_v43 }
 0x63c   :  { %v4448_v43 = vpop.f32.mrf.mxu0  ;;  %v4497_v40 = vpop.f32.mrf.mxu1 }
 0x63d   :  { %v4546_v9 = vpop.f32.mrf.mxu2  ;;  %v4595_v23 = vpop.f32.mrf.mxu3  ;;  %v13530_v14 = vadd.f32 %v4448_v43, %v16734_v0  ;;  %v13533_v55 = vadd.f32 %v4497_v40, %v16734_v0  ;;  %v4697_v43 = vmax.f32 %v13483_v61, 0.0  ;;  %v13550_v40 = vpack.c.bf16 %v4729_v19, %v4713_v57  ;;  %v16737_v61 = vld [vmem:[#allocation58_spill] sm:$0xff] }
 0x63e   :  { %v13536_v37 = vadd.f32 %v4546_v9, %v16734_v0  ;;  %v13539_v41 = vadd.f32 %v4595_v23, %v16734_v0  ;;  %v13552_v9 = vpack.c.bf16 %v4730_v36, %v4714_v53  ;;  %v13554_v23 = vpack.c.bf16 %v4695_v60, %v4679_v3 }
 0x63f   :  { %v4447_v16 = vadd.f32 %v13357_v58, %v16737_v61  ;;  %v4496_v53 = vadd.f32 %v13359_v47, %v16737_v61  ;;  %v4545_v3 = vadd.f32 %v13369_v13, %v16737_v61  ;;  %v4594_v36 = vadd.f32 %v13371_v34, %v16737_v61 }
 0x640   :  { %v4824_v60 = vmax.f32 %v13533_v55, 0.0  ;;  %v4825_v57 = vmax.f32 %v13536_v37, 0.0  ;;  %v4826_v2 = vmax.f32 %v13539_v41, 0.0  ;;  %v16738_v41 = vmax.f32 %v13451_v42, 0.0 }
 0x644   :  { %v4451_v48 = vpop.f32.mrf.mxu0  ;;  %v4500_v46 = vpop.f32.mrf.mxu1 }
 0x645   :  { %v4549_v21 = vpop.f32.mrf.mxu2  ;;  %v4598_v18 = vpop.f32.mrf.mxu3  ;;  %v4452_v39 = vadd.f32 %v4451_v48, %v16735_v28  ;;  %v4501_v10 = vadd.f32 %v4500_v46, %v16735_v28  ;;  %v4698_v48 = vmax.f32 %v13487_v20, 0.0  ;;  %v4823_v20 = vmax.f32 %v13530_v14, 0.0 }
 0x646   :  { %v4550_v46 = vadd.f32 %v4549_v21, %v16735_v28  ;;  %v4599_v51 = vadd.f32 %v4598_v18, %v16735_v28 }
 0x647   :  { %v4839_v58 = vmax.f32 %v4452_v39, 0.0  ;;  %v4840_v19 = vmax.f32 %v4501_v10, 0.0  ;;  %v16739_v39 = vmax.f32 %v13455_v33, 0.0  ;;  %v16744_v33 = vmax.f32 %v13399_v29, 0.0 }
 0x648   :  { %v4841_v0 = vmax.f32 %v4550_v46, 0.0  ;;  %v4842_v34 = vmax.f32 %v4599_v51, 0.0  ;;  %v16741_v46 = vmax.f32 %v13409_v52, 0.0  ;;  %v16747_v52 = vmax.f32 %v13423_v49, 0.0  ;;  %v16752_v49 = vld [vmem:[#allocation52_spill] sm:$0xff] }
 0x649   :  { %v13585_v10 = vpack.c.bf16 %v4698_v48, %v16739_v39  ;;  %v16745_v48 = vmax.f32 %v13419_v62, 0.0  ;;  %v16750_v29 = vmax.f32 %v13355_v56, 0.0  ;;  %v16751_v62 = vmax.f32 %v13379_v1, 0.0 }
 0x64a   :  { %5358 = vmatmul.bf16.gmra.mxu0 %v16736_v6  ;;  %5407 = vmatmul.bf16.gmra.mxu1 %v16736_v6  ;;  %v4810_v1 = vmax.f32 %v4594_v36, 0.0 }
 0x64b   :  { %5456 = vmatmul.bf16.gmra.mxu2 %v16736_v6  ;;  %5505 = vmatmul.bf16.gmra.mxu3 %v16736_v6  ;;  %v13581_v6 = vpack.c.bf16 %v4697_v43, %v16738_v41  ;;  %v4809_v41 = vmax.f32 %v4545_v3, 0.0  ;;  %v4794_v3 = vmax.f32 %v13527_v4, 0.0 }
 0x64c   :  { %v4453_v38 = vpop.f32.mrf.mxu0  ;;  %v4502_v11 = vpop.f32.mrf.mxu1 }
 0x64d   :  { %v4454_v47 = vadd.f32 %v4453_v38, %v16560_v30  ;;  %v4503_v21 = vadd.f32 %v4502_v11, %v16560_v30  ;;  %v4551_v13 = vpop.f32.mrf.mxu2  ;;  %v4600_v18 = vpop.f32.mrf.mxu3  ;;  %v16740_v11 = vmax.f32 %v13391_v59, 0.0  ;;  %v16746_v59 = vmax.f32 %v13403_v8, 0.0 }
 0x64e   :  { %v4552_v14 = vadd.f32 %v4551_v13, %v16560_v30  ;;  %v4601_v55 = vadd.f32 %v4600_v18, %v16560_v30  ;;  %v16742_v30 = vmax.f32 %v13395_v32, 0.0  ;;  %v13603_v13 = vpack.c.bf16 %v16745_v48, %v16744_v33  ;;  %v16757_v33 = vld [vmem:[#allocation85_spill] sm:$0xff] }
 0x64f   :  { %v4855_v28 = vmax.f32 %v4454_v47, 0.0  ;;  %v4856_v37 = vmax.f32 %v4503_v21, 0.0  ;;  %v13591_v51 = vpack.c.bf16 %v16741_v46, %v16740_v11  ;;  %v16743_v47 = vmax.f32 %v13413_v44, 0.0 }
 0x650   :  { %v4857_v61 = vmax.f32 %v4552_v14, 0.0  ;;  %v4858_v38 = vmax.f32 %v4601_v55, 0.0  ;;  %v13609_v18 = vpack.c.bf16 %v16747_v52, %v16746_v59  ;;  %v16748_v44 = vmax.f32 %v13351_v50, 0.0  ;;  %v16753_v50 = vld [vmem:[#allocation68_spill] sm:$0xff]  ;;  %v16759_v59 = vld [vmem:[#allocation49_spill] sm:$0xff] }
 0x651   :  { %v13597_v21 = vpack.c.bf16 %v16743_v47, %v16742_v30  ;;  %v5000_v42 = vpack.c.bf16 %v4855_v28, %v4839_v58  ;;  %v5001_v43 = vpack.c.bf16 %v4856_v37, %v4840_v19  ;;  %v16749_v55 = vmax.f32 %v13375_v31, 0.0  ;;  %v16754_v37 = vld [vmem:[#allocation17_spill] sm:$0xff] }
 0x652   :  { %v5002_v14 = vpack.c.bf16 %v4857_v61, %v4841_v0  ;;  %v5003_v32 = vpack.c.bf16 %v4858_v38, %v4842_v34  ;;  %v13621_v19 = vpack.c.bf16 %v16751_v62, %v16750_v29  ;;  %v4442_v8 = vadd.f32 %v13324_v25, %v16634_v26 }
 0x653   :  { %v13615_v58 = vpack.c.bf16 %v16749_v55, %v16748_v44  ;;  %v4491_v28 = vadd.f32 %v16752_v49, %v16634_v26  ;;  %v4807_v0 = vmax.f32 %v4447_v16, 0.0  ;;  %v4808_v34 = vmax.f32 %v4496_v53, 0.0  ;;  %5737 = vmatpush.bf16.msrb.mxu0 %v5000_v42  ;;  %5786 = vmatpush.bf16.msrb.mxu1 %v5001_v43  ;;  %v16755_v43 = vld [vmem:[#allocation28_spill] sm:$0xff] }
 0x654   :  { %v4540_v31 = vadd.f32 %v16753_v50, %v16634_v26  ;;  %v4589_v56 = vadd.f32 %v16754_v37, %v16634_v26  ;;  %v13631_v39 = vpop.f32.mrf.mxu0  ;;  %v13633_v61 = vpop.f32.mrf.mxu1  ;;  %5835 = vmatpush.bf16.msrb.mxu2 %v5002_v14  ;;  %5884 = vmatpush.bf16.msrb.mxu3 %v5003_v32  ;;  %v4791_v25 = vmax.f32 %v13515_v35, 0.0  ;;  %v4792_v16 = vmax.f32 %v13519_v7, 0.0  ;;  %v16765_v49 = vld [vmem:[#allocation16_spill] sm:$0xff]  ;;  %v16766_v50 = vld [vmem:[#allocation30_spill] sm:$0xff] }
 0x655   :  { %v13637_v53 = vpop.f32.mrf.mxu2  ;;  %v13639_v38 = vpop.f32.mrf.mxu3  ;;  %v4984_v11 = vpack.c.bf16 %v4823_v20, %v4807_v0  ;;  %v4985_v46 = vpack.c.bf16 %v4824_v60, %v4808_v34  ;;  %v4793_v26 = vmax.f32 %v13523_v17, 0.0  ;;  %v4986_v36 = vpack.c.bf16 %v4825_v57, %v4809_v41  ;;  %v16761_v20 = vld [vmem:[#allocation46_spill] sm:$0xff]  ;;  %v16764_v57 = vld [vmem:[#allocation15_spill] sm:$0xff] }
 0x656   :  { %v4987_v30 = vpack.c.bf16 %v4826_v2, %v4810_v1  ;;  %v4775_v47 = vmax.f32 %v4442_v8, 0.0  ;;  %v4776_v42 = vmax.f32 %v4491_v28, 0.0  ;;  %v16756_v35 = vmax.f32 %v16755_v43, 0.0  ;;  %v16763_v17 = vld [vmem:[#allocation50_spill] sm:$0xff] }
 0x657   :  { %5738 = vmatpush.bf16.msrb.mxu0 %v4984_v11  ;;  %5787 = vmatpush.bf16.msrb.mxu1 %v4985_v46  ;;  %v16758_v7 = vmax.f32 %v16757_v33, 0.0  ;;  %v16760_v52 = vmax.f32 %v16759_v59, 0.0  ;;  %v16762_v60 = vmax.f32 %v16761_v20, 0.0  ;;  %v4535_v4 = vadd.f32 %v16763_v17, %v11873_v5  ;;  %v13745_v33 = vpop.permute.xlu2 %5083 }
 0x658   :  { %v4584_v2 = vadd.f32 %v16764_v57, %v11873_v5  ;;  %v4777_v32 = vmax.f32 %v4540_v31, 0.0  ;;  %v4778_v44 = vmax.f32 %v4589_v56, 0.0  ;;  %5836 = vmatpush.bf16.msrb.mxu2 %v4986_v36  ;;  %5885 = vmatpush.bf16.msrb.mxu3 %v4987_v30  ;;  %v4759_v55 = vmax.f32 %v13499_v45, 0.0  ;;  %v13733_v36 = vpop.permute.xlu0 %5093  ;;  %16771 = vst [vmem:[#allocation73_spill] sm:$0xff] %v13745_v33 }
 0x659   :  { %v13647_v48 = vpack.c.bf16 %v16758_v7, %v16756_v35  ;;  %v13653_v14 = vpack.c.bf16 %v16762_v60, %v16760_v52  ;;  %v4760_v29 = vmax.f32 %v13503_v15, 0.0  ;;  %v4968_v62 = vpack.c.bf16 %v4791_v25, %v4775_v47  ;;  %16769 = vst [vmem:[#allocation41_spill] sm:$0xff] %v13733_v36  ;;  %v16772_v7 = vld [vmem:[#allocation10_spill] sm:$0xff] }
 0x65a   :  { %v4969_v8 = vpack.c.bf16 %v4792_v16, %v4776_v42  ;;  %5363 = vmatmul.bf16.gmra.mxu0 %v16765_v49  ;;  %5412 = vmatmul.bf16.gmra.mxu1 %v16765_v49  ;;  %v4761_v28 = vmax.f32 %v13507_v22, 0.0  ;;  %v4762_v0 = vmax.f32 %v13511_v12, 0.0  ;;  %v4970_v34 = vpack.c.bf16 %v4793_v26, %v4777_v32 }
 0x65b   :  { %v4971_v5 = vpack.c.bf16 %v4794_v3, %v4778_v44  ;;  %5461 = vmatmul.bf16.gmra.mxu2 %v16765_v49  ;;  %5510 = vmatmul.bf16.gmra.mxu3 %v16765_v49  ;;  %v4743_v45 = vmax.f32 %v13491_v54, 0.0  ;;  %v4744_v15 = vmax.f32 %v16766_v50, 0.0  ;;  %v4745_v31 = vmax.f32 %v4535_v4, 0.0 }
 0x65c   :  { %5739 = vmatpush.bf16.msrb.mxu0 %v4968_v62  ;;  %5788 = vmatpush.bf16.msrb.mxu1 %v4969_v8  ;;  %v4746_v37 = vmax.f32 %v4584_v2, 0.0  ;;  %v13669_v56 = vpop.f32.mrf.mxu0  ;;  %v13671_v41 = vpop.f32.mrf.mxu1 }
 0x65d   :  { %5837 = vmatpush.bf16.msrb.mxu2 %v4970_v34  ;;  %5886 = vmatpush.bf16.msrb.mxu3 %v4971_v5  ;;  %v13673_v22 = vpop.f32.mrf.mxu2  ;;  %v13675_v12 = vpop.f32.mrf.mxu3  ;;  %v4952_v1 = vpack.c.bf16 %v4759_v55, %v4743_v45  ;;  %v4953_v25 = vpack.c.bf16 %v4760_v29, %v4744_v15  ;;  %v4954_v16 = vpack.c.bf16 %v4761_v28, %v4745_v31  ;;  %v16778_v55 = vld [vmem:[#allocation44_spill] sm:$0xff] }
 0x65e   :  { %v4955_v54 = vpack.c.bf16 %v4762_v0, %v4746_v37 }
 0x65f   :  { %v13763_v17 = vpop.permute.xlu2 %5078 }
 0x660   :  { %5740 = vmatpush.bf16.msrb.mxu0 %v4952_v1  ;;  %5789 = vmatpush.bf16.msrb.mxu1 %v4953_v25  ;;  %v13743_v35 = vpop.permute.xlu0 %5088  ;;  %16774 = vst [vmem:[#allocation43_spill] sm:$0xff] %v13763_v17  ;;  %v16788_v1 = vld [vmem:[#allocation54_spill] sm:$0xff] }
 0x661   :  { %5838 = vmatpush.bf16.msrb.mxu2 %v4954_v16  ;;  %5887 = vmatpush.bf16.msrb.mxu3 %v4955_v54  ;;  %16770 = vst [vmem:[#allocation92_spill] sm:$0xff] %v13743_v35 }
 0x664   :  { %5741 = vmatpush.bf16.msrb.mxu0 %v13543_v27  ;;  %5790 = vmatpush.bf16.msrb.mxu1 %v13545_v63  ;;  %v13679_v11 = vpop.f32.mrf.mxu0  ;;  %v13681_v46 = vpop.f32.mrf.mxu1  ;;  %v16767_v27 = vld [vmem:[#allocation11_spill] sm:$0xff] }
 0x665   :  { %5839 = vmatpush.bf16.msrb.mxu2 %v13550_v40  ;;  %5888 = vmatpush.bf16.msrb.mxu3 %v13552_v9  ;;  %v13685_v26 = vpop.f32.mrf.mxu2  ;;  %v13687_v3 = vpop.f32.mrf.mxu3 }
 0x667   :  { %v13789_v0 = vpop.permute.xlu2 %5053 }
 0x668   :  { %5742 = vmatpush.bf16.msrb.mxu0 %v13554_v23  ;;  %5791 = vmatpush.bf16.msrb.mxu1 %v13561_v24  ;;  %16780 = vst [vmem:[#allocation24_spill] sm:$0xff] %v13789_v0 }
 0x669   :  { %5840 = vmatpush.bf16.msrb.mxu2 %v13581_v6  ;;  %5889 = vmatpush.bf16.msrb.mxu3 %v13585_v10 }
 0x66a   :  { %5368 = vmatmul.bf16.gmra.mxu0 %v16767_v27  ;;  %5417 = vmatmul.bf16.gmra.mxu1 %v16767_v27 }
 0x66b   :  { %5466 = vmatmul.bf16.gmra.mxu2 %v16767_v27  ;;  %5515 = vmatmul.bf16.gmra.mxu3 %v16767_v27 }
 0x66c   :  { %5743 = vmatpush.bf16.msrb.mxu0 %v13591_v51  ;;  %5792 = vmatpush.bf16.msrb.mxu1 %v13597_v21  ;;  %v13699_v63 = vpop.f32.mrf.mxu0  ;;  %v13701_v40 = vpop.f32.mrf.mxu1  ;;  %v16768_v21 = vld [vmem:[#allocation8_spill] sm:$0xff] }
 0x66d   :  { %5841 = vmatpush.bf16.msrb.mxu2 %v13603_v13  ;;  %5890 = vmatpush.bf16.msrb.mxu3 %v13609_v18  ;;  %v13705_v9 = vpop.f32.mrf.mxu2  ;;  %v13707_v23 = vpop.f32.mrf.mxu3 }
 0x66f   :  { %v13803_v37 = vpop.permute.xlu2 %5048 }
 0x670   :  { %5744 = vmatpush.bf16.msrb.mxu0 %v13615_v58  ;;  %5793 = vmatpush.bf16.msrb.mxu1 %v13621_v19  ;;  %16787 = vst [vmem:[#allocation55_spill] sm:$0xff] %v13803_v37 }
 0x671   :  { %5842 = vmatpush.bf16.msrb.mxu2 %v13647_v48  ;;  %5891 = vmatpush.bf16.msrb.mxu3 %v13653_v14  ;;  %v13751_v48 = vpop.permute.xlu1 %5098  ;;  %v13761_v14 = vpop.permute.xlu0 %5063 }
 0x672   :  { %16773 = vst [vmem:[#allocation51_spill] sm:$0xff] %v13751_v48 }
 0x674   :  { %v13713_v24 = vpop.f32.mrf.mxu0  ;;  %v13715_v6 = vpop.f32.mrf.mxu1 }
 0x675   :  { %v13717_v10 = vpop.f32.mrf.mxu2  ;;  %v13719_v51 = vpop.f32.mrf.mxu3 }
 0x679   :  { %v13773_v44 = vpop.permute.xlu1 %5073  ;;  %v13787_v28 = vpop.permute.xlu0 %5058 }
 0x67a   :  { %5373 = vmatmul.bf16.gmra.mxu0 %v16768_v21  ;;  %5422 = vmatmul.bf16.gmra.mxu1 %v16768_v21  ;;  %16777 = vst [vmem:[#allocation60_spill] sm:$0xff] %v13773_v44 }
 0x67b   :  { %5471 = vmatmul.bf16.gmra.mxu2 %v16768_v21  ;;  %5520 = vmatmul.bf16.gmra.mxu3 %v16768_v21  ;;  %16779 = vst [vmem:[#allocation80_spill] sm:$0xff] %v13787_v28 }
 0x67c   :  { %v13725_v13 = vpop.f32.mrf.mxu0  ;;  %v13727_v18 = vpop.f32.mrf.mxu1 }
 0x67d   :  { %v13729_v58 = vpop.f32.mrf.mxu2  ;;  %v13731_v19 = vpop.f32.mrf.mxu3 }
 0x681   :  { %v13791_v34 = vpop.permute.xlu1 %5068  ;;  %v13801_v31 = vpop.permute.xlu0 %5033 }
 0x682   :  { %16781 = vst [vmem:[#allocation59_spill] sm:$0xff] %v13791_v34  ;;  %v13867_v48 = vadd.f32 %v13679_v11, %v13801_v31 }
 0x683   :  { %16786 = vst [vmem:[#allocation72_spill] sm:$0xff] %v13801_v31 }
 0x684   :  { %v13735_v30 = vpop.f32.mrf.mxu0  ;;  %v13737_v47 = vpop.f32.mrf.mxu1 }
 0x685   :  { %v13739_v42 = vpop.f32.mrf.mxu2  ;;  %v13741_v43 = vpop.f32.mrf.mxu3 }
 0x689   :  { %v13809_v25 = vpop.permute.xlu1 %5043 }
 0x68a   :  { %5378 = vmatmul.bf16.gmra.mxu0 %v16772_v7  ;;  %5427 = vmatmul.bf16.gmra.mxu1 %v16772_v7  ;;  %16789 = vst [vmem:[#allocation27_spill] sm:$0xff] %v13809_v25 }
 0x68b   :  { %5476 = vmatmul.bf16.gmra.mxu2 %v16772_v7  ;;  %5525 = vmatmul.bf16.gmra.mxu3 %v16772_v7  ;;  %v13819_v7 = vpop.permute.xlu0 %5028 }
 0x68c   :  { %v13753_v59 = vpop.f32.mrf.mxu0  ;;  %v13755_v52 = vpop.f32.mrf.mxu1  ;;  %16790 = vst [vmem:[#allocation22_spill] sm:$0xff] %v13819_v7  ;;  %v13853_v44 = vadd.f32 %v13671_v41, %v13819_v7  ;;  %v13875_v41 = vadd.f32 %v13685_v26, %v13801_v31  ;;  %v13936_v26 = vadd.f32 %v13719_v51, %v13809_v25  ;;  %v5321_v51 = vadd.f32 %v13741_v43, %v13789_v0 }
 0x68d   :  { %v13757_v20 = vpop.f32.mrf.mxu2  ;;  %v13759_v60 = vpop.f32.mrf.mxu3 }
 0x68e   :  { %16795 = vst [vmem:[#allocation53_spill] sm:$0xff] %v13853_v44 }
 0x694   :  { %v13765_v4 = vpop.f32.mrf.mxu0  ;;  %v13767_v57 = vpop.f32.mrf.mxu1 }
 0x695   :  { %v13769_v2 = vpop.f32.mrf.mxu2  ;;  %v13771_v32 = vpop.f32.mrf.mxu3  ;;  %v13972_v43 = vadd.f32 %v13765_v4, %v13761_v14 }
 0x696   :  { %16775 = vst [vmem:[#allocation87_spill] sm:$0xff] %v13769_v2 }
 0x697   :  { %16776 = vst [vmem:[#allocation89_spill] sm:$0xff] %v13771_v32 }
 0x69a   :  { %5383 = vmatmul.bf16.gmra.mxu0 %v16778_v55  ;;  %5432 = vmatmul.bf16.gmra.mxu1 %v16778_v55 }
 0x69b   :  { %5481 = vmatmul.bf16.gmra.mxu2 %v16778_v55  ;;  %5530 = vmatmul.bf16.gmra.mxu3 %v16778_v55  ;;  %v13821_v55 = vpop.permute.xlu2 %5023 }
 0x69c   :  { %v13779_v29 = vpop.f32.mrf.mxu0  ;;  %v13781_v62 = vpop.f32.mrf.mxu1  ;;  %16791 = vst [vmem:[#allocation25_spill] sm:$0xff] %v13821_v55  ;;  %v13825_v32 = vadd.f32 %v13631_v39, %v13821_v55 }
 0x69d   :  { %v13783_v8 = vpop.f32.mrf.mxu2  ;;  %v13785_v49 = vpop.f32.mrf.mxu3 }
 0x69e   :  { %v13992_v4 = vadd.f32 %v13785_v49, %v13791_v34 }
 0x6a4   :  { %v13793_v5 = vpop.f32.mrf.mxu0  ;;  %v13795_v45 = vpop.f32.mrf.mxu1 }
 0x6a5   :  { %16782 = vst [vmem:[#allocation71_spill] sm:$0xff] %v13793_v5  ;;  %v13797_v50 = vpop.f32.mrf.mxu2  ;;  %v13799_v15 = vpop.f32.mrf.mxu3 }
 0x6a6   :  { %16783 = vst [vmem:[#allocation42_spill] sm:$0xff] %v13795_v45  ;;  %v13841_v45 = vadd.f32 %v13639_v38, %v13821_v55  ;;  %v13861_v38 = vadd.f32 %v13675_v12, %v13819_v7 }
 0x6a7   :  { %16784 = vst [vmem:[#allocation40_spill] sm:$0xff] %v13797_v50  ;;  %v13837_v50 = vadd.f32 %v13637_v53, %v13821_v55  ;;  %v13857_v53 = vadd.f32 %v13673_v22, %v13819_v7  ;;  %v13879_v22 = vadd.f32 %v13687_v3, %v13801_v31 }
 0x6a8   :  { %16785 = vst [vmem:[#allocation45_spill] sm:$0xff] %v13799_v15 }
 0x6a9   :  { %16792 = vst [vmem:[#allocation64_spill] sm:$0xff] %v13837_v50  ;;  %v6032_v50 = vmax.f32 %v5321_v51, 0.0 }
 0x6aa   :  { %5388 = vmatmul.bf16.gmra.mxu0 %v16788_v1  ;;  %5437 = vmatmul.bf16.gmra.mxu1 %v16788_v1  ;;  %16793 = vst [vmem:[#allocation83_spill] sm:$0xff] %v13841_v45 }
 0x6ab   :  { %5486 = vmatmul.bf16.gmra.mxu2 %v16788_v1  ;;  %5535 = vmatmul.bf16.gmra.mxu3 %v16788_v1  ;;  %v13829_v1 = vadd.f32 %v13633_v61, %v13821_v55  ;;  %v13849_v61 = vadd.f32 %v13669_v56, %v13819_v7  ;;  %16796 = vst [vmem:[#allocation93_spill] sm:$0xff] %v13857_v53  ;;  %v13863_v55 = vpop.permute.xlu1 %5038 }
 0x6ac   :  { %v13811_v16 = vpop.f32.mrf.mxu0  ;;  %v13813_v54 = vpop.f32.mrf.mxu1  ;;  %16797 = vst [vmem:[#allocation69_spill] sm:$0xff] %v13861_v38  ;;  %v13871_v56 = vadd.f32 %v13681_v46, %v13801_v31  ;;  %v13885_v11 = vadd.f32 %v13699_v63, %v13863_v55  ;;  %v13889_v46 = vadd.f32 %v13701_v40, %v13863_v55  ;;  %v13895_v3 = vadd.f32 %v13705_v9, %v13863_v55  ;;  %v13904_v63 = vld [vmem:[%s15282_s2 + $0x80] sm:$0xff] }
 0x6ad   :  { %v13815_v27 = vpop.f32.mrf.mxu2  ;;  %v13817_v21 = vpop.f32.mrf.mxu3  ;;  %16798 = vst [vmem:[#allocation47_spill] sm:$0xff] %v13863_v55  ;;  %v13899_v12 = vadd.f32 %v13707_v23, %v13863_v55  ;;  %v13922_v9 = vadd.f32 %v13713_v24, %v13809_v25  ;;  %v13932_v31 = vadd.f32 %v13717_v10, %v13809_v25  ;;  %v5220_v38 = vadd.f32 %v13727_v18, %v13803_v37 }
 0x6ae   :  { %16799 = vst [vmem:[#allocation76_spill] sm:$0xff] %v13904_v63  ;;  %v5174_v7 = vadd.f32 %v13735_v30, %v13789_v0  ;;  %v5223_v55 = vadd.f32 %v13737_v47, %v13789_v0  ;;  %v5272_v10 = vadd.f32 %v13739_v42, %v13789_v0  ;;  %v5274_v30 = vadd.f32 %v13757_v20, %v13787_v28 }
 0x6af   :  { %v5997_v18 = vmax.f32 %v13922_v9, 0.0  ;;  %v5323_v47 = vadd.f32 %v13759_v60, %v13787_v28 }
 0x6b0   :  { %v6029_v0 = vmax.f32 %v5174_v7, 0.0  ;;  %v6030_v53 = vmax.f32 %v5223_v55, 0.0  ;;  %v6031_v20 = vmax.f32 %v5272_v10, 0.0  ;;  %v13980_v7 = vadd.f32 %v13779_v29, %v13791_v34 }
 0x6b1   :  { %v6048_v42 = vmax.f32 %v5323_v47, 0.0  ;;  %v13988_v55 = vadd.f32 %v13783_v8, %v13791_v34  ;;  %v14000_v29 = vadd.f32 %v13813_v54, %v13763_v17  ;;  %v14008_v8 = vadd.f32 %v13817_v21, %v13763_v17 }
 0x6b4   :  { %v13831_v2 = vpop.f32.mrf.mxu0  ;;  %v13833_v15 = vpop.f32.mrf.mxu1 }
 0x6b5   :  { %v13843_v5 = vpop.f32.mrf.mxu2  ;;  %v13845_v39 = vpop.f32.mrf.mxu3 }
 0x6b6   :  { %16794 = vst [vmem:[#allocation33_spill] sm:$0xff] %v13845_v39  ;;  %v13926_v39 = vadd.f32 %v13715_v6, %v13809_v25  ;;  %v5171_v6 = vadd.f32 %v13725_v13, %v13803_v37  ;;  %v5176_v25 = vadd.f32 %v13753_v59, %v13787_v28  ;;  %v5225_v13 = vadd.f32 %v13755_v52, %v13787_v28 }
 0x6b7   :  { %v13964_v59 = vadd.f32 %v13729_v58, %v13803_v37  ;;  %v13968_v52 = vadd.f32 %v13731_v19, %v13803_v37  ;;  %v6047_v28 = vmax.f32 %v5274_v30, 0.0  ;;  %v13976_v58 = vadd.f32 %v13767_v57, %v13761_v14 }
 0x6b8   :  { %v5998_v45 = vmax.f32 %v13926_v39, 0.0  ;;  %v6013_v9 = vmax.f32 %v5171_v6, 0.0  ;;  %v6014_v39 = vmax.f32 %v5220_v38, 0.0  ;;  %v6045_v44 = vmax.f32 %v5176_v25, 0.0 }
 0x6b9   :  { %v6046_v60 = vmax.f32 %v5225_v13, 0.0  ;;  %v13984_v25 = vadd.f32 %v13781_v62, %v13791_v34  ;;  %v13996_v6 = vadd.f32 %v13811_v16, %v13763_v17  ;;  %v14004_v62 = vadd.f32 %v13815_v27, %v13763_v17 }
 0x6ba   :  { %5549 = vmatmul.bf16.vlgmr.msra.gmra.mxu0 %v13904_v63  ;;  %5598 = vmatmul.bf16.vlgmr.msra.gmra.mxu1 %v13904_v63  ;;  %v14024_v13 = vpack.c.bf16 %v6045_v44, %v6029_v0  ;;  %v6016_v44 = vmax.f32 %v13968_v52, 0.0  ;;  %v14047_v30 = vpack.c.bf16 %v6014_v39, %v5998_v45 }
 0x6bb   :  { %5647 = vmatmul.bf16.vlgmr.msra.gmra.mxu2 %v13904_v63  ;;  %5696 = vmatmul.bf16.vlgmr.msra.gmra.mxu3 %v13904_v63  ;;  %v14026_v21 = vpack.c.bf16 %v6046_v60, %v6030_v53 }
 0x6bc   :  { %v5190_v63 = vpop.f32.mrf.mxu0  ;;  %v5239_v23 = vpop.f32.mrf.mxu1 }
 0x6bd   :  { %v5288_v24 = vpop.f32.mrf.mxu2  ;;  %v5337_v40 = vpop.f32.mrf.mxu3  ;;  %v14011_v49 = vadd.f32 %v5190_v63, %v13743_v35  ;;  %v14014_v10 = vadd.f32 %v5239_v23, %v13743_v35  ;;  %v6015_v63 = vmax.f32 %v13964_v59, 0.0  ;;  %v14032_v23 = vld [vmem:[%s15282_s2 + $0x88] sm:$0xff]  ;;  %v16801_v47 = vld [vmem:[#allocation33_spill] sm:$0xff] }
 0x6be   :  { %v14017_v16 = vadd.f32 %v5288_v24, %v13743_v35  ;;  %v14020_v54 = vadd.f32 %v5337_v40, %v13743_v35  ;;  %16800 = vst [vmem:[#allocation18_spill] sm:$0xff] %v14032_v23  ;;  %v14036_v40 = vpack.c.bf16 %v6047_v28, %v6031_v20  ;;  %v14038_v24 = vpack.c.bf16 %v6048_v42, %v6032_v50 }
 0x6bf   :  { %v5189_v28 = vadd.f32 %v13831_v2, %v13745_v33  ;;  %v5238_v50 = vadd.f32 %v13833_v15, %v13745_v33  ;;  %v5336_v42 = vadd.f32 %v16801_v47, %v13745_v33  ;;  %v6141_v59 = vmax.f32 %v14011_v49, 0.0 }
 0x6c0   :  { %v6142_v52 = vmax.f32 %v14014_v10, 0.0  ;;  %v6144_v45 = vmax.f32 %v14020_v54, 0.0  ;;  %v16803_v54 = vmax.f32 %v13932_v31, 0.0  ;;  %v16805_v35 = vmax.f32 %v13867_v48, 0.0 }
 0x6c1   :  { %v16811_v48 = vmax.f32 %v13879_v22, 0.0  ;;  %v16819_v22 = vld [vmem:[#allocation71_spill] sm:$0xff] }
 0x6c4   :  { %v5193_v19 = vpop.f32.mrf.mxu0  ;;  %v5242_v37 = vpop.f32.mrf.mxu1 }
 0x6c5   :  { %v5291_v57 = vpop.f32.mrf.mxu2  ;;  %v5340_v38 = vpop.f32.mrf.mxu3  ;;  %v5194_v51 = vadd.f32 %v5193_v19, %v13733_v36  ;;  %v5243_v27 = vadd.f32 %v5242_v37, %v13733_v36  ;;  %v14040_v37 = vpack.c.bf16 %v6013_v9, %v5997_v18  ;;  %v5287_v18 = vadd.f32 %v13843_v5, %v13745_v33  ;;  %v16802_v19 = vld [vmem:[#allocation51_spill] sm:$0xff] }
 0x6c6   :  { %v5292_v0 = vadd.f32 %v5291_v57, %v13733_v36  ;;  %v5341_v53 = vadd.f32 %v5340_v38, %v13733_v36  ;;  %v6143_v9 = vmax.f32 %v14017_v16, 0.0  ;;  %v14067_v36 = vpack.c.bf16 %v6015_v63, %v16803_v54 }
 0x6c7   :  { %v6157_v2 = vmax.f32 %v5194_v51, 0.0  ;;  %v6158_v60 = vmax.f32 %v5243_v27, 0.0  ;;  %v16804_v51 = vmax.f32 %v13936_v26, 0.0  ;;  %v16809_v26 = vmax.f32 %v13875_v41, 0.0 }
 0x6c8   :  { %v6160_v47 = vmax.f32 %v5341_v53, 0.0  ;;  %v16815_v41 = vmax.f32 %v13829_v1, 0.0 }
 0x6c9   :  { %v14071_v27 = vpack.c.bf16 %v6016_v44, %v16804_v51  ;;  %v16810_v44 = vmax.f32 %v13895_v3, 0.0 }
 0x6ca   :  { %5554 = vmatmul.bf16.gmra.mxu0 %v14032_v23  ;;  %5603 = vmatmul.bf16.gmra.mxu1 %v14032_v23 }
 0x6cb   :  { %5652 = vmatmul.bf16.gmra.mxu2 %v14032_v23  ;;  %5701 = vmatmul.bf16.gmra.mxu3 %v14032_v23  ;;  %v6159_v23 = vmax.f32 %v5292_v0, 0.0  ;;  %v16806_v0 = vmax.f32 %v13885_v11, 0.0  ;;  %v16812_v11 = vmax.f32 %v13899_v12, 0.0  ;;  %v16820_v12 = vld [vmem:[#allocation42_spill] sm:$0xff] }
 0x6cc   :  { %v5195_v39 = vpop.f32.mrf.mxu0  ;;  %v5244_v20 = vpop.f32.mrf.mxu1 }
 0x6cd   :  { %v5196_v15 = vadd.f32 %v5195_v39, %v16802_v19  ;;  %v5245_v57 = vadd.f32 %v5244_v20, %v16802_v19  ;;  %v5293_v5 = vpop.f32.mrf.mxu2  ;;  %v5342_v38 = vpop.f32.mrf.mxu3  ;;  %v14077_v53 = vpack.c.bf16 %v16806_v0, %v16805_v35  ;;  %v14095_v35 = vpack.c.bf16 %v16812_v11, %v16811_v48 }
 0x6ce   :  { %v5294_v49 = vadd.f32 %v5293_v5, %v16802_v19  ;;  %v5343_v10 = vadd.f32 %v5342_v38, %v16802_v19  ;;  %v16807_v5 = vmax.f32 %v13871_v56, 0.0  ;;  %v14089_v38 = vpack.c.bf16 %v16810_v44, %v16809_v26 }
 0x6cf   :  { %v6173_v33 = vmax.f32 %v5196_v15, 0.0  ;;  %v6174_v16 = vmax.f32 %v5245_v57, 0.0  ;;  %v16808_v15 = vmax.f32 %v13889_v46, 0.0  ;;  %v16813_v46 = vmax.f32 %v13825_v32, 0.0  ;;  %v16821_v32 = vld [vmem:[#allocation40_spill] sm:$0xff] }
 0x6d0   :  { %v6175_v39 = vmax.f32 %v5294_v49, 0.0  ;;  %v6176_v20 = vmax.f32 %v5343_v10, 0.0  ;;  %v16814_v10 = vmax.f32 %v13849_v61, 0.0  ;;  %v6128_v0 = vmax.f32 %v5336_v42, 0.0 }
 0x6d1   :  { %v14083_v57 = vpack.c.bf16 %v16808_v15, %v16807_v5  ;;  %v6303_v31 = vpack.c.bf16 %v6173_v33, %v6157_v2  ;;  %v6304_v63 = vpack.c.bf16 %v6174_v16, %v6158_v60  ;;  %v16816_v2 = vld [vmem:[#allocation53_spill] sm:$0xff]  ;;  %v16818_v16 = vld [vmem:[#allocation60_spill] sm:$0xff]  ;;  %v6109_v26 = vmax.f32 %v13996_v6, 0.0 }
 0x6d2   :  { %v6305_v49 = vpack.c.bf16 %v6175_v39, %v6159_v23  ;;  %v6306_v56 = vpack.c.bf16 %v6176_v20, %v6160_v47  ;;  %v14101_v33 = vpack.c.bf16 %v16814_v10, %v16813_v46  ;;  %v16817_v3 = vmax.f32 %v16816_v2, 0.0  ;;  %v16822_v39 = vld [vmem:[#allocation45_spill] sm:$0xff]  ;;  %v16827_v2 = vld [vmem:[#allocation83_spill] sm:$0xff] }
 0x6d3   :  { %v5184_v54 = vadd.f32 %v16819_v22, %v16818_v16  ;;  %v5233_v51 = vadd.f32 %v16820_v12, %v16818_v16  ;;  %v6125_v23 = vmax.f32 %v5189_v28, 0.0  ;;  %v6126_v47 = vmax.f32 %v5238_v50, 0.0  ;;  %6325 = vmatpush.bf16.msra.mxu0 %v6303_v31  ;;  %6338 = vmatpush.bf16.msra.mxu1 %v6304_v63 }
 0x6d4   :  { %v14107_v60 = vpack.c.bf16 %v16817_v3, %v16815_v41  ;;  %v5282_v61 = vadd.f32 %v16821_v32, %v16818_v16  ;;  %v5331_v1 = vadd.f32 %v16822_v39, %v16818_v16  ;;  %v6127_v20 = vmax.f32 %v5287_v18, 0.0  ;;  %v14117_v5 = vpop.f32.mrf.mxu0  ;;  %v14119_v15 = vpop.f32.mrf.mxu1  ;;  %6351 = vmatpush.bf16.msra.mxu2 %v6305_v49  ;;  %6364 = vmatpush.bf16.msra.mxu3 %v6306_v56  ;;  %v16823_v49 = vld [vmem:[#allocation64_spill] sm:$0xff]  ;;  %v16825_v56 = vld [vmem:[#allocation93_spill] sm:$0xff]  ;;  %v14150_v39 = vld [vmem:[%s15282_s2 + $0x90] sm:$0xff] }
 0x6d5   :  { %v6110_v28 = vmax.f32 %v14000_v29, 0.0  ;;  %v14123_v50 = vpop.f32.mrf.mxu2  ;;  %v14125_v31 = vpop.f32.mrf.mxu3  ;;  %v6287_v63 = vpack.c.bf16 %v6141_v59, %v6125_v23  ;;  %v6288_v44 = vpack.c.bf16 %v6142_v52, %v6126_v47  ;;  %v6111_v48 = vmax.f32 %v14004_v62, 0.0  ;;  %v16829_v59 = vld [vmem:[#allocation69_spill] sm:$0xff]  ;;  %v16831_v62 = vld [vmem:[#allocation87_spill] sm:$0xff]  ;;  %16833 = vst [vmem:[#allocation66_spill] sm:$0xff] %v14150_v39 }
 0x6d6   :  { %v6112_v18 = vmax.f32 %v14008_v8, 0.0  ;;  %v6289_v42 = vpack.c.bf16 %v6143_v9, %v6127_v20  ;;  %v6290_v11 = vpack.c.bf16 %v6144_v45, %v6128_v0  ;;  %v6093_v46 = vmax.f32 %v5184_v54, 0.0  ;;  %v16832_v9 = vld [vmem:[#allocation89_spill] sm:$0xff] }
 0x6d7   :  { %v6094_v10 = vmax.f32 %v5233_v51, 0.0  ;;  %6326 = vmatpush.bf16.msra.mxu0 %v6287_v63  ;;  %6339 = vmatpush.bf16.msra.mxu1 %v6288_v44  ;;  %v16824_v6 = vmax.f32 %v16823_v49, 0.0  ;;  %v16826_v29 = vmax.f32 %v16825_v56, 0.0  ;;  %v16828_v3 = vmax.f32 %v16827_v2, 0.0 }
 0x6d8   :  { %v16830_v52 = vmax.f32 %v16829_v59, 0.0  ;;  %v5277_v8 = vadd.f32 %v16831_v62, %v13761_v14  ;;  %v5326_v45 = vadd.f32 %v16832_v9, %v13761_v14  ;;  %v6095_v54 = vmax.f32 %v5282_v61, 0.0  ;;  %6352 = vmatpush.bf16.msra.mxu2 %v6289_v42  ;;  %6365 = vmatpush.bf16.msra.mxu3 %v6290_v11 }
 0x6d9   :  { %v14133_v41 = vpack.c.bf16 %v16826_v29, %v16824_v6  ;;  %v6096_v12 = vmax.f32 %v5331_v1, 0.0  ;;  %v6077_v51 = vmax.f32 %v13980_v7, 0.0  ;;  %v6078_v23 = vmax.f32 %v13984_v25, 0.0 }
 0x6da   :  { %v14139_v22 = vpack.c.bf16 %v16830_v52, %v16828_v3  ;;  %v6271_v47 = vpack.c.bf16 %v6109_v26, %v6093_v46  ;;  %v6272_v32 = vpack.c.bf16 %v6110_v28, %v6094_v10  ;;  %5559 = vmatmul.bf16.gmra.mxu0 %v14150_v39  ;;  %5608 = vmatmul.bf16.gmra.mxu1 %v14150_v39  ;;  %v6079_v61 = vmax.f32 %v13988_v55, 0.0 }
 0x6db   :  { %v6080_v1 = vmax.f32 %v13992_v4, 0.0  ;;  %v6273_v20 = vpack.c.bf16 %v6111_v48, %v6095_v54  ;;  %v6274_v0 = vpack.c.bf16 %v6112_v18, %v6096_v12  ;;  %5657 = vmatmul.bf16.gmra.mxu2 %v14150_v39  ;;  %5706 = vmatmul.bf16.gmra.mxu3 %v14150_v39  ;;  %v6061_v7 = vmax.f32 %v13972_v43, 0.0 }
 0x6dc   :  { %v6062_v25 = vmax.f32 %v13976_v58, 0.0  ;;  %6327 = vmatpush.bf16.msra.mxu0 %v6271_v47  ;;  %6340 = vmatpush.bf16.msra.mxu1 %v6272_v32  ;;  %v6063_v26 = vmax.f32 %v5277_v8, 0.0  ;;  %v6064_v28 = vmax.f32 %v5326_v45, 0.0  ;;  %v14160_v63 = vpop.f32.mrf.mxu0  ;;  %v14162_v44 = vpop.f32.mrf.mxu1  ;;  %v14270_v45 = vld [vmem:[%s15282_s2 + $0xb0] sm:$0xff] }
 0x6dd   :  { %6353 = vmatpush.bf16.msra.mxu2 %v6273_v20  ;;  %6366 = vmatpush.bf16.msra.mxu3 %v6274_v0  ;;  %v14164_v55 = vpop.f32.mrf.mxu2  ;;  %v14166_v4 = vpop.f32.mrf.mxu3  ;;  %v6255_v48 = vpack.c.bf16 %v6077_v51, %v6061_v7  ;;  %16839 = vst [vmem:[#allocation77_spill] sm:$0xff] %v14270_v45  ;;  %v14295_v20 = vld [vmem:[%s15282_s2 + $0xb8] sm:$0xff] }
 0x6de   :  { %v6256_v18 = vpack.c.bf16 %v6078_v23, %v6062_v25  ;;  %v6257_v42 = vpack.c.bf16 %v6079_v61, %v6063_v26  ;;  %v6258_v43 = vpack.c.bf16 %v6080_v1, %v6064_v28  ;;  %16844 = vst [vmem:[#allocation5_spill] sm:$0xff] %v14295_v20  ;;  %v16845_v28 = vld [vmem:[#allocation25_spill] sm:$0xff] }
 0x6e0   :  { %6328 = vmatpush.bf16.msra.mxu0 %v6255_v48  ;;  %6341 = vmatpush.bf16.msra.mxu1 %v6256_v18  ;;  %v14311_v48 = vadd.f32 %v14117_v5, %v16845_v28  ;;  %v14315_v18 = vadd.f32 %v14119_v15, %v16845_v28 }
 0x6e1   :  { %6354 = vmatpush.bf16.msra.mxu2 %v6257_v42  ;;  %6367 = vmatpush.bf16.msra.mxu3 %v6258_v43 }
 0x6e4   :  { %6329 = vmatpush.bf16.msra.mxu0 %v14024_v13  ;;  %6342 = vmatpush.bf16.msra.mxu1 %v14026_v21  ;;  %v14170_v58 = vpop.f32.mrf.mxu0  ;;  %v14172_v11 = vpop.f32.mrf.mxu1  ;;  %v14187_v13 = vld [vmem:[%s15282_s2 + $0x98] sm:$0xff] }
 0x6e5   :  { %6355 = vmatpush.bf16.msra.mxu2 %v14036_v40  ;;  %6368 = vmatpush.bf16.msra.mxu3 %v14038_v24  ;;  %v14176_v46 = vpop.f32.mrf.mxu2  ;;  %v14178_v10 = vpop.f32.mrf.mxu3  ;;  %16834 = vst [vmem:[#allocation81_spill] sm:$0xff] %v14187_v13 }
 0x6e8   :  { %6330 = vmatpush.bf16.msra.mxu0 %v14040_v37  ;;  %6343 = vmatpush.bf16.msra.mxu1 %v14047_v30 }
 0x6e9   :  { %6356 = vmatpush.bf16.msra.mxu2 %v14067_v36  ;;  %6369 = vmatpush.bf16.msra.mxu3 %v14071_v27 }
 0x6ea   :  { %5564 = vmatmul.bf16.gmra.mxu0 %v14187_v13  ;;  %5613 = vmatmul.bf16.gmra.mxu1 %v14187_v13 }
 0x6eb   :  { %5662 = vmatmul.bf16.gmra.mxu2 %v14187_v13  ;;  %5711 = vmatmul.bf16.gmra.mxu3 %v14187_v13 }
 0x6ec   :  { %6331 = vmatpush.bf16.msra.mxu0 %v14077_v53  ;;  %6344 = vmatpush.bf16.msra.mxu1 %v14083_v57  ;;  %v14195_v36 = vpop.f32.mrf.mxu0  ;;  %v14197_v21 = vpop.f32.mrf.mxu1  ;;  %v14220_v57 = vld [vmem:[%s15282_s2 + $0xa0] sm:$0xff] }
 0x6ed   :  { %6357 = vmatpush.bf16.msra.mxu2 %v14089_v38  ;;  %6370 = vmatpush.bf16.msra.mxu3 %v14095_v35  ;;  %v14201_v40 = vpop.f32.mrf.mxu2  ;;  %v14203_v24 = vpop.f32.mrf.mxu3  ;;  %16835 = vst [vmem:[#allocation39_spill] sm:$0xff] %v14220_v57 }
 0x6f0   :  { %6332 = vmatpush.bf16.msra.mxu0 %v14101_v33  ;;  %6345 = vmatpush.bf16.msra.mxu1 %v14107_v60 }
 0x6f1   :  { %6358 = vmatpush.bf16.msra.mxu2 %v14133_v41  ;;  %6371 = vmatpush.bf16.msra.mxu3 %v14139_v22  ;;  %v14245_v41 = vld [vmem:[%s15282_s2 + $0xa8] sm:$0xff] }
 0x6f2   :  { %16836 = vst [vmem:[#allocation19_spill] sm:$0xff] %v14245_v41 }
 0x6f4   :  { %v14209_v37 = vpop.f32.mrf.mxu0  ;;  %v14211_v30 = vpop.f32.mrf.mxu1 }
 0x6f5   :  { %v14213_v27 = vpop.f32.mrf.mxu2  ;;  %v14215_v53 = vpop.f32.mrf.mxu3 }
 0x6fa   :  { %5569 = vmatmul.bf16.gmra.mxu0 %v14220_v57  ;;  %5618 = vmatmul.bf16.gmra.mxu1 %v14220_v57 }
 0x6fb   :  { %5667 = vmatmul.bf16.gmra.mxu2 %v14220_v57  ;;  %5716 = vmatmul.bf16.gmra.mxu3 %v14220_v57  ;;  %v16848_v57 = vld [vmem:[#allocation22_spill] sm:$0xff] }
 0x6fc   :  { %v14226_v38 = vpop.f32.mrf.mxu0  ;;  %v14228_v35 = vpop.f32.mrf.mxu1  ;;  %v14335_v15 = vadd.f32 %v14160_v63, %v16848_v57  ;;  %v14339_v13 = vadd.f32 %v14162_v44, %v16848_v57 }
 0x6fd   :  { %v14230_v33 = vpop.f32.mrf.mxu2  ;;  %v14232_v60 = vpop.f32.mrf.mxu3 }
 0x704   :  { %v14234_v49 = vpop.f32.mrf.mxu0  ;;  %v14236_v6 = vpop.f32.mrf.mxu1 }
 0x705   :  { %v14238_v56 = vpop.f32.mrf.mxu2  ;;  %v14240_v29 = vpop.f32.mrf.mxu3 }
 0x70a   :  { %5574 = vmatmul.bf16.gmra.mxu0 %v14245_v41  ;;  %5623 = vmatmul.bf16.gmra.mxu1 %v14245_v41 }
 0x70b   :  { %5672 = vmatmul.bf16.gmra.mxu2 %v14245_v41  ;;  %5721 = vmatmul.bf16.gmra.mxu3 %v14245_v41 }
 0x70c   :  { %v14251_v2 = vpop.f32.mrf.mxu0  ;;  %v14253_v3 = vpop.f32.mrf.mxu1 }
 0x70d   :  { %v14255_v59 = vpop.f32.mrf.mxu2  ;;  %v14257_v52 = vpop.f32.mrf.mxu3 }
 0x714   :  { %v14259_v22 = vpop.f32.mrf.mxu0  ;;  %v14261_v62 = vpop.f32.mrf.mxu1 }
 0x715   :  { %v14263_v8 = vpop.f32.mrf.mxu2  ;;  %v14265_v9 = vpop.f32.mrf.mxu3 }
 0x716   :  { %16837 = vst [vmem:[#allocation9_spill] sm:$0xff] %v14263_v8 }
 0x717   :  { %16838 = vst [vmem:[#allocation6_spill] sm:$0xff] %v14265_v9 }
 0x71a   :  { %5579 = vmatmul.bf16.gmra.mxu0 %v14270_v45  ;;  %5628 = vmatmul.bf16.gmra.mxu1 %v14270_v45 }
 0x71b   :  { %5677 = vmatmul.bf16.gmra.mxu2 %v14270_v45  ;;  %5726 = vmatmul.bf16.gmra.mxu3 %v14270_v45  ;;  %v14327_v45 = vadd.f32 %v14125_v31, %v16845_v28  ;;  %v14347_v31 = vadd.f32 %v14166_v4, %v16848_v57  ;;  %v16853_v4 = vld [vmem:[#allocation76_spill] sm:$0xff] }
 0x71c   :  { %v14276_v54 = vpop.f32.mrf.mxu0  ;;  %v14278_v12 = vpop.f32.mrf.mxu1 }
 0x71d   :  { %v14280_v51 = vpop.f32.mrf.mxu2  ;;  %v14282_v23 = vpop.f32.mrf.mxu3  ;;  %16847 = vst [vmem:[#allocation65_spill] sm:$0xff] %v14327_v45  ;;  %v16854_v45 = vld [vmem:[#allocation27_spill] sm:$0xff] }
 0x71e   :  { %16850 = vst [vmem:[#allocation20_spill] sm:$0xff] %v14347_v31  ;;  %v14401_v8 = vadd.f32 %v14209_v37, %v16854_v45  ;;  %v16855_v31 = vld [vmem:[#allocation55_spill] sm:$0xff] }
 0x724   :  { %v14284_v47 = vpop.f32.mrf.mxu0  ;;  %v14286_v32 = vpop.f32.mrf.mxu1 }
 0x725   :  { %16840 = vst [vmem:[#allocation63_spill] sm:$0xff] %v14284_v47  ;;  %v14288_v61 = vpop.f32.mrf.mxu2  ;;  %v14290_v1 = vpop.f32.mrf.mxu3 }
 0x726   :  { %16841 = vst [vmem:[#allocation70_spill] sm:$0xff] %v14286_v32 }
 0x727   :  { %16842 = vst [vmem:[#allocation38_spill] sm:$0xff] %v14288_v61 }
 0x728   :  { %16843 = vst [vmem:[#allocation12_spill] sm:$0xff] %v14290_v1 }
 0x72a   :  { %5584 = vmatmul.bf16.gmra.mxu0 %v14295_v20  ;;  %5633 = vmatmul.bf16.gmra.mxu1 %v14295_v20 }
 0x72b   :  { %5682 = vmatmul.bf16.gmra.mxu2 %v14295_v20  ;;  %5731 = vmatmul.bf16.gmra.mxu3 %v14295_v20  ;;  %v14323_v20 = vadd.f32 %v14123_v50, %v16845_v28  ;;  %v14343_v50 = vadd.f32 %v14164_v55, %v16848_v57  ;;  %v16851_v28 = vld [vmem:[#allocation72_spill] sm:$0xff]  ;;  %v16852_v57 = vld [vmem:[#allocation47_spill] sm:$0xff] }
 0x72c   :  { %v14301_v0 = vpop.f32.mrf.mxu0  ;;  %v14303_v7 = vpop.f32.mrf.mxu1  ;;  %v14351_v39 = vadd.f32 %v14170_v58, %v16851_v28  ;;  %v14355_v63 = vadd.f32 %v14172_v11, %v16851_v28  ;;  %v14359_v44 = vadd.f32 %v14176_v46, %v16851_v28  ;;  %v14363_v55 = vadd.f32 %v14178_v10, %v16851_v28 }
 0x72d   :  { %v14305_v25 = vpop.f32.mrf.mxu2  ;;  %v14307_v26 = vpop.f32.mrf.mxu3  ;;  %16846 = vst [vmem:[#allocation32_spill] sm:$0xff] %v14323_v20  ;;  %v14369_v58 = vadd.f32 %v14195_v36, %v16852_v57  ;;  %v14373_v11 = vadd.f32 %v14197_v21, %v16852_v57  ;;  %v14379_v10 = vadd.f32 %v14201_v40, %v16852_v57  ;;  %v14383_v9 = vadd.f32 %v14203_v24, %v16852_v57  ;;  %v16856_v20 = vld [vmem:[#allocation24_spill] sm:$0xff] }
 0x72e   :  { %16849 = vst [vmem:[#allocation88_spill] sm:$0xff] %v14343_v50  ;;  %v14405_v46 = vadd.f32 %v14211_v30, %v16854_v45  ;;  %v14411_v28 = vadd.f32 %v14213_v27, %v16854_v45  ;;  %v14415_v21 = vadd.f32 %v14215_v53, %v16854_v45  ;;  %v5367_v30 = vadd.f32 %v14226_v38, %v16855_v31  ;;  %v16857_v45 = vld [vmem:[#allocation80_spill] sm:$0xff] }
 0x72f   :  { %v5416_v50 = vadd.f32 %v14228_v35, %v16855_v31  ;;  %v5370_v24 = vadd.f32 %v14234_v49, %v16856_v20  ;;  %v5419_v57 = vadd.f32 %v14236_v6, %v16856_v20  ;;  %v5468_v27 = vadd.f32 %v14238_v56, %v16856_v20 }
 0x730   :  { %v5517_v53 = vadd.f32 %v14240_v29, %v16856_v20  ;;  %v5372_v1 = vadd.f32 %v14251_v2, %v16857_v45  ;;  %v5421_v38 = vadd.f32 %v14253_v3, %v16857_v45  ;;  %v6001_v35 = vmax.f32 %v14401_v8, 0.0 }
 0x731   :  { %v6002_v61 = vmax.f32 %v14405_v46, 0.0  ;;  %v5470_v49 = vadd.f32 %v14255_v59, %v16857_v45  ;;  %v5519_v6 = vadd.f32 %v14257_v52, %v16857_v45  ;;  %v14443_v2 = vadd.f32 %v14230_v33, %v16855_v31 }
 0x732   :  { %v14447_v3 = vadd.f32 %v14232_v60, %v16855_v31  ;;  %v6017_v8 = vmax.f32 %v5367_v30, 0.0  ;;  %v6018_v46 = vmax.f32 %v5416_v50, 0.0  ;;  %v6033_v20 = vmax.f32 %v5370_v24, 0.0 }
 0x733   :  { %v6034_v32 = vmax.f32 %v5419_v57, 0.0  ;;  %v6035_v59 = vmax.f32 %v5468_v27, 0.0  ;;  %v6036_v47 = vmax.f32 %v5517_v53, 0.0  ;;  %v6049_v16 = vmax.f32 %v5372_v1, 0.0 }
 0x734   :  { %v14317_v42 = vpop.f32.mrf.mxu0  ;;  %v14319_v43 = vpop.f32.mrf.mxu1  ;;  %v6050_v52 = vmax.f32 %v5421_v38, 0.0  ;;  %v6051_v45 = vmax.f32 %v5470_v49, 0.0  ;;  %v6052_v56 = vmax.f32 %v5519_v6, 0.0  ;;  %v14451_v29 = vadd.f32 %v14259_v22, %v13761_v14  ;;  %v16859_v38 = vld [vmem:[#allocation41_spill] sm:$0xff] }
 0x735   :  { %v14329_v41 = vpop.f32.mrf.mxu2  ;;  %v14331_v5 = vpop.f32.mrf.mxu3  ;;  %v14455_v33 = vadd.f32 %v14261_v62, %v13761_v14  ;;  %v14459_v50 = vadd.f32 %v14276_v54, %v13791_v34  ;;  %v14463_v57 = vadd.f32 %v14278_v12, %v13791_v34  ;;  %v14467_v1 = vadd.f32 %v14280_v51, %v13791_v34 }
 0x736   :  { %v14471_v22 = vadd.f32 %v14282_v23, %v13791_v34  ;;  %v14475_v30 = vadd.f32 %v14301_v0, %v13763_v17  ;;  %v14479_v54 = vadd.f32 %v14303_v7, %v13763_v17  ;;  %v14483_v12 = vadd.f32 %v14305_v25, %v13763_v17  ;;  %v16858_v23 = vld [vmem:[#allocation92_spill] sm:$0xff] }
 0x737   :  { %v14487_v51 = vadd.f32 %v14307_v26, %v13763_v17  ;;  %v14503_v6 = vpack.c.bf16 %v6049_v16, %v6033_v20  ;;  %v14505_v26 = vpack.c.bf16 %v6050_v52, %v6034_v32  ;;  %v16860_v17 = vld [vmem:[#allocation18_spill] sm:$0xff]  ;;  %v14521_v32 = vpack.c.bf16 %v6018_v46, %v6002_v61  ;;  %v16861_v20 = vld [vmem:[#allocation73_spill] sm:$0xff] }
 0x73a   :  { %5745 = vmatmul.bf16.vlgmr.msrb.gmra.mxu0 %v16853_v4  ;;  %5794 = vmatmul.bf16.vlgmr.msrb.gmra.mxu1 %v16853_v4 }
 0x73b   :  { %5843 = vmatmul.bf16.vlgmr.msrb.gmra.mxu2 %v16853_v4  ;;  %5892 = vmatmul.bf16.vlgmr.msrb.gmra.mxu3 %v16853_v4 }
 0x73c   :  { %v5386_v4 = vpop.f32.mrf.mxu0  ;;  %v5435_v40 = vpop.f32.mrf.mxu1 }
 0x73d   :  { %v5484_v37 = vpop.f32.mrf.mxu2  ;;  %v5533_v36 = vpop.f32.mrf.mxu3  ;;  %v14490_v27 = vadd.f32 %v5386_v4, %v16858_v23  ;;  %v14493_v53 = vadd.f32 %v5435_v40, %v16858_v23  ;;  %v6019_v4 = vmax.f32 %v14443_v2, 0.0  ;;  %v14510_v40 = vpack.c.bf16 %v6051_v45, %v6035_v59 }
 0x73e   :  { %v14496_v0 = vadd.f32 %v5484_v37, %v16858_v23  ;;  %v14499_v7 = vadd.f32 %v5533_v36, %v16858_v23  ;;  %v14512_v37 = vpack.c.bf16 %v6052_v56, %v6036_v47  ;;  %v14514_v36 = vpack.c.bf16 %v6017_v8, %v6001_v35 }
 0x73f   :  { %v5385_v45 = vadd.f32 %v14317_v42, %v16861_v20  ;;  %v5434_v47 = vadd.f32 %v14319_v43, %v16861_v20  ;;  %v5483_v35 = vadd.f32 %v14329_v41, %v16861_v20  ;;  %v5532_v56 = vadd.f32 %v14331_v5, %v16861_v20 }
 0x740   :  { %v6145_v2 = vmax.f32 %v14490_v27, 0.0  ;;  %v6148_v61 = vmax.f32 %v14499_v7, 0.0  ;;  %v16862_v7 = vmax.f32 %v14411_v28, 0.0  ;;  %v16864_v20 = vmax.f32 %v14351_v39, 0.0 }
 0x741   :  { %v16870_v39 = vmax.f32 %v14363_v55, 0.0  ;;  %v16877_v55 = vld [vmem:[#allocation63_spill] sm:$0xff] }
 0x742   :  { %v14541_v23 = vpack.c.bf16 %v6019_v4, %v16862_v7 }
 0x744   :  { %v5389_v60 = vpop.f32.mrf.mxu0  ;;  %v5438_v31 = vpop.f32.mrf.mxu1 }
 0x745   :  { %v5487_v62 = vpop.f32.mrf.mxu2  ;;  %v5536_v24 = vpop.f32.mrf.mxu3  ;;  %v5390_v49 = vadd.f32 %v5389_v60, %v16859_v38  ;;  %v5439_v25 = vadd.f32 %v5438_v31, %v16859_v38  ;;  %v6020_v60 = vmax.f32 %v14447_v3, 0.0  ;;  %v6146_v3 = vmax.f32 %v14493_v53, 0.0 }
 0x746   :  { %v5488_v31 = vadd.f32 %v5487_v62, %v16859_v38  ;;  %v5537_v16 = vadd.f32 %v5536_v24, %v16859_v38 }
 0x747   :  { %v6161_v42 = vmax.f32 %v5390_v49, 0.0  ;;  %v6162_v59 = vmax.f32 %v5439_v25, 0.0  ;;  %v16863_v49 = vmax.f32 %v14415_v21, 0.0  ;;  %v16868_v21 = vmax.f32 %v14359_v44, 0.0 }
 0x748   :  { %v6163_v24 = vmax.f32 %v5488_v31, 0.0  ;;  %v6164_v5 = vmax.f32 %v5537_v16, 0.0  ;;  %v16865_v31 = vmax.f32 %v14369_v58, 0.0  ;;  %v16871_v58 = vmax.f32 %v14383_v9, 0.0  ;;  %v16878_v9 = vld [vmem:[#allocation70_spill] sm:$0xff] }
 0x749   :  { %v14545_v25 = vpack.c.bf16 %v6020_v60, %v16863_v49  ;;  %v16869_v60 = vmax.f32 %v14379_v10, 0.0  ;;  %v16874_v44 = vmax.f32 %v14315_v18, 0.0  ;;  %v16875_v10 = vmax.f32 %v14339_v13, 0.0  ;;  %v16880_v49 = vld [vmem:[#allocation12_spill] sm:$0xff] }
 0x74a   :  { %5750 = vmatmul.bf16.gmra.mxu0 %v16860_v17  ;;  %5799 = vmatmul.bf16.gmra.mxu1 %v16860_v17  ;;  %v14551_v16 = vpack.c.bf16 %v16865_v31, %v16864_v20  ;;  %v14569_v20 = vpack.c.bf16 %v16871_v58, %v16870_v39  ;;  %v6132_v13 = vmax.f32 %v5532_v56, 0.0 }
 0x74b   :  { %5848 = vmatmul.bf16.gmra.mxu2 %v16860_v17  ;;  %5897 = vmatmul.bf16.gmra.mxu3 %v16860_v17  ;;  %v6147_v17 = vmax.f32 %v14496_v0, 0.0 }
 0x74c   :  { %v5391_v8 = vpop.f32.mrf.mxu0  ;;  %v5440_v46 = vpop.f32.mrf.mxu1 }
 0x74d   :  { %v5392_v43 = vadd.f32 %v5391_v8, %v16802_v19  ;;  %v5441_v52 = vadd.f32 %v5440_v46, %v16802_v19  ;;  %v5489_v41 = vpop.f32.mrf.mxu2  ;;  %v5538_v62 = vpop.f32.mrf.mxu3 }
 0x74e   :  { %v5490_v27 = vadd.f32 %v5489_v41, %v16802_v19  ;;  %v5539_v53 = vadd.f32 %v5538_v62, %v16802_v19  ;;  %v16866_v41 = vmax.f32 %v14355_v63, 0.0  ;;  %v14563_v62 = vpack.c.bf16 %v16869_v60, %v16868_v21 }
 0x74f   :  { %v6177_v38 = vmax.f32 %v5392_v43, 0.0  ;;  %v6178_v0 = vmax.f32 %v5441_v52, 0.0  ;;  %v16867_v43 = vmax.f32 %v14373_v11, 0.0  ;;  %v16872_v11 = vmax.f32 %v14311_v48, 0.0  ;;  %v16879_v48 = vld [vmem:[#allocation38_spill] sm:$0xff] }
 0x750   :  { %v6179_v8 = vmax.f32 %v5490_v27, 0.0  ;;  %v6180_v46 = vmax.f32 %v5539_v53, 0.0  ;;  %v16873_v53 = vmax.f32 %v14335_v15, 0.0  ;;  %v6115_v21 = vmax.f32 %v14483_v12, 0.0  ;;  %v16889_v12 = vld [vmem:[#allocation9_spill] sm:$0xff] }
 0x751   :  { %v14557_v52 = vpack.c.bf16 %v16867_v43, %v16866_v41  ;;  %v6307_v28 = vpack.c.bf16 %v6177_v38, %v6161_v42  ;;  %v6308_v4 = vpack.c.bf16 %v6178_v0, %v6162_v59  ;;  %v14581_v42 = vpack.c.bf16 %v16875_v10, %v16874_v44  ;;  %v16876_v59 = vld [vmem:[#allocation60_spill] sm:$0xff] }
 0x752   :  { %v6309_v27 = vpack.c.bf16 %v6179_v8, %v6163_v24  ;;  %v6310_v63 = vpack.c.bf16 %v6180_v46, %v6164_v5  ;;  %v14575_v38 = vpack.c.bf16 %v16873_v53, %v16872_v11  ;;  %v5380_v0 = vadd.f32 %v16877_v55, %v16876_v59  ;;  %v16885_v53 = vld [vmem:[#allocation65_spill] sm:$0xff] }
 0x753   :  { %v5429_v7 = vadd.f32 %v16878_v9, %v16876_v59  ;;  %v6129_v24 = vmax.f32 %v5385_v45, 0.0  ;;  %v6130_v5 = vmax.f32 %v5434_v47, 0.0  ;;  %6377 = vmatpush.bf16.msrb.mxu0 %v6307_v28  ;;  %6390 = vmatpush.bf16.msrb.mxu1 %v6308_v4  ;;  %v5478_v15 = vadd.f32 %v16879_v48, %v16876_v59  ;;  %v16891_v48 = vld [vmem:[#allocation66_spill] sm:$0xff] }
 0x754   :  { %v5527_v18 = vadd.f32 %v16880_v49, %v16876_v59  ;;  %v6131_v8 = vmax.f32 %v5483_v35, 0.0  ;;  %v14591_v46 = vpop.f32.mrf.mxu0  ;;  %v14593_v31 = vpop.f32.mrf.mxu1  ;;  %6403 = vmatpush.bf16.msrb.mxu2 %v6309_v27  ;;  %6416 = vmatpush.bf16.msrb.mxu3 %v6310_v63  ;;  %v6113_v41 = vmax.f32 %v14475_v30, 0.0  ;;  %v6114_v45 = vmax.f32 %v14479_v54, 0.0  ;;  %v16881_v27 = vld [vmem:[#allocation32_spill] sm:$0xff] }
 0x755   :  { %v14597_v47 = vpop.f32.mrf.mxu2  ;;  %v14599_v43 = vpop.f32.mrf.mxu3  ;;  %v6291_v28 = vpack.c.bf16 %v6145_v2, %v6129_v24  ;;  %v6292_v4 = vpack.c.bf16 %v6146_v3, %v6130_v5  ;;  %v6116_v35 = vmax.f32 %v14487_v51, 0.0  ;;  %v6294_v60 = vpack.c.bf16 %v6148_v61, %v6132_v13  ;;  %v16883_v63 = vld [vmem:[#allocation88_spill] sm:$0xff] }
 0x756   :  { %v6293_v56 = vpack.c.bf16 %v6147_v17, %v6131_v8  ;;  %v6097_v39 = vmax.f32 %v5380_v0, 0.0  ;;  %v6098_v58 = vmax.f32 %v5429_v7, 0.0  ;;  %v16882_v30 = vmax.f32 %v16881_v27, 0.0  ;;  %v16887_v2 = vld [vmem:[#allocation20_spill] sm:$0xff]  ;;  %v16890_v17 = vld [vmem:[#allocation6_spill] sm:$0xff] }
 0x757   :  { %6378 = vmatpush.bf16.msrb.mxu0 %v6291_v28  ;;  %6391 = vmatpush.bf16.msrb.mxu1 %v6292_v4  ;;  %v16884_v54 = vmax.f32 %v16883_v63, 0.0  ;;  %v16886_v44 = vmax.f32 %v16885_v53, 0.0  ;;  %v16888_v3 = vmax.f32 %v16887_v2, 0.0  ;;  %v5473_v51 = vadd.f32 %v16889_v12, %v13761_v14 }
 0x758   :  { %v5522_v61 = vadd.f32 %v16890_v17, %v13761_v14  ;;  %v6099_v55 = vmax.f32 %v5478_v15, 0.0  ;;  %v6100_v0 = vmax.f32 %v5527_v18, 0.0  ;;  %6404 = vmatpush.bf16.msrb.mxu2 %v6293_v56  ;;  %6417 = vmatpush.bf16.msrb.mxu3 %v6294_v60  ;;  %v6081_v9 = vmax.f32 %v14459_v50, 0.0  ;;  %v16897_v17 = vld [vmem:[#allocation77_spill] sm:$0xff] }
 0x759   :  { %v14607_v11 = vpack.c.bf16 %v16884_v54, %v16882_v30  ;;  %v14613_v10 = vpack.c.bf16 %v16888_v3, %v16886_v44  ;;  %v6082_v7 = vmax.f32 %v14463_v57, 0.0  ;;  %v6275_v24 = vpack.c.bf16 %v6113_v41, %v6097_v39  ;;  %v16894_v54 = vld [vmem:[#allocation19_spill] sm:$0xff] }
 0x75a   :  { %v6276_v5 = vpack.c.bf16 %v6114_v45, %v6098_v58  ;;  %5755 = vmatmul.bf16.gmra.mxu0 %v16891_v48  ;;  %5804 = vmatmul.bf16.gmra.mxu1 %v16891_v48  ;;  %v6083_v49 = vmax.f32 %v14467_v1, 0.0  ;;  %v6084_v8 = vmax.f32 %v14471_v22, 0.0  ;;  %v6277_v13 = vpack.c.bf16 %v6115_v21, %v6099_v55 }
 0x75b   :  { %v6278_v28 = vpack.c.bf16 %v6116_v35, %v6100_v0  ;;  %5853 = vmatmul.bf16.gmra.mxu2 %v16891_v48  ;;  %5902 = vmatmul.bf16.gmra.mxu3 %v16891_v48  ;;  %v6065_v50 = vmax.f32 %v14451_v29, 0.0  ;;  %v6066_v57 = vmax.f32 %v14455_v33, 0.0  ;;  %v6067_v15 = vmax.f32 %v5473_v51, 0.0 }
 0x75c   :  { %6379 = vmatpush.bf16.msrb.mxu0 %v6275_v24  ;;  %6392 = vmatpush.bf16.msrb.mxu1 %v6276_v5  ;;  %v6068_v18 = vmax.f32 %v5522_v61, 0.0  ;;  %v14629_v41 = vpop.f32.mrf.mxu0  ;;  %v14631_v45 = vpop.f32.mrf.mxu1 }
 0x75d   :  { %6405 = vmatpush.bf16.msrb.mxu2 %v6277_v13  ;;  %6418 = vmatpush.bf16.msrb.mxu3 %v6278_v28  ;;  %v14633_v1 = vpop.f32.mrf.mxu2  ;;  %v14635_v22 = vpop.f32.mrf.mxu3  ;;  %v6259_v4 = vpack.c.bf16 %v6081_v9, %v6065_v50  ;;  %v6260_v21 = vpack.c.bf16 %v6082_v7, %v6066_v57  ;;  %v6261_v35 = vpack.c.bf16 %v6083_v49, %v6067_v15  ;;  %v16899_v49 = vld [vmem:[#allocation5_spill] sm:$0xff] }
 0x75e   :  { %v6262_v29 = vpack.c.bf16 %v6084_v8, %v6068_v18  ;;  %v16900_v57 = vld [vmem:[#allocation25_spill] sm:$0xff] }
 0x75f   :  { %v14755_v15 = vadd.f32 %v14591_v46, %v16900_v57  ;;  %v14759_v18 = vadd.f32 %v14593_v31, %v16900_v57  ;;  %v16905_v31 = vld [vmem:[#allocation22_spill] sm:$0xff] }
 0x760   :  { %6380 = vmatpush.bf16.msrb.mxu0 %v6259_v4  ;;  %6393 = vmatpush.bf16.msrb.mxu1 %v6260_v21 }
 0x761   :  { %6406 = vmatpush.bf16.msrb.mxu2 %v6261_v35  ;;  %6419 = vmatpush.bf16.msrb.mxu3 %v6262_v29  ;;  %16901 = vst [vmem:[#allocation61_spill] sm:$0xff] %v14755_v15  ;;  %v14768_v29 = vadd.f32 %v14597_v47, %v16900_v57  ;;  %v14788_v47 = vadd.f32 %v14633_v1, %v16905_v31 }
 0x762   :  { %16902 = vst [vmem:[#allocation7_spill] sm:$0xff] %v14759_v18 }
 0x763   :  { %16903 = vst [vmem:[#allocation86_spill] sm:$0xff] %v14768_v29  ;;  %v16915_v29 = vld [vmem:[#allocation24_spill] sm:$0xff] }
 0x764   :  { %6381 = vmatpush.bf16.msrb.mxu0 %v14503_v6  ;;  %6394 = vmatpush.bf16.msrb.mxu1 %v14505_v26  ;;  %v14639_v33 = vpop.f32.mrf.mxu0  ;;  %v14641_v56 = vpop.f32.mrf.mxu1  ;;  %v16892_v6 = vld [vmem:[#allocation81_spill] sm:$0xff]  ;;  %16908 = vst [vmem:[#allocation26_spill] sm:$0xff] %v14788_v47 }
 0x765   :  { %6407 = vmatpush.bf16.msrb.mxu2 %v14510_v40  ;;  %6420 = vmatpush.bf16.msrb.mxu3 %v14512_v37  ;;  %v14645_v60 = vpop.f32.mrf.mxu2  ;;  %v14647_v39 = vpop.f32.mrf.mxu3 }
 0x768   :  { %6382 = vmatpush.bf16.msrb.mxu0 %v14514_v36  ;;  %6395 = vmatpush.bf16.msrb.mxu1 %v14521_v32 }
 0x769   :  { %6408 = vmatpush.bf16.msrb.mxu2 %v14541_v23  ;;  %6421 = vmatpush.bf16.msrb.mxu3 %v14545_v25 }
 0x76a   :  { %5760 = vmatmul.bf16.gmra.mxu0 %v16892_v6  ;;  %5809 = vmatmul.bf16.gmra.mxu1 %v16892_v6 }
 0x76b   :  { %5858 = vmatmul.bf16.gmra.mxu2 %v16892_v6  ;;  %5907 = vmatmul.bf16.gmra.mxu3 %v16892_v6  ;;  %v14772_v6 = vadd.f32 %v14599_v43, %v16900_v57  ;;  %v14792_v43 = vadd.f32 %v14635_v22, %v16905_v31  ;;  %v6189_v22 = vld [vmem:[%s15283_s3] sm:$0xff]  ;;  %s6873_s3 = smov [#allocation2]  }
 0x76c   :  { %6383 = vmatpush.bf16.msrb.mxu0 %v14551_v16  ;;  %6396 = vmatpush.bf16.msrb.mxu1 %v14557_v52  ;;  %v14659_v26 = vpop.f32.mrf.mxu0  ;;  %v14661_v40 = vpop.f32.mrf.mxu1  ;;  %v16893_v52 = vld [vmem:[#allocation39_spill] sm:$0xff]  ;;  %s6554_s17 = sshll.u32 %s6873_s3, 4  ;;  %s6555_s17 = int_to_ptr.vmem [resolvable:$true] %s6554_s17 }
 0x76d   :  { %6409 = vmatpush.bf16.msrb.mxu2 %v14563_v62  ;;  %6422 = vmatpush.bf16.msrb.mxu3 %v14569_v20  ;;  %v14665_v23 = vpop.f32.mrf.mxu2  ;;  %v14667_v37 = vpop.f32.mrf.mxu3  ;;  %16904 = vst [vmem:[#allocation74_spill] sm:$0xff] %v14772_v6 }
 0x76e   :  { %16909 = vst [vmem:[#allocation79_spill] sm:$0xff] %v14792_v43 }
 0x770   :  { %6384 = vmatpush.bf16.msrb.mxu0 %v14575_v38  ;;  %6397 = vmatpush.bf16.msrb.mxu1 %v14581_v42 }
 0x771   :  { %6410 = vmatpush.bf16.msrb.mxu2 %v14607_v11  ;;  %6423 = vmatpush.bf16.msrb.mxu3 %v14613_v10 }
 0x774   :  { %v14673_v36 = vpop.f32.mrf.mxu0  ;;  %v14675_v32 = vpop.f32.mrf.mxu1 }
 0x775   :  { %v14677_v25 = vpop.f32.mrf.mxu2  ;;  %v14679_v16 = vpop.f32.mrf.mxu3 }
 0x77a   :  { %5765 = vmatmul.bf16.gmra.mxu0 %v16893_v52  ;;  %5814 = vmatmul.bf16.gmra.mxu1 %v16893_v52 }
 0x77b   :  { %5863 = vmatmul.bf16.gmra.mxu2 %v16893_v52  ;;  %5912 = vmatmul.bf16.gmra.mxu3 %v16893_v52 }
 0x77c   :  { %v14685_v62 = vpop.f32.mrf.mxu0  ;;  %v14687_v20 = vpop.f32.mrf.mxu1 }
 0x77d   :  { %v14689_v38 = vpop.f32.mrf.mxu2  ;;  %v14691_v42 = vpop.f32.mrf.mxu3 }
 0x784   :  { %v14693_v58 = vpop.f32.mrf.mxu0  ;;  %v14695_v27 = vpop.f32.mrf.mxu1 }
 0x785   :  { %v14697_v30 = vpop.f32.mrf.mxu2  ;;  %v14699_v63 = vpop.f32.mrf.mxu3 }
 0x78a   :  { %5770 = vmatmul.bf16.gmra.mxu0 %v16894_v54  ;;  %5819 = vmatmul.bf16.gmra.mxu1 %v16894_v54 }
 0x78b   :  { %5868 = vmatmul.bf16.gmra.mxu2 %v16894_v54  ;;  %5917 = vmatmul.bf16.gmra.mxu3 %v16894_v54  ;;  %v14780_v54 = vadd.f32 %v14629_v41, %v16905_v31 }
 0x78c   :  { %v14705_v11 = vpop.f32.mrf.mxu0  ;;  %v14707_v53 = vpop.f32.mrf.mxu1 }
 0x78d   :  { %v14709_v44 = vpop.f32.mrf.mxu2  ;;  %v14711_v2 = vpop.f32.mrf.mxu3  ;;  %16906 = vst [vmem:[#allocation23_spill] sm:$0xff] %v14780_v54 }
 0x794   :  { %v14713_v3 = vpop.f32.mrf.mxu0  ;;  %v14715_v10 = vpop.f32.mrf.mxu1 }
 0x795   :  { %v14717_v12 = vpop.f32.mrf.mxu2  ;;  %v14719_v51 = vpop.f32.mrf.mxu3 }
 0x796   :  { %16895 = vst [vmem:[#allocation57_spill] sm:$0xff] %v14717_v12  ;;  %v16913_v12 = vld [vmem:[#allocation27_spill] sm:$0xff] }
 0x797   :  { %16896 = vst [vmem:[#allocation84_spill] sm:$0xff] %v14719_v51  ;;  %v14856_v43 = vadd.f32 %v14677_v25, %v16913_v12  ;;  %v5566_v51 = vadd.f32 %v14693_v58, %v16915_v29  ;;  %v5664_v25 = vadd.f32 %v14697_v30, %v16915_v29  ;;  %v14894_v30 = vadd.f32 %v14713_v3, %v13761_v14 }
 0x79a   :  { %5775 = vmatmul.bf16.gmra.mxu0 %v16897_v17  ;;  %5824 = vmatmul.bf16.gmra.mxu1 %v16897_v17 }
 0x79b   :  { %5873 = vmatmul.bf16.gmra.mxu2 %v16897_v17  ;;  %5922 = vmatmul.bf16.gmra.mxu3 %v16897_v17  ;;  %v14784_v17 = vadd.f32 %v14631_v45, %v16905_v31 }
 0x79c   :  { %v14725_v61 = vpop.f32.mrf.mxu0  ;;  %v14727_v55 = vpop.f32.mrf.mxu1 }
 0x79d   :  { %v14729_v0 = vpop.f32.mrf.mxu2  ;;  %v14731_v9 = vpop.f32.mrf.mxu3  ;;  %16907 = vst [vmem:[#allocation78_spill] sm:$0xff] %v14784_v17 }
 0x79e   :  { %v14914_v3 = vadd.f32 %v14731_v9, %v13791_v34 }
 0x7a4   :  { %v14733_v7 = vpop.f32.mrf.mxu0  ;;  %v14735_v24 = vpop.f32.mrf.mxu1 }
 0x7a5   :  { %v14737_v5 = vpop.f32.mrf.mxu2  ;;  %v14739_v48 = vpop.f32.mrf.mxu3 }
 0x7a6   :  { %16898 = vst [vmem:[#allocation31_spill] sm:$0xff] %v14739_v48 }
 0x7aa   :  { %5780 = vmatmul.bf16.gmra.mxu0 %v16899_v49  ;;  %5829 = vmatmul.bf16.gmra.mxu1 %v16899_v49 }
 0x7ab   :  { %5878 = vmatmul.bf16.gmra.mxu2 %v16899_v49  ;;  %5927 = vmatmul.bf16.gmra.mxu3 %v16899_v49  ;;  %v16910_v49 = vld [vmem:[#allocation72_spill] sm:$0xff] }
 0x7ac   :  { %v14745_v8 = vpop.f32.mrf.mxu0  ;;  %v14747_v13 = vpop.f32.mrf.mxu1  ;;  %v14796_v35 = vadd.f32 %v14639_v33, %v16910_v49  ;;  %v14800_v41 = vadd.f32 %v14641_v56, %v16910_v49  ;;  %v14804_v45 = vadd.f32 %v14645_v60, %v16910_v49  ;;  %v14808_v1 = vadd.f32 %v14647_v39, %v16910_v49  ;;  %v16911_v33 = vld [vmem:[#allocation47_spill] sm:$0xff] }
 0x7ad   :  { %v14749_v28 = vpop.f32.mrf.mxu2  ;;  %v14751_v50 = vpop.f32.mrf.mxu3  ;;  %v14816_v57 = vadd.f32 %v14659_v26, %v16911_v33  ;;  %v14820_v56 = vadd.f32 %v14661_v40, %v16911_v33  ;;  %v14822_v60 = vpack.c.bf16 %v6189_v22, %v6189_v22  ;;  %v14828_v49 = vadd.f32 %v14665_v23, %v16911_v33 }
 0x7ae   :  { %v14832_v31 = vadd.f32 %v14667_v37, %v16911_v33  ;;  %v5561_v26 = vadd.f32 %v14673_v36, %v16913_v12  ;;  %v5610_v39 = vadd.f32 %v14675_v32, %v16913_v12  ;;  %v14860_v40 = vadd.f32 %v14679_v16, %v16913_v12  ;;  %v16914_v36 = vld [vmem:[#allocation55_spill] sm:$0xff]  ;;  %v16916_v12 = vld [vmem:[#allocation80_spill] sm:$0xff] }
 0x7af   :  { %16912 = vst [vmem:[#allocation21_spill] sm:$0xff] %v14822_v60  ;;  %v5563_v47 = vadd.f32 %v14685_v62, %v16914_v36  ;;  %v5612_v32 = vadd.f32 %v14687_v20, %v16914_v36  ;;  %v5615_v37 = vadd.f32 %v14695_v27, %v16915_v29  ;;  %v5713_v16 = vadd.f32 %v14699_v63, %v16915_v29 }
 0x7b0   :  { %v5568_v17 = vadd.f32 %v14705_v11, %v16916_v12  ;;  %v5617_v62 = vadd.f32 %v14707_v53, %v16916_v12  ;;  %v6005_v18 = vmax.f32 %v5561_v26, 0.0  ;;  %v6006_v20 = vmax.f32 %v5610_v39, 0.0 }
 0x7b1   :  { %v5666_v58 = vadd.f32 %v14709_v44, %v16916_v12  ;;  %v5715_v27 = vadd.f32 %v14711_v2, %v16916_v12  ;;  %v14886_v63 = vadd.f32 %v14689_v38, %v16914_v36  ;;  %v14890_v11 = vadd.f32 %v14691_v42, %v16914_v36 }
 0x7b2   :  { %v6021_v53 = vmax.f32 %v5563_v47, 0.0  ;;  %v6022_v39 = vmax.f32 %v5612_v32, 0.0  ;;  %v6037_v26 = vmax.f32 %v5566_v51, 0.0  ;;  %v6038_v29 = vmax.f32 %v5615_v37, 0.0 }
 0x7b3   :  { %v6039_v44 = vmax.f32 %v5664_v25, 0.0  ;;  %v6040_v54 = vmax.f32 %v5713_v16, 0.0  ;;  %v6053_v15 = vmax.f32 %v5568_v17, 0.0  ;;  %v6054_v2 = vmax.f32 %v5617_v62, 0.0  ;;  %v16918_v16 = vld [vmem:[#allocation73_spill] sm:$0xff]  ;;  %v16919_v62 = vld [vmem:[#allocation92_spill] sm:$0xff] }
 0x7b4   :  { %v14761_v4 = vpop.f32.mrf.mxu0  ;;  %v14763_v21 = vpop.f32.mrf.mxu1  ;;  %v6055_v12 = vmax.f32 %v5666_v58, 0.0  ;;  %v6056_v48 = vmax.f32 %v5715_v27, 0.0  ;;  %v14898_v38 = vadd.f32 %v14715_v10, %v13761_v14  ;;  %v14902_v51 = vadd.f32 %v14725_v61, %v13791_v34 }
 0x7b5   :  { %v14774_v46 = vpop.f32.mrf.mxu2  ;;  %v14776_v52 = vpop.f32.mrf.mxu3  ;;  %v14906_v17 = vadd.f32 %v14727_v55, %v13791_v34  ;;  %v14910_v47 = vadd.f32 %v14729_v0, %v13791_v34  ;;  %v14918_v32 = vadd.f32 %v14733_v7, %v16876_v59  ;;  %v14922_v61 = vadd.f32 %v14735_v24, %v16876_v59  ;;  %v16917_v0 = vld [vmem:[#allocation43_spill] sm:$0xff] }
 0x7b6   :  { %v14926_v55 = vadd.f32 %v14737_v5, %v16876_v59  ;;  %v14930_v25 = vadd.f32 %v14745_v8, %v16917_v0  ;;  %v14934_v9 = vadd.f32 %v14747_v13, %v16917_v0  ;;  %v14938_v7 = vadd.f32 %v14749_v28, %v16917_v0 }
 0x7b7   :  { %v14942_v24 = vadd.f32 %v14751_v50, %v16917_v0  ;;  %v14946_v5 = vadd.f32 %v14761_v4, %v16918_v16  ;;  %v14954_v13 = vpack.c.bf16 %v6053_v15, %v6037_v26  ;;  %v14956_v27 = vpack.c.bf16 %v6054_v2, %v6038_v29 }
 0x7b8   :  { %v14958_v28 = vpack.c.bf16 %v6055_v12, %v6039_v44  ;;  %v14960_v34 = vpack.c.bf16 %v6056_v48, %v6040_v54  ;;  %v14962_v50 = vpack.c.bf16 %v6021_v53, %v6005_v18  ;;  %v14964_v0 = vpack.c.bf16 %v6022_v39, %v6006_v20  ;;  %v16922_v18 = vld [vmem:[#allocation41_spill] sm:$0xff] }
 0x7b9   :  { %v6023_v4 = vmax.f32 %v14886_v63, 0.0  ;;  %v6024_v12 = vmax.f32 %v14890_v11, 0.0  ;;  %v5679_v48 = vadd.f32 %v14774_v46, %v16918_v16  ;;  %v5728_v54 = vadd.f32 %v14776_v52, %v16918_v16 }
 0x7ba   :  { %6333 = vmatmul.bf16.vlgmr.msra.gmra.mxu0 %v14822_v60  ;;  %6346 = vmatmul.bf16.vlgmr.msra.gmra.mxu1 %v14822_v60  ;;  %16920 = vst [vmem:[#allocation14_spill] sm:$0xff] %v14962_v50 }
 0x7bb   :  { %6359 = vmatmul.bf16.vlgmr.msra.gmra.mxu2 %v14822_v60  ;;  %6372 = vmatmul.bf16.vlgmr.msra.gmra.mxu3 %v14822_v60  ;;  %16921 = vst [vmem:[#allocation13_spill] sm:$0xff] %v14964_v0  ;;  %v16923_v0 = vmax.f32 %v14856_v43, 0.0 }
 0x7bc   :  { %v5582_v33 = vpop.f32.mrf.mxu0  ;;  %v5631_v23 = vpop.f32.mrf.mxu1 }
 0x7bd   :  { %v5680_v22 = vpop.f32.mrf.mxu2  ;;  %v5729_v6 = vpop.f32.mrf.mxu3  ;;  %v14949_v58 = vadd.f32 %v5582_v33, %v16919_v62  ;;  %v14952_v8 = vadd.f32 %v5631_v23, %v16919_v62  ;;  %v14969_v33 = vadd.f32 %v14763_v21, %v16918_v16  ;;  %v15001_v50 = vpack.c.bf16 %v6023_v4, %v16923_v0 }
 0x7be   :  { %v14972_v23 = vadd.f32 %v5680_v22, %v16919_v62  ;;  %v14975_v15 = vadd.f32 %v5729_v6, %v16919_v62  ;;  %v6133_v6 = vmax.f32 %v14946_v5, 0.0  ;;  %v16930_v0 = vmax.f32 %v14828_v49, 0.0 }
 0x7bf   :  { %v6149_v46 = vmax.f32 %v14949_v58, 0.0  ;;  %v6150_v53 = vmax.f32 %v14952_v8, 0.0  ;;  %v6134_v43 = vmax.f32 %v14969_v33, 0.0 }
 0x7c0   :  { %v6151_v2 = vmax.f32 %v14972_v23, 0.0  ;;  %v6152_v52 = vmax.f32 %v14975_v15, 0.0  ;;  %v16924_v23 = vmax.f32 %v14860_v40, 0.0  ;;  %v16929_v40 = vmax.f32 %v14804_v45, 0.0 }
 0x7c1   :  { %v6135_v45 = vmax.f32 %v5679_v48, 0.0  ;;  %v6119_v48 = vmax.f32 %v14938_v7, 0.0 }
 0x7c2   :  { %v15005_v15 = vpack.c.bf16 %v6024_v12, %v16924_v23  ;;  %v16935_v12 = vld [vmem:[#allocation23_spill] sm:$0xff] }
 0x7c4   :  { %v5585_v42 = vpop.f32.mrf.mxu0  ;;  %v5634_v36 = vpop.f32.mrf.mxu1 }
 0x7c5   :  { %v5683_v10 = vpop.f32.mrf.mxu2  ;;  %v5732_v37 = vpop.f32.mrf.mxu3  ;;  %v5586_v29 = vadd.f32 %v5585_v42, %v16922_v18  ;;  %v5635_v21 = vadd.f32 %v5634_v36, %v16922_v18 }
 0x7c6   :  { %v5684_v22 = vadd.f32 %v5683_v10, %v16922_v18  ;;  %v5733_v20 = vadd.f32 %v5732_v37, %v16922_v18 }
 0x7c7   :  { %v6165_v37 = vmax.f32 %v5586_v29, 0.0  ;;  %v6166_v5 = vmax.f32 %v5635_v21, 0.0  ;;  %v16925_v29 = vmax.f32 %v14796_v35, 0.0  ;;  %v16926_v21 = vmax.f32 %v14816_v57, 0.0 }
 0x7c8   :  { %v6167_v18 = vmax.f32 %v5684_v22, 0.0  ;;  %v6168_v8 = vmax.f32 %v5733_v20, 0.0  ;;  %v16927_v20 = vmax.f32 %v14800_v41, 0.0  ;;  %v16931_v57 = vmax.f32 %v14808_v1, 0.0  ;;  %v16933_v41 = vld [vmem:[#allocation61_spill] sm:$0xff]  ;;  %v16938_v1 = vld [vmem:[#allocation7_spill] sm:$0xff] }
 0x7c9   :  { %v15011_v22 = vpack.c.bf16 %v16926_v21, %v16925_v29  ;;  %v16932_v35 = vmax.f32 %v14832_v31, 0.0  ;;  %v16940_v31 = vld [vmem:[#allocation78_spill] sm:$0xff]  ;;  %v6295_v29 = vpack.c.bf16 %v6149_v46, %v6133_v6  ;;  %v6296_v21 = vpack.c.bf16 %v6150_v53, %v6134_v43  ;;  %v16948_v53 = vld [vmem:[#allocation79_spill] sm:$0xff] }
 0x7ca   :  { %6385 = vmatmul.bf16.vlgmr.msrb.gmra.mxu0 %v14822_v60  ;;  %6398 = vmatmul.bf16.vlgmr.msrb.gmra.mxu1 %v14822_v60  ;;  %v16946_v6 = vld [vmem:[#allocation74_spill] sm:$0xff]  ;;  %v16949_v7 = vmax.f32 %v16948_v53, 0.0 }
 0x7cb   :  { %6411 = vmatmul.bf16.vlgmr.msrb.gmra.mxu2 %v14822_v60  ;;  %6424 = vmatmul.bf16.vlgmr.msrb.gmra.mxu3 %v14822_v60  ;;  %v15030_v4 = vpack.c.bf16 %v16932_v35, %v16931_v57  ;;  %v16947_v46 = vmax.f32 %v16946_v6, 0.0 }
 0x7cc   :  { %v5587_v63 = vpop.f32.mrf.mxu0  ;;  %v5636_v11 = vpop.f32.mrf.mxu1 }
 0x7cd   :  { %v5588_v36 = vadd.f32 %v5587_v63, %v16802_v19  ;;  %v5637_v39 = vadd.f32 %v5636_v11, %v16802_v19  ;;  %v5685_v26 = vpop.f32.mrf.mxu2  ;;  %v5734_v44 = vpop.f32.mrf.mxu3  ;;  %v15062_v43 = vpack.c.bf16 %v16949_v7, %v16947_v46 }
 0x7ce   :  { %v5686_v42 = vadd.f32 %v5685_v26, %v16802_v19  ;;  %v5735_v10 = vadd.f32 %v5734_v44, %v16802_v19 }
 0x7cf   :  { %v6181_v62 = vmax.f32 %v5588_v36, 0.0  ;;  %v6182_v58 = vmax.f32 %v5637_v39, 0.0 }
 0x7d0   :  { %v6183_v16 = vmax.f32 %v5686_v42, 0.0  ;;  %v6184_v63 = vmax.f32 %v5735_v10, 0.0  ;;  %v6136_v42 = vmax.f32 %v5728_v54, 0.0  ;;  %v6120_v54 = vmax.f32 %v14942_v24, 0.0  ;;  %v16950_v24 = vld [vmem:[#allocation57_spill] sm:$0xff] }
 0x7d1   :  { %v6311_v60 = vpack.c.bf16 %v6181_v62, %v6165_v37  ;;  %v6312_v11 = vpack.c.bf16 %v6182_v58, %v6166_v5  ;;  %v16928_v62 = vmax.f32 %v14820_v56, 0.0  ;;  %v16934_v56 = vmax.f32 %v16933_v41, 0.0 }
 0x7d2   :  { %v6313_v26 = vpack.c.bf16 %v6183_v16, %v6167_v18  ;;  %v6314_v44 = vpack.c.bf16 %v6184_v63, %v6168_v8  ;;  %v15024_v16 = vpack.c.bf16 %v16930_v0, %v16929_v40  ;;  %v16936_v18 = vmax.f32 %v16935_v12, 0.0  ;;  %v16942_v40 = vld [vmem:[#allocation86_spill] sm:$0xff] }
 0x7d3   :  { %v15017_v36 = vpack.c.bf16 %v16928_v62, %v16927_v20  ;;  %6429 = vmatpush.bf16.msra.mxu0 %v6311_v60  ;;  %6442 = vmatpush.bf16.msra.mxu1 %v6312_v11  ;;  %v16937_v60 = vld [vmem:[#allocation31_spill] sm:$0xff]  ;;  %v16939_v37 = vmax.f32 %v16938_v1, 0.0  ;;  %v16941_v5 = vmax.f32 %v16940_v31, 0.0  ;;  %v6117_v8 = vmax.f32 %v14930_v25, 0.0  ;;  %v16944_v0 = vld [vmem:[#allocation26_spill] sm:$0xff] }
 0x7d4   :  { %v15036_v39 = vpack.c.bf16 %v16936_v18, %v16934_v56  ;;  %v5723_v33 = vadd.f32 %v16937_v60, %v16876_v59  ;;  %v5746_v49 = vpop.f32.mrf.mxu0  ;;  %v5795_v10 = vpop.f32.mrf.mxu1  ;;  %6455 = vmatpush.bf16.msra.mxu2 %v6313_v26  ;;  %6468 = vmatpush.bf16.msra.mxu3 %v6314_v44  ;;  %v6118_v63 = vmax.f32 %v14934_v9, 0.0  ;;  %v6297_v26 = vpack.c.bf16 %v6151_v2, %v6135_v45 }
 0x7d5   :  { %v15044_v58 = vpack.c.bf16 %v16941_v5, %v16939_v37  ;;  %v5844_v11 = vpop.f32.mrf.mxu2  ;;  %v5893_v23 = vpop.f32.mrf.mxu3  ;;  %v6298_v44 = vpack.c.bf16 %v6152_v52, %v6136_v42  ;;  %v6101_v20 = vmax.f32 %v14918_v32, 0.0  ;;  %v6102_v62 = vmax.f32 %v14922_v61, 0.0  ;;  %v16951_v32 = vld [vmem:[#allocation84_spill] sm:$0xff] }
 0x7d6   :  { %v16943_v25 = vmax.f32 %v16942_v40, 0.0  ;;  %v16945_v9 = vmax.f32 %v16944_v0, 0.0  ;;  %v5669_v2 = vadd.f32 %v16950_v24, %v13761_v14  ;;  %v5718_v61 = vadd.f32 %v16951_v32, %v13761_v14 }
 0x7d7   :  { %6430 = vmatpush.bf16.msra.mxu0 %v6295_v29  ;;  %6443 = vmatpush.bf16.msra.mxu1 %v6296_v21  ;;  %v6103_v52 = vmax.f32 %v14926_v55, 0.0  ;;  %v6104_v35 = vmax.f32 %v5723_v33, 0.0  ;;  %v6085_v41 = vmax.f32 %v14902_v51, 0.0  ;;  %v6086_v56 = vmax.f32 %v14906_v17, 0.0  ;;  %v16952_v55 = vld [vmem:[#allocation25_spill] sm:$0xff]  ;;  %v16953_v29 = vld [vmem:[#allocation22_spill] sm:$0xff] }
 0x7d8   :  { %v15056_v57 = vpack.c.bf16 %v16945_v9, %v16943_v25  ;;  %6456 = vmatpush.bf16.msra.mxu2 %v6297_v26  ;;  %6469 = vmatpush.bf16.msra.mxu3 %v6298_v44  ;;  %v6279_v12 = vpack.c.bf16 %v6117_v8, %v6101_v20  ;;  %v6280_v18 = vpack.c.bf16 %v6118_v63, %v6102_v62  ;;  %v6087_v60 = vmax.f32 %v14910_v47, 0.0 }
 0x7d9   :  { %v6088_v45 = vmax.f32 %v14914_v3, 0.0  ;;  %v6281_v42 = vpack.c.bf16 %v6119_v48, %v6103_v52  ;;  %v6282_v1 = vpack.c.bf16 %v6120_v54, %v6104_v35  ;;  %v6069_v37 = vmax.f32 %v14894_v30, 0.0  ;;  %v16958_v35 = vld [vmem:[#allocation14_spill] sm:$0xff] }
 0x7da   :  { %v6070_v31 = vmax.f32 %v14898_v38, 0.0  ;;  %v5747_v33 = vadd.f32 %v5746_v49, %v16952_v55  ;;  %v5796_v5 = vadd.f32 %v5795_v10, %v16952_v55  ;;  %v6071_v51 = vmax.f32 %v5669_v2, 0.0 }
 0x7db   :  { %6431 = vmatpush.bf16.msra.mxu0 %v6279_v12  ;;  %6444 = vmatpush.bf16.msra.mxu1 %v6280_v18  ;;  %v6072_v17 = vmax.f32 %v5718_v61, 0.0  ;;  %v5845_v8 = vadd.f32 %v5844_v11, %v16952_v55  ;;  %v5894_v47 = vadd.f32 %v5893_v23, %v16952_v55  ;;  %v6263_v48 = vpack.c.bf16 %v6085_v41, %v6069_v37  ;;  %v16959_v41 = vld [vmem:[#allocation13_spill] sm:$0xff] }
 0x7dc   :  { %v5748_v63 = vpop.f32.mrf.mxu0  ;;  %v5797_v3 = vpop.f32.mrf.mxu1  ;;  %6457 = vmatpush.bf16.msra.mxu2 %v6281_v42  ;;  %6470 = vmatpush.bf16.msra.mxu3 %v6282_v1  ;;  %v6264_v10 = vpack.c.bf16 %v6086_v56, %v6070_v31  ;;  %v6265_v44 = vpack.c.bf16 %v6087_v60, %v6071_v51  ;;  %v5945_v20 = vmax.f32 %v5747_v33, 0.0  ;;  %v5946_v23 = vmax.f32 %v5796_v5, 0.0  ;;  %v16960_v56 = vld [vmem:[#allocation72_spill] sm:$0xff] }
 0x7dd   :  { %v5749_v30 = vadd.f32 %v5748_v63, %v16953_v29  ;;  %v5798_v38 = vadd.f32 %v5797_v3, %v16953_v29  ;;  %v5846_v21 = vpop.f32.mrf.mxu2  ;;  %v5895_v49 = vpop.f32.mrf.mxu3  ;;  %v6266_v11 = vpack.c.bf16 %v6088_v45, %v6072_v17  ;;  %v5947_v25 = vmax.f32 %v5845_v8, 0.0  ;;  %v16963_v63 = vld [vmem:[#allocation21_spill] sm:$0xff]  ;;  %v16964_v3 = vld [vmem:[#allocation27_spill] sm:$0xff] }
 0x7de   :  { %v5847_v54 = vadd.f32 %v5846_v21, %v16953_v29  ;;  %v5896_v26 = vadd.f32 %v5895_v49, %v16953_v29  ;;  %v5948_v0 = vmax.f32 %v5894_v47, 0.0 }
 0x7df   :  { %v5961_v62 = vmax.f32 %v5749_v30, 0.0  ;;  %v5962_v40 = vmax.f32 %v5798_v38, 0.0  ;;  %6432 = vmatpush.bf16.msra.mxu0 %v6263_v48  ;;  %6445 = vmatpush.bf16.msra.mxu1 %v6264_v10  ;;  %v16965_v10 = vld [vmem:[#allocation55_spill] sm:$0xff] }
 0x7e0   :  { %v5963_v9 = vmax.f32 %v5847_v54, 0.0  ;;  %v5964_v6 = vmax.f32 %v5896_v26, 0.0  ;;  %6458 = vmatpush.bf16.msra.mxu2 %v6265_v44  ;;  %6471 = vmatpush.bf16.msra.mxu3 %v6266_v11 }
 0x7e1   :  { %v15083_v46 = vpack.c.bf16 %v5961_v62, %v5945_v20  ;;  %v15085_v53 = vpack.c.bf16 %v5962_v40, %v5946_v23 }
 0x7e2   :  { %v15087_v7 = vpack.c.bf16 %v5963_v9, %v5947_v25  ;;  %v15089_v24 = vpack.c.bf16 %v5964_v6, %v5948_v0 }
 0x7e3   :  { %16954 = vst [vmem:[#allocation91_spill] sm:$0xff] %v15083_v46  ;;  %6433 = vmatpush.bf16.msra.mxu0 %v14954_v13  ;;  %6446 = vmatpush.bf16.msra.mxu1 %v14956_v27 }
 0x7e4   :  { %16955 = vst [vmem:[#allocation90_spill] sm:$0xff] %v15085_v53  ;;  %v5751_v2 = vpop.f32.mrf.mxu0  ;;  %v5800_v32 = vpop.f32.mrf.mxu1  ;;  %6459 = vmatpush.bf16.msra.mxu2 %v14958_v28  ;;  %6472 = vmatpush.bf16.msra.mxu3 %v14960_v34 }
 0x7e5   :  { %16956 = vst [vmem:[#allocation75_spill] sm:$0xff] %v15087_v7  ;;  %v5849_v61 = vpop.f32.mrf.mxu2  ;;  %v5898_v52 = vpop.f32.mrf.mxu3  ;;  %v5752_v13 = vadd.f32 %v5751_v2, %v16960_v56  ;;  %v5801_v27 = vadd.f32 %v5800_v32, %v16960_v56 }
 0x7e6   :  { %16957 = vst [vmem:[#allocation35_spill] sm:$0xff] %v15089_v24  ;;  %v5850_v34 = vadd.f32 %v5849_v61, %v16960_v56  ;;  %v5899_v28 = vadd.f32 %v5898_v52, %v16960_v56 }
 0x7e7   :  { %6434 = vmatpush.bf16.msra.mxu0 %v16958_v35  ;;  %6447 = vmatpush.bf16.msra.mxu1 %v16959_v41  ;;  %v5977_v1 = vmax.f32 %v5752_v13, 0.0  ;;  %v5978_v37 = vmax.f32 %v5801_v27, 0.0 }
 0x7e8   :  { %6460 = vmatpush.bf16.msra.mxu2 %v15001_v50  ;;  %6473 = vmatpush.bf16.msra.mxu3 %v15005_v15  ;;  %v16961_v50 = vld [vmem:[#allocation47_spill] sm:$0xff] }
 0x7eb   :  { %6435 = vmatpush.bf16.msra.mxu0 %v15011_v22  ;;  %6448 = vmatpush.bf16.msra.mxu1 %v15017_v36 }
 0x7ec   :  { %v5753_v12 = vpop.f32.mrf.mxu0  ;;  %v5802_v18 = vpop.f32.mrf.mxu1  ;;  %6461 = vmatpush.bf16.msra.mxu2 %v15024_v16  ;;  %6474 = vmatpush.bf16.msra.mxu3 %v15030_v4  ;;  %v5979_v16 = vmax.f32 %v5850_v34, 0.0  ;;  %v5980_v4 = vmax.f32 %v5899_v28, 0.0  ;;  %v16966_v28 = vld [vmem:[#allocation24_spill] sm:$0xff] }
 0x7ed   :  { %v5754_v15 = vadd.f32 %v5753_v12, %v16961_v50  ;;  %v5803_v60 = vadd.f32 %v5802_v18, %v16961_v50  ;;  %v5851_v45 = vpop.f32.mrf.mxu2  ;;  %v5900_v42 = vpop.f32.mrf.mxu3 }
 0x7ee   :  { %v5852_v22 = vadd.f32 %v5851_v45, %v16961_v50  ;;  %v5901_v36 = vadd.f32 %v5900_v42, %v16961_v50  ;;  %v16967_v42 = vld [vmem:[#allocation80_spill] sm:$0xff] }
 0x7ef   :  { %v5993_v31 = vmax.f32 %v5754_v15, 0.0  ;;  %v5994_v55 = vmax.f32 %v5803_v60, 0.0  ;;  %6436 = vmatpush.bf16.msra.mxu0 %v15036_v39  ;;  %6449 = vmatpush.bf16.msra.mxu1 %v15044_v58 }
 0x7f0   :  { %v5995_v33 = vmax.f32 %v5852_v22, 0.0  ;;  %v5996_v5 = vmax.f32 %v5901_v36, 0.0  ;;  %6462 = vmatpush.bf16.msra.mxu2 %v15056_v57  ;;  %6475 = vmatpush.bf16.msra.mxu3 %v15062_v43 }
 0x7f1   :  { %v15115_v51 = vpack.c.bf16 %v5993_v31, %v5977_v1  ;;  %v15117_v17 = vpack.c.bf16 %v5994_v55, %v5978_v37 }
 0x7f2   :  { %v15119_v8 = vpack.c.bf16 %v5995_v33, %v5979_v16  ;;  %v15121_v47 = vpack.c.bf16 %v5996_v5, %v5980_v4  ;;  %6437 = vmatmul.bf16.vlgmr.msra.gmra.mxu0 %v16963_v63  ;;  %6450 = vmatmul.bf16.vlgmr.msra.gmra.mxu1 %v16963_v63 }
 0x7f3   :  { %6463 = vmatmul.bf16.vlgmr.msra.gmra.mxu2 %v16963_v63  ;;  %6476 = vmatmul.bf16.vlgmr.msra.gmra.mxu3 %v16963_v63 }
 0x7f4   :  { %16962 = vst [vmem:[#allocation29_spill] sm:$0xff] %v15121_v47  ;;  %v5756_v39 = vpop.f32.mrf.mxu0  ;;  %v5805_v58 = vpop.f32.mrf.mxu1 }
 0x7f5   :  { %v5854_v57 = vpop.f32.mrf.mxu2  ;;  %v5903_v43 = vpop.f32.mrf.mxu3  ;;  %v5757_v29 = vadd.f32 %v5756_v39, %v16964_v3  ;;  %v5806_v30 = vadd.f32 %v5805_v58, %v16964_v3 }
 0x7f6   :  { %v5855_v38 = vadd.f32 %v5854_v57, %v16964_v3  ;;  %v5904_v21 = vadd.f32 %v5903_v43, %v16964_v3 }
 0x7f7   :  { %v6009_v62 = vmax.f32 %v5757_v29, 0.0  ;;  %v6010_v40 = vmax.f32 %v5806_v30, 0.0 }
 0x7f8   :  { %v6011_v9 = vmax.f32 %v5855_v38, 0.0  ;;  %v6012_v6 = vmax.f32 %v5904_v21, 0.0 }
 0x7fc   :  { %v5758_v49 = vpop.f32.mrf.mxu0  ;;  %v5807_v48 = vpop.f32.mrf.mxu1 }
 0x7fd   :  { %v5759_v54 = vadd.f32 %v5758_v49, %v16965_v10  ;;  %v5808_v26 = vadd.f32 %v5807_v48, %v16965_v10  ;;  %v5856_v44 = vpop.f32.mrf.mxu2  ;;  %v5905_v11 = vpop.f32.mrf.mxu3 }
 0x7fe   :  { %v5857_v20 = vadd.f32 %v5856_v44, %v16965_v10  ;;  %v5906_v23 = vadd.f32 %v5905_v11, %v16965_v10 }
 0x7ff   :  { %v6025_v25 = vmax.f32 %v5759_v54, 0.0  ;;  %v6026_v0 = vmax.f32 %v5808_v26, 0.0 }
 0x800   :  { %v6027_v2 = vmax.f32 %v5857_v20, 0.0  ;;  %v6028_v32 = vmax.f32 %v5906_v23, 0.0 }
 0x801   :  { %v15135_v61 = vpack.c.bf16 %v6025_v25, %v6009_v62  ;;  %v15137_v52 = vpack.c.bf16 %v6026_v0, %v6010_v40 }
 0x802   :  { %v15139_v35 = vpack.c.bf16 %v6027_v2, %v6011_v9  ;;  %v15141_v41 = vpack.c.bf16 %v6028_v32, %v6012_v6 }
 0x804   :  { %v5761_v56 = vpop.f32.mrf.mxu0  ;;  %v5810_v13 = vpop.f32.mrf.mxu1 }
 0x805   :  { %v5859_v27 = vpop.f32.mrf.mxu2  ;;  %v5908_v34 = vpop.f32.mrf.mxu3  ;;  %v5762_v12 = vadd.f32 %v5761_v56, %v16966_v28  ;;  %v5811_v18 = vadd.f32 %v5810_v13, %v16966_v28 }
 0x806   :  { %v5860_v50 = vadd.f32 %v5859_v27, %v16966_v28  ;;  %v5909_v15 = vadd.f32 %v5908_v34, %v16966_v28 }
 0x807   :  { %v6041_v16 = vmax.f32 %v5762_v12, 0.0  ;;  %v6042_v4 = vmax.f32 %v5811_v18, 0.0 }
 0x808   :  { %v6043_v39 = vmax.f32 %v5860_v50, 0.0  ;;  %v6044_v58 = vmax.f32 %v5909_v15, 0.0 }
 0x80c   :  { %v5763_v60 = vpop.f32.mrf.mxu0  ;;  %v5812_v45 = vpop.f32.mrf.mxu1 }
 0x80d   :  { %v5764_v22 = vadd.f32 %v5763_v60, %v16967_v42  ;;  %v5813_v36 = vadd.f32 %v5812_v45, %v16967_v42  ;;  %v5861_v1 = vpop.f32.mrf.mxu2  ;;  %v5910_v37 = vpop.f32.mrf.mxu3  ;;  %v16968_v45 = vld [vmem:[#allocation59_spill] sm:$0xff] }
 0x80e   :  { %v5862_v31 = vadd.f32 %v5861_v1, %v16967_v42  ;;  %v5911_v55 = vadd.f32 %v5910_v37, %v16967_v42 }
 0x80f   :  { %v6057_v33 = vmax.f32 %v5764_v22, 0.0  ;;  %v6058_v5 = vmax.f32 %v5813_v36, 0.0 }
 0x810   :  { %v6059_v57 = vmax.f32 %v5862_v31, 0.0  ;;  %v6060_v43 = vmax.f32 %v5911_v55, 0.0 }
 0x811   :  { %v15151_v3 = vpack.c.bf16 %v6057_v33, %v6041_v16  ;;  %v15153_v29 = vpack.c.bf16 %v6058_v5, %v6042_v4  ;;  %v16969_v4 = vld [vmem:[#allocation43_spill] sm:$0xff] }
 0x812   :  { %v15155_v30 = vpack.c.bf16 %v6059_v57, %v6043_v39  ;;  %v15157_v38 = vpack.c.bf16 %v6060_v43, %v6044_v58  ;;  %v16970_v57 = vld [vmem:[#allocation73_spill] sm:$0xff] }
 0x814   :  { %v15159_v21 = vpop.f32.mrf.mxu0  ;;  %v15161_v49 = vpop.f32.mrf.mxu1 }
 0x815   :  { %v15163_v48 = vpop.f32.mrf.mxu2  ;;  %v15165_v10 = vpop.f32.mrf.mxu3 }
 0x81c   :  { %v5768_v54 = vpop.f32.mrf.mxu0  ;;  %v5817_v26 = vpop.f32.mrf.mxu1 }
 0x81d   :  { %v5866_v44 = vpop.f32.mrf.mxu2  ;;  %v5915_v11 = vpop.f32.mrf.mxu3  ;;  %v15168_v42 = vadd.f32 %v5768_v54, %v16968_v45  ;;  %v15171_v22 = vadd.f32 %v5817_v26, %v16968_v45  ;;  %v16971_v26 = vld [vmem:[#allocation41_spill] sm:$0xff] }
 0x81e   :  { %v15174_v36 = vadd.f32 %v5866_v44, %v16968_v45  ;;  %v15177_v1 = vadd.f32 %v5915_v11, %v16968_v45 }
 0x824   :  { %v5771_v20 = vpop.f32.mrf.mxu0  ;;  %v5820_v23 = vpop.f32.mrf.mxu1 }
 0x825   :  { %v5869_v62 = vpop.f32.mrf.mxu2  ;;  %v5918_v40 = vpop.f32.mrf.mxu3  ;;  %v15180_v37 = vadd.f32 %v5771_v20, %v16876_v59  ;;  %v15183_v31 = vadd.f32 %v5820_v23, %v16876_v59 }
 0x826   :  { %v15186_v55 = vadd.f32 %v5869_v62, %v16876_v59  ;;  %v15189_v16 = vadd.f32 %v5918_v40, %v16876_v59 }
 0x82c   :  { %v5773_v25 = vpop.f32.mrf.mxu0  ;;  %v5822_v0 = vpop.f32.mrf.mxu1 }
 0x82d   :  { %v5871_v9 = vpop.f32.mrf.mxu2  ;;  %v5920_v6 = vpop.f32.mrf.mxu3  ;;  %v15192_v33 = vadd.f32 %v5773_v25, %v16969_v4  ;;  %v15195_v5 = vadd.f32 %v5822_v0, %v16969_v4  ;;  %v16972_v0 = vld [vmem:[#allocation92_spill] sm:$0xff] }
 0x82e   :  { %v15198_v39 = vadd.f32 %v5871_v9, %v16969_v4  ;;  %v15201_v58 = vadd.f32 %v5920_v6, %v16969_v4 }
 0x834   :  { %v5776_v2 = vpop.f32.mrf.mxu0  ;;  %v5825_v32 = vpop.f32.mrf.mxu1 }
 0x835   :  { %v5874_v56 = vpop.f32.mrf.mxu2  ;;  %v5923_v13 = vpop.f32.mrf.mxu3  ;;  %v5777_v43 = vadd.f32 %v5776_v2, %v16970_v57  ;;  %v5826_v54 = vadd.f32 %v5825_v32, %v16970_v57 }
 0x836   :  { %v5875_v11 = vadd.f32 %v5874_v56, %v16970_v57  ;;  %v5924_v20 = vadd.f32 %v5923_v13, %v16970_v57 }
 0x83c   :  { %v5778_v27 = vpop.f32.mrf.mxu0  ;;  %v5827_v34 = vpop.f32.mrf.mxu1 }
 0x83d   :  { %v5876_v28 = vpop.f32.mrf.mxu2  ;;  %v5925_v12 = vpop.f32.mrf.mxu3  ;;  %v5779_v9 = vadd.f32 %v5778_v27, %v16972_v0  ;;  %v5828_v6 = vadd.f32 %v5827_v34, %v16972_v0 }
 0x83e   :  { %v5877_v56 = vadd.f32 %v5876_v28, %v16972_v0  ;;  %v5926_v13 = vadd.f32 %v5925_v12, %v16972_v0  ;;  %v15219_v0 = vpop.permute.xlu1 %6322 }
 0x83f   :  { %v6153_v24 = vmax.f32 %v5779_v9, 0.0  ;;  %v6139_v9 = vmax.f32 %v5875_v11, 0.0  ;;  %v5767_v11 = vadd.f32 %v15159_v21, %v13761_v14  ;;  %v6108_v21 = vmax.f32 %v15189_v16, 0.0 }
 0x840   :  { %v6155_v46 = vmax.f32 %v5877_v56, 0.0  ;;  %v6156_v28 = vmax.f32 %v5926_v13, 0.0  ;;  %v5914_v56 = vadd.f32 %v15165_v10, %v13761_v14  ;;  %v6107_v13 = vmax.f32 %v15186_v55, 0.0 }
 0x841   :  { %v6073_v10 = vmax.f32 %v5767_v11, 0.0 }
 0x844   :  { %v5781_v18 = vpop.f32.mrf.mxu0  ;;  %v5830_v50 = vpop.f32.mrf.mxu1 }
 0x845   :  { %v5879_v15 = vpop.f32.mrf.mxu2  ;;  %v5928_v60 = vpop.f32.mrf.mxu3  ;;  %v5782_v44 = vadd.f32 %v5781_v18, %v16971_v26  ;;  %v5831_v59 = vadd.f32 %v5830_v50, %v16971_v26 }
 0x846   :  { %v5880_v23 = vadd.f32 %v5879_v15, %v16971_v26  ;;  %v5929_v62 = vadd.f32 %v5928_v60, %v16971_v26 }
 0x847   :  { %v6169_v45 = vmax.f32 %v5782_v44, 0.0  ;;  %v6170_v4 = vmax.f32 %v5831_v59, 0.0  ;;  %v6122_v44 = vmax.f32 %v15195_v5, 0.0  ;;  %v6137_v59 = vmax.f32 %v5777_v43, 0.0 }
 0x848   :  { %v6171_v26 = vmax.f32 %v5880_v23, 0.0  ;;  %v6172_v34 = vmax.f32 %v5929_v62, 0.0  ;;  %v6123_v23 = vmax.f32 %v15198_v39, 0.0  ;;  %v6124_v62 = vmax.f32 %v15201_v58, 0.0 }
 0x84c   :  { %v5783_v40 = vpop.f32.mrf.mxu0  ;;  %v5832_v25 = vpop.f32.mrf.mxu1 }
 0x84d   :  { %v5784_v2 = vadd.f32 %v5783_v40, %v16802_v19  ;;  %v5833_v32 = vadd.f32 %v5832_v25, %v16802_v19  ;;  %v5881_v18 = vpop.f32.mrf.mxu2  ;;  %v5930_v50 = vpop.f32.mrf.mxu3  ;;  %v6154_v25 = vmax.f32 %v5828_v6, 0.0  ;;  %v6140_v6 = vmax.f32 %v5924_v20, 0.0 }
 0x84e   :  { %v5882_v15 = vadd.f32 %v5881_v18, %v16802_v19  ;;  %v5931_v60 = vadd.f32 %v5930_v50, %v16802_v19  ;;  %v6121_v19 = vmax.f32 %v15192_v33, 0.0  ;;  %v6106_v20 = vmax.f32 %v15183_v31, 0.0 }
 0x84f   :  { %v6185_v57 = vmax.f32 %v5784_v2, 0.0  ;;  %v6186_v27 = vmax.f32 %v5833_v32, 0.0  ;;  %v6138_v2 = vmax.f32 %v5826_v54, 0.0 }
 0x850   :  { %v6187_v63 = vmax.f32 %v5882_v15, 0.0  ;;  %v6188_v40 = vmax.f32 %v5931_v60, 0.0  ;;  %v6284_v15 = vpack.c.bf16 %v6122_v44, %v6106_v20  ;;  %v6091_v60 = vmax.f32 %v15174_v36, 0.0 }
 0x851   :  { %v6315_v7 = vpack.c.bf16 %v6185_v57, %v6169_v45  ;;  %v6316_v53 = vpack.c.bf16 %v6186_v27, %v6170_v4  ;;  %v6300_v50 = vpack.c.bf16 %v6154_v25, %v6138_v2  ;;  %v6285_v45 = vpack.c.bf16 %v6123_v23, %v6107_v13  ;;  %v16975_v23 = vld [vmem:[#allocation90_spill] sm:$0xff] }
 0x852   :  { %v6317_v47 = vpack.c.bf16 %v6187_v63, %v6171_v26  ;;  %v6318_v12 = vpack.c.bf16 %v6188_v40, %v6172_v34  ;;  %v6299_v63 = vpack.c.bf16 %v6153_v24, %v6137_v59  ;;  %v6105_v24 = vmax.f32 %v15180_v37, 0.0 }
 0x853   :  { %6481 = vmatpush.bf16.msrb.mxu0 %v6315_v7  ;;  %6494 = vmatpush.bf16.msrb.mxu1 %v6316_v53  ;;  %v6301_v7 = vpack.c.bf16 %v6155_v46, %v6139_v9  ;;  %v6302_v53 = vpack.c.bf16 %v6156_v28, %v6140_v6  ;;  %v5865_v46 = vadd.f32 %v15163_v48, %v13761_v14  ;;  %v6090_v37 = vmax.f32 %v15171_v22, 0.0 }
 0x854   :  { %v6334_v32 = vpop.f32.mrf.mxu0  ;;  %v6347_v18 = vpop.f32.mrf.mxu1  ;;  %6507 = vmatpush.bf16.msrb.mxu2 %v6317_v47  ;;  %6520 = vmatpush.bf16.msrb.mxu3 %v6318_v12  ;;  %v5816_v47 = vadd.f32 %v15161_v49, %v13761_v14  ;;  %v6089_v49 = vmax.f32 %v15168_v42, 0.0  ;;  %v6283_v31 = vpack.c.bf16 %v6121_v19, %v6105_v24  ;;  %v6092_v48 = vmax.f32 %v15177_v1, 0.0 }
 0x855   :  { %v6335_v33 = vadd.f32 %v6334_v32, %v15219_v0  ;;  %v6348_v5 = vadd.f32 %v6347_v18, %v15219_v0  ;;  %v6360_v43 = vpop.f32.mrf.mxu2  ;;  %v6373_v54 = vpop.f32.mrf.mxu3  ;;  %v6286_v14 = vpack.c.bf16 %v6124_v62, %v6108_v21  ;;  %v6075_v16 = vmax.f32 %v5865_v46, 0.0  ;;  %v16978_v62 = vld [vmem:[#allocation21_spill] sm:$0xff] }
 0x856   :  { %v6361_v39 = vadd.f32 %v6360_v43, %v15219_v0  ;;  %v6374_v58 = vadd.f32 %v6373_v54, %v15219_v0  ;;  %v6074_v55 = vmax.f32 %v5816_v47, 0.0  ;;  %v6076_v4 = vmax.f32 %v5914_v56, 0.0 }
 0x857   :  { %6533 = vst [vmem:[#allocation2] sm:$0xff] %v6335_v33  ;;  %6482 = vmatpush.bf16.msrb.mxu0 %v6299_v63  ;;  %6495 = vmatpush.bf16.msrb.mxu1 %v6300_v50  ;;  %v6267_v22 = vpack.c.bf16 %v6089_v49, %v6073_v10  ;;  %v6269_v36 = vpack.c.bf16 %v6091_v60, %v6075_v16 }
 0x858   :  { %6534 = vst [vmem:[#allocation2 + $0x8] sm:$0xff] %v6348_v5  ;;  %6508 = vmatpush.bf16.msrb.mxu2 %v6301_v7  ;;  %6521 = vmatpush.bf16.msrb.mxu3 %v6302_v53  ;;  %v6268_v27 = vpack.c.bf16 %v6090_v37, %v6074_v55  ;;  %v6270_v40 = vpack.c.bf16 %v6092_v48, %v6076_v4 }
 0x859   :  { %6535 = vst [vmem:[#allocation2 + $0x10] sm:$0xff] %v6361_v39 }
 0x85a   :  { %6536 = vst [vmem:[#allocation2 + $0x18] sm:$0xff] %v6374_v58 }
 0x85b   :  { %6483 = vmatpush.bf16.msrb.mxu0 %v6283_v31  ;;  %6496 = vmatpush.bf16.msrb.mxu1 %v6284_v15 }
 0x85c   :  { %v6336_v57 = vpop.f32.mrf.mxu0  ;;  %v6349_v42 = vpop.f32.mrf.mxu1  ;;  %6509 = vmatpush.bf16.msrb.mxu2 %v6285_v45  ;;  %6522 = vmatpush.bf16.msrb.mxu3 %v6286_v14 }
 0x85d   :  { %v6362_v26 = vpop.f32.mrf.mxu2  ;;  %v6375_v34 = vpop.f32.mrf.mxu3 }
 0x85f   :  { %6484 = vmatpush.bf16.msrb.mxu0 %v6267_v22  ;;  %6497 = vmatpush.bf16.msrb.mxu1 %v6268_v27 }
 0x860   :  { %6510 = vmatpush.bf16.msrb.mxu2 %v6269_v36  ;;  %6523 = vmatpush.bf16.msrb.mxu3 %v6270_v40 }
 0x863   :  { %6485 = vmatpush.bf16.msrb.mxu0 %v15151_v3  ;;  %6498 = vmatpush.bf16.msrb.mxu1 %v15153_v29 }
 0x864   :  { %v6386_v1 = vpop.f32.mrf.mxu0  ;;  %v6399_v25 = vpop.f32.mrf.mxu1  ;;  %6511 = vmatpush.bf16.msrb.mxu2 %v15155_v30  ;;  %6524 = vmatpush.bf16.msrb.mxu3 %v15157_v38  ;;  %v16973_v30 = vld [vmem:[#allocation29_spill] sm:$0xff] }
 0x865   :  { %v6387_v28 = vadd.f32 %v6386_v1, %v15219_v0  ;;  %v6400_v12 = vadd.f32 %v6399_v25, %v15219_v0  ;;  %v6412_v19 = vpop.f32.mrf.mxu2  ;;  %v6425_v44 = vpop.f32.mrf.mxu3 }
 0x866   :  { %v6413_v59 = vadd.f32 %v6412_v19, %v15219_v0  ;;  %v6426_v2 = vadd.f32 %v6425_v44, %v15219_v0 }
 0x867   :  { %6537 = vst [vmem:[#allocation2 + $0x20] sm:$0xff] %v6387_v28  ;;  %6486 = vmatpush.bf16.msrb.mxu0 %v15135_v61  ;;  %6499 = vmatpush.bf16.msrb.mxu1 %v15137_v52  ;;  %v16974_v52 = vld [vmem:[#allocation91_spill] sm:$0xff] }
 0x868   :  { %6538 = vst [vmem:[#allocation2 + $0x28] sm:$0xff] %v6400_v12  ;;  %6512 = vmatpush.bf16.msrb.mxu2 %v15139_v35  ;;  %6525 = vmatpush.bf16.msrb.mxu3 %v15141_v41  ;;  %v16976_v35 = vld [vmem:[#allocation75_spill] sm:$0xff] }
 0x869   :  { %6539 = vst [vmem:[#allocation2 + $0x30] sm:$0xff] %v6413_v59  ;;  %v16977_v41 = vld [vmem:[#allocation35_spill] sm:$0xff] }
 0x86a   :  { %6540 = vst [vmem:[#allocation2 + $0x38] sm:$0xff] %v6426_v2 }
 0x86b   :  { %6487 = vmatpush.bf16.msrb.mxu0 %v15115_v51  ;;  %6500 = vmatpush.bf16.msrb.mxu1 %v15117_v17 }
 0x86c   :  { %v6388_v3 = vpop.f32.mrf.mxu0  ;;  %v6401_v29 = vpop.f32.mrf.mxu1  ;;  %6513 = vmatpush.bf16.msrb.mxu2 %v15119_v8  ;;  %6526 = vmatpush.bf16.msrb.mxu3 %v16973_v30 }
 0x86d   :  { %v6414_v61 = vpop.f32.mrf.mxu2  ;;  %v6427_v38 = vpop.f32.mrf.mxu3 }
 0x86f   :  { %6488 = vmatpush.bf16.msrb.mxu0 %v16974_v52  ;;  %6501 = vmatpush.bf16.msrb.mxu1 %v16975_v23 }
 0x870   :  { %6514 = vmatpush.bf16.msrb.mxu2 %v16976_v35  ;;  %6527 = vmatpush.bf16.msrb.mxu3 %v16977_v41 }
 0x872   :  { %6489 = vmatmul.bf16.vlgmr.msrb.gmra.mxu0 %v16978_v62  ;;  %6502 = vmatmul.bf16.vlgmr.msrb.gmra.mxu1 %v16978_v62 }
 0x873   :  { %6515 = vmatmul.bf16.vlgmr.msrb.gmra.mxu2 %v16978_v62  ;;  %6528 = vmatmul.bf16.vlgmr.msrb.gmra.mxu3 %v16978_v62 }
 0x874   :  { %v6438_v51 = vpop.f32.mrf.mxu0  ;;  %v6451_v17 = vpop.f32.mrf.mxu1 }
 0x875   :  { %v6439_v8 = vadd.f32 %v6438_v51, %v15219_v0  ;;  %v6452_v9 = vadd.f32 %v6451_v17, %v15219_v0 }
 0x876   :  { %v6464_v6 = vpop.f32.mrf.mxu2  ;;  %v6477_v32 = vpop.f32.mrf.mxu3 }
 0x877   :  { %6541 = vst [vmem:[#allocation2 + $0x40] sm:$0xff] %v6439_v8  ;;  %v6465_v18 = vadd.f32 %v6464_v6, %v15219_v0  ;;  %v6478_v63 = vadd.f32 %v6477_v32, %v15219_v0 }
 0x878   :  { %6542 = vst [vmem:[#allocation2 + $0x48] sm:$0xff] %v6452_v9 }
 0x879   :  { %6543 = vst [vmem:[#allocation2 + $0x50] sm:$0xff] %v6465_v18 }
 0x87a   :  { %6544 = vst [vmem:[#allocation2 + $0x58] sm:$0xff] %v6478_v63 }
 0x87c   :  { %v6440_v50 = vpop.f32.mrf.mxu0  ;;  %v6453_v33 = vpop.f32.mrf.mxu1 }
 0x87e   :  { %v6466_v5 = vpop.f32.mrf.mxu2  ;;  %v6479_v43 = vpop.f32.mrf.mxu3 }
 0x8ef   :  { %v6490_v54 = vpop.f32.mrf.mxu0  ;;  %v6503_v7 = vpop.f32.mrf.mxu1 }
 0x8f0   :  { %v6491_v53 = vadd.f32 %v6490_v54, %v15219_v0  ;;  %v6504_v39 = vadd.f32 %v6503_v7, %v15219_v0 }
 0x8f2   :  { %6545 = vst [vmem:[#allocation2 + $0x60] sm:$0xff] %v6491_v53 }
 0x8f3   :  { %6546 = vst [vmem:[#allocation2 + $0x68] sm:$0xff] %v6504_v39 }
 0x8f6   :  { %v6516_v58 = vpop.f32.mrf.mxu2  ;;  %v6529_v11 = vpop.f32.mrf.mxu3 }
 0x8f7   :  { %v6492_v47 = vpop.f32.mrf.mxu0  ;;  %v6505_v24 = vpop.f32.mrf.mxu1  ;;  %v6517_v20 = vadd.f32 %v6516_v58, %v15219_v0  ;;  %v6530_v46 = vadd.f32 %v6529_v11, %v15219_v0 }
 0x8f9   :  { %6547 = vst [vmem:[#allocation2 + $0x70] sm:$0xff] %v6517_v20 }
 0x8fa   :  { %6548 = vst [vmem:[#allocation2 + $0x78] sm:$0xff] %v6530_v46 }
 0x8fb   :  { %6559 = dma.vmem_to_hbm [thread:$0]  %s6555_s17, 2048, %s6557_s20, [#allocation3]  }
 0x8fe   :  { %v6518_v56 = vpop.f32.mrf.mxu2  ;;  %v6531_v13 = vpop.f32.mrf.mxu3 }
 0x8ff   :  { %6868 = dma.done.wait [#allocation3], 2048  }
 0x900   :  { %6869 = vsyncadd [#allocation3], 4294965248 }
 0x901   :  { %6564 = vsyncpa [#allocation3], 1 }

</bundles_post_ra>
